<compile_context>
chip_gen: v5e
topology: v5e:2x2
jax: 0.10.0
libtpu: 0.0.40
codegen_flags: <defaults>
</compile_context>

<pallas_src>
import functools

import jax
import jax.numpy as jnp
from jax import lax
from jax.experimental import pallas as pl
from jax.experimental.pallas import tpu as pltpu

EPS = 1e-5        # BatchNorm eps
ATTN_EPS = 1e-9   # offset-attention column-normalization eps


# ----------------------------------------------------------------------------
# Kernel: full SA_Layer forward for one batch block of `bblk` elements
# ----------------------------------------------------------------------------
def sa_layer_kernel(x_ref, wqkv_ref, wt_ref, b_ref, o_ref):
    """x_ref: (bblk, C, N) bf16.  wqkv: (C/2 + C, C) bf16.  wt: (C, C) bf16 with
    inference BatchNorm folded in.  b: (C, 2) f32 = [v_conv bias | folded BN bias]."""
    bblk, C, N = x_ref.shape
    d = C // 4

    dot = functools.partial(lax.dot_general,
                            preferred_element_type=jnp.float32)
    cn = (((1,), (0,)), ((), ()))   # (M, K) @ (K, N)
    cc = (((0,), (0,)), ((), ()))   # contract dim 0 with dim 0 (lhs "transposed")

    # Weight/bias blocks use constant index maps -> resident across the grid.
    wqkv = wqkv_ref[...]            # (2d + C, C) bf16
    wt = wt_ref[...]                # (C, C) bf16 (BatchNorm folded)
    bv = b_ref[:, 0:1]              # (C, 1) f32, v_conv bias
    bt = b_ref[:, 1:2]              # (C, 1) f32, trans_conv + folded BN bias
    # Column-sum matvec operand (hoisted out of the batch loop).  Eight
    # identical result rows keep the MXU output sublane-tile aligned; row 0
    # is the one consumed.
    ones_cs = jnp.ones((N, 8), jnp.bfloat16)

    # Static unroll over the batch block: keeps several independent small
    # matmuls in flight per grid step (MXU fill/drain latency hiding).
    for i in range(bblk):
        xb = x_ref[i]                                      # (C, N) bf16

        # Fused Q/K/V projection: one (2d + C, C) x (C, N) MXU matmul.
        qkv = dot(wqkv, xb, cn)                            # (2d + C, N) f32
        q = qkv[:d, :].astype(jnp.bfloat16)                # (d, N), bf16 right away
        k = qkv[d:2 * d, :].astype(jnp.bfloat16)           # (d, N), bf16 right away
        v = qkv[2 * d:, :] + bv                            # (C, N) f32

        # energy[a, b] = sum_c q[c, a] * k[c, b]           (torch: x_q @ x_k)
        # q is only (C/4, N), so any implicit transpose Mosaic emits is cheap.
        e = dot(q, k, cc)                                  # (N, N) f32

        # Row softmax.  The 1/rowsum scale rides inside the mandatory
        # f32 -> bf16 cast pass, so the softmax is materialized exactly once,
        # as bf16 — the only NxN buffer kept live.
        m = jnp.max(e, axis=-1, keepdims=True)             # (N, 1)
        pf = jnp.exp(e - m)                                # (N, N) f32
        rs = jnp.sum(pf, axis=-1, keepdims=True)           # (N, 1), exact
        pn = (pf * (1.0 / rs)).astype(jnp.bfloat16)        # (N, N) bf16 softmax

        # Column normalization hoisted out of the NxN domain: column sums via
        # an MXU matvec (offloads the XLU), reciprocal deferred onto the
        # (C, N) result of the x_r matmul.
        cs = dot(ones_cs, pn, cc)[0:1, :]                  # (1, N) f32
        cinv = 1.0 / (ATTN_EPS + cs)                       # (1, N), exact recip

        # x_r[c, j] = sum_a v[c, a] * attention[a, j]      (torch: x_v @ attention)
        x_r = dot(v.astype(jnp.bfloat16), pn, cn) * cinv   # (C, N) f32

        # trans_conv(x - x_r) with BatchNorm folded into wt/bt, ReLU, residual.
        diff = (xb - x_r).astype(jnp.bfloat16)             # f32 math -> bf16 operand
        t = dot(wt, diff, cn) + bt                         # (C, N) f32
        o_ref[i] = xb + jnp.maximum(t, 0.0)                # residual add in f32


# ----------------------------------------------------------------------------
# pallas_call wrapper (single fused call, weights resident across batch grid)
# ----------------------------------------------------------------------------
def sa_layer(x, p, bblk=None):
    B, C, N = x.shape
    d = C // 4
    assert C % 4 == 0 and d % 8 == 0, "need C/4 to be a multiple of 8 sublanes"
    assert N % 128 == 0, "need N to be a multiple of 128 lanes"

    if bblk is None:
        # Largest batch block that divides B, keeps >= 2 grid steps (v7x has
        # two TensorCores sharing the parallel grid axis), and keeps the NxN
        # temporaries of the unrolled loop modest.
        bblk = 1
        for cand in range(1, B + 1):
            if B % cand == 0 and B // cand >= 2 and cand * N * N * 10 <= (8 << 20):
                bblk = cand
    assert B % bblk == 0
    grid = (B // bblk,)

    # Fold inference-mode BatchNorm into the trans_conv weight/bias (f32), then
    # cast the matmul weights to bf16.  (Not valid for training-mode BN.)
    s = p["gamma"] * lax.rsqrt(p["var"] + EPS)                    # (C,)
    wt_folded = (s[:, None] * p["wt"]).astype(jnp.bfloat16)       # (C, C)
    bt_folded = s * (p["bt"] - p["mean"]) + p["beta"]             # (C,)

    # Stack q/k/v projection weights into one tall MXU operand.
    wqkv = jnp.concatenate([p["wq"], p["wk"], p["wv"]],
                           axis=0).astype(jnp.bfloat16)           # (2d + C, C)
    # Merge the two per-channel biases into a single (C, 2) operand.
    biases = jnp.stack([p["bv"], bt_folded], axis=1).astype(jnp.float32)

    # bf16 input halves the per-step HBM read; the output stays f32 so the
    # residual add keeps full accuracy.
    xb = x.astype(jnp.bfloat16)

    # Explicit VMEM budget: never below the default scoped limit, capped at
    # 64 MiB so it remains valid on v7x (64 MiB physical VMEM).
    weights_b = (2 * d + C) * C * 2 + C * C * 2 + C * 128 * 4
    io_b = 2 * bblk * C * N * (2 + 4)                 # double-buffered in/out blocks
    attn_b = bblk * N * N * (4 + 4 + 2)               # energy + exp + bf16 softmax
    misc_b = 3 * bblk * (2 * d + C) * N * 4           # qkv / v / x_r style temporaries
    vmem_limit = min(64 << 20,
                     max(32 << 20, 2 * (weights_b + io_b + attn_b + misc_b)))

    blk = pl.BlockSpec((bblk, C, N), lambda b: (b, 0, 0))
    return pl.pallas_call(
        sa_layer_kernel,
        out_shape=jax.ShapeDtypeStruct((B, C, N), jnp.float32),
        grid=grid,
        in_specs=[blk,
                  pl.BlockSpec((2 * d + C, C), lambda b: (0, 0)),
                  pl.BlockSpec((C, C), lambda b: (0, 0)),
                  pl.BlockSpec((C, 2), lambda b: (0, 0))],
        out_specs=blk,
        compiler_params=pltpu.CompilerParams(
            dimension_semantics=("parallel",),
            vmem_limit_bytes=vmem_limit),
    )(xb, wqkv, wt_folded, biases)


# ----------------------------------------------------------------------------
# Deterministic parameter init (synthetic; not a checkpoint load)
# ----------------------------------------------------------------------------
def init_params(key, C):
    ks = jax.random.split(key, 10)
    u = lambda k, shape, lo, hi: jax.random.uniform(k, shape, jnp.float32, lo, hi)
    w = 0.05
    d = C // 4
    return dict(
        wq=u(ks[0], (d, C), -w, w),
        wk=u(ks[1], (d, C), -w, w),
        wv=u(ks[2], (C, C), -w, w),
        bv=u(ks[3], (C,), -w, w),
        wt=u(ks[4], (C, C), -w, w),
        bt=u(ks[5], (C,), -w, w),
        gamma=u(ks[6], (C,), 0.5, 1.5),
        beta=u(ks[7], (C,), -0.1, 0.1),
        mean=u(ks[8], (C,), -0.1, 0.1),
        var=u(ks[9], (C,), 0.5, 1.5),
    )


# ----------------------------------------------------------------------------
# Pure-JAX reference (mirrors torch SA_Layer.forward op-for-op, f32)
# ----------------------------------------------------------------------------
def sa_layer_ref(p, x):
    conv = lambda w, a: jnp.einsum("oc,bcn->bon", w, a)
    q = conv(p["wq"], x)                                          # (B, C/4, N)
    k = conv(p["wk"], x)                                          # (B, C/4, N)
    v = conv(p["wv"], x) + p["bv"][None, :, None]                 # (B, C, N)
    energy = jnp.einsum("bci,bcj->bij", q, k)                     # x_q @ x_k
    attention = jax.nn.softmax(energy, axis=-1)
    attention = attention / (ATTN_EPS + attention.sum(axis=1, keepdims=True))
    x_r = jnp.einsum("bci,bij->bcj", v, attention)                # x_v @ attention
    t = conv(p["wt"], x - x_r) + p["bt"][None, :, None]
    bn = ((t - p["mean"][None, :, None])
          / jnp.sqrt(p["var"][None, :, None] + EPS)
          * p["gamma"][None, :, None] + p["beta"][None, :, None])
    return x + jnp.maximum(bn, 0.0)


# ----------------------------------------------------------------------------
if __name__ == "__main__":
    B, C, N = 4, 128, 256     # -> bblk=2, grid=(2,): both v7x TensorCores busy
    key = jax.random.PRNGKey(0)
    kx, kp = jax.random.split(key)
    x = jax.random.normal(kx, (B, C, N), dtype=jnp.float32)
    params = init_params(kp, C)

    fwd = jax.jit(sa_layer)
    out = jax.block_until_ready(fwd(x, params))
    assert out.shape == (B, C, N), out.shape
    assert bool(jnp.isfinite(out).all())

    ref = sa_layer_ref(params, x)
    rel = jnp.linalg.norm(out - ref) / (jnp.linalg.norm(ref) + 1e-12)
    assert float(rel) < 2e-2, f"relative error too large: {float(rel)}"

    print("KERNEL_OK")
</pallas_src>

<mosaic_0001>
module attributes {stable_mosaic.version = 11 : i64} {
  func.func @sa_layer_kernel(%arg0: i32, %arg1: memref<2x128x256xbf16, #tpu.memory_space<vmem>>, %arg2: memref<192x128xbf16, #tpu.memory_space<vmem>>, %arg3: memref<128x128xbf16, #tpu.memory_space<vmem>>, %arg4: memref<128x2xf32, #tpu.memory_space<vmem>>, %arg5: memref<2x128x256xf32, #tpu.memory_space<vmem>>) attributes {dimension_semantics = [#tpu.dimension_semantics<parallel>], iteration_bounds = array<i64: 2>, scalar_prefetch = 0 : i64, scratch_operands = 0 : i64, tpu.core_type = #tpu.core_type<tc>, window_params = [{transform_indices = @transform_0, window_bounds = array<i64: 2, 128, 256>}, {pipeline_mode = #tpu.pipeline_mode<synchronous>, transform_indices = @transform_1, window_bounds = array<i64: 192, 128>}, {pipeline_mode = #tpu.pipeline_mode<synchronous>, transform_indices = @transform_2, window_bounds = array<i64: 128, 128>}, {pipeline_mode = #tpu.pipeline_mode<synchronous>, transform_indices = @transform_3, window_bounds = array<i64: 128, 2>}, {transform_indices = @transform_4, window_bounds = array<i64: 2, 128, 256>}]} {
    %c0 = arith.constant 0 : index
    %c0_0 = arith.constant 0 : index
    %0 = vector.load %arg2[%c0, %c0_0] : memref<192x128xbf16, #tpu.memory_space<vmem>>, vector<192x128xbf16>
    %c0_1 = arith.constant 0 : index
    %c0_2 = arith.constant 0 : index
    %1 = vector.load %arg3[%c0_1, %c0_2] : memref<128x128xbf16, #tpu.memory_space<vmem>>, vector<128x128xbf16>
    %c0_3 = arith.constant 0 : index
    %c0_4 = arith.constant 0 : index
    %2 = vector.load %arg4[%c0_3, %c0_4] : memref<128x2xf32, #tpu.memory_space<vmem>>, vector<128x1xf32>
    %c0_5 = arith.constant 0 : index
    %c1 = arith.constant 1 : index
    %3 = vector.load %arg4[%c0_5, %c1] : memref<128x2xf32, #tpu.memory_space<vmem>>, vector<128x1xf32>
    %cst = arith.constant 1.000000e+00 : bf16
    %4 = vector.broadcast %cst : bf16 to vector<256x8xbf16>
    %c0_6 = arith.constant 0 : index
    %c0_7 = arith.constant 0 : index
    %c0_8 = arith.constant 0 : index
    %5 = vector.load %arg1[%c0_6, %c0_7, %c0_8] : memref<2x128x256xbf16, #tpu.memory_space<vmem>>, vector<1x128x256xbf16>
    %6 = vector.shape_cast %5 : vector<1x128x256xbf16> to vector<128x256xbf16>
    %cst_9 = arith.constant dense<0.000000e+00> : vector<192x256xf32>
    %7 = tpu.matmul %0, %6, %cst_9 {dimension_numbers = #tpu.dot_dimension_numbers<[1], [0], [0], [1], [0, 0, 1, 1], [], []>} : vector<192x128xbf16>, vector<128x256xbf16>, vector<192x256xf32> -> vector<192x256xf32>
    %8 = vector.extract_strided_slice %7 {offsets = [0, 0], sizes = [32, 256], strides = [1, 1]} : vector<192x256xf32> to vector<32x256xf32>
    %9 = arith.truncf %8 : vector<32x256xf32> to vector<32x256xbf16>
    %10 = vector.extract_strided_slice %7 {offsets = [32, 0], sizes = [32, 256], strides = [1, 1]} : vector<192x256xf32> to vector<32x256xf32>
    %11 = arith.truncf %10 : vector<32x256xf32> to vector<32x256xbf16>
    %12 = vector.extract_strided_slice %7 {offsets = [64, 0], sizes = [128, 256], strides = [1, 1]} : vector<192x256xf32> to vector<128x256xf32>
    %13 = vector.broadcast %2 : vector<128x1xf32> to vector<128x256xf32>
    %14 = arith.addf %12, %13 : vector<128x256xf32>
    %cst_10 = arith.constant dense<0.000000e+00> : vector<256x256xf32>
    %15 = tpu.matmul %9, %11, %cst_10 {dimension_numbers = #tpu.dot_dimension_numbers<[0], [0], [1], [1], [0, 1, 1, 1], [], []>} : vector<32x256xbf16>, vector<32x256xbf16>, vector<256x256xf32> -> vector<256x256xf32>
    %cst_11 = arith.constant dense<0xFF800000> : vector<256xf32>
    %16 = vector.multi_reduction <maximumf>, %15, %cst_11 [1] : vector<256x256xf32> to vector<256xf32>
    %17 = vector.shape_cast %16 : vector<256xf32> to vector<256x1xf32>
    %18 = vector.broadcast %17 : vector<256x1xf32> to vector<256x256xf32>
    %19 = arith.subf %15, %18 : vector<256x256xf32>
    %20 = math.exp %19 : vector<256x256xf32>
    %cst_12 = arith.constant dense<0.000000e+00> : vector<256xf32>
    %21 = vector.multi_reduction <add>, %20, %cst_12 [1] : vector<256x256xf32> to vector<256xf32>
    %22 = vector.shape_cast %21 : vector<256xf32> to vector<256x1xf32>
    %cst_13 = arith.constant 1.000000e+00 : f32
    %23 = vector.broadcast %cst_13 : f32 to vector<256x1xf32>
    %24 = arith.divf %23, %22 : vector<256x1xf32>
    %25 = vector.broadcast %24 : vector<256x1xf32> to vector<256x256xf32>
    %26 = arith.mulf %20, %25 : vector<256x256xf32>
    %27 = arith.truncf %26 : vector<256x256xf32> to vector<256x256xbf16>
    %cst_14 = arith.constant dense<0.000000e+00> : vector<8x256xf32>
    %28 = tpu.matmul %4, %27, %cst_14 {dimension_numbers = #tpu.dot_dimension_numbers<[0], [0], [1], [1], [0, 1, 1, 1], [], []>} : vector<256x8xbf16>, vector<256x256xbf16>, vector<8x256xf32> -> vector<8x256xf32>
    %29 = vector.extract_strided_slice %28 {offsets = [0, 0], sizes = [1, 256], strides = [1, 1]} : vector<8x256xf32> to vector<1x256xf32>
    %cst_15 = arith.constant 9.99999971E-10 : f32
    %30 = vector.broadcast %cst_15 : f32 to vector<1x256xf32>
    %31 = arith.addf %30, %29 : vector<1x256xf32>
    %cst_16 = arith.constant 1.000000e+00 : f32
    %32 = vector.broadcast %cst_16 : f32 to vector<1x256xf32>
    %33 = arith.divf %32, %31 : vector<1x256xf32>
    %34 = arith.truncf %14 : vector<128x256xf32> to vector<128x256xbf16>
    %cst_17 = arith.constant dense<0.000000e+00> : vector<128x256xf32>
    %35 = tpu.matmul %34, %27, %cst_17 {dimension_numbers = #tpu.dot_dimension_numbers<[1], [0], [0], [1], [0, 0, 1, 1], [], []>} : vector<128x256xbf16>, vector<256x256xbf16>, vector<128x256xf32> -> vector<128x256xf32>
    %36 = vector.broadcast %33 : vector<1x256xf32> to vector<128x256xf32>
    %37 = arith.mulf %35, %36 : vector<128x256xf32>
    %38 = arith.extf %6 : vector<128x256xbf16> to vector<128x256xf32>
    %39 = arith.subf %38, %37 : vector<128x256xf32>
    %40 = arith.truncf %39 : vector<128x256xf32> to vector<128x256xbf16>
    %cst_18 = arith.constant dense<0.000000e+00> : vector<128x256xf32>
    %41 = tpu.matmul %1, %40, %cst_18 {dimension_numbers = #tpu.dot_dimension_numbers<[1], [0], [0], [1], [0, 0, 1, 1], [], []>} : vector<128x128xbf16>, vector<128x256xbf16>, vector<128x256xf32> -> vector<128x256xf32>
    %42 = vector.broadcast %3 : vector<128x1xf32> to vector<128x256xf32>
    %43 = arith.addf %41, %42 : vector<128x256xf32>
    %cst_19 = arith.constant 0.000000e+00 : f32
    %44 = vector.broadcast %cst_19 : f32 to vector<128x256xf32>
    %45 = arith.maximumf %43, %44 : vector<128x256xf32>
    %46 = arith.extf %6 : vector<128x256xbf16> to vector<128x256xf32>
    %47 = arith.addf %46, %45 : vector<128x256xf32>
    %c0_20 = arith.constant 0 : index
    %c0_21 = arith.constant 0 : index
    %c0_22 = arith.constant 0 : index
    %48 = vector.load %arg5[%c0_20, %c0_21, %c0_22] : memref<2x128x256xf32, #tpu.memory_space<vmem>>, vector<1x128x256xf32>
    %49 = vector.shape_cast %48 : vector<1x128x256xf32> to vector<128x256xf32>
    %50 = vector.shape_cast %47 : vector<128x256xf32> to vector<1x128x256xf32>
    tpu.vector_store %arg5[%c0_20, %c0_21, %c0_22], %50 {strides = array<i32>} : memref<2x128x256xf32, #tpu.memory_space<vmem>>, vector<1x128x256xf32>,
    %c1_23 = arith.constant 1 : index
    %c0_24 = arith.constant 0 : index
    %c0_25 = arith.constant 0 : index
    %51 = vector.load %arg1[%c1_23, %c0_24, %c0_25] : memref<2x128x256xbf16, #tpu.memory_space<vmem>>, vector<1x128x256xbf16>
    %52 = vector.shape_cast %51 : vector<1x128x256xbf16> to vector<128x256xbf16>
    %cst_26 = arith.constant dense<0.000000e+00> : vector<192x256xf32>
    %53 = tpu.matmul %0, %52, %cst_26 {dimension_numbers = #tpu.dot_dimension_numbers<[1], [0], [0], [1], [0, 0, 1, 1], [], []>} : vector<192x128xbf16>, vector<128x256xbf16>, vector<192x256xf32> -> vector<192x256xf32>
    %54 = vector.extract_strided_slice %53 {offsets = [0, 0], sizes = [32, 256], strides = [1, 1]} : vector<192x256xf32> to vector<32x256xf32>
    %55 = arith.truncf %54 : vector<32x256xf32> to vector<32x256xbf16>
    %56 = vector.extract_strided_slice %53 {offsets = [32, 0], sizes = [32, 256], strides = [1, 1]} : vector<192x256xf32> to vector<32x256xf32>
    %57 = arith.truncf %56 : vector<32x256xf32> to vector<32x256xbf16>
    %58 = vector.extract_strided_slice %53 {offsets = [64, 0], sizes = [128, 256], strides = [1, 1]} : vector<192x256xf32> to vector<128x256xf32>
    %59 = vector.broadcast %2 : vector<128x1xf32> to vector<128x256xf32>
    %60 = arith.addf %58, %59 : vector<128x256xf32>
    %cst_27 = arith.constant dense<0.000000e+00> : vector<256x256xf32>
    %61 = tpu.matmul %55, %57, %cst_27 {dimension_numbers = #tpu.dot_dimension_numbers<[0], [0], [1], [1], [0, 1, 1, 1], [], []>} : vector<32x256xbf16>, vector<32x256xbf16>, vector<256x256xf32> -> vector<256x256xf32>
    %cst_28 = arith.constant dense<0xFF800000> : vector<256xf32>
    %62 = vector.multi_reduction <maximumf>, %61, %cst_28 [1] : vector<256x256xf32> to vector<256xf32>
    %63 = vector.shape_cast %62 : vector<256xf32> to vector<256x1xf32>
    %64 = vector.broadcast %63 : vector<256x1xf32> to vector<256x256xf32>
    %65 = arith.subf %61, %64 : vector<256x256xf32>
    %66 = math.exp %65 : vector<256x256xf32>
    %cst_29 = arith.constant dense<0.000000e+00> : vector<256xf32>
    %67 = vector.multi_reduction <add>, %66, %cst_29 [1] : vector<256x256xf32> to vector<256xf32>
    %68 = vector.shape_cast %67 : vector<256xf32> to vector<256x1xf32>
    %cst_30 = arith.constant 1.000000e+00 : f32
    %69 = vector.broadcast %cst_30 : f32 to vector<256x1xf32>
    %70 = arith.divf %69, %68 : vector<256x1xf32>
    %71 = vector.broadcast %70 : vector<256x1xf32> to vector<256x256xf32>
    %72 = arith.mulf %66, %71 : vector<256x256xf32>
    %73 = arith.truncf %72 : vector<256x256xf32> to vector<256x256xbf16>
    %cst_31 = arith.constant dense<0.000000e+00> : vector<8x256xf32>
    %74 = tpu.matmul %4, %73, %cst_31 {dimension_numbers = #tpu.dot_dimension_numbers<[0], [0], [1], [1], [0, 1, 1, 1], [], []>} : vector<256x8xbf16>, vector<256x256xbf16>, vector<8x256xf32> -> vector<8x256xf32>
    %75 = vector.extract_strided_slice %74 {offsets = [0, 0], sizes = [1, 256], strides = [1, 1]} : vector<8x256xf32> to vector<1x256xf32>
    %cst_32 = arith.constant 9.99999971E-10 : f32
    %76 = vector.broadcast %cst_32 : f32 to vector<1x256xf32>
    %77 = arith.addf %76, %75 : vector<1x256xf32>
    %cst_33 = arith.constant 1.000000e+00 : f32
    %78 = vector.broadcast %cst_33 : f32 to vector<1x256xf32>
    %79 = arith.divf %78, %77 : vector<1x256xf32>
    %80 = arith.truncf %60 : vector<128x256xf32> to vector<128x256xbf16>
    %cst_34 = arith.constant dense<0.000000e+00> : vector<128x256xf32>
    %81 = tpu.matmul %80, %73, %cst_34 {dimension_numbers = #tpu.dot_dimension_numbers<[1], [0], [0], [1], [0, 0, 1, 1], [], []>} : vector<128x256xbf16>, vector<256x256xbf16>, vector<128x256xf32> -> vector<128x256xf32>
    %82 = vector.broadcast %79 : vector<1x256xf32> to vector<128x256xf32>
    %83 = arith.mulf %81, %82 : vector<128x256xf32>
    %84 = arith.extf %52 : vector<128x256xbf16> to vector<128x256xf32>
    %85 = arith.subf %84, %83 : vector<128x256xf32>
    %86 = arith.truncf %85 : vector<128x256xf32> to vector<128x256xbf16>
    %cst_35 = arith.constant dense<0.000000e+00> : vector<128x256xf32>
    %87 = tpu.matmul %1, %86, %cst_35 {dimension_numbers = #tpu.dot_dimension_numbers<[1], [0], [0], [1], [0, 0, 1, 1], [], []>} : vector<128x128xbf16>, vector<128x256xbf16>, vector<128x256xf32> -> vector<128x256xf32>
    %88 = vector.broadcast %3 : vector<128x1xf32> to vector<128x256xf32>
    %89 = arith.addf %87, %88 : vector<128x256xf32>
    %cst_36 = arith.constant 0.000000e+00 : f32
    %90 = vector.broadcast %cst_36 : f32 to vector<128x256xf32>
    %91 = arith.maximumf %89, %90 : vector<128x256xf32>
    %92 = arith.extf %52 : vector<128x256xbf16> to vector<128x256xf32>
    %93 = arith.addf %92, %91 : vector<128x256xf32>
    %c1_37 = arith.constant 1 : index
    %c0_38 = arith.constant 0 : index
    %c0_39 = arith.constant 0 : index
    %94 = vector.load %arg5[%c1_37, %c0_38, %c0_39] : memref<2x128x256xf32, #tpu.memory_space<vmem>>, vector<1x128x256xf32>
    %95 = vector.shape_cast %94 : vector<1x128x256xf32> to vector<128x256xf32>
    %96 = vector.shape_cast %93 : vector<128x256xf32> to vector<1x128x256xf32>
    tpu.vector_store %arg5[%c1_37, %c0_38, %c0_39], %96 {strides = array<i32>} : memref<2x128x256xf32, #tpu.memory_space<vmem>>, vector<1x128x256xf32>,
    return
  }
  func.func @transform_0(%arg0: i32) -> (i32, i32, i32) {
    %c0_i32 = arith.constant 0 : i32
    %c0_i32_0 = arith.constant 0 : i32
    %c0_i32_1 = arith.constant 0 : i32
    return %arg0, %c0_i32, %c0_i32_0 : i32, i32, i32
  }
  func.func @transform_1(%arg0: i32) -> (i32, i32) {
    %c0_i32 = arith.constant 0 : i32
    %c0_i32_0 = arith.constant 0 : i32
    %c0_i32_1 = arith.constant 0 : i32
    return %c0_i32, %c0_i32_0 : i32, i32
  }
  func.func @transform_2(%arg0: i32) -> (i32, i32) {
    %c0_i32 = arith.constant 0 : i32
    %c0_i32_0 = arith.constant 0 : i32
    %c0_i32_1 = arith.constant 0 : i32
    return %c0_i32, %c0_i32_0 : i32, i32
  }
  func.func @transform_3(%arg0: i32) -> (i32, i32) {
    %c0_i32 = arith.constant 0 : i32
    %c0_i32_0 = arith.constant 0 : i32
    %c0_i32_1 = arith.constant 0 : i32
    return %c0_i32, %c0_i32_0 : i32, i32
  }
  func.func @transform_4(%arg0: i32) -> (i32, i32, i32) {
    %c0_i32 = arith.constant 0 : i32
    %c0_i32_0 = arith.constant 0 : i32
    %c0_i32_1 = arith.constant 0 : i32
    return %arg0, %c0_i32, %c0_i32_0 : i32, i32, i32
  }
}

</mosaic_0001>

<bundles_post_ra>
// kernel: sa_layer.1
= control target key start
LH: loop header
LB: loop body
LE: loop exit
PB: predicated region body
PF: predicated region fallthrough
CT: control target
= control target key end

     0   :  { %9 = vsyncpa [#allocation3], 0  ;;  %s10380_s0 = inlined_call_operand.vmem [shape: bf16[4,128,256], index: 0, kind: input, shape index: {}]   ;;  %s10381_s1 = inlined_call_operand.vmem [shape: bf16[192,128], index: 1, kind: input, shape index: {}]   ;;  %s10382_s2 = inlined_call_operand.vmem [shape: bf16[128,128], index: 2, kind: input, shape index: {}]   ;;  %s10383_s3 = inlined_call_operand.vmem [shape: f32[128,2], index: 3, kind: input, shape index: {}]   ;;  %s10384_s4 = inlined_call_operand.hbm [shape: f32[4,128,256], index: 4, kind: output, shape index: {}]  }
   0x1   :  { %11 = vsyncpa [#allocation3 + $0x1], 0  ;;  %s5758_s15 = smov 0   ;;  %s5760_s16 = smov 0  }
   0x2   :  { %s5762_s17 = smov 0   ;;  %s5764_s18 = smov 0  }
   0x3 LB: > { %s5779_s19 = sadd.s32 4294967295, %s5726_s18   ;;  %s4798_s20 = sadd.s32 4294967294, %s5726_s18   ;;  %s5726_s18 = sphi %s5764_s18, %s11348_s18   ;;  %s5722_s17 = sphi %s5762_s17, %s11347_s17   ;;  %s5718_s16 = sphi %s5760_s16, %s11346_s16   ;;  %s5714_s15 = sphi %s5758_s15, %s11345_s15  }
   0x4   : > { %s5783_s21 = sadd.s32 1, %s5726_s18   ;;  %s113_s22 = sadd.s32 1, %s5722_s17 }
   0x5   : > { %s110_s23 = ssub.s32 %s5726_s18, %s5783_s21  ;;  %p123_p0 = scmp.ne.s32.totalorder %s5722_s17, %s5718_s16 }
   0x6   : > { %p111_p1 = scmp.eq.s32.totalorder %s110_s23, 0  ;;  %p124_p2 = scmp.eq.s32.totalorder %s5779_s19, 1 }
   0x7   : > { %p129_p3 = scmp.ne.s32.totalorder %s5718_s16, %s5714_s15  ;;  %p130_p4 = scmp.eq.s32.totalorder %s4798_s20, 1 }
   0x8   : > { %s5794_s24 = scalar_select %p111_p1, %s5722_s17, %s113_s22  }
   0x9   : > { %p5796_p5 = por %p124_p2, %p123_p0  ;;  %p5800_p6 = por %p130_p4, %p129_p3 }
   0xa   : > { %p4801_p7 = scmp.ge.s32.totalorder %s5726_s18, 1  ;;  %p167_p8 = scmp.lt.s32.totalorder %s5726_s18, 3 }
   0xc   : > { %p168_p9 = pnand %p4801_p7, %p167_p8 }
   0xe   : > { %171 = sbr.rel (%p168_p9) target bundleno = 3001 (0xbb9), region = 36 }
  0x13   : > { %s4803_s27 = sshll.u32 %s5779_s19, 1  ;;  %v5133_v48 = vld [vmem:[%s10381_s1] sm:$0xff]  ;;  %v5134_v49 = vld [vmem:[%s10381_s1 + $0x8] sm:$0xff]  ;;  %v5135_v50 = vld [vmem:[%s10381_s1 + $0x10] sm:$0xff]  ;;  %vm710_vm0 = vcmask 261120   ;;  %s191_s6 = sand.u32 1, %s5718_s16  }
  0x14   : > { %p195_p10 = scmp.lt.s32.totalorder %s4803_s27, 3  ;;  %v5136_v51 = vld [vmem:[%s10381_s1 + $0x18] sm:$0xff]  ;;  %s9463_s7 = sshll.u32 %s191_s6, 9 }
  0x15   : > { %s9559_s8 = scalar_lea.vmem [#allocation2], %s9463_s7  ;;  %s5186_s9 = sshll.u32 %s5779_s19, 9 }
  0x16   : > { %s11350_s27 = smov (!%p195_p10, %s4803_s27), 3  ;;  %s4732_s12 = scalar_lea.hbm %s10384_s4, %s5186_s9 }
  0x17   : > { %s5132_s28 = sshll.u32 %s11350_s27, 7  ;;  %s4733_s13 = sshll.u32 %s9559_s8, 4  ;;  %s4734_s13 = int_to_ptr.vmem [resolvable:$true] %s4733_s13 }
  0x18   : > { %s5810_s5 = scalar_lea.vmem %s10380_s0, %s5132_s28  ;;  %s4735_s14 = sshll.u32 %s4732_s12, 4  ;;  %s4736_s14 = int_to_ptr.hbm [resolvable:$true] %s4735_s14 }
  0x19   : > { %v4912_v0 = vld [vmem:[%s5810_s5 + $0x70] sm:$0xf]  ;;  %v5168_v1 = vld [vmem:[%s5810_s5 + $0x74] sm:$0xf0]  ;;  %v5167_v2 = vld [vmem:[%s5810_s5 + $0x74] sm:$0xf] }
  0x1a   : > { %v4913_v3 = vor.u32 %v5168_v1, %v4912_v0  ;;  %v4914_v4 = vld [vmem:[%s5810_s5 + $0x78] sm:$0xf0]  ;;  %v4904_v5 = vld [vmem:[%s5810_s5 + $0x60] sm:$0xf]  ;;  %v5166_v6 = vld [vmem:[%s5810_s5 + $0x64] sm:$0xf0] }
  0x1b   : > { %v4917_v7 = vor.u32 %v5167_v2, %v4914_v4  ;;  %v5165_v8 = vld [vmem:[%s5810_s5 + $0x64] sm:$0xf]  ;;  %v4906_v9 = vld [vmem:[%s5810_s5 + $0x68] sm:$0xf0]  ;;  %v4905_v10 = vor.u32 %v5166_v6, %v4904_v5  ;;  %v4896_v12 = vld [vmem:[%s5810_s5 + $0x50] sm:$0xf] }
  0x1c   : > { %428 = vmatpush.bf16.msra.mxu0 %v4913_v3  ;;  %v4909_v11 = vor.u32 %v5165_v8, %v4906_v9  ;;  %v5164_v13 = vld [vmem:[%s5810_s5 + $0x54] sm:$0xf0]  ;;  %v5163_v14 = vld [vmem:[%s5810_s5 + $0x54] sm:$0xf]  ;;  %v4898_v15 = vld [vmem:[%s5810_s5 + $0x58] sm:$0xf0] }
  0x1d   : > { %497 = vmatpush.bf16.msra.mxu1 %v4917_v7  ;;  %v4897_v16 = vor.u32 %v5164_v13, %v4896_v12  ;;  %v4901_v17 = vor.u32 %v5163_v14, %v4898_v15  ;;  %v4888_v18 = vld [vmem:[%s5810_s5 + $0x40] sm:$0xf]  ;;  %v5162_v19 = vld [vmem:[%s5810_s5 + $0x44] sm:$0xf0]  ;;  %v5161_v20 = vld [vmem:[%s5810_s5 + $0x44] sm:$0xf] }
  0x1e   : > { %v4890_v21 = vld [vmem:[%s5810_s5 + $0x48] sm:$0xf0]  ;;  %v4889_v22 = vor.u32 %v5162_v19, %v4888_v18  ;;  %v4880_v24 = vld [vmem:[%s5810_s5 + $0x30] sm:$0xf]  ;;  %v5160_v25 = vld [vmem:[%s5810_s5 + $0x34] sm:$0xf0] }
  0x1f   : > { %v4893_v23 = vor.u32 %v5161_v20, %v4890_v21  ;;  %v5159_v26 = vld [vmem:[%s5810_s5 + $0x34] sm:$0xf]  ;;  %v4882_v27 = vld [vmem:[%s5810_s5 + $0x38] sm:$0xf0]  ;;  %v4881_v28 = vor.u32 %v5160_v25, %v4880_v24  ;;  %v4872_v30 = vld [vmem:[%s5810_s5 + $0x20] sm:$0xf] }
  0x20   : > { %429 = vmatpush.bf16.msra.mxu0 %v4905_v10  ;;  %v4885_v29 = vor.u32 %v5159_v26, %v4882_v27  ;;  %v5158_v31 = vld [vmem:[%s5810_s5 + $0x24] sm:$0xf0]  ;;  %v5157_v32 = vld [vmem:[%s5810_s5 + $0x24] sm:$0xf]  ;;  %v4874_v33 = vld [vmem:[%s5810_s5 + $0x28] sm:$0xf0] }
  0x21   : > { %498 = vmatpush.bf16.msra.mxu1 %v4909_v11  ;;  %v4873_v34 = vor.u32 %v5158_v31, %v4872_v30  ;;  %v4877_v35 = vor.u32 %v5157_v32, %v4874_v33  ;;  %v4864_v36 = vld [vmem:[%s5810_s5 + $0x10] sm:$0xf]  ;;  %v5156_v37 = vld [vmem:[%s5810_s5 + $0x14] sm:$0xf0]  ;;  %v5155_v38 = vld [vmem:[%s5810_s5 + $0x14] sm:$0xf] }
  0x22   : > { %v4866_v39 = vld [vmem:[%s5810_s5 + $0x18] sm:$0xf0]  ;;  %v4865_v40 = vor.u32 %v5156_v37, %v4864_v36  ;;  %v4856_v42 = vld [vmem:[%s5810_s5] sm:$0xf]  ;;  %v5154_v43 = vld [vmem:[%s5810_s5 + $0x4] sm:$0xf0] }
  0x23   : > { %v4869_v41 = vor.u32 %v5155_v38, %v4866_v39  ;;  %v5153_v44 = vld [vmem:[%s5810_s5 + $0x4] sm:$0xf]  ;;  %v4858_v45 = vld [vmem:[%s5810_s5 + $0x8] sm:$0xf0]  ;;  %v4857_v46 = vor.u32 %v5154_v43, %v4856_v42  ;;  %s4720_s19 = scalar_lea.sflag [#allocation3], %s191_s6  ;;  %s5678_s20 = sshra.s32 %s4736_s14, 4  ;;  %s5679_s20 = int_to_ptr.hbm [resolvable:$true] %s5678_s20 }
  0x24   : > { %430 = vmatpush.bf16.msra.mxu0 %v4897_v16  ;;  %v4861_v47 = vor.u32 %v5153_v44, %v4858_v45  ;;  %s5680_s22 = scalar_lea.hbm %s5679_s20, 512  ;;  %s5684_s28 = scalar_lea.hbm %s10384_s4, 1024 }
  0x25   : > { %499 = vmatpush.bf16.msra.mxu1 %v4901_v17  ;;  %p5681_p11 = scmp.ne.s32.totalorder %s5679_s20, %s5680_s22  ;;  %p5685_p0 = scmp.lt.s32.totalorder %s5679_s20, %s10384_s4 }
  0x26   : > { %p5686_p1 = scmp.lt.s32.totalorder %s5684_s28, %s5680_s22 }
  0x27   : > { %p5682_p12 = pnand %p5681_p11, %p5796_p5 }
  0x28   : > { %431 = vmatpush.bf16.msra.mxu0 %v4889_v22  ;;  %p5687_p2 = por %p5686_p1, %p5685_p0 }
  0x29   : > { %500 = vmatpush.bf16.msra.mxu1 %v4893_v23  ;;  %p5683_p13 = pneg %p5682_p12 }
  0x2b   : > { %p5688_p3 = pnand %p5687_p2, %p5683_p13 }
  0x2c   : > { %432 = vmatpush.bf16.msra.mxu0 %v4881_v28 }
  0x2d   : > { %501 = vmatpush.bf16.msra.mxu1 %v4885_v29 }
  0x30   : > { %433 = vmatpush.bf16.msra.mxu0 %v4873_v34 }
  0x31   : > { %502 = vmatpush.bf16.msra.mxu1 %v4877_v35 }
  0x34   : > { %434 = vmatpush.bf16.msra.mxu0 %v4865_v40 }
  0x35   : > { %503 = vmatpush.bf16.msra.mxu1 %v4869_v41 }
  0x38   : > { %435 = vmatpush.bf16.msra.mxu0 %v4857_v46 }
  0x39   : > { %504 = vmatpush.bf16.msra.mxu1 %v4861_v47 }
  0x3b   : > { %436 = vmatmul.bf16.vlgmr.msra.gmra.mxu0 %v5133_v48 }
  0x3c   : > { %505 = vmatmul.bf16.vlgmr.msra.gmra.mxu1 %v5133_v48 }
  0x4b   : > { %441 = vmatmul.bf16.gmra.mxu0 %v5134_v49 }
  0x4c   : > { %510 = vmatmul.bf16.gmra.mxu1 %v5134_v49 }
  0x5b   : > { %446 = vmatmul.bf16.gmra.mxu0 %v5135_v50 }
  0x5c   : > { %515 = vmatmul.bf16.gmra.mxu1 %v5135_v50 }
  0x6b   : > { %451 = vmatmul.bf16.gmra.mxu0 %v5136_v51 }
  0x6c   : > { %520 = vmatmul.bf16.gmra.mxu1 %v5136_v51 }
  0xb8   : > { %v437_v52 = vpop.f32.mrf.mxu0 }
  0xb9   : > { %v506_v53 = vpop.f32.mrf.mxu1 }
  0xc0   : > { %v439_v54 = vpop.f32.mrf.mxu0 }
  0xc1   : > { %v508_v55 = vpop.f32.mrf.mxu1  ;;  %v566_v56 = vpack.c.bf16 %v439_v54, %v437_v52 }
  0xc2   : > { %v567_v57 = vpack.c.bf16 %v508_v55, %v506_v53 }
  0xc4   : > { %686 = vxpose.binary.xlu0.c.b16.start [1/4] (short) %v567_v57, %v566_v56, 128 }
  0xc8   : > { %v442_v58 = vpop.f32.mrf.mxu0 }
  0xc9   : > { %v511_v59 = vpop.f32.mrf.mxu1 }
  0xd0   : > { %v444_v60 = vpop.f32.mrf.mxu0 }
  0xd1   : > { %v568_v61 = vpack.c.bf16 %v444_v60, %v442_v58  ;;  %v513_v62 = vpop.f32.mrf.mxu1 }
  0xd2   : > { %v569_v63 = vpack.c.bf16 %v513_v62, %v511_v59 }
  0xd4   : > { %687 = vxpose.binary.xlu0.c.b16.end [2/4] (short) %v569_v63, %v568_v61, 128 }
  0xd8   : > { %v447_v0 = vpop.f32.mrf.mxu0 }
  0xd9   : > { %v516_v1 = vpop.f32.mrf.mxu1 }
  0xe0   : > { %v449_v2 = vpop.f32.mrf.mxu0 }
  0xe1   : > { %v518_v3 = vpop.f32.mrf.mxu1  ;;  %v570_v10 = vpack.c.bf16 %v449_v2, %v447_v0 }
  0xe2   : > { %v571_v11 = vpack.c.bf16 %v518_v3, %v516_v1 }
  0xe8   : > { %v452_v4 = vpop.f32.mrf.mxu0 }
  0xe9   : > { %v521_v5 = vpop.f32.mrf.mxu1 }
  0xf0   : > { %v454_v6 = vpop.f32.mrf.mxu0 }
  0xf1   : > { %v523_v7 = vpop.f32.mrf.mxu1  ;;  %v572_v8 = vpack.c.bf16 %v454_v6, %v452_v4 }
  0xf2   : > { %v573_v9 = vpack.c.bf16 %v523_v7, %v521_v5 }
  0xf3   : > { %765 = vmatpush.bf16.msra.mxu2 %v572_v8 }
  0xf4   : > { %854 = vmatpush.bf16.msra.mxu3 %v573_v9 }
  0xf7   : > { %766 = vmatpush.bf16.msra.mxu2 %v570_v10 }
  0xf8   : > { %855 = vmatpush.bf16.msra.mxu3 %v571_v11 }
 0x170   : > { %v694_v12 = vpop.trf.xlu0 }
 0x171   : > { %4918 = vmatmul.msk.bf16.vlgmr.msra.gmra.mxu2 %vm710_vm0, %v694_v12  ;;  %4934 = vmatmul.msk.bf16.vlgmr.msra.gmra.mxu3 %vm710_vm0, %v694_v12 }
 0x178   : > { %v695_v13 = vpop.trf.xlu0 }
 0x180   : > { %v696_v14 = vpop.trf.xlu0 }
 0x181   : > { %4919 = vmatmul.msk.bf16.gmra.mxu2 %vm710_vm0, %v696_v14  ;;  %4935 = vmatmul.msk.bf16.gmra.mxu3 %vm710_vm0, %v696_v14 }
 0x188   : > { %v697_v15 = vpop.trf.xlu0 }
 0x190   : > { %v698_v16 = vpop.trf.xlu0 }
 0x191   : > { %4920 = vmatmul.msk.bf16.gmra.mxu2 %vm710_vm0, %v698_v16  ;;  %4936 = vmatmul.msk.bf16.gmra.mxu3 %vm710_vm0, %v698_v16 }
 0x198   : > { %v699_v17 = vpop.trf.xlu0 }
 0x1a0   : > { %v700_v18 = vpop.trf.xlu0 }
 0x1a1   : > { %4921 = vmatmul.msk.bf16.gmra.mxu2 %vm710_vm0, %v700_v18  ;;  %4937 = vmatmul.msk.bf16.gmra.mxu3 %vm710_vm0, %v700_v18 }
 0x1a8   : > { %v701_v19 = vpop.trf.xlu0 }
 0x1b0   : > { %v702_v20 = vpop.trf.xlu0 }
 0x1b1   : > { %4922 = vmatmul.msk.bf16.gmra.mxu2 %vm710_vm0, %v702_v20  ;;  %4938 = vmatmul.msk.bf16.gmra.mxu3 %vm710_vm0, %v702_v20 }
 0x1b8   : > { %v703_v21 = vpop.trf.xlu0 }
 0x1c0   : > { %v704_v22 = vpop.trf.xlu0 }
 0x1c1   : > { %4923 = vmatmul.msk.bf16.gmra.mxu2 %vm710_vm0, %v704_v22  ;;  %4939 = vmatmul.msk.bf16.gmra.mxu3 %vm710_vm0, %v704_v22 }
 0x1c8   : > { %v705_v23 = vpop.trf.xlu0 }
 0x1d0   : > { %v706_v24 = vpop.trf.xlu0 }
 0x1d1   : > { %4924 = vmatmul.msk.bf16.gmra.mxu2 %vm710_vm0, %v706_v24  ;;  %4940 = vmatmul.msk.bf16.gmra.mxu3 %vm710_vm0, %v706_v24 }
 0x1d8   : > { %v5870_v25 = vpop.trf.xlu0 }
 0x1e0   : > { %v708_v26 = vpop.trf.xlu0 }
 0x1e1   : > { %4925 = vmatmul.msk.bf16.gmra.mxu2 %vm710_vm0, %v708_v26  ;;  %4941 = vmatmul.msk.bf16.gmra.mxu3 %vm710_vm0, %v708_v26 }
 0x1e8   : > { %v709_v5 = vpop.trf.xlu0 }
 0x1f1   : > { %4926 = vmatmul.msk.bf16.gmra.mxu2 %vm710_vm0, %v695_v13  ;;  %4942 = vmatmul.msk.bf16.gmra.mxu3 %vm710_vm0, %v695_v13 }
 0x1f4   : > { %v5876_v27 = vpop.f32.mrf.mxu2  ;;  %v5878_v28 = vpop.f32.mrf.mxu3 }
 0x1f5   : > { %v937_v29 = vmax.f32 %v5876_v27, %v5878_v28 }
 0x1f7   : > { %938 = vmax.xlane.f32.xlu2 %v937_v29 }
 0x1fc   : > { %v5882_v30 = vpop.f32.mrf.mxu2  ;;  %v5884_v31 = vpop.f32.mrf.mxu3 }
 0x1fd   : > { %v940_v32 = vmax.f32 %v5882_v30, %v5884_v31 }
 0x1ff   : > { %941 = vmax.xlane.f32.xlu1 %v940_v32 }
 0x201   : > { %4927 = vmatmul.msk.bf16.gmra.mxu2 %vm710_vm0, %v697_v15  ;;  %4943 = vmatmul.msk.bf16.gmra.mxu3 %vm710_vm0, %v697_v15 }
 0x204   : > { %v5890_v33 = vpop.f32.mrf.mxu2  ;;  %v5892_v34 = vpop.f32.mrf.mxu3 }
 0x205   : > { %v943_v35 = vmax.f32 %v5890_v33, %v5892_v34 }
 0x207   : > { %944 = vmax.xlane.f32.xlu2 %v943_v35 }
 0x20c   : > { %v5896_v36 = vpop.f32.mrf.mxu2  ;;  %v5898_v37 = vpop.f32.mrf.mxu3 }
 0x20d   : > { %v946_v38 = vmax.f32 %v5896_v36, %v5898_v37 }
 0x20f   : > { %947 = vmax.xlane.f32.xlu1 %v946_v38 }
 0x211   : > { %4928 = vmatmul.msk.bf16.gmra.mxu2 %vm710_vm0, %v699_v17  ;;  %4944 = vmatmul.msk.bf16.gmra.mxu3 %vm710_vm0, %v699_v17 }
 0x214   : > { %v5904_v39 = vpop.f32.mrf.mxu2  ;;  %v5906_v40 = vpop.f32.mrf.mxu3 }
 0x215   : > { %v949_v41 = vmax.f32 %v5904_v39, %v5906_v40 }
 0x217   : > { %950 = vmax.xlane.f32.xlu2 %v949_v41 }
 0x21c   : > { %v5910_v42 = vpop.f32.mrf.mxu2  ;;  %v5912_v43 = vpop.f32.mrf.mxu3 }
 0x21d   : > { %v952_v44 = vmax.f32 %v5910_v42, %v5912_v43 }
 0x21f   : > { %953 = vmax.xlane.f32.xlu1 %v952_v44 }
 0x221   : > { %4929 = vmatmul.msk.bf16.gmra.mxu2 %vm710_vm0, %v701_v19  ;;  %4945 = vmatmul.msk.bf16.gmra.mxu3 %vm710_vm0, %v701_v19 }
 0x224   : > { %v5918_v45 = vpop.f32.mrf.mxu2  ;;  %v5920_v46 = vpop.f32.mrf.mxu3 }
 0x225   : > { %v955_v47 = vmax.f32 %v5918_v45, %v5920_v46 }
 0x227   : > { %956 = vmax.xlane.f32.xlu2 %v955_v47 }
 0x22c   : > { %v5924_v48 = vpop.f32.mrf.mxu2  ;;  %v5926_v49 = vpop.f32.mrf.mxu3 }
 0x22d   : > { %v958_v50 = vmax.f32 %v5924_v48, %v5926_v49 }
 0x22f   : > { %959 = vmax.xlane.f32.xlu1 %v958_v50 }
 0x231   : > { %4930 = vmatmul.msk.bf16.gmra.mxu2 %vm710_vm0, %v703_v21  ;;  %4946 = vmatmul.msk.bf16.gmra.mxu3 %vm710_vm0, %v703_v21 }
 0x234   : > { %v5932_v51 = vpop.f32.mrf.mxu2  ;;  %v5934_v52 = vpop.f32.mrf.mxu3 }
 0x235   : > { %v961_v53 = vmax.f32 %v5932_v51, %v5934_v52 }
 0x237   : > { %962 = vmax.xlane.f32.xlu2 %v961_v53 }
 0x23c   : > { %v5938_v54 = vpop.f32.mrf.mxu2  ;;  %v5940_v55 = vpop.f32.mrf.mxu3 }
 0x23d   : > { %v964_v56 = vmax.f32 %v5938_v54, %v5940_v55 }
 0x23f   : > { %965 = vmax.xlane.f32.xlu1 %v964_v56 }
 0x241   : > { %4931 = vmatmul.msk.bf16.gmra.mxu2 %vm710_vm0, %v705_v23  ;;  %4947 = vmatmul.msk.bf16.gmra.mxu3 %vm710_vm0, %v705_v23 }
 0x244   : > { %v5946_v57 = vpop.f32.mrf.mxu2  ;;  %v5948_v58 = vpop.f32.mrf.mxu3 }
 0x245   : > { %v967_v59 = vmax.f32 %v5946_v57, %v5948_v58 }
 0x247   : > { %968 = vmax.xlane.f32.xlu2 %v967_v59 }
 0x24c   : > { %v5952_v60 = vpop.f32.mrf.mxu2  ;;  %v5954_v61 = vpop.f32.mrf.mxu3 }
 0x24d   : > { %v970_v62 = vmax.f32 %v5952_v60, %v5954_v61 }
 0x24f   : > { %971 = vmax.xlane.f32.xlu1 %v970_v62 }
 0x251   : > { %4932 = vmatmul.msk.bf16.gmra.mxu2 %vm710_vm0, %v5870_v25  ;;  %4948 = vmatmul.msk.bf16.gmra.mxu3 %vm710_vm0, %v5870_v25 }
 0x254   : > { %v5962_v63 = vpop.f32.mrf.mxu2  ;;  %v5964_v0 = vpop.f32.mrf.mxu3 }
 0x255   : > { %v973_v1 = vmax.f32 %v5962_v63, %v5964_v0 }
 0x257   : > { %974 = vmax.xlane.f32.xlu1 %v973_v1 }
 0x25c   : > { %v5968_v2 = vpop.f32.mrf.mxu2  ;;  %v5970_v3 = vpop.f32.mrf.mxu3 }
 0x25d   : > { %v976_v4 = vmax.f32 %v5968_v2, %v5970_v3 }
 0x25f   : > { %977 = vmax.xlane.f32.xlu2 %v976_v4 }
 0x261   : > { %4933 = vmatmul.msk.bf16.gmra.mxu2 %vm710_vm0, %v709_v5  ;;  %4949 = vmatmul.msk.bf16.gmra.mxu3 %vm710_vm0, %v709_v5 }
 0x264   : > { %v5976_v6 = vpop.f32.mrf.mxu2  ;;  %v5978_v7 = vpop.f32.mrf.mxu3 }
 0x265   : > { %v979_v8 = vmax.f32 %v5976_v6, %v5978_v7 }
 0x267   : > { %980 = vmax.xlane.f32.xlu1 %v979_v8 }
 0x26a   : > { %v6000_v18 = vpop.xlane.xlu2 %938 }
 0x26c   : > { %v5982_v9 = vpop.f32.mrf.mxu2  ;;  %v5984_v10 = vpop.f32.mrf.mxu3 }
 0x26d   : > { %v982_v11 = vmax.f32 %v5982_v9, %v5984_v10 }
 0x26f   : > { %983 = vmax.xlane.f32.xlu1 %v982_v11 }
 0x272   : > { %v6008_v22 = vpop.xlane.xlu1 %941 }
 0x274   : > { %v5988_v12 = vpop.f32.mrf.mxu2  ;;  %v5990_v13 = vpop.f32.mrf.mxu3 }
 0x275   : > { %10648 = vst [vmem:[#allocation5_spill] sm:$0xff] %v5988_v12  ;;  %v985_v14 = vmax.f32 %v5988_v12, %v5990_v13 }
 0x276   : > { %10649 = vst [vmem:[#allocation6_spill] sm:$0xff] %v5990_v13  ;;  %v1036_v13 = vsub.f32 %v5884_v31, %v6008_v22 }
 0x277   : > { %986 = vmax.xlane.f32.xlu2 %v985_v14 }
 0x27a   : > { %v6010_v23 = vpop.xlane.xlu2 %944 }
 0x27c   : > { %v5994_v15 = vpop.f32.mrf.mxu2  ;;  %v5996_v16 = vpop.f32.mrf.mxu3 }
 0x27d   : > { %v988_v17 = vmax.f32 %v5994_v15, %v5996_v16 }
 0x27f   : > { %989 = vmax.xlane.f32.xlu1 %v988_v17 }
 0x282   : > { %v6018_v29 = vpop.xlane.xlu1 %947 }
 0x284   : > { %v6002_v19 = vpop.f32.mrf.mxu2  ;;  %v6004_v20 = vpop.f32.mrf.mxu3 }
 0x285   : > { %v991_v21 = vmax.f32 %v6002_v19, %v6004_v20 }
 0x287   : > { %992 = vmax.xlane.f32.xlu2 %v991_v21 }
 0x28a   : > { %v6020_v32 = vpop.xlane.xlu2 %950 }
 0x28c   : > { %v6012_v24 = vpop.f32.mrf.mxu2  ;;  %v6014_v25 = vpop.f32.mrf.mxu3 }
 0x28d   : > { %v994_v26 = vmax.f32 %v6012_v24, %v6014_v25 }
 0x28f   : > { %995 = vmax.xlane.f32.xlu1 %v994_v26 }
 0x292   : > { %v6028_v44 = vpop.xlane.xlu1 %953 }
 0x294   : > { %v6022_v35 = vpop.f32.mrf.mxu2  ;;  %v6024_v38 = vpop.f32.mrf.mxu3 }
 0x295   : > { %v997_v41 = vmax.f32 %v6022_v35, %v6024_v38 }
 0x297   : > { %998 = vmax.xlane.f32.xlu2 %v997_v41 }
 0x29a   : > { %v957_v47 = vpop.xlane.xlu2 %956 }
 0x29b   : > { %v1045_v50 = vsub.f32 %v5918_v45, %v957_v47  ;;  %v1046_v53 = vsub.f32 %v5920_v46, %v957_v47 }
 0x29c   : > { %v6032_v56 = vpop.f32.mrf.mxu2  ;;  %v6034_v59 = vpop.f32.mrf.mxu3 }
 0x29d   : > { %v1000_v62 = vmax.f32 %v6032_v56, %v6034_v59  ;;  %v1121_v1 = vmul.f32 1.442695, %v1045_v50  ;;  %v1123_v4 = vmul.f32 1.442695, %v1046_v53 }
 0x29f   : > { %1001 = vmax.xlane.f32.xlu1 %v1000_v62  ;;  %5236 = vpow2.f32 %v1121_v1 }
 0x2a0   : > { %5238 = vpow2.f32 %v1123_v4 }
 0x2a2   : > { %v960_v5 = vpop.xlane.xlu1 %959 }
 0x2a3   : > { %v1047_v8 = vsub.f32 %v5924_v48, %v960_v5  ;;  %v1048_v11 = vsub.f32 %v5926_v49, %v960_v5 }
 0x2a4   : > { %v6040_v45 = vpop.f32.mrf.mxu2  ;;  %v6042_v46 = vpop.f32.mrf.mxu3 }
 0x2a5   : > { %v1003_v14 = vmax.f32 %v6040_v45, %v6042_v46  ;;  %v1125_v17 = vmul.f32 1.442695, %v1047_v8  ;;  %v1127_v21 = vmul.f32 1.442695, %v1048_v11  ;;  %v6046_v26 = vpop.eup %5236 }
 0x2a6   : > { %10650 = vst [vmem:[#allocation7_spill] sm:$0xff] %v6046_v26  ;;  %v6048_v41 = vpop.eup %5238 }
 0x2a7   : > { %1004 = vmax.xlane.f32.xlu2 %v1003_v14  ;;  %5240 = vpow2.f32 %v1125_v17  ;;  %v1243_v62 = vadd.f32 %v6048_v41, %v6046_v26 }
 0x2a8   : > { %5242 = vpow2.f32 %v1127_v21 }
 0x2aa   : > { %v963_v47 = vpop.xlane.xlu2 %962 }
 0x2ab   : > { %v1049_v48 = vsub.f32 %v5932_v51, %v963_v47  ;;  %v1050_v49 = vsub.f32 %v5934_v52, %v963_v47 }
 0x2ac   : > { %v6052_v50 = vpop.f32.mrf.mxu2  ;;  %v6054_v53 = vpop.f32.mrf.mxu3 }
 0x2ad   : > { %v1006_v1 = vmax.f32 %v6052_v50, %v6054_v53  ;;  %v1129_v4 = vmul.f32 1.442695, %v1049_v48  ;;  %v1131_v5 = vmul.f32 1.442695, %v1050_v49  ;;  %v6060_v8 = vpop.eup %5240 }
 0x2ae   : > { %10651 = vst [vmem:[#allocation8_spill] sm:$0xff] %v6060_v8  ;;  %v6062_v51 = vpop.eup %5242 }
 0x2af   : > { %1244 = vadd.xlane.f32.xlu2 %v1243_v62  ;;  %1007 = vmax.xlane.f32.xlu1 %v1006_v1  ;;  %5244 = vpow2.f32 %v1129_v4  ;;  %v1246_v47 = vadd.f32 %v6062_v51, %v6060_v8 }
 0x2b0   : > { %5246 = vpow2.f32 %v1131_v5 }
 0x2b2   : > { %v966_v11 = vpop.xlane.xlu1 %965 }
 0x2b3   : > { %v1051_v52 = vsub.f32 %v5938_v54, %v966_v11  ;;  %v1052_v14 = vsub.f32 %v5940_v55, %v966_v11 }
 0x2b4   : > { %v6066_v17 = vpop.f32.mrf.mxu2  ;;  %v6068_v21 = vpop.f32.mrf.mxu3 }
 0x2b5   : > { %v1009_v48 = vmax.f32 %v6066_v17, %v6068_v21  ;;  %v1133_v49 = vmul.f32 1.442695, %v1051_v52  ;;  %v1135_v62 = vmul.f32 1.442695, %v1052_v14  ;;  %v6074_v1 = vpop.eup %5244 }
 0x2b6   : > { %10652 = vst [vmem:[#allocation9_spill] sm:$0xff] %v6074_v1  ;;  %v6076_v54 = vpop.eup %5246 }
 0x2b7   : > { %1247 = vadd.xlane.f32.xlu1 %v1246_v47  ;;  %1010 = vmax.xlane.f32.xlu2 %v1009_v48  ;;  %5248 = vpow2.f32 %v1133_v49  ;;  %v1249_v52 = vadd.f32 %v6076_v54, %v6074_v1 }
 0x2b8   : > { %5250 = vpow2.f32 %v1135_v62 }
 0x2ba   : > { %v969_v4 = vpop.xlane.xlu2 %968 }
 0x2bb   : > { %v1053_v55 = vsub.f32 %v5946_v57, %v969_v4  ;;  %v1054_v5 = vsub.f32 %v5948_v58, %v969_v4 }
 0x2bc   : > { %v6080_v11 = vpop.f32.mrf.mxu2  ;;  %v6082_v26 = vpop.f32.mrf.mxu3 }
 0x2bd   : > { %v1012_v14 = vmax.f32 %v6080_v11, %v6082_v26  ;;  %v1137_v47 = vmul.f32 1.442695, %v1053_v55  ;;  %v1139_v48 = vmul.f32 1.442695, %v1054_v5  ;;  %v6088_v49 = vpop.eup %5248 }
 0x2be   : > { %10653 = vst [vmem:[#allocation10_spill] sm:$0xff] %v6088_v49  ;;  %v6090_v57 = vpop.eup %5250 }
 0x2bf   : > { %1250 = vadd.xlane.f32.xlu2 %v1249_v52  ;;  %1013 = vmax.xlane.f32.xlu1 %v1012_v14  ;;  %5252 = vpow2.f32 %v1137_v47  ;;  %v1252_v55 = vadd.f32 %v6090_v57, %v6088_v49 }
 0x2c0   : > { %5254 = vpow2.f32 %v1139_v48 }
 0x2c2   : > { %v972_v62 = vpop.xlane.xlu1 %971 }
 0x2c3   : > { %v1055_v58 = vsub.f32 %v5952_v60, %v972_v62  ;;  %v1056_v4 = vsub.f32 %v5954_v61, %v972_v62  ;;  %v1035_v61 = vsub.f32 %v5882_v30, %v6008_v22 }
 0x2c4   : > { %v6094_v8 = vpop.f32.mrf.mxu2  ;;  %v6096_v1 = vpop.f32.mrf.mxu3 }
 0x2c5   : > { %v1015_v5 = vmax.f32 %v6094_v8, %v6096_v1  ;;  %v1141_v52 = vmul.f32 1.442695, %v1055_v58  ;;  %v1143_v14 = vmul.f32 1.442695, %v1056_v4  ;;  %v6102_v47 = vpop.eup %5252 }
 0x2c6   : > { %10654 = vst [vmem:[#allocation11_spill] sm:$0xff] %v6102_v47  ;;  %v6104_v60 = vpop.eup %5254 }
 0x2c7   : > { %1253 = vadd.xlane.f32.xlu1 %v1252_v55  ;;  %1016 = vmax.xlane.f32.xlu2 %v1015_v5  ;;  %5256 = vpow2.f32 %v1141_v52  ;;  %v1255_v12 = vadd.f32 %v6104_v60, %v6102_v47  ;;  %v1101_v52 = vmul.f32 1.442695, %v1035_v61 }
 0x2c8   : > { %5258 = vpow2.f32 %v1143_v14 }
 0x2ca   : > { %v975_v48 = vpop.xlane.xlu1 %974 }
 0x2cb   : > { %v1057_v62 = vsub.f32 %v5962_v63, %v975_v48  ;;  %v1058_v49 = vsub.f32 %v5964_v0, %v975_v48  ;;  %v1103_v63 = vmul.f32 1.442695, %v1036_v13 }
 0x2cc   : > { %v6112_v58 = vpop.f32.mrf.mxu2  ;;  %v6114_v4 = vpop.f32.mrf.mxu3 }
 0x2cd   : > { %v1145_v55 = vmul.f32 1.442695, %v1057_v62  ;;  %v1147_v5 = vmul.f32 1.442695, %v1058_v49  ;;  %v1018_v30 = vmax.f32 %v6112_v58, %v6114_v4  ;;  %v6120_v31 = vpop.eup %5256 }
 0x2ce   : > { %10655 = vst [vmem:[#allocation12_spill] sm:$0xff] %v6120_v31  ;;  %v6122_v0 = vpop.eup %5258 }
 0x2cf   : > { %5260 = vpow2.f32 %v1145_v55  ;;  %1256 = vadd.xlane.f32.xlu2 %v1255_v12  ;;  %1019 = vmax.xlane.f32.xlu1 %v1018_v30  ;;  %v1258_v12 = vadd.f32 %v6122_v0, %v6120_v31 }
 0x2d0   : > { %5262 = vpow2.f32 %v1147_v5 }
 0x2d1   : > { %5264 = vpow2.f32 %v1101_v52  ;;  %v1043_v52 = vsub.f32 %v5910_v42, %v6028_v44 }
 0x2d2   : > { %v978_v22 = vpop.xlane.xlu2 %977  ;;  %5266 = vpow2.f32 %v1103_v63 }
 0x2d3   : > { %v1059_v49 = vsub.f32 %v5968_v2, %v978_v22  ;;  %v1060_v14 = vsub.f32 %v5970_v3, %v978_v22  ;;  %v1044_v22 = vsub.f32 %v5912_v43, %v6028_v44  ;;  %v1117_v31 = vmul.f32 1.442695, %v1043_v52 }
 0x2d4   : > { %v6126_v48 = vpop.f32.mrf.mxu2  ;;  %v6128_v62 = vpop.f32.mrf.mxu3 }
 0x2d5   : > { %v6130_v61 = vpop.eup %5260  ;;  %v1021_v13 = vmax.f32 %v6126_v48, %v6128_v62  ;;  %v1149_v5 = vmul.f32 1.442695, %v1059_v49  ;;  %v1151_v3 = vmul.f32 1.442695, %v1060_v14 }
 0x2d6   : > { %10656 = vst [vmem:[#allocation13_spill] sm:$0xff] %v6130_v61  ;;  %v6136_v55 = vpop.eup %5262 }
 0x2d7   : > { %1259 = vadd.xlane.f32.xlu1 %v1258_v12  ;;  %1022 = vmax.xlane.f32.xlu0 %v1021_v13  ;;  %v1261_v2 = vadd.f32 %v6136_v55, %v6130_v61  ;;  %v6140_v30 = vpop.eup %5264  ;;  %5268 = vpow2.f32 %v1149_v5  ;;  %v1119_v61 = vmul.f32 1.442695, %v1044_v22 }
 0x2d8   : > { %10657 = vst [vmem:[#allocation14_spill] sm:$0xff] %v6140_v30  ;;  %v6144_v63 = vpop.eup %5266  ;;  %5270 = vpow2.f32 %v1151_v3 }
 0x2d9   : > { %1262 = vadd.xlane.f32.xlu2 %v1261_v2  ;;  %10658 = vst [vmem:[#allocation15_spill] sm:$0xff] %v6144_v63  ;;  %v1228_v42 = vadd.f32 %v6144_v63, %v6140_v30  ;;  %5272 = vpow2.f32 %v1117_v31 }
 0x2da   : > { %v981_v47 = vpop.xlane.xlu1 %980  ;;  %5274 = vpow2.f32 %v1119_v61 }
 0x2db   : > { %v1061_v49 = vsub.f32 %v5976_v6, %v981_v47  ;;  %v1062_v12 = vsub.f32 %v5978_v7, %v981_v47 }
 0x2dc   : > { %v6150_v13 = vpop.f32.mrf.mxu2  ;;  %v6152_v14 = vpop.f32.mrf.mxu3 }
 0x2dd   : > { %v1024_v2 = vmax.f32 %v6150_v13, %v6152_v14  ;;  %v1153_v43 = vmul.f32 1.442695, %v1061_v49  ;;  %v1155_v44 = vmul.f32 1.442695, %v1062_v12  ;;  %v6158_v6 = vpop.eup %5268 }
 0x2de   : > { %10659 = vst [vmem:[#allocation16_spill] sm:$0xff] %v6158_v6  ;;  %v6160_v7 = vpop.eup %5270 }
 0x2df   : > { %1229 = vadd.xlane.f32.xlu0 %v1228_v42  ;;  %1025 = vmax.xlane.f32.xlu1 %v1024_v2  ;;  %5276 = vpow2.f32 %v1153_v43  ;;  %v1264_v49 = vadd.f32 %v6160_v7, %v6158_v6  ;;  %v6172_v12 = vpop.eup %5272  ;;  %v1041_v43 = vsub.f32 %v5904_v39, %v6020_v32 }
 0x2e0   : > { %5278 = vpow2.f32 %v1155_v44  ;;  %10660 = vst [vmem:[#allocation17_spill] sm:$0xff] %v6172_v12  ;;  %v6174_v42 = vpop.eup %5274  ;;  %v1042_v44 = vsub.f32 %v5906_v40, %v6020_v32 }
 0x2e1   : > { %10661 = vst [vmem:[#allocation18_spill] sm:$0xff] %v6174_v42 }
 0x2e2   : > { %v984_v47 = vpop.xlane.xlu1 %983 }
 0x2e3   : > { %v1063_v5 = vsub.f32 %v5982_v9, %v984_v47  ;;  %v1064_v3 = vsub.f32 %v5984_v10, %v984_v47  ;;  %v1240_v47 = vadd.f32 %v6174_v42, %v6172_v12 }
 0x2e4   : > { %v6164_v52 = vpop.f32.mrf.mxu2  ;;  %v6166_v22 = vpop.f32.mrf.mxu3 }
 0x2e5   : > { %v1027_v31 = vmax.f32 %v6164_v52, %v6166_v22  ;;  %v1157_v61 = vmul.f32 1.442695, %v1063_v5  ;;  %v1159_v9 = vmul.f32 1.442695, %v1064_v3  ;;  %v6176_v2 = vpop.eup %5276  ;;  %v1115_v3 = vmul.f32 1.442695, %v1042_v44 }
 0x2e6   : > { %10662 = vst [vmem:[#allocation19_spill] sm:$0xff] %v6176_v2  ;;  %v6178_v10 = vpop.eup %5278 }
 0x2e7   : > { %1265 = vadd.xlane.f32.xlu1 %v1264_v49  ;;  %1028 = vmax.xlane.f32.xlu2 %v1027_v31  ;;  %10663 = vst [vmem:[#allocation20_spill] sm:$0xff] %v6178_v10  ;;  %5280 = vpow2.f32 %v1157_v61  ;;  %v1267_v5 = vadd.f32 %v6178_v10, %v6176_v2  ;;  %v1113_v49 = vmul.f32 1.442695, %v1041_v43 }
 0x2e8   : > { %5282 = vpow2.f32 %v1159_v9 }
 0x2e9   : > { %5284 = vpow2.f32 %v1113_v49 }
 0x2ea   : > { %5286 = vpow2.f32 %v1115_v3  ;;  %v6204_v44 = vpop.xlane.xlu2 %986 }
 0x2eb   : > { %10668 = vst [vmem:[#allocation25_spill] sm:$0xff] %v6204_v44 }
 0x2ec   : > { %v6192_v39 = vpop.f32.mrf.mxu2  ;;  %v6194_v61 = vpop.f32.mrf.mxu3 }
 0x2ed   : > { %v6188_v31 = vpop.eup %5280  ;;  %v1030_v32 = vmax.f32 %v6192_v39, %v6194_v61 }
 0x2ee   : > { %10664 = vst [vmem:[#allocation21_spill] sm:$0xff] %v6188_v31  ;;  %v6190_v63 = vpop.eup %5282 }
 0x2ef   : > { %1241 = vadd.xlane.f32.xlu1 %v1240_v47  ;;  %1268 = vadd.xlane.f32.xlu2 %v1267_v5  ;;  %10665 = vst [vmem:[#allocation22_spill] sm:$0xff] %v6190_v63  ;;  %v1270_v40 = vadd.f32 %v6190_v63, %v6188_v31  ;;  %v6200_v9 = vpop.eup %5284 }
 0x2f0   : > { %10666 = vst [vmem:[#allocation23_spill] sm:$0xff] %v6200_v9  ;;  %v6202_v43 = vpop.eup %5286 }
 0x2f1   : > { %10667 = vst [vmem:[#allocation24_spill] sm:$0xff] %v6202_v43  ;;  %v1237_v47 = vadd.f32 %v6202_v43, %v6200_v9 }
 0x2f2   : > { %v6210_v49 = vpop.xlane.xlu1 %989 }
 0x2f7   : > { %1271 = vadd.xlane.f32.xlu1 %v1270_v40  ;;  %1031 = vmax.xlane.f32.xlu2 %v1030_v32 }
 0x2fa   : > { %v6208_v5 = vpop.xlane.xlu2 %992 }
 0x2ff   : > { %1238 = vadd.xlane.f32.xlu2 %v1237_v47 }
 0x302   : > { %v6214_v42 = vpop.xlane.xlu1 %995 }
 0x30a   : > { %v999_v3 = vpop.xlane.xlu2 %998 }
 0x30b   : > { %v1073_v30 = vsub.f32 %v6022_v35, %v999_v3  ;;  %v1074_v40 = vsub.f32 %v6024_v38, %v999_v3 }
 0x30d   : > { %v1177_v32 = vmul.f32 1.442695, %v1073_v30  ;;  %v1179_v12 = vmul.f32 1.442695, %v1074_v40 }
 0x30f   : > { %5288 = vpow2.f32 %v1177_v32 }
 0x310   : > { %5290 = vpow2.f32 %v1179_v12 }
 0x312   : > { %v6222_v9 = vpop.xlane.xlu1 %1001 }
 0x315   : > { %v6216_v44 = vpop.eup %5288 }
 0x316   : > { %10669 = vst [vmem:[#allocation26_spill] sm:$0xff] %v6216_v44  ;;  %v6218_v6 = vpop.eup %5290 }
 0x317   : > { %10670 = vst [vmem:[#allocation27_spill] sm:$0xff] %v6218_v6  ;;  %v1285_v47 = vadd.f32 %v6218_v6, %v6216_v44 }
 0x319   : > { %1286 = vadd.xlane.f32.xlu2 %v1285_v47 }
 0x31a   : > { %v1005_v43 = vpop.xlane.xlu2 %1004 }
 0x31b   : > { %v1077_v35 = vsub.f32 %v6040_v45, %v1005_v43  ;;  %v1078_v38 = vsub.f32 %v6042_v46, %v1005_v43 }
 0x31d   : > { %v1185_v30 = vmul.f32 1.442695, %v1077_v35  ;;  %v1187_v3 = vmul.f32 1.442695, %v1078_v38 }
 0x31f   : > { %5292 = vpow2.f32 %v1185_v30 }
 0x320   : > { %5294 = vpow2.f32 %v1187_v3 }
 0x322   : > { %v1245_v12 = vpop.xlane.xlu2 %1244  ;;  %v1008_v40 = vpop.xlane.xlu1 %1007 }
 0x323   : > { %5296 = vrcp.f32 %v1245_v12  ;;  %v1079_v32 = vsub.f32 %v6052_v50, %v1008_v40  ;;  %v1080_v63 = vsub.f32 %v6054_v53, %v1008_v40  ;;  %vm1416_vm2 = vweird.f32 %v1245_v12 }
 0x325   : > { %v6228_v6 = vpop.eup %5292  ;;  %v1189_v47 = vmul.f32 1.442695, %v1079_v32  ;;  %v1191_v44 = vmul.f32 1.442695, %v1080_v63 }
 0x326   : > { %10671 = vst [vmem:[#allocation28_spill] sm:$0xff] %v6228_v6  ;;  %v6230_v31 = vpop.eup %5294 }
 0x327   : > { %10672 = vst [vmem:[#allocation29_spill] sm:$0xff] %v6230_v31  ;;  %5298 = vpow2.f32 %v1189_v47  ;;  %v1291_v45 = vadd.f32 %v6230_v31, %v6228_v6 }
 0x328   : > { %5300 = vpow2.f32 %v1191_v44 }
 0x329   : > { %v5297_v46 = vpop.eup %5296  ;;  %1292 = vadd.xlane.f32.xlu2 %v1291_v45 }
 0x32a   : > { %v1412_v43 = vmul.f32 %v5297_v46, %v1245_v12  ;;  %v1248_v35 = vpop.xlane.xlu1 %1247  ;;  %v1011_v38 = vpop.xlane.xlu2 %1010  ;;  %vm1417_vm1 = vweird.f32 %v5297_v46 }
 0x32b   : > { %5302 = vrcp.f32 %v1248_v35  ;;  %v1081_v50 = vsub.f32 %v6066_v17, %v1011_v38  ;;  %v1082_v53 = vsub.f32 %v6068_v21, %v1011_v38  ;;  %vm6251_vm3 = vmor %vm1416_vm2, %vm1417_vm1  ;;  %vm1431_vm5 = vweird.f32 %v1248_v35 }
 0x32c   : > { %v1413_v30 = vsub.f32 1.0, %v1412_v43 }
 0x32d   : > { %v6236_v3 = vpop.eup %5298  ;;  %v1193_v63 = vmul.f32 1.442695, %v1081_v50  ;;  %v1195_v40 = vmul.f32 1.442695, %v1082_v53  ;;  %v1422_v53 = vand.u32 2147483648, %v1245_v12 }
 0x32e   : > { %10673 = vst [vmem:[#allocation30_spill] sm:$0xff] %v6236_v3  ;;  %v6238_v32 = vpop.eup %5300  ;;  %v1414_v47 = vmul.f32 %v5297_v46, %v1413_v30  ;;  %v1420_v30 = vand.u32 2147483647, %v1245_v12 }
 0x32f   : > { %10674 = vst [vmem:[#allocation31_spill] sm:$0xff] %v6238_v32  ;;  %5304 = vpow2.f32 %v1193_v63  ;;  %v1294_v44 = vadd.f32 %v6238_v32, %v6236_v3  ;;  %v1423_v12 = vor.u32 1.1754944e-38, %v1422_v53 }
 0x330   : > { %5306 = vpow2.f32 %v1195_v40  ;;  %v1415_v38 = vadd.f32 %v5297_v46, %v1414_v47  ;;  %vm1421_vm6 = vcmp.eq.f32.partialorder %v1420_v30, 8.507059e+37 }
 0x331   : > { %v5303_v45 = vpop.eup %5302  ;;  %1295 = vadd.xlane.f32.xlu1 %v1294_v44 }
 0x332   : > { %v1427_v31 = vmul.f32 %v5303_v45, %v1248_v35  ;;  %v6242_v6 = vpop.xlane.xlu2 %1250  ;;  %v1014_v17 = vpop.xlane.xlu1 %1013  ;;  %vm1432_vm4 = vweird.f32 %v5303_v45  ;;  %v1419_v47 = vsel %vm6251_vm3, %v5297_v46, %v1415_v38 }
 0x333   : > { %v1083_v21 = vsub.f32 %v6080_v11, %v1014_v17  ;;  %v1084_v43 = vsub.f32 %v6082_v26, %v1014_v17  ;;  %5308 = vrcp.f32 %v6242_v6  ;;  %v1437_v26 = vand.u32 2147483648, %v1248_v35  ;;  %vm1433_vm7 = vmor %vm1431_vm5, %vm1432_vm4 }
 0x334   : > { %v1428_v50 = vsub.f32 1.0, %v1427_v31  ;;  %v1435_v17 = vand.u32 2147483647, %v1248_v35  ;;  %v6261_v3 = vsel %vm1421_vm6, %v1423_v12, %v1419_v47  ;;  %vm1446_vm13 = vweird.f32 %v6242_v6 }
 0x335   : > { %v6246_v63 = vpop.eup %5304  ;;  %v1197_v10 = vmul.f32 1.442695, %v1083_v21  ;;  %v1199_v32 = vmul.f32 1.442695, %v1084_v43  ;;  %v1438_v2 = vor.u32 1.1754944e-38, %v1437_v26 }
 0x336   : > { %v6248_v40 = vpop.eup %5306  ;;  %v1429_v11 = vmul.f32 %v5303_v45, %v1428_v50  ;;  %vm1436_vm8 = vcmp.eq.f32.partialorder %v1435_v17, 8.507059e+37 }
 0x337   : > { %10675 = vst [vmem:[#allocation32_spill] sm:$0xff] %v6248_v40  ;;  %5310 = vpow2.f32 %v1197_v10  ;;  %v1297_v31 = vadd.f32 %v6248_v40, %v6246_v63 }
 0x338   : > { %5312 = vpow2.f32 %v1199_v32  ;;  %v1430_v21 = vadd.f32 %v5303_v45, %v1429_v11  ;;  %v1814_v11 = vmul.f32 %v6048_v41, %v6261_v3 }
 0x339   : > { %1298 = vadd.xlane.f32.xlu2 %v1297_v31  ;;  %v6266_v32 = vpop.eup %5308 }
 0x33a   : > { %v6259_v43 = vpop.xlane.xlu1 %1253  ;;  %v1017_v50 = vpop.xlane.xlu2 %1016  ;;  %v1434_v10 = vsel %vm1433_vm7, %v5303_v45, %v1430_v21  ;;  %vm1447_vm10 = vweird.f32 %v6266_v32 }
 0x33b   : > { %5314 = vrcp.f32 %v6259_v43  ;;  %v1085_v44 = vsub.f32 %v6094_v8, %v1017_v50  ;;  %v1086_v46 = vsub.f32 %v6096_v1, %v1017_v50  ;;  %v6268_v35 = vsel %vm1436_vm8, %v1438_v2, %v1434_v10  ;;  %vm6347_vm14 = vmor %vm1446_vm13, %vm1447_vm10 }
 0x33c   : > { %v1816_v45 = vmul.f32 %v6062_v51, %v6268_v35  ;;  %v1442_v2 = vmul.f32 %v6266_v32, %v6242_v6  ;;  %vm1461_vm11 = vweird.f32 %v6259_v43 }
 0x33d   : > { %v6270_v38 = vpop.eup %5310  ;;  %v1201_v53 = vmul.f32 1.442695, %v1085_v44  ;;  %v1203_v30 = vmul.f32 1.442695, %v1086_v46 }
 0x33e   : > { %v6276_v26 = vpop.eup %5312  ;;  %v6280_v1 = vpack.c.bf16 %v1816_v45, %v1814_v11  ;;  %v1443_v21 = vsub.f32 1.0, %v1442_v2  ;;  %v1033_v11 = vsub.f32 %v5876_v27, %v6000_v18  ;;  %v1034_v2 = vsub.f32 %v5878_v28, %v6000_v18 }
 0x33f   : > { %10678 = vst [vmem:[#allocation33_spill] sm:$0xff] %v6276_v26  ;;  %5316 = vpow2.f32 %v1201_v53  ;;  %v1300_v8 = vadd.f32 %v6276_v26, %v6270_v38  ;;  %v5137_v53 = vld [vmem:[%s10381_s1 + $0x20] sm:$0xff]  ;;  %v1467_v28 = vand.u32 2147483648, %v6259_v43  ;;  %v1037_v26 = vsub.f32 %v5890_v33, %v6010_v23 }
 0x340   : > { %10679 = vst [vmem:[#allocation34_spill] sm:$0xff] %v6280_v1  ;;  %5318 = vpow2.f32 %v1203_v30  ;;  %456 = vmatmul.bf16.gmra.mxu0 %v5137_v53  ;;  %525 = vmatmul.bf16.gmra.mxu1 %v5137_v53 }
 0x341   : > { %v6284_v31 = vpop.eup %5314  ;;  %1301 = vadd.xlane.f32.xlu1 %v1300_v8 }
 0x342   : > { %v1457_v41 = vmul.f32 %v6284_v31, %v6259_v43  ;;  %v6288_v47 = vpop.xlane.xlu2 %1256  ;;  %v1020_v51 = vpop.xlane.xlu1 %1019  ;;  %vm1462_vm9 = vweird.f32 %v6284_v31 }
 0x343   : > { %5320 = vrcp.f32 %v6288_v47  ;;  %v1087_v17 = vsub.f32 %v6112_v58, %v1020_v51  ;;  %v1088_v12 = vsub.f32 %v6114_v4, %v1020_v51  ;;  %v1444_v4 = vmul.f32 %v6266_v32, %v1443_v21  ;;  %vm6331_vm12 = vmor %vm1461_vm11, %vm1462_vm9 }
 0x344   : > { %v1458_v50 = vsub.f32 1.0, %v1457_v41  ;;  %v1097_v41 = vmul.f32 1.442695, %v1033_v11  ;;  %vm1476_vm2 = vweird.f32 %v6288_v47  ;;  %v1480_v33 = vand.u32 2147483647, %v6288_v47 }
 0x345   : > { %v6293_v10 = vpop.eup %5316  ;;  %v1205_v44 = vmul.f32 1.442695, %v1087_v17  ;;  %v1207_v46 = vmul.f32 1.442695, %v1088_v12 }
 0x346   : > { %v6298_v30 = vpop.eup %5318  ;;  %v1459_v45 = vmul.f32 %v6284_v31, %v1458_v50  ;;  %vm1481_vm8 = vcmp.eq.f32.partialorder %v1480_v33, 8.507059e+37 }
 0x347   : > { %10680 = vst [vmem:[#allocation35_spill] sm:$0xff] %v6298_v30  ;;  %5322 = vpow2.f32 %v1205_v44  ;;  %v1303_v58 = vadd.f32 %v6298_v30, %v6293_v10  ;;  %v1445_v44 = vadd.f32 %v6266_v32, %v1444_v4 }
 0x348   : > { %5324 = vpow2.f32 %v1207_v46  ;;  %v1460_v12 = vadd.f32 %v6284_v31, %v1459_v45  ;;  %v1465_v46 = vand.u32 2147483647, %v6259_v43  ;;  %v1450_v43 = vand.u32 2147483647, %v6242_v6 }
 0x349   : > { %v6306_v8 = vpop.eup %5320  ;;  %1304 = vadd.xlane.f32.xlu2 %v1303_v58 }
 0x34a   : > { %v1472_v27 = vmul.f32 %v6306_v8, %v6288_v47  ;;  %v6312_v51 = vpop.xlane.xlu1 %1259  ;;  %v1023_v17 = vpop.xlane.xlu0 %1022  ;;  %vm1466_vm15 = vcmp.eq.f32.partialorder %v1465_v46, 8.507059e+37  ;;  %vm1451_vm1 = vcmp.eq.f32.partialorder %v1450_v43, 8.507059e+37  ;;  %vm1477_vm3 = vweird.f32 %v6306_v8 }
 0x34b   : > { %5326 = vrcp.f32 %v6312_v51  ;;  %v1089_v21 = vsub.f32 %v6126_v48, %v1023_v17  ;;  %v1090_v50 = vsub.f32 %v6128_v62, %v1023_v17  ;;  %v1452_v48 = vand.u32 2147483648, %v6242_v6  ;;  %vm6399_vm6 = vmor %vm1476_vm2, %vm1477_vm3 }
 0x34c   : > { %v6320_v18 = vpop.xlane.xlu2 %1262  ;;  %v1473_v11 = vsub.f32 1.0, %v1472_v27  ;;  %v1464_v27 = vsel %vm6331_vm12, %v6284_v31, %v1460_v12  ;;  %v1449_v6 = vsel %vm6347_vm14, %v6266_v32, %v1445_v44  ;;  %v1099_v31 = vmul.f32 1.442695, %v1034_v2 }
 0x34d   : > { %v6326_v53 = vpop.eup %5322  ;;  %v1209_v45 = vmul.f32 1.442695, %v1089_v21  ;;  %v1211_v58 = vmul.f32 1.442695, %v1090_v50  ;;  %5328 = vrcp.f32 %v6320_v18  ;;  %v1468_v50 = vor.u32 1.1754944e-38, %v1467_v28 }
 0x34e   : > { %v6335_v4 = vpop.eup %5324  ;;  %v1474_v12 = vmul.f32 %v6306_v8, %v1473_v11  ;;  %v1038_v32 = vsub.f32 %v5892_v34, %v6010_v23  ;;  %v5138_v34 = vld [vmem:[%s10381_s1 + $0x28] sm:$0xff]  ;;  %vm1491_vm5 = vweird.f32 %v6312_v51  ;;  %vm1506_vm12 = vweird.f32 %v6320_v18 }
 0x34f   : > { %5330 = vpow2.f32 %v1209_v45  ;;  %v1306_v17 = vadd.f32 %v6335_v4, %v6326_v53  ;;  %v1453_v45 = vor.u32 1.1754944e-38, %v1452_v48  ;;  %v6357_v62 = vsel %vm1466_vm15, %v1468_v50, %v1464_v27 }
 0x350   : > { %5332 = vpow2.f32 %v1211_v58  ;;  %v1820_v48 = vmul.f32 %v6090_v57, %v6357_v62  ;;  %v1475_v23 = vadd.f32 %v6306_v8, %v1474_v12  ;;  %461 = vmatmul.bf16.gmra.mxu0 %v5138_v34  ;;  %530 = vmatmul.bf16.gmra.mxu1 %v5138_v34 }
 0x351   : > { %v6354_v40 = vpop.eup %5326  ;;  %1307 = vadd.xlane.f32.xlu1 %v1306_v17  ;;  %5334 = vpow2.f32 %v1097_v41  ;;  %v6367_v44 = vsel %vm1451_vm1, %v1453_v45, %v1449_v6  ;;  %v1497_v6 = vand.u32 2147483648, %v6312_v51 }
 0x352   : > { %v1487_v28 = vmul.f32 %v6354_v40, %v6312_v51  ;;  %v1026_v58 = vpop.xlane.xlu1 %1025  ;;  %vm1492_vm4 = vweird.f32 %v6354_v40  ;;  %v1818_v57 = vmul.f32 %v6076_v54, %v6367_v44 }
 0x353   : > { %v1091_v2 = vsub.f32 %v6150_v13, %v1026_v58  ;;  %v6369_v46 = vpop.eup %5328  ;;  %v1092_v11 = vsub.f32 %v6152_v14, %v1026_v58  ;;  %v1482_v13 = vand.u32 2147483648, %v6288_v47  ;;  %vm6414_vm7 = vmor %vm1491_vm5, %vm1492_vm4 }
 0x354   : > { %v1488_v41 = vsub.f32 1.0, %v1487_v28  ;;  %v1495_v28 = vand.u32 2147483647, %v6312_v51  ;;  %v6405_v58 = vpack.c.bf16 %v1820_v48, %v1818_v57  ;;  %v1039_v51 = vsub.f32 %v5896_v36, %v6018_v29 }
 0x355   : > { %v6375_v43 = vpop.eup %5330  ;;  %v1213_v27 = vmul.f32 1.442695, %v1091_v2  ;;  %v1215_v14 = vmul.f32 1.442695, %v1092_v11  ;;  %v1105_v2 = vmul.f32 1.442695, %v1037_v26  ;;  %v1479_v11 = vsel %vm6399_vm6, %v6306_v8, %v1475_v23 }
 0x356   : > { %v6383_v17 = vpop.eup %5332  ;;  %v1489_v21 = vmul.f32 %v6354_v40, %v1488_v41  ;;  %v1502_v41 = vmul.f32 %v6369_v46, %v6320_v18  ;;  %v1483_v34 = vor.u32 1.1754944e-38, %v1482_v13  ;;  %v1107_v36 = vmul.f32 1.442695, %v1038_v32 }
 0x357   : > { %5336 = vpow2.f32 %v1213_v27  ;;  %v1309_v50 = vadd.f32 %v6383_v17, %v6375_v43  ;;  %v6393_v12 = vpop.eup %5334  ;;  %v10414_v27 = vmov 1065369472   ;;  %vm1496_vm9 = vcmp.eq.f32.partialorder %v1495_v28, 8.507059e+37 }
 0x358   : > { %5338 = vpow2.f32 %v1215_v14  ;;  %v1490_v54 = vadd.f32 %v6354_v40, %v1489_v21  ;;  %1897 = vxpose.xlu0.c.b16.start [1/8] (narrow) %v10414_v27, 16  ;;  %v1498_v21 = vor.u32 1.1754944e-38, %v1497_v6  ;;  %v6429_v57 = vsel %vm1481_vm8, %v1483_v34, %v1479_v11 }
 0x359   : > { %1310 = vadd.xlane.f32.xlu2 %v1309_v50  ;;  %v1503_v33 = vsub.f32 1.0, %v1502_v41  ;;  %v1069_v28 = vsub.f32 %v6002_v19, %v6208_v5  ;;  %v1070_v34 = vsub.f32 %v6004_v20, %v6208_v5  ;;  %vm1507_vm10 = vweird.f32 %v6369_v46 }
 0x35a   : > { %v6420_v48 = vpop.xlane.xlu1 %1265  ;;  %v1029_v26 = vpop.xlane.xlu2 %1028  ;;  %v1494_v8 = vsel %vm6414_vm7, %v6354_v40, %v1490_v54  ;;  %v1109_v54 = vmul.f32 1.442695, %v1039_v51  ;;  %v5139_v51 = vld [vmem:[%s10381_s1 + $0x30] sm:$0xff]  ;;  %vm6486_vm13 = vmor %vm1506_vm12, %vm1507_vm10 }
 0x35b   : > { %5340 = vrcp.f32 %v6420_v48  ;;  %v1093_v23 = vsub.f32 %v6164_v52, %v1029_v26  ;;  %v1094_v14 = vsub.f32 %v6166_v22, %v1029_v26  ;;  %v6433_v27 = vsel %vm1496_vm9, %v1498_v21, %v1494_v8 }
 0x35c   : > { %5342 = vpow2.f32 %v1099_v31  ;;  %v1040_v52 = vsub.f32 %v5898_v37, %v6018_v29  ;;  %v1822_v31 = vmul.f32 %v6104_v60, %v6429_v57  ;;  %v1824_v32 = vmul.f32 %v6122_v0, %v6433_v27 }
 0x35d   : > { %v6431_v50 = vpop.eup %5336  ;;  %v1217_v13 = vmul.f32 1.442695, %v1093_v23  ;;  %v1219_v45 = vmul.f32 1.442695, %v1094_v14  ;;  %5344 = vpow2.f32 %v1105_v2  ;;  %v1504_v37 = vmul.f32 %v6369_v46, %v1503_v33 }
 0x35e   : > { %v6435_v40 = vpop.eup %5338  ;;  %v6458_v0 = vpack.c.bf16 %v1824_v32, %v1822_v31  ;;  %v1111_v11 = vmul.f32 1.442695, %v1040_v52  ;;  %v1169_v8 = vmul.f32 1.442695, %v1069_v28  ;;  %v1510_v21 = vand.u32 2147483647, %v6320_v18 }
 0x35f   : > { %5346 = vpow2.f32 %v1217_v13  ;;  %v1312_v22 = vadd.f32 %v6435_v40, %v6431_v50  ;;  %v1505_v23 = vadd.f32 %v6369_v46, %v1504_v37  ;;  %vm1521_vm14 = vweird.f32 %v6420_v48 }
 0x360   : > { %5348 = vpow2.f32 %v1219_v45  ;;  %466 = vmatmul.bf16.gmra.mxu0 %v5139_v51  ;;  %535 = vmatmul.bf16.gmra.mxu1 %v5139_v51  ;;  %v1525_v52 = vand.u32 2147483647, %v6420_v48  ;;  %v1171_v32 = vmul.f32 1.442695, %v1070_v34  ;;  %vm1511_vm1 = vcmp.eq.f32.partialorder %v1510_v21, 8.507059e+37 }
 0x361   : > { %v6445_v6 = vpop.eup %5340  ;;  %5350 = vpow2.f32 %v1107_v36  ;;  %1313 = vadd.xlane.f32.xlu1 %v1312_v22  ;;  %v1512_v36 = vand.u32 2147483648, %v6320_v18  ;;  %v1527_v22 = vand.u32 2147483648, %v6420_v48  ;;  %v1067_v18 = vsub.f32 %v5994_v15, %v6210_v49 }
 0x362   : > { %v6450_v29 = vpop.eup %5342  ;;  %5352 = vpow2.f32 %v1109_v54  ;;  %v1517_v2 = vmul.f32 %v6445_v6, %v6420_v48  ;;  %v6454_v41 = vpop.xlane.xlu1 %1241  ;;  %vm1522_vm11 = vweird.f32 %v6445_v6  ;;  %v1509_v28 = vsel %vm6486_vm13, %v6369_v46, %v1505_v23 }
 0x363   : > { %10689 = vst [vmem:[#allocation36_spill] sm:$0xff] %v6450_v29  ;;  %v6456_v60 = vpop.xlane.xlu2 %1268  ;;  %5354 = vrcp.f32 %v6454_v41  ;;  %v6461_v47 = vpop.eup %5344  ;;  %vm6503_vm15 = vmor %vm1521_vm14, %vm1522_vm11  ;;  %v1075_v48 = vsub.f32 %v6032_v56, %v6222_v9  ;;  %v10695_v51 = vmov 1065369472   ;;  %v1076_v23 = vsub.f32 %v6034_v59, %v6222_v9 }
 0x364   : > { %v1518_v19 = vsub.f32 1.0, %v1517_v2  ;;  %5356 = vrcp.f32 %v6456_v60  ;;  %vm1526_vm2 = vcmp.eq.f32.partialorder %v1525_v52, 8.507059e+37  ;;  %v1165_v37 = vmul.f32 1.442695, %v1067_v18 }
 0x365   : > { %v6467_v26 = vpop.eup %5346  ;;  %5358 = vpow2.f32 %v1111_v11  ;;  %v1068_v59 = vsub.f32 %v5996_v16, %v6210_v49  ;;  %vm1536_vm4 = vweird.f32 %v6456_v60  ;;  %vm1401_vm12 = vweird.f32 %v6454_v41 }
 0x366   : > { %v6473_v14 = vpop.eup %5348  ;;  %v1519_v33 = vmul.f32 %v6445_v6, %v1518_v19  ;;  %5360 = vpow2.f32 %v1169_v8  ;;  %v1513_v19 = vor.u32 1.1754944e-38, %v1512_v36  ;;  %v1528_v36 = vor.u32 1.1754944e-38, %v1527_v22 }
 0x367   : > { %v6479_v13 = vpop.eup %5350  ;;  %v1315_v20 = vadd.f32 %v6473_v14, %v6467_v26  ;;  %v1181_v22 = vmul.f32 1.442695, %v1075_v48  ;;  %v1542_v48 = vand.u32 2147483648, %v6456_v60 }
 0x368   : > { %10690 = vst [vmem:[#allocation37_spill] sm:$0xff] %v6479_v13  ;;  %v6484_v5 = vpop.eup %5352  ;;  %v1520_v54 = vadd.f32 %v6445_v6, %v1519_v33  ;;  %1898 = vxpose.xlu0.c.b16.cont [2/8] (narrow) %v10695_v51, 16  ;;  %v6524_v21 = vsel %vm1511_vm1, %v1513_v19, %v1509_v28  ;;  %v1231_v9 = vadd.f32 %v6479_v13, %v6461_v47 }
 0x369   : > { %v6494_v31 = vpop.eup %5354  ;;  %1316 = vadd.xlane.f32.xlu2 %v1315_v20  ;;  %v1826_v28 = vmul.f32 %v6136_v55, %v6524_v21  ;;  %v1167_v55 = vmul.f32 1.442695, %v1068_v59 }
 0x36a   : > { %v6507_v2 = vpop.eup %5356  ;;  %v6511_v11 = vpop.xlane.xlu1 %1271  ;;  %v1524_v46 = vsel %vm6503_vm15, %v6445_v6, %v1520_v54  ;;  %v1397_v6 = vmul.f32 %v6494_v31, %v6454_v41  ;;  %vm1402_vm10 = vweird.f32 %v6494_v31 }
 0x36b   : > { %v1032_v15 = vpop.xlane.xlu2 %1031  ;;  %v1532_v34 = vmul.f32 %v6507_v2, %v6456_v60  ;;  %5362 = vrcp.f32 %v6511_v11  ;;  %v6526_v33 = vpop.eup %5358  ;;  %vm1537_vm3 = vweird.f32 %v6507_v2  ;;  %v1555_v59 = vand.u32 2147483647, %v6511_v11  ;;  %vm6602_vm13 = vmor %vm1401_vm12, %vm1402_vm10 }
 0x36c   : > { %v1095_v8 = vsub.f32 %v6192_v39, %v1032_v15  ;;  %v1096_v56 = vsub.f32 %v6194_v61, %v1032_v15  ;;  %10696 = vst [vmem:[#allocation38_spill] sm:$0xff] %v6526_v33  ;;  %5364 = vpow2.f32 %v1171_v32  ;;  %v6530_v39 = vsel %vm1526_vm2, %v1528_v36, %v1524_v46  ;;  %v6532_v61 = vpop.eup %5360  ;;  %vm6556_vm5 = vmor %vm1536_vm4, %vm1537_vm3 }
 0x36d   : > { %v1533_v20 = vsub.f32 1.0, %v1532_v34  ;;  %v1828_v18 = vmul.f32 %v6160_v7, %v6530_v39  ;;  %v1183_v15 = vmul.f32 1.442695, %v1076_v23  ;;  %v1398_v19 = vsub.f32 1.0, %v1397_v6 }
 0x36e   : > { %v1221_v45 = vmul.f32 1.442695, %v1095_v8  ;;  %v1223_v54 = vmul.f32 1.442695, %v1096_v56  ;;  %v1540_v7 = vand.u32 2147483647, %v6456_v60  ;;  %vm1551_vm8 = vweird.f32 %v6511_v11 }
 0x36f   : > { %v1534_v52 = vmul.f32 %v6507_v2, %v1533_v20  ;;  %v6549_v34 = vpack.c.bf16 %v1828_v18, %v1826_v28  ;;  %v1557_v20 = vand.u32 2147483648, %v6511_v11  ;;  %vm1556_vm11 = vcmp.eq.f32.partialorder %v1555_v59, 8.507059e+37  ;;  %v10704_v59 = vld [vmem:[#allocation22_spill] sm:$0xff] }
 0x370   : > { %5366 = vpow2.f32 %v1221_v45  ;;  %v1399_v45 = vmul.f32 %v6494_v31, %v1398_v19  ;;  %vm1541_vm7 = vcmp.eq.f32.partialorder %v1540_v7, 8.507059e+37  ;;  %v10701_v7 = vld [vmem:[#allocation19_spill] sm:$0xff]  ;;  %v1405_v23 = vand.u32 2147483647, %v6454_v41 }
 0x371   : > { %5368 = vpow2.f32 %v1223_v54  ;;  %v5363_v32 = vpop.eup %5362  ;;  %1232 = vadd.xlane.f32.xlu2 %v1231_v9  ;;  %v1535_v16 = vadd.f32 %v6507_v2, %v1534_v52  ;;  %v1543_v54 = vor.u32 1.1754944e-38, %v1542_v48 }
 0x372   : > { %5370 = vpow2.f32 %v1165_v37  ;;  %v1547_v49 = vmul.f32 %v5363_v32, %v6511_v11  ;;  %v6554_v8 = vpop.eup %5364  ;;  %vm1552_vm6 = vweird.f32 %v5363_v32  ;;  %v1400_v48 = vadd.f32 %v6494_v31, %v1399_v45  ;;  %v10702_v45 = vld [vmem:[#allocation20_spill] sm:$0xff] }
 0x373   : > { %v6546_v46 = vpop.xlane.xlu2 %1238  ;;  %10697 = vst [vmem:[#allocation39_spill] sm:$0xff] %v6554_v8  ;;  %v1539_v6 = vsel %vm6556_vm5, %v6507_v2, %v1535_v16  ;;  %v1279_v9 = vadd.f32 %v6554_v8, %v6532_v61  ;;  %v1072_v16 = vsub.f32 %v6014_v25, %v6214_v42  ;;  %vm1553_vm9 = vmor %vm1551_vm8, %vm1552_vm6  ;;  %vm1406_vm1 = vcmp.eq.f32.partialorder %v1405_v23, 8.507059e+37  ;;  %v10713_v23 = vld [vmem:[#allocation18_spill] sm:$0xff] }
 0x374   : > { %5372 = vrcp.f32 %v6546_v46  ;;  %v1548_v56 = vsub.f32 1.0, %v1547_v49  ;;  %v1544_v28 = vsel %vm1541_vm7, %v1543_v54, %v1539_v6  ;;  %v1558_v49 = vor.u32 1.1754944e-38, %v1557_v20 }
 0x375   : > { %5374 = vpow2.f32 %v1181_v22  ;;  %v1071_v22 = vsub.f32 %v6012_v24, %v6214_v42  ;;  %v1407_v6 = vand.u32 2147483648, %v6454_v41  ;;  %v1830_v54 = vmul.f32 %v10702_v45, %v1544_v28 }
 0x376   : > { %v6560_v36 = vpop.eup %5366  ;;  %5376 = vpow2.f32 %v1183_v15  ;;  %v1549_v37 = vmul.f32 %v5363_v32, %v1548_v56  ;;  %v5140_v15 = vld [vmem:[%s10381_s1 + $0x38] sm:$0xff]  ;;  %v1829_v56 = vmul.f32 %v10701_v7, %v1544_v28  ;;  %v1404_v28 = vsel %vm6602_vm13, %v6494_v31, %v1400_v48 }
 0x377   : > { %v6567_v60 = vpop.eup %5368  ;;  %5378 = vpow2.f32 %v1167_v55  ;;  %471 = vmatmul.bf16.gmra.mxu0 %v5140_v15  ;;  %540 = vmatmul.bf16.gmra.mxu1 %v5140_v15  ;;  %v10708_v15 = vld [vmem:[#allocation16_spill] sm:$0xff]  ;;  %v1225_v45 = vadd.f32 %v6450_v29, %v6393_v12  ;;  %vm1386_vm15 = vweird.f32 %v6546_v46  ;;  %v1173_v31 = vmul.f32 1.442695, %v1071_v22 }
 0x378   : > { %v1318_v52 = vadd.f32 %v6567_v60, %v6560_v36  ;;  %v6574_v2 = vpop.eup %5370  ;;  %v1550_v18 = vadd.f32 %v5363_v32, %v1549_v37  ;;  %1899 = vxpose.xlu0.c.b16.cont [3/8] (narrow) %v10695_v51, 16  ;;  %v1827_v41 = vmul.f32 %v10708_v15, %v6530_v39  ;;  %v1408_v39 = vor.u32 1.1754944e-38, %v1407_v6  ;;  %v10710_v6 = vld [vmem:[#allocation12_spill] sm:$0xff] }
 0x379   : > { %1280 = vadd.xlane.f32.xlu2 %v1279_v9  ;;  %v1175_v48 = vmul.f32 1.442695, %v1072_v16  ;;  %v10712_v22 = vld [vmem:[#allocation24_spill] sm:$0xff]  ;;  %5380 = vpow2.f32 %v1173_v31 }
 0x37a   : > { %v5373_v19 = vpop.eup %5372  ;;  %1319 = vadd.xlane.f32.xlu1 %v1318_v52  ;;  %v1554_v55 = vsel %vm1553_vm9, %v5363_v32, %v1550_v18  ;;  %v10703_v32 = vld [vmem:[#allocation21_spill] sm:$0xff] }
 0x37b   : > { %v6587_v24 = vpop.eup %5374  ;;  %v1382_v11 = vmul.f32 %v5373_v19, %v6546_v46  ;;  %v1559_v42 = vsel %vm1556_vm11, %v1558_v49, %v1554_v55  ;;  %v1390_v49 = vand.u32 2147483647, %v6546_v46  ;;  %vm1387_vm14 = vweird.f32 %v5373_v19 }
 0x37c   : > { %v6591_v25 = vpop.eup %5376  ;;  %v1831_v37 = vmul.f32 %v10703_v32, %v1559_v42  ;;  %v1832_v9 = vmul.f32 %v10704_v59, %v1559_v42  ;;  %v10709_v59 = vld [vmem:[#allocation13_spill] sm:$0xff]  ;;  %vm1388_vm2 = vmor %vm1386_vm15, %vm1387_vm14  ;;  %5382 = vpow2.f32 %v1175_v48 }
 0x37d   : > { %10700 = vst [vmem:[#allocation40_spill] sm:$0xff] %v6591_v25  ;;  %v1383_v20 = vsub.f32 1.0, %v1382_v11  ;;  %v6606_v18 = vpop.eup %5378  ;;  %v1392_v11 = vand.u32 2147483648, %v6546_v46  ;;  %v1288_v32 = vadd.f32 %v6591_v25, %v6587_v24  ;;  %v1825_v15 = vmul.f32 %v10709_v59, %v6524_v21  ;;  %v10711_v21 = vld [vmem:[#allocation11_spill] sm:$0xff] }
 0x37e   : > { %10707 = vst [vmem:[#allocation19_spill] sm:$0xff] %v6606_v18  ;;  %v1879_v55 = vpack.c.bf16 %v1831_v37, %v1829_v56  ;;  %v6615_v7 = vpack.c.bf16 %v1832_v9, %v1830_v54  ;;  %v1823_v37 = vmul.f32 %v10710_v6, %v6433_v27  ;;  %vm1391_vm3 = vcmp.eq.f32.partialorder %v1390_v49, 8.507059e+37 }
 0x37f   : > { %v1384_v42 = vmul.f32 %v5373_v19, %v1383_v20  ;;  %v1393_v56 = vor.u32 1.1754944e-38, %v1392_v11  ;;  %v1409_v20 = vsel %vm1406_vm1, %v1408_v39, %v1404_v28  ;;  %v1877_v54 = vpack.c.bf16 %v1827_v41, %v1825_v15  ;;  %v10716_v41 = vld [vmem:[#allocation6_spill] sm:$0xff]  ;;  %v10719_v39 = vld [vmem:[#allocation9_spill] sm:$0xff]  ;;  %v6650_v6 = vpop.eup %5380 }
 0x380   : > { %1913 = vmatpush.bf16.msrb.mxu0 %v1879_v55  ;;  %2013 = vmatpush.bf16.msrb.mxu2 %v1879_v55  ;;  %v1821_v46 = vmul.f32 %v10711_v21, %v6429_v57  ;;  %v1812_v55 = vmul.f32 %v10713_v23, %v1409_v20  ;;  %v1276_v57 = vadd.f32 %v6606_v18, %v6574_v2 }
 0x381   : > { %v1385_v8 = vadd.f32 %v5373_v19, %v1384_v42  ;;  %1226 = vadd.xlane.f32.xlu2 %v1225_v45  ;;  %v10714_v42 = vld [vmem:[#allocation25_spill] sm:$0xff]  ;;  %v1817_v59 = vmul.f32 %v10719_v39, %v6367_v44  ;;  %v10722_v44 = vld [vmem:[#allocation7_spill] sm:$0xff] }
 0x382   : > { %1289 = vadd.xlane.f32.xlu1 %v1288_v32  ;;  %v10715_v45 = vld [vmem:[#allocation5_spill] sm:$0xff]  ;;  %v1066_v28 = vsub.f32 %v10716_v41, %v10714_v42  ;;  %v1875_v27 = vpack.c.bf16 %v1823_v37, %v1821_v46  ;;  %v1234_v32 = vadd.f32 %v6526_v33, %v6484_v5  ;;  %v6652_v37 = vpop.eup %5382  ;;  %v10723_v46 = vld [vmem:[#allocation23_spill] sm:$0xff]  ;;  %v245_v41 = vld [vmem:[%s10383_s3 + $0x8] sm:$0xff] }
 0x383   : > { %v1389_v9 = vsel %vm1388_vm2, %v5373_v19, %v1385_v8  ;;  %v1065_v11 = vsub.f32 %v10715_v45, %v10714_v42  ;;  %v10717_v8 = vld [vmem:[#allocation10_spill] sm:$0xff]  ;;  %10721 = vst [vmem:[#allocation21_spill] sm:$0xff] %v6652_v37 }
 0x384   : > { %v1394_v52 = vsel %vm1391_vm3, %v1393_v56, %v1389_v9  ;;  %1914 = vmatpush.bf16.msrb.mxu0 %v1877_v54  ;;  %2014 = vmatpush.bf16.msrb.mxu2 %v1877_v54  ;;  %v1819_v19 = vmul.f32 %v10717_v8, %v6357_v62  ;;  %v5141_v62 = vld [vmem:[%s10381_s1 + $0x40] sm:$0xff]  ;;  %v1163_v31 = vmul.f32 1.442695, %v1066_v28  ;;  %v10720_v56 = vld [vmem:[#allocation8_spill] sm:$0xff]  ;;  %v1813_v9 = vmul.f32 %v10722_v44, %v6261_v3 }
 0x385   : > { %v1810_v16 = vmul.f32 %v10712_v22, %v1394_v52  ;;  %v1161_v15 = vmul.f32 1.442695, %v1065_v11  ;;  %v1815_v54 = vmul.f32 %v10720_v56, %v6268_v35  ;;  %v1809_v22 = vmul.f32 %v10723_v46, %v1394_v52  ;;  %v5142_v11 = vld [vmem:[%s10381_s1 + $0x48] sm:$0xff]  ;;  %v244_v28 = vld [vmem:[%s10383_s3] sm:$0xff] }
 0x386   : > { %v1873_v48 = vpack.c.bf16 %v1819_v19, %v1817_v59  ;;  %v1282_v35 = vadd.f32 %v6652_v37, %v6650_v6  ;;  %v5729_v3 = vmov 0   ;;  %v247_v19 = vld [vmem:[%s10383_s3 + $0x18] sm:$0xff]  ;;  %v1230_v59 = vpop.xlane.xlu0 %1229  ;;  %v252_v46 = vld [vmem:[%s10383_s3 + $0x40] sm:$0xff] }
 0x387   : > { %v6637_v49 = vpack.c.bf16 %v1812_v55, %v1810_v16  ;;  %476 = vmatmul.bf16.gmra.mxu0 %v5141_v62  ;;  %545 = vmatmul.bf16.gmra.mxu1 %v5141_v62  ;;  %5384 = vpow2.f32 %v1161_v15  ;;  %v1871_v21 = vpack.c.bf16 %v1815_v54, %v1813_v9  ;;  %v10724_v16 = vld [vmem:[#allocation17_spill] sm:$0xff]  ;;  %v249_v15 = vld [vmem:[%s10383_s3 + $0x28] sm:$0xff]  ;;  %v251_v54 = vld [vmem:[%s10383_s3 + $0x38] sm:$0xff]  ;;  %vm1341_vm5 = vweird.f32 %v1230_v59 }
 0x388   : > { %1915 = vmatpush.bf16.msrb.mxu0 %v1875_v27  ;;  %2015 = vmatpush.bf16.msrb.mxu2 %v1875_v27  ;;  %5386 = vpow2.f32 %v1163_v31  ;;  %v1811_v23 = vmul.f32 %v10724_v16, %v1409_v20  ;;  %v5143_v20 = vld [vmem:[%s10381_s1 + $0x50] sm:$0xff] }
 0x389   : > { %10718 = vst [vmem:[#allocation20_spill] sm:$0xff] %v6637_v49  ;;  %1277 = vadd.xlane.f32.xlu2 %v1276_v57  ;;  %1900 = vxpose.xlu0.c.b16.cont [4/8] (narrow) %v10695_v51, 16  ;;  %v246_v27 = vld [vmem:[%s10383_s3 + $0x10] sm:$0xff]  ;;  %v5144_v57 = vld [vmem:[%s10381_s1 + $0x58] sm:$0xff]  ;;  %5388 = vrcp.f32 %v1230_v59 }
 0x38a   : > { %1235 = vadd.xlane.f32.xlu1 %v1234_v32  ;;  %v1869_v55 = vpack.c.bf16 %v1811_v23, %v1809_v22  ;;  %5232 = vset.pattern.permute.xlu2 %v5729_v3  ;;  %v248_v32 = vld [vmem:[%s10383_s3 + $0x20] sm:$0xff]  ;;  %v250_v31 = vld [vmem:[%s10383_s3 + $0x30] sm:$0xff] }
 0x38b   : > { %5231 = vset.pattern.permute.xlu1 %v5729_v3 }
 0x38c   : > { %1916 = vmatpush.bf16.msrb.mxu0 %v1873_v48  ;;  %2016 = vmatpush.bf16.msrb.mxu2 %v1873_v48  ;;  %v6684_v8 = vpop.xlane.xlu2 %1286 }
 0x38d   : > { %v6661_v42 = vpop.eup %5384  ;;  %5390 = vrcp.f32 %v6684_v8  ;;  %vm1626_vm9 = vweird.f32 %v6684_v8 }
 0x38e   : > { %v6663_v45 = vpop.eup %5386 }
 0x38f   : > { %10725 = vst [vmem:[#allocation22_spill] sm:$0xff] %v6663_v45  ;;  %v1273_v52 = vadd.f32 %v6663_v45, %v6661_v42  ;;  %v5389_v56 = vpop.eup %5388 }
 0x390   : > { %1917 = vmatpush.bf16.msrb.mxu0 %v1871_v21  ;;  %2017 = vmatpush.bf16.msrb.mxu2 %v1871_v21  ;;  %v1337_v9 = vmul.f32 %v5389_v56, %v1230_v59  ;;  %vm1342_vm4 = vweird.f32 %v5389_v56 }
 0x391   : > { %vm6761_vm6 = vmor %vm1341_vm5, %vm1342_vm4 }
 0x392   : > { %1283 = vadd.xlane.f32.xlu1 %v1282_v35  ;;  %v1338_v35 = vsub.f32 1.0, %v1337_v9 }
 0x393   : > { %v6715_v21 = vpop.eup %5390 }
 0x394   : > { %1918 = vmatpush.bf16.msrb.mxu0 %v1869_v55  ;;  %2018 = vmatpush.bf16.msrb.mxu2 %v1869_v55  ;;  %v1622_v16 = vmul.f32 %v6715_v21, %v6684_v8  ;;  %v253_v55 = vld [vmem:[%s10383_s3 + $0x48] sm:$0xff]  ;;  %vm1627_vm7 = vweird.f32 %v6715_v21 }
 0x395   : > { %vm6782_vm10 = vmor %vm1626_vm9, %vm1627_vm7 }
 0x397   : > { %481 = vmatmul.bf16.gmra.mxu0 %v5142_v11  ;;  %550 = vmatmul.bf16.gmra.mxu1 %v5142_v11  ;;  %v1339_v11 = vmul.f32 %v5389_v56, %v1338_v35  ;;  %v255_v35 = vld [vmem:[%s10383_s3 + $0x58] sm:$0xff] }
 0x399   : > { %1901 = vxpose.xlu0.c.b16.cont [5/8] (narrow) %v10695_v51, 16 }
 0x39a   : > { %1274 = vadd.xlane.f32.xlu1 %v1273_v52 }
 0x39c   : > { %v6695_v39 = vpop.xlane.xlu2 %1292 }
 0x39d   : > { %5392 = vrcp.f32 %v6695_v39  ;;  %v1662_v37 = vand.u32 2147483648, %v6695_v39  ;;  %vm1656_vm13 = vweird.f32 %v6695_v39 }
 0x3a1   : > { %581 = vperm.xlu2 %5232, %v245_v41  }
 0x3a3   : > { %v6726_v23 = vpop.eup %5392 }
 0x3a4   : > { %v6701_v62 = vpop.xlane.xlu1 %1295  ;;  %vm1657_vm11 = vweird.f32 %v6726_v23 }
 0x3a5   : > { %5394 = vrcp.f32 %v6701_v62  ;;  %vm6817_vm15 = vmor %vm1656_vm13, %vm1657_vm11  ;;  %vm1671_vm2 = vweird.f32 %v6701_v62 }
 0x3a7   : > { %486 = vmatmul.bf16.gmra.mxu0 %v5143_v20  ;;  %555 = vmatmul.bf16.gmra.mxu1 %v5143_v20  ;;  %v1623_v20 = vsub.f32 1.0, %v1622_v16  ;;  %v1632_v16 = vand.u32 2147483648, %v6684_v8 }
 0x3a9   : > { %1902 = vxpose.xlu0.c.b16.cont [6/8] (narrow) %v10695_v51, 16  ;;  %586 = vperm.xlu2 %5232, %v246_v27  }
 0x3ab   : > { %v6732_v3 = vpop.eup %5394 }
 0x3ac   : > { %v6707_v48 = vpop.xlane.xlu2 %1298  ;;  %v1667_v41 = vmul.f32 %v6732_v3, %v6701_v62  ;;  %vm1672_vm12 = vweird.f32 %v6732_v3 }
 0x3ad   : > { %vm6829_vm3 = vmor %vm1671_vm2, %vm1672_vm12  ;;  %v1692_v33 = vand.u32 2147483648, %v6707_v48 }
 0x3b1   : > { %596 = vperm.xlu2 %5232, %v248_v32   ;;  %v1340_v32 = vadd.f32 %v5389_v56, %v1339_v11 }
 0x3b3   : > { %576 = vperm.xlu1 %5231, %v244_v28   ;;  %v254_v28 = vld [vmem:[%s10383_s3 + $0x50] sm:$0xff] }
 0x3b4   : > { %v6712_v44 = vpop.xlane.xlu1 %1301 }
 0x3b5   : > { %5396 = vrcp.f32 %v6712_v44  ;;  %v1705_v49 = vand.u32 2147483647, %v6712_v44 }
 0x3b6   : > { %5398 = vrcp.f32 %v6707_v48 }
 0x3b7   : > { %491 = vmatmul.bf16.gmra.mxu0 %v5144_v57  ;;  %560 = vmatmul.bf16.gmra.mxu1 %v5144_v57  ;;  %v1624_v57 = vmul.f32 %v6715_v21, %v1623_v20  ;;  %vm1706_vm12 = vcmp.eq.f32.partialorder %v1705_v49, 8.507059e+37 }
 0x3b9   : > { %1903 = vxpose.xlu0.c.b16.cont [7/8] (narrow) %v10695_v51, 16  ;;  %606 = vperm.xlu2 %5232, %v250_v31   ;;  %v1345_v31 = vand.u32 2147483647, %v1230_v59 }
 0x3bb   : > { %591 = vperm.xlu1 %5231, %v247_v19   ;;  %v6746_v19 = vpop.eup %5396  ;;  %vm1346_vm8 = vcmp.eq.f32.partialorder %v1345_v31, 8.507059e+37  ;;  %v1630_v31 = vand.u32 2147483647, %v6684_v8  ;;  %v1675_v8 = vand.u32 2147483647, %v6701_v62 }
 0x3bc   : > { %v6721_v22 = vpop.xlane.xlu2 %1304  ;;  %vm1702_vm5 = vweird.f32 %v6746_v19 }
 0x3bd   : > { %vm1631_vm14 = vcmp.eq.f32.partialorder %v1630_v31, 8.507059e+37  ;;  %v1663_v31 = vor.u32 1.1754944e-38, %v1662_v37  ;;  %vm6833_vm4 = vcmp.eq.f32.partialorder %v1675_v8, 8.507059e+37  ;;  %vm1716_vm13 = vweird.f32 %v6721_v22 }
 0x3c1   : > { %616 = vperm.xlu2 %5232, %v252_v46   ;;  %v1668_v46 = vsub.f32 1.0, %v1667_v41 }
 0x3c3   : > { %601 = vperm.xlu1 %5231, %v249_v15   ;;  %v1347_v15 = vand.u32 2147483648, %v1230_v59  ;;  %v1344_v59 = vsel %vm6761_vm6, %v5389_v56, %v1340_v32  ;;  %v256_v56 = vld [vmem:[%s10383_s3 + $0x60] sm:$0xff]  ;;  %vm1686_vm6 = vweird.f32 %v6707_v48 }
 0x3c4   : > { %v6734_v52 = vpop.xlane.xlu1 %1307 }
 0x3c5   : > { %5400 = vrcp.f32 %v6734_v52  ;;  %vm1731_vm2 = vweird.f32 %v6734_v52 }
 0x3c6   : > { %5402 = vrcp.f32 %v6721_v22 }
 0x3c9   : > { %1904 = vxpose.xlu0.c.b16.end [8/8] (narrow) %v10695_v51, 16  ;;  %v1652_v51 = vmul.f32 %v6726_v23, %v6695_v39  ;;  %626 = vperm.xlu2 %5232, %v254_v28   ;;  %v1348_v28 = vor.u32 1.1754944e-38, %v1347_v15 }
 0x3cb   : > { %611 = vperm.xlu1 %5231, %v251_v54   ;;  %v6749_v54 = vpop.eup %5398  ;;  %v1653_v9 = vsub.f32 1.0, %v1652_v51  ;;  %v1625_v51 = vadd.f32 %v6715_v21, %v1624_v57  ;;  %v1669_v57 = vmul.f32 %v6732_v3, %v1668_v46  ;;  %v6780_v45 = vsel %vm1346_vm8, %v1348_v28, %v1344_v59 }
 0x3cc   : > { %v6744_v27 = vpop.xlane.xlu2 %1310  ;;  %v1682_v41 = vmul.f32 %v6749_v54, %v6707_v48  ;;  %v1660_v46 = vand.u32 2147483647, %v6695_v39  ;;  %vm1687_vm7 = vweird.f32 %v6749_v54  ;;  %vm1701_vm8 = vweird.f32 %v6712_v44 }
 0x3cd   : > { %v1654_v18 = vmul.f32 %v6726_v23, %v1653_v9  ;;  %v1633_v9 = vor.u32 1.1754944e-38, %v1632_v16  ;;  %v1677_v16 = vand.u32 2147483648, %v6701_v62  ;;  %v1670_v15 = vadd.f32 %v6732_v3, %v1669_v57  ;;  %v258_v62 = vld [vmem:[%s10383_s3 + $0x70] sm:$0xff]  ;;  %vm6897_vm11 = vmor %vm1686_vm6, %vm1687_vm7 }
 0x3ce   : > { %v1683_v28 = vsub.f32 1.0, %v1682_v41  ;;  %vm6821_vm1 = vcmp.eq.f32.partialorder %v1660_v46, 8.507059e+37  ;;  %vm1746_vm7 = vweird.f32 %v6744_v27 }
 0x3cf   : > { %v1655_v25 = vadd.f32 %v6726_v23, %v1654_v18  ;;  %v1678_v46 = vor.u32 1.1754944e-38, %v1677_v16  ;;  %v1693_v18 = vor.u32 1.1754944e-38, %v1692_v33 }
 0x3d1   : > { %636 = vperm.xlu2 %5232, %v256_v56   ;;  %v257_v56 = vld [vmem:[%s10383_s3 + $0x68] sm:$0xff]  ;;  %v1659_v37 = vsel %vm6817_vm15, %v6726_v23, %v1655_v25  ;;  %v1707_v23 = vand.u32 2147483648, %v6712_v44 }
 0x3d3   : > { %621 = vperm.xlu1 %5231, %v253_v55   ;;  %v1697_v55 = vmul.f32 %v6746_v19, %v6712_v44 }
 0x3d4   : > { %v6759_v11 = vpop.xlane.xlu1 %1313 }
 0x3d5   : > { %5404 = vrcp.f32 %v6759_v11  ;;  %v1698_v32 = vsub.f32 1.0, %v1697_v55  ;;  %v1629_v55 = vsel %vm6782_vm10, %v6715_v21, %v1625_v51  ;;  %vm6877_vm10 = vmor %vm1701_vm8, %vm1702_vm5 }
 0x3d6   : > { %5406 = vrcp.f32 %v6744_v27  ;;  %v6826_v39 = vsel %vm1631_vm14, %v1633_v9, %v1629_v55  ;;  %v1690_v9 = vand.u32 2147483647, %v6707_v48  ;;  %v1674_v55 = vsel %vm6829_vm3, %v6732_v3, %v1670_v15 }
 0x3d7   : > { %v1699_v51 = vmul.f32 %v6746_v19, %v1698_v32  ;;  %v1684_v32 = vmul.f32 %v6749_v54, %v1683_v28  ;;  %v6866_v15 = vsel %vm6821_vm1, %v1663_v31, %v1659_v37  ;;  %v6883_v44 = vsel %vm6833_vm4, %v1678_v46, %v1674_v55 }
 0x3d8   : > { %vm6873_vm9 = vcmp.eq.f32.partialorder %v1690_v9, 8.507059e+37  ;;  %v1708_v46 = vor.u32 1.1754944e-38, %v1707_v23  ;;  %v1722_v37 = vand.u32 2147483648, %v6721_v22  ;;  %v1720_v55 = vand.u32 2147483647, %v6721_v22 }
 0x3d9   : > { %646 = vperm.xlu2 %5232, %v258_v62   ;;  %v1700_v1 = vadd.f32 %v6746_v19, %v1699_v51  ;;  %v1685_v3 = vadd.f32 %v6749_v54, %v1684_v32 }
 0x3da   : > { %vm6925_vm1 = vcmp.eq.f32.partialorder %v1720_v55, 8.507059e+37 }
 0x3db   : > { %631 = vperm.xlu1 %5231, %v255_v35   ;;  %v6787_v35 = vpop.eup %5400  ;;  %v1704_v9 = vsel %vm6877_vm10, %v6746_v19, %v1700_v1  ;;  %v1735_v1 = vand.u32 2147483647, %v6734_v52  ;;  %v1689_v19 = vsel %vm6897_vm11, %v6749_v54, %v1685_v3 }
 0x3dc   : > { %v6778_v20 = vpop.xlane.xlu2 %1316  ;;  %v6795_v59 = vpop.eup %5402  ;;  %v1727_v21 = vmul.f32 %v6787_v35, %v6734_v52  ;;  %vm1732_vm14 = vweird.f32 %v6787_v35  ;;  %v6923_v3 = vsel %vm6873_vm9, %v1693_v18, %v1689_v19  ;;  %vm1761_vm9 = vweird.f32 %v6759_v11 }
 0x3dd   : > { %5408 = vrcp.f32 %v6778_v20  ;;  %v6811_v41 = vpop.eup %5404  ;;  %v1712_v29 = vmul.f32 %v6795_v59, %v6721_v22  ;;  %vm1717_vm15 = vweird.f32 %v6795_v59  ;;  %10745 = vst [vmem:[#allocation13_spill] sm:$0xff] %v6923_v3  ;;  %vm6930_vm3 = vcmp.eq.f32.partialorder %v1735_v1, 8.507059e+37  ;;  %vm6938_vm4 = vmor %vm1731_vm2, %vm1732_vm14 }
 0x3de   : > { %v6848_v28 = vpop.eup %5406  ;;  %v1728_v8 = vsub.f32 1.0, %v1727_v21  ;;  %v1757_v16 = vmul.f32 %v6811_v41, %v6759_v11  ;;  %vm1762_vm5 = vweird.f32 %v6811_v41  ;;  %vm6953_vm6 = vmor %vm1716_vm13, %vm1717_vm15  ;;  %v1767_v1 = vand.u32 2147483648, %v6759_v11 }
 0x3df   : > { %v1713_v25 = vsub.f32 1.0, %v1712_v29  ;;  %v1742_v21 = vmul.f32 %v6848_v28, %v6744_v27  ;;  %v259_v29 = vld [vmem:[%s10383_s3 + $0x78] sm:$0xff]  ;;  %vm1747_vm8 = vweird.f32 %v6848_v28  ;;  %vm6973_vm11 = vmor %vm1761_vm9, %vm1762_vm5  ;;  %vm1776_vm13 = vweird.f32 %v6778_v20 }
 0x3e0   : > { %v1758_v57 = vsub.f32 1.0, %v1757_v16  ;;  %v1729_v62 = vmul.f32 %v6787_v35, %v1728_v8  ;;  %v1737_v8 = vand.u32 2147483648, %v6734_v52  ;;  %v6909_v16 = vsel %vm1706_vm12, %v1708_v46, %v1704_v9  ;;  %vm7004_vm14 = vmor %vm1746_vm7, %vm1747_vm8 }
 0x3e1   : > { %v1714_v33 = vmul.f32 %v6795_v59, %v1713_v25  ;;  %v1743_v48 = vsub.f32 1.0, %v1742_v21  ;;  %10744 = vst [vmem:[#allocation16_spill] sm:$0xff] %v6909_v16  ;;  %v6944_v13 = vmul.f32 %v6270_v38, %v6909_v16  ;;  %v1752_v38 = vand.u32 2147483648, %v6744_v27 }
 0x3e2   : > { %v1730_v32 = vadd.f32 %v6787_v35, %v1729_v62  ;;  %v1738_v18 = vor.u32 1.1754944e-38, %v1737_v8  ;;  %v1768_v51 = vor.u32 1.1754944e-38, %v1767_v1 }
 0x3e3   : > { %641 = vperm.xlu1 %5231, %v257_v56   ;;  %v6856_v30 = vpop.eup %5408  ;;  %v1715_v54 = vadd.f32 %v6795_v59, %v1714_v33  ;;  %v1744_v9 = vmul.f32 %v6848_v28, %v1743_v48  ;;  %v1765_v33 = vand.u32 2147483647, %v6759_v11  ;;  %v1750_v48 = vand.u32 2147483647, %v6744_v27 }
 0x3e4   : > { %v6852_v56 = vpop.xlane.xlu2 %1232  ;;  %v1772_v31 = vmul.f32 %v6856_v30, %v6778_v20  ;;  %v1734_v55 = vsel %vm6938_vm4, %v6787_v35, %v1730_v32  ;;  %vm1777_vm10 = vweird.f32 %v6856_v30 }
 0x3e5   : > { %5410 = vrcp.f32 %v6852_v56  ;;  %v1719_v19 = vsel %vm6953_vm6, %v6795_v59, %v1715_v54  ;;  %v1745_v8 = vadd.f32 %v6848_v28, %v1744_v9  ;;  %vm6977_vm12 = vcmp.eq.f32.partialorder %v1765_v33, 8.507059e+37  ;;  %vm7010_vm15 = vmor %vm1776_vm13, %vm1777_vm10 }
 0x3e6   : > { %v1773_v25 = vsub.f32 1.0, %v1772_v31  ;;  %v1723_v31 = vor.u32 1.1754944e-38, %v1722_v37  ;;  %vm7017_vm2 = vcmp.eq.f32.partialorder %v1750_v48, 8.507059e+37  ;;  %v1753_v59 = vor.u32 1.1754944e-38, %v1752_v38 }
 0x3e7   : > { %v1849_v38 = vmul.f32 %v6246_v63, %v6923_v3  ;;  %vm1356_vm8 = vweird.f32 %v6852_v56 }
 0x3e8   : > { %v1774_v52 = vmul.f32 %v6856_v30, %v1773_v25  ;;  %v7027_v1 = vsel %vm6925_vm1, %v1723_v31, %v1719_v19 }
 0x3e9   : > { %v7104_v3 = vpack.c.bf16 %v6944_v13, %v1849_v38 }
 0x3ea   : > { %v1775_v9 = vadd.f32 %v6856_v30, %v1774_v52 }
 0x3eb   : > { %651 = vperm.xlu1 %5231, %v259_v29   ;;  %v1759_v29 = vmul.f32 %v6811_v41, %v1758_v57  ;;  %v6934_v62 = vpop.eup %5410  ;;  %v1782_v57 = vand.u32 2147483648, %v6778_v20 }
 0x3ec   : > { %v6913_v23 = vpop.xlane.xlu2 %1280  ;;  %v1352_v22 = vmul.f32 %v6934_v62, %v6852_v56  ;;  %v1779_v25 = vsel %vm7010_vm15, %v6856_v30, %v1775_v9  ;;  %v1362_v9 = vand.u32 2147483648, %v6852_v56  ;;  %vm1357_vm7 = vweird.f32 %v6934_v62 }
 0x3ed   : > { %v6911_v49 = vpop.xlane.xlu1 %1319  ;;  %v1760_v46 = vadd.f32 %v6811_v41, %v1759_v29  ;;  %v6983_v29 = vsel %vm6930_vm3, %v1738_v18, %v1734_v55  ;;  %v1780_v55 = vand.u32 2147483647, %v6778_v20  ;;  %v1783_v48 = vor.u32 1.1754944e-38, %v1782_v57  ;;  %vm7108_vm9 = vmor %vm1356_vm8, %vm1357_vm7 }
 0x3ee   : > { %5412 = vrcp.f32 %v6911_v49  ;;  %v1353_v18 = vsub.f32 1.0, %v1352_v22  ;;  %v7029_v22 = vpop.f32.mrf.mxu0  ;;  %vm1791_vm4 = vweird.f32 %v6911_v49  ;;  %v1360_v20 = vand.u32 2147483647, %v6852_v56 }
 0x3ef   : > { %5414 = vrcp.f32 %v6913_v23  ;;  %v1764_v33 = vsel %vm6973_vm11, %v6811_v41, %v1760_v46  ;;  %v1749_v46 = vsel %vm7004_vm14, %v6848_v28, %v1745_v8  ;;  %v1797_v28 = vand.u32 2147483648, %v6911_v49 }
 0x3f0   : > { %v7023_v27 = vsel %vm6977_vm12, %v1768_v51, %v1764_v33  ;;  %v1795_v8 = vand.u32 2147483647, %v6911_v49  ;;  %v1855_v33 = vmul.f32 %v6326_v53, %v6983_v29  ;;  %v1354_v31 = vmul.f32 %v6934_v62, %v1353_v18  ;;  %v7045_v51 = vpop.f32.mrf.mxu1 }
 0x3f1   : > { %vm1781_vm1 = vcmp.eq.f32.partialorder %v1780_v55, 8.507059e+37  ;;  %v7056_v53 = vsel %vm7017_vm2, %v1753_v59, %v1749_v46  ;;  %v1363_v56 = vor.u32 1.1754944e-38, %v1362_v9  ;;  %vm7115_vm10 = vcmp.eq.f32.partialorder %v1360_v20, 8.507059e+37 }
 0x3f2   : > { %v7047_v57 = vsel %vm1781_vm1, %v1783_v48, %v1779_v25  ;;  %v1798_v25 = vor.u32 1.1754944e-38, %v1797_v28  ;;  %vm1796_vm6 = vcmp.eq.f32.partialorder %v1795_v8, 8.507059e+37  ;;  %v1853_v8 = vmul.f32 %v6293_v10, %v7027_v1 }
 0x3f3   : > { %v1861_v48 = vmul.f32 %v6467_v26, %v7047_v57  ;;  %v10767_v26 = vld [vmem:[#allocation30_spill] sm:$0xff]  ;;  %vm1596_vm12 = vweird.f32 %v6913_v23 }
 0x3f4   : > { %v5413_v35 = vpop.eup %5412  ;;  %v6989_v54 = vpop.xlane.xlu2 %1226  ;;  %v1891_v63 = vpack.c.bf16 %v1855_v33, %v1853_v8 }
 0x3f5   : > { %v1787_v32 = vmul.f32 %v5413_v35, %v6911_v49  ;;  %v6987_v11 = vpop.xlane.xlu1 %1289  ;;  %vm1792_vm3 = vweird.f32 %v5413_v35  ;;  %v7038_v21 = vpop.eup %5414  ;;  %v1859_v49 = vmul.f32 %v6431_v50, %v7023_v27  ;;  %vm1326_vm11 = vweird.f32 %v6989_v54 }
 0x3f6   : > { %5416 = vrcp.f32 %v6987_v11  ;;  %vm7050_vm5 = vmor %vm1791_vm4, %vm1792_vm3  ;;  %v1592_v50 = vmul.f32 %v7038_v21, %v6913_v23  ;;  %v7101_v10 = vpop.f32.mrf.mxu0  ;;  %v1332_v9 = vand.u32 2147483648, %v6989_v54  ;;  %vm1641_vm1 = vweird.f32 %v6987_v11 }
 0x3f7   : > { %v1788_v37 = vsub.f32 1.0, %v1787_v32  ;;  %5418 = vrcp.f32 %v6989_v54 }
 0x3f8   : > { %v1593_v16 = vsub.f32 1.0, %v1592_v50 }
 0x3f9   : > { %v1789_v32 = vmul.f32 %v5413_v35, %v1788_v37 }
 0x3fb   : > { %v1790_v19 = vadd.f32 %v5413_v35, %v1789_v32 }
 0x3fc   : > { %v7042_v30 = vpop.eup %5416  ;;  %v7066_v52 = vpop.xlane.xlu2 %1277 }
 0x3fd   : > { %v7060_v18 = vpop.eup %5418  ;;  %v1637_v37 = vmul.f32 %v7042_v30, %v6987_v11  ;;  %v7064_v55 = vpop.xlane.xlu1 %1235  ;;  %v1794_v41 = vsel %vm7050_vm5, %v5413_v35, %v1790_v19  ;;  %v1355_v35 = vadd.f32 %v6934_v62, %v1354_v31  ;;  %v7095_v31 = vmul.f32 %v10767_v26, %v6883_v44 }
 0x3fe   : > { %v1322_v46 = vmul.f32 %v7060_v18, %v6989_v54  ;;  %5420 = vrcp.f32 %v7064_v55  ;;  %v7077_v32 = vsel %vm1796_vm6, %v1798_v25, %v1794_v41  ;;  %v10766_v41 = vld [vmem:[#allocation28_spill] sm:$0xff]  ;;  %vm1327_vm13 = vweird.f32 %v7060_v18 }
 0x3ff   : > { %v1638_v28 = vsub.f32 1.0, %v1637_v37  ;;  %5422 = vrcp.f32 %v7066_v52  ;;  %v1863_v19 = vmul.f32 %v6560_v36, %v7077_v32  ;;  %v7091_v25 = vmul.f32 %v10766_v41, %v6866_v15  ;;  %vm7151_vm2 = vmor %vm1326_vm11, %vm1327_vm13 }
 0x400   : > { %v1323_v59 = vsub.f32 1.0, %v1322_v46  ;;  %v1857_v36 = vmul.f32 %v6375_v43, %v7056_v53  ;;  %v1359_v43 = vsel %vm7108_vm9, %v6934_v62, %v1355_v35  ;;  %v7129_v62 = vpop.f32.mrf.mxu1  ;;  %v1330_v35 = vand.u32 2147483647, %v6989_v54 }
 0x401   : > { %v1895_v46 = vpack.c.bf16 %v1863_v19, %v1861_v48  ;;  %v1639_v13 = vmul.f32 %v7042_v30, %v1638_v28  ;;  %v1594_v28 = vmul.f32 %v7038_v21, %v1593_v16  ;;  %v7138_v38 = vsel %vm7115_vm10, %v1363_v56, %v1359_v43 }
 0x402   : > { %v1324_v37 = vmul.f32 %v7060_v18, %v1323_v59  ;;  %v1893_v48 = vpack.c.bf16 %v1859_v49, %v1857_v36  ;;  %v1375_v36 = vand.u32 2147483647, %v7064_v55  ;;  %v1377_v41 = vand.u32 2147483648, %v7064_v55 }
 0x403   : > { %1926 = vmatpush.bf16.msrb.mxu1 %v1895_v46  ;;  %2062 = vmatpush.bf16.msrb.mxu3 %v1895_v46  ;;  %v1647_v46 = vand.u32 2147483648, %v6987_v11  ;;  %vm1642_vm14 = vweird.f32 %v7042_v30  ;;  %vm7158_vm3 = vcmp.eq.f32.partialorder %v1330_v35, 8.507059e+37  ;;  %vm1371_vm4 = vweird.f32 %v7064_v55 }
 0x404   : > { %v5421_v26 = vpop.eup %5420  ;;  %v1325_v20 = vadd.f32 %v7060_v18, %v1324_v37  ;;  %v1640_v37 = vadd.f32 %v7042_v30, %v1639_v13  ;;  %v1645_v13 = vand.u32 2147483647, %v6987_v11  ;;  %vm7165_vm5 = vmor %vm1641_vm1, %vm1642_vm14  ;;  %vm1597_vm6 = vweird.f32 %v7038_v21 }
 0x405   : > { %v1367_v59 = vmul.f32 %v5421_v26, %v7064_v55  ;;  %v7124_v19 = vpop.xlane.xlu1 %1283  ;;  %v7126_v49 = vpop.eup %5422  ;;  %vm1372_vm15 = vweird.f32 %v5421_v26  ;;  %vm1376_vm8 = vcmp.eq.f32.partialorder %v1375_v36, 8.507059e+37  ;;  %v1595_v55 = vadd.f32 %v7038_v21, %v1594_v28  ;;  %vm7198_vm10 = vmor %vm1596_vm12, %vm1597_vm6 }
 0x406   : > { %5424 = vrcp.f32 %v7124_v19  ;;  %v1577_v16 = vmul.f32 %v7126_v49, %v7066_v52  ;;  %v1329_v43 = vsel %vm7151_vm2, %v7060_v18, %v1325_v20  ;;  %vm1373_vm7 = vmor %vm1371_vm4, %vm1372_vm15  ;;  %v1378_v18 = vor.u32 1.1754944e-38, %v1377_v41  ;;  %v7175_v20 = vpop.f32.mrf.mxu0 }
 0x407   : > { %v1368_v8 = vsub.f32 1.0, %v1367_v59  ;;  %1927 = vmatpush.bf16.msrb.mxu1 %v1893_v48  ;;  %2063 = vmatpush.bf16.msrb.mxu3 %v1893_v48  ;;  %v1333_v48 = vor.u32 1.1754944e-38, %v1332_v9  ;;  %v1648_v9 = vor.u32 1.1754944e-38, %v1647_v46  ;;  %v1644_v11 = vsel %vm7165_vm5, %v7042_v30, %v1640_v37 }
 0x408   : > { %v1578_v35 = vsub.f32 1.0, %v1577_v16  ;;  %vm1646_vm9 = vcmp.eq.f32.partialorder %v1645_v13, 8.507059e+37  ;;  %v1600_v30 = vand.u32 2147483647, %v6913_v23  ;;  %v1805_v41 = vmul.f32 %v6461_v47, %v7138_v38 }
 0x409   : > { %v1369_v59 = vmul.f32 %v5421_v26, %v1368_v8  ;;  %v7192_v16 = vsel %vm1646_vm9, %v1648_v9, %v1644_v11  ;;  %v1887_v54 = vpack.c.bf16 %v7095_v31, %v7091_v25  ;;  %v10782_v11 = vld [vmem:[#allocation26_spill] sm:$0xff]  ;;  %vm1611_vm13 = vweird.f32 %v7124_v19 }
 0x40a   : > { %v1579_v33 = vmul.f32 %v7126_v49, %v1578_v35  ;;  %vm1601_vm12 = vcmp.eq.f32.partialorder %v1600_v30, 8.507059e+37  ;;  %vm1582_vm15 = vweird.f32 %v7126_v49 }
 0x40b   : > { %v1370_v8 = vadd.f32 %v5421_v26, %v1369_v59  ;;  %1928 = vmatpush.bf16.msrb.mxu1 %v1891_v63  ;;  %2064 = vmatpush.bf16.msrb.mxu3 %v1891_v63  ;;  %v7182_v63 = vsel %vm7158_vm3, %v1333_v48, %v1329_v43  ;;  %v1615_v48 = vand.u32 2147483647, %v7124_v19  ;;  %v1617_v43 = vand.u32 2147483648, %v7124_v19 }
 0x40c   : > { %v5425_v56 = vpop.eup %5424  ;;  %v1801_v47 = vmul.f32 %v6393_v12, %v7182_v63  ;;  %v1843_v12 = vmul.f32 %v6587_v24, %v7192_v16  ;;  %v1580_v30 = vadd.f32 %v7126_v49, %v1579_v33  ;;  %vm1581_vm3 = vweird.f32 %v7066_v52 }
 0x40d   : > { %v1607_v46 = vmul.f32 %v5425_v56, %v7124_v19  ;;  %v7178_v59 = vpop.xlane.xlu1 %1274  ;;  %v1374_v50 = vsel %vm1373_vm7, %v5421_v26, %v1370_v8  ;;  %vm1612_vm11 = vweird.f32 %v5425_v56  ;;  %v1618_v24 = vor.u32 1.1754944e-38, %v1617_v43  ;;  %v7242_v43 = vpop.trf.xlu0  ;;  %vm7250_vm1 = vmor %vm1581_vm3, %vm1582_vm15 }
 0x40e   : > { %5426 = vrcp.f32 %v7178_v59  ;;  %v7185_v36 = vsel %vm1376_vm8, %v1378_v18, %v1374_v50  ;;  %v7202_v50 = vpop.f32.mrf.mxu1  ;;  %vm1613_vm14 = vmor %vm1611_vm13, %vm1612_vm11  ;;  %vm1616_vm2 = vcmp.eq.f32.partialorder %v1615_v48, 8.507059e+37  ;;  %v1587_v19 = vand.u32 2147483648, %v7066_v52  ;;  %v7235_v26 = vpop.f32.mrf.mxu0  ;;  %10783 = vst [vmem:[#allocation12_spill] sm:$0xff] %v7242_v43 }
 0x40f   : > { %v1608_v28 = vsub.f32 1.0, %v1607_v46  ;;  %v1807_v37 = vmul.f32 %v6484_v5, %v7185_v36  ;;  %1929 = vmatpush.bf16.msrb.mxu1 %v7104_v3  ;;  %2065 = vmatpush.bf16.msrb.mxu3 %v7104_v3  ;;  %v1599_v5 = vsel %vm7198_vm10, %v7038_v21, %v1595_v55  ;;  %v10780_v3 = vld [vmem:[#allocation14_spill] sm:$0xff]  ;;  %v10781_v21 = vand.u32 2147483648, %v6913_v23 }
 0x410   : > { %v1803_v9 = vmul.f32 %v10780_v3, %v6780_v45  ;;  %v1841_v55 = vmul.f32 %v10782_v11, %v6826_v39  ;;  %v1585_v48 = vand.u32 2147483647, %v7066_v52  ;;  %v1570_v33 = vand.u32 2147483647, %v7178_v59 }
 0x411   : > { %v1867_v13 = vpack.c.bf16 %v1807_v37, %v1805_v41  ;;  %v1609_v8 = vmul.f32 %v5425_v56, %v1608_v28  ;;  %v1603_v18 = vor.u32 1.1754944e-38, %v10781_v21  ;;  %vm1566_vm5 = vweird.f32 %v7178_v59 }
 0x412   : > { %v1865_v25 = vpack.c.bf16 %v1803_v9, %v1801_v47  ;;  %v1885_v41 = vpack.c.bf16 %v1843_v12, %v1841_v55  ;;  %v1588_v9 = vor.u32 1.1754944e-38, %v1587_v19  ;;  %vm1586_vm6 = vcmp.eq.f32.partialorder %v1585_v48, 8.507059e+37 }
 0x413   : > { %1919 = vmatpush.bf16.msrb.mxu0 %v1867_v13  ;;  %2019 = vmatpush.bf16.msrb.mxu2 %v1867_v13  ;;  %v1610_v35 = vadd.f32 %v5425_v56, %v1609_v8  ;;  %v7225_v31 = vsel %vm1601_vm12, %v1603_v18, %v1599_v5  ;;  %v1572_v13 = vand.u32 2147483648, %v7178_v59  ;;  %vm1571_vm8 = vcmp.eq.f32.partialorder %v1570_v33, 8.507059e+37  ;;  %v10795_v33 = vld [vmem:[#allocation37_spill] sm:$0xff]  ;;  %v10796_v8 = vld [vmem:[#allocation20_spill] sm:$0xff] }
 0x414   : > { %v5427_v46 = vpop.eup %5426  ;;  %1930 = vmatpush.bf16.msrb.mxu1 %v1887_v54  ;;  %2066 = vmatpush.bf16.msrb.mxu3 %v1887_v54  ;;  %v1837_v5 = vmul.f32 %v6532_v61, %v7225_v31  ;;  %v1584_v54 = vsel %vm7250_vm1, %v7126_v49, %v1580_v30  ;;  %v1864_v49 = vmul.f32 %v6567_v60, %v7077_v32  ;;  %v7282_v32 = vpop.permute.xlu2 %581 }
 0x415   : > { %v1562_v23 = vmul.f32 %v5427_v46, %v7178_v59  ;;  %v1614_v28 = vsel %vm1613_vm14, %v5425_v56, %v1610_v35  ;;  %vm1567_vm4 = vweird.f32 %v5427_v46  ;;  %v1573_v52 = vor.u32 1.1754944e-38, %v1572_v13  ;;  %10786 = vst [vmem:[#allocation11_spill] sm:$0xff] %v7282_v32 }
 0x416   : > { %v7233_v37 = vsel %vm1616_vm2, %v1618_v24, %v1614_v28  ;;  %v7258_v3 = vpop.f32.mrf.mxu1  ;;  %vm1568_vm7 = vmor %vm1566_vm5, %vm1567_vm4  ;;  %v7262_v21 = vsel %vm1586_vm6, %v1588_v9, %v1584_v54  ;;  %v1862_v35 = vmul.f32 %v6473_v14, %v7047_v57  ;;  %v1860_v24 = vmul.f32 %v6435_v40, %v7023_v27 }
 0x417   : > { %v1563_v47 = vsub.f32 1.0, %v1562_v23  ;;  %1920 = vmatpush.bf16.msrb.mxu0 %v1865_v25  ;;  %2020 = vmatpush.bf16.msrb.mxu2 %v1865_v25  ;;  %v1839_v56 = vmul.f32 %v6650_v6, %v7233_v37  ;;  %v1835_v59 = vmul.f32 %v6574_v2, %v7262_v21  ;;  %v7275_v25 = vpop.f32.mrf.mxu0  ;;  %v1858_v2 = vmul.f32 %v6383_v17, %v7056_v53 }
 0x418   : > { %1931 = vmatpush.bf16.msrb.mxu1 %v1885_v41  ;;  %2067 = vmatpush.bf16.msrb.mxu3 %v1885_v41  ;;  %v7280_v60 = vpack.c.bf16 %v1864_v49, %v1862_v35  ;;  %v656_v14 = vadd.f32 %v7282_v32, %v7101_v10  ;;  %v657_v57 = vadd.f32 %v7282_v32, %v7129_v62  ;;  %v10788_v10 = vld [vmem:[#allocation35_spill] sm:$0xff] }
 0x419   : > { %v1883_v61 = vpack.c.bf16 %v1839_v56, %v1837_v5  ;;  %v1564_v6 = vmul.f32 %v5427_v46, %v1563_v47  ;;  %v1856_v27 = vmul.f32 %v6335_v4, %v6983_v29  ;;  %v7302_v53 = vpack.c.bf16 %v1860_v24, %v1858_v2  ;;  %v10789_v4 = vld [vmem:[#allocation34_spill] sm:$0xff]  ;;  %v10790_v29 = vld [vmem:[#allocation16_spill] sm:$0xff]  ;;  %v10793_v5 = vld [vmem:[#allocation13_spill] sm:$0xff] }
 0x41a   : > { %1921 = vmatmul.bf16.vlgmr.msrb.gmra.mxu0 %v7242_v43  ;;  %v1854_v62 = vmul.f32 %v10788_v10, %v7027_v1  ;;  %v10792_v1 = vld [vmem:[#allocation38_spill] sm:$0xff]  ;;  %v10794_v56 = vld [vmem:[#allocation32_spill] sm:$0xff]  ;;  %v1806_v13 = vmul.f32 %v10795_v33, %v7138_v38 }
 0x41b   : > { %1939 = vmatpush.bf16.msra.mxu0 %v6615_v7  ;;  %v1565_v12 = vadd.f32 %v5427_v46, %v1564_v6  ;;  %v1808_v47 = vmul.f32 %v10792_v1, %v7185_v36  ;;  %v1850_v48 = vmul.f32 %v10794_v56, %v10793_v5  ;;  %v10797_v6 = vld [vmem:[#allocation31_spill] sm:$0xff]  ;;  %v10799_v36 = vld [vmem:[#allocation29_spill] sm:$0xff] }
 0x41c   : > { %1932 = vmatpush.bf16.msrb.mxu1 %v1883_v61  ;;  %2068 = vmatpush.bf16.msrb.mxu3 %v1883_v61  ;;  %v1848_v54 = vmul.f32 %v10797_v6, %v6883_v44  ;;  %v1846_v49 = vmul.f32 %v10799_v36, %v6866_v15  ;;  %v7335_v35 = vpop.permute.xlu2 %586 }
 0x41d   : > { %v1569_v18 = vsel %vm1568_vm7, %v5427_v46, %v1565_v12  ;;  %v10798_v12 = vld [vmem:[#allocation36_spill] sm:$0xff]  ;;  %10801 = vst [vmem:[#allocation18_spill] sm:$0xff] %v7335_v35  ;;  %v658_v24 = vadd.f32 %v7335_v35, %v7175_v20  ;;  %v659_v15 = vadd.f32 %v7335_v35, %v7202_v50 }
 0x41e   : > { %v7267_v11 = vsel %vm1571_vm8, %v1573_v52, %v1569_v18  ;;  %v1802_v52 = vmul.f32 %v10798_v12, %v7182_v63  ;;  %v1868_v18 = vpack.c.bf16 %v1808_v47, %v1806_v13  ;;  %v1888_v2 = vpack.c.bf16 %v1848_v54, %v1846_v49 }
 0x41f   : > { %1940 = vmatpush.bf16.msra.mxu0 %v6549_v34  ;;  %v1833_v55 = vmul.f32 %v6661_v42, %v7267_v11  ;;  %v7284_v42 = vpop.f32.mrf.mxu1  ;;  %v469_v41 = vpop.f32.mrf.mxu0 }
 0x421   : > { %v1881_v46 = vpack.c.bf16 %v1835_v59, %v1833_v55  ;;  %v10800_v55 = vld [vmem:[#allocation15_spill] sm:$0xff] }
 0x422   : > { %v1804_v59 = vmul.f32 %v10800_v55, %v6780_v45 }
 0x423   : > { %1941 = vmatpush.bf16.msra.mxu0 %v6458_v0  ;;  %1933 = vmatpush.bf16.msrb.mxu1 %v1881_v46 }
 0x424   : > { %2069 = vmatpush.bf16.msrb.mxu3 %v1881_v46  ;;  %v10803_v46 = vld [vmem:[#allocation40_spill] sm:$0xff]  ;;  %v7369_v1 = vpop.permute.xlu2 %596 }
 0x425   : > { %v7294_v40 = vpop.permute.xlu1 %576  ;;  %v1844_v44 = vmul.f32 %v10803_v46, %v7192_v16  ;;  %v10805_v16 = vld [vmem:[#allocation21_spill] sm:$0xff]  ;;  %10809 = vst [vmem:[#allocation5_spill] sm:$0xff] %v7369_v1 }
 0x426   : > { %10787 = vst [vmem:[#allocation24_spill] sm:$0xff] %v7294_v40  ;;  %v654_v23 = vadd.f32 %v7294_v40, %v7029_v22  ;;  %v655_v17 = vadd.f32 %v7294_v40, %v7045_v51  ;;  %1934 = vmatmul.bf16.vlgmr.msrb.gmra.mxu1 %v7242_v43  ;;  %v10791_v22 = vld [vmem:[#allocation33_spill] sm:$0xff]  ;;  %v7317_v51 = vpack.c.bf16 %v1856_v27, %v1854_v62 }
 0x427   : > { %1952 = vmatpush.bf16.msra.mxu1 %v7280_v60  ;;  %1942 = vmatpush.bf16.msra.mxu0 %v6405_v58  ;;  %v1852_v19 = vmul.f32 %v10791_v22, %v10790_v29  ;;  %v538_v61 = vpop.f32.mrf.mxu1  ;;  %v1840_v20 = vmul.f32 %v10805_v16, %v7233_v37  ;;  %v10808_v37 = vld [vmem:[#allocation19_spill] sm:$0xff] }
 0x428   : > { %v7308_v28 = vpack.c.bf16 %v656_v14, %v654_v23  ;;  %v7310_v30 = vpack.c.bf16 %v657_v57, %v655_v17  ;;  %v1866_v14 = vpack.c.bf16 %v1804_v59, %v1802_v52  ;;  %v10804_v57 = vld [vmem:[#allocation27_spill] sm:$0xff]  ;;  %v472_v23 = vpop.f32.mrf.mxu0  ;;  %v1836_v22 = vmul.f32 %v10808_v37, %v7262_v21 }
 0x429   : > { %v1890_v9 = vpack.c.bf16 %v1852_v19, %v1850_v48  ;;  %v1842_v27 = vmul.f32 %v10804_v57, %v6826_v39  ;;  %v10807_v39 = vld [vmem:[#allocation22_spill] sm:$0xff] }
 0x42a   : > { %2021 = vmatmul.bf16.vlgmr.msrb.gmra.mxu2 %v7308_v28  ;;  %2070 = vmatmul.bf16.vlgmr.msrb.gmra.mxu3 %v7310_v30  ;;  %v1834_v29 = vmul.f32 %v10807_v39, %v7267_v11  ;;  %v662_v11 = vadd.f32 %v7369_v1, %v7275_v25 }
 0x42b   : > { %1953 = vmatpush.bf16.msra.mxu1 %v7302_v53  ;;  %1943 = vmatpush.bf16.msra.mxu0 %v10789_v4 }
 0x42c   : > { %v7386_v25 = vpop.permute.xlu2 %606 }
 0x42d   : > { %v7337_v38 = vpop.permute.xlu1 %591  ;;  %10811 = vst [vmem:[#allocation10_spill] sm:$0xff] %v7386_v25 }
 0x42e   : > { %10802 = vst [vmem:[#allocation25_spill] sm:$0xff] %v7337_v38  ;;  %v660_v63 = vadd.f32 %v7337_v38, %v7235_v26  ;;  %v661_v45 = vadd.f32 %v7337_v38, %v7258_v3  ;;  %v1886_v26 = vpack.c.bf16 %v1844_v44, %v1842_v27  ;;  %v10806_v3 = vld [vmem:[#allocation39_spill] sm:$0xff] }
 0x42f   : > { %1954 = vmatpush.bf16.msra.mxu1 %v7317_v51  ;;  %1944 = vmatpush.bf16.msra.mxu0 %v10796_v8  ;;  %v541_v50 = vpop.f32.mrf.mxu1  ;;  %v1838_v62 = vmul.f32 %v10806_v3, %v7225_v31  ;;  %v1882_v31 = vpack.c.bf16 %v1836_v22, %v1834_v29 }
 0x430   : > { %v7354_v17 = vpack.c.bf16 %v660_v63, %v658_v24  ;;  %v7356_v10 = vpack.c.bf16 %v661_v45, %v659_v15  ;;  %v474_v19 = vpop.f32.mrf.mxu0 }
 0x433   : > { %1955 = vmatpush.bf16.msra.mxu1 %v1890_v9  ;;  %1945 = vmatpush.bf16.msra.mxu0 %v1868_v18 }
 0x435   : > { %v7371_v47 = vpop.permute.xlu1 %601 }
 0x436   : > { %10810 = vst [vmem:[#allocation6_spill] sm:$0xff] %v7371_v47  ;;  %v664_v5 = vadd.f32 %v7371_v47, %v469_v41  ;;  %v665_v21 = vadd.f32 %v7371_v47, %v538_v61 }
 0x437   : > { %1956 = vmatpush.bf16.msra.mxu1 %v1888_v2  ;;  %1946 = vmatpush.bf16.msra.mxu0 %v1866_v14 }
 0x438   : > { %v477_v48 = vpop.f32.mrf.mxu0 }
 0x43a   : > { %1947 = vmatmul.bf16.vlgmr.msra.gmra.mxu0 %v7242_v43  ;;  %2026 = vmatmul.bf16.gmra.mxu2 %v7354_v17 }
 0x43b   : > { %2111 = vmatpush.bf16.msrb.mxu0 %v6615_v7  ;;  %1957 = vmatpush.bf16.msra.mxu1 %v1886_v26  ;;  %v1884_v7 = vpack.c.bf16 %v1840_v20, %v1838_v62 }
 0x43c   : > { %2075 = vmatmul.bf16.gmra.mxu3 %v7356_v10 }
 0x43f   : > { %2112 = vmatpush.bf16.msrb.mxu0 %v6549_v34  ;;  %1958 = vmatpush.bf16.msra.mxu1 %v1884_v7  ;;  %v543_v34 = vpop.f32.mrf.mxu1 }
 0x440   : > { %v479_v41 = vpop.f32.mrf.mxu0 }
 0x443   : > { %2113 = vmatpush.bf16.msrb.mxu0 %v6458_v0  ;;  %1959 = vmatpush.bf16.msra.mxu1 %v1882_v31  ;;  %v663_v0 = vadd.f32 %v7369_v1, %v7284_v42  ;;  %v7388_v42 = vpop.permute.xlu1 %611 }
 0x444   : > { %10812 = vst [vmem:[#allocation9_spill] sm:$0xff] %v7388_v42  ;;  %v669_v33 = vadd.f32 %v7388_v42, %v543_v34 }
 0x445   : > { %v2002_v56 = vpack.c.bf16 %v665_v21, %v663_v0 }
 0x446   : > { %1960 = vmatmul.bf16.vlgmr.msra.gmra.mxu1 %v7242_v43 }
 0x447   : > { %2160 = vmatpush.bf16.msrb.mxu1 %v7280_v60  ;;  %2114 = vmatpush.bf16.msrb.mxu0 %v6405_v58  ;;  %v2001_v60 = vpack.c.bf16 %v664_v5, %v662_v11  ;;  %v546_v58 = vpop.f32.mrf.mxu1 }
 0x448   : > { %v482_v6 = vpop.f32.mrf.mxu0 }
 0x44a   : > { %2031 = vmatmul.bf16.gmra.mxu2 %v2001_v60 }
 0x44b   : > { %2161 = vmatpush.bf16.msrb.mxu1 %v7302_v53  ;;  %2115 = vmatpush.bf16.msrb.mxu0 %v10789_v4  ;;  %v666_v53 = vadd.f32 %v7386_v25, %v472_v23  ;;  %v668_v4 = vadd.f32 %v7388_v42, %v474_v19  ;;  %v7398_v12 = vpop.permute.xlu1 %621 }
 0x44c   : > { %2080 = vmatmul.bf16.gmra.mxu3 %v2002_v56  ;;  %10814 = vst [vmem:[#allocation7_spill] sm:$0xff] %v7398_v12 }
 0x44f   : > { %2162 = vmatpush.bf16.msrb.mxu1 %v7317_v51  ;;  %2116 = vmatpush.bf16.msrb.mxu0 %v10796_v8  ;;  %v667_v51 = vadd.f32 %v7386_v25, %v541_v50  ;;  %v548_v13 = vpop.f32.mrf.mxu1  ;;  %v2003_v8 = vpack.c.bf16 %v668_v4, %v666_v53  ;;  %v5048_v4 = vld [vmem:[%s5810_s5 + $0xe0] sm:$0xf] }
 0x450   : > { %v673_v36 = vadd.f32 %v7398_v12, %v548_v13  ;;  %v484_v49 = vpop.f32.mrf.mxu0 }
 0x451   : > { %v2004_v61 = vpack.c.bf16 %v669_v33, %v667_v51 }
 0x453   : > { %2163 = vmatpush.bf16.msrb.mxu1 %v1890_v9  ;;  %2117 = vmatpush.bf16.msrb.mxu0 %v1868_v18  ;;  %v7396_v9 = vpop.permute.xlu2 %616  ;;  %v7408_v24 = vpop.permute.xlu1 %631 }
 0x454   : > { %10813 = vst [vmem:[#allocation8_spill] sm:$0xff] %v7396_v9  ;;  %v670_v52 = vadd.f32 %v7396_v9, %v477_v48  ;;  %v671_v18 = vadd.f32 %v7396_v9, %v546_v58  ;;  %v676_v15 = vadd.f32 %v7408_v24, %v484_v49  ;;  %v5056_v48 = vld [vmem:[%s5810_s5 + $0xf0] sm:$0xf]  ;;  %v5184_v58 = vld [vmem:[%s5810_s5 + $0xf4] sm:$0xf0] }
 0x455   : > { %10816 = vst [vmem:[#allocation17_spill] sm:$0xff] %v7408_v24  ;;  %v5057_v53 = vor.u32 %v5184_v58, %v5056_v48  ;;  %v5058_v49 = vld [vmem:[%s5810_s5 + $0xf8] sm:$0xf0]  ;;  %v5172_v58 = vld [vmem:[%s5810_s5 + $0x94] sm:$0xf0] }
 0x456   : > { %v2006_v59 = vpack.c.bf16 %v673_v36, %v671_v18  ;;  %v5178_v18 = vld [vmem:[%s5810_s5 + $0xc4] sm:$0xf0]  ;;  %v5183_v36 = vld [vmem:[%s5810_s5 + $0xf4] sm:$0xf] }
 0x457   : > { %2164 = vmatpush.bf16.msrb.mxu1 %v1888_v2  ;;  %2118 = vmatpush.bf16.msrb.mxu0 %v1866_v14  ;;  %v551_v54 = vpop.f32.mrf.mxu1 }
 0x45a   : > { %2119 = vmatmul.bf16.vlgmr.msrb.gmra.mxu0 %v7308_v28  ;;  %2036 = vmatmul.bf16.gmra.mxu2 %v2003_v8  ;;  %v672_v28 = vadd.f32 %v7398_v12, %v479_v41  ;;  %v5182_v41 = vld [vmem:[%s5810_s5 + $0xe4] sm:$0xf0] }
 0x45b   : > { %2165 = vmatpush.bf16.msrb.mxu1 %v1886_v26  ;;  %v7406_v44 = vpop.permute.xlu2 %626  ;;  %v7419_v26 = vpop.permute.xlu1 %641  ;;  %2726 = vmatpush.bf16.msra.mxu0 %v5057_v53  ;;  %v5049_v33 = vor.u32 %v5182_v41, %v5048_v4  ;;  %v5177_v53 = vld [vmem:[%s5810_s5 + $0xc4] sm:$0xf] }
 0x45c   : > { %2085 = vmatmul.bf16.gmra.mxu3 %v2004_v61  ;;  %v2005_v55 = vpack.c.bf16 %v672_v28, %v670_v52  ;;  %10815 = vst [vmem:[#allocation23_spill] sm:$0xff] %v7406_v44  ;;  %v674_v2 = vadd.f32 %v7406_v44, %v482_v6  ;;  %v675_v45 = vadd.f32 %v7406_v44, %v551_v54  ;;  %v5032_v28 = vld [vmem:[%s5810_s5 + $0xc0] sm:$0xf] }
 0x45d   : > { %10818 = vst [vmem:[#allocation30_spill] sm:$0xff] %v7419_v26 }
 0x45e   : > { %v2007_v57 = vpack.c.bf16 %v676_v15, %v674_v2  ;;  %v5181_v2 = vld [vmem:[%s5810_s5 + $0xe4] sm:$0xf] }
 0x45f   : > { %2166 = vmatpush.bf16.msrb.mxu1 %v1884_v7  ;;  %v553_v46 = vpop.f32.mrf.mxu1  ;;  %2727 = vmatpush.bf16.msra.mxu0 %v5049_v33 }
 0x460   : > { %v677_v14 = vadd.f32 %v7408_v24, %v553_v46 }
 0x462   : > { %v7414_v27 = vpack.c.bf16 %v677_v14, %v675_v45 }
 0x463   : > { %2167 = vmatpush.bf16.msrb.mxu1 %v1882_v31  ;;  %v7417_v20 = vpop.permute.xlu2 %636  ;;  %v7431_v22 = vpop.permute.xlu1 %651 }
 0x464   : > { %10817 = vst [vmem:[#allocation28_spill] sm:$0xff] %v7417_v20 }
 0x465   : > { %10819 = vst [vmem:[#allocation14_spill] sm:$0xff] %v7431_v22 }
 0x466   : > { %2168 = vmatmul.bf16.vlgmr.msrb.gmra.mxu1 %v7310_v30  ;;  %v487_v30 = vpop.f32.mrf.mxu0 }
 0x467   : > { %v556_v63 = vpop.f32.mrf.mxu1 }
 0x468   : > { %v679_v50 = vadd.f32 %v7417_v20, %v556_v63  ;;  %v5176_v63 = vld [vmem:[%s5810_s5 + $0xb4] sm:$0xf0] }
 0x46a   : > { %2124 = vmatmul.bf16.gmra.mxu0 %v7354_v17  ;;  %2041 = vmatmul.bf16.gmra.mxu2 %v2005_v55  ;;  %v678_v17 = vadd.f32 %v7417_v20, %v487_v30  ;;  %v5024_v30 = vld [vmem:[%s5810_s5 + $0xb0] sm:$0xf] }
 0x46b   : > { %v7433_v19 = vpop.permute.xlu2 %646  ;;  %v5025_v14 = vor.u32 %v5176_v63, %v5024_v30 }
 0x46c   : > { %2090 = vmatmul.bf16.gmra.mxu3 %v2006_v59  ;;  %10820 = vst [vmem:[#allocation26_spill] sm:$0xff] %v7433_v19 }
 0x46e   : > { %v489_v23 = vpop.f32.mrf.mxu0 }
 0x46f   : > { %v558_v16 = vpop.f32.mrf.mxu1 }
 0x470   : > { %v681_v62 = vadd.f32 %v7419_v26, %v558_v16 }
 0x472   : > { %v7427_v7 = vpack.c.bf16 %v681_v62, %v679_v50  ;;  %v5016_v62 = vld [vmem:[%s5810_s5 + $0xa0] sm:$0xf] }
 0x476   : > { %2173 = vmatmul.bf16.gmra.mxu1 %v7356_v10  ;;  %v680_v10 = vadd.f32 %v7419_v26, %v489_v23  ;;  %v492_v3 = vpop.f32.mrf.mxu0 }
 0x477   : > { %v561_v39 = vpop.f32.mrf.mxu1  ;;  %v682_v5 = vadd.f32 %v7433_v19, %v492_v3 }
 0x478   : > { %v7425_v29 = vpack.c.bf16 %v680_v10, %v678_v17  ;;  %v683_v0 = vadd.f32 %v7433_v19, %v561_v39  ;;  %v5174_v39 = vld [vmem:[%s5810_s5 + $0xa4] sm:$0xf0] }
 0x47a   : > { %2129 = vmatmul.bf16.gmra.mxu0 %v2001_v60  ;;  %2046 = vmatmul.bf16.gmra.mxu2 %v2007_v57 }
 0x47c   : > { %2095 = vmatmul.bf16.gmra.mxu3 %v7414_v27 }
 0x47e   : > { %v494_v37 = vpop.f32.mrf.mxu0 }
 0x47f   : > { %v563_v31 = vpop.f32.mrf.mxu1  ;;  %v684_v34 = vadd.f32 %v7431_v22, %v494_v37 }
 0x480   : > { %v685_v11 = vadd.f32 %v7431_v22, %v563_v31  ;;  %v5017_v31 = vor.u32 %v5174_v39, %v5016_v62  ;;  %v5633_v22 = vld [vmem:[%s10381_s1 + $0x28] sm:$0xff] }
 0x481   : > { %v7439_v60 = vpack.c.bf16 %v684_v34, %v682_v5  ;;  %v5179_v34 = vld [vmem:[%s5810_s5 + $0xd4] sm:$0xf] }
 0x486   : > { %2178 = vmatmul.bf16.gmra.mxu1 %v2002_v56  ;;  %v7441_v56 = vpack.c.bf16 %v685_v11, %v683_v0  ;;  %v5042_v11 = vld [vmem:[%s5810_s5 + $0xd8] sm:$0xf0] }
 0x487   : > { %v5045_v5 = vor.u32 %v5179_v34, %v5042_v11 }
 0x48a   : > { %2134 = vmatmul.bf16.gmra.mxu0 %v2003_v8  ;;  %2051 = vmatmul.bf16.gmra.mxu2 %v7425_v29  ;;  %v5040_v8 = vld [vmem:[%s5810_s5 + $0xd0] sm:$0xf] }
 0x48c   : > { %2100 = vmatmul.bf16.gmra.mxu3 %v7427_v7 }
 0x496   : > { %2183 = vmatmul.bf16.gmra.mxu1 %v2004_v61  ;;  %v5180_v61 = vld [vmem:[%s5810_s5 + $0xd4] sm:$0xf0] }
 0x497   : > { %v1922_v21 = vpop.f32.mrf.mxu0  ;;  %v5041_v54 = vor.u32 %v5180_v61, %v5040_v8  ;;  %v5034_v61 = vld [vmem:[%s5810_s5 + $0xc8] sm:$0xf0] }
 0x499   : > { %2728 = vmatpush.bf16.msra.mxu0 %v5041_v54  ;;  %v5037_v54 = vor.u32 %v5177_v53, %v5034_v61  ;;  %v5002_v53 = vld [vmem:[%s5810_s5 + $0x88] sm:$0xf0] }
 0x49a   : > { %2139 = vmatmul.bf16.gmra.mxu0 %v2005_v55  ;;  %2056 = vmatmul.bf16.gmra.mxu2 %v7439_v60  ;;  %v5033_v55 = vor.u32 %v5178_v18, %v5032_v28  ;;  %v5170_v28 = vld [vmem:[%s5810_s5 + $0x84] sm:$0xf0]  ;;  %v7483_v18 = vld [vmem:[%s5810_s5] sm:$0xff] }
 0x49b   : > { %10826 = vst [vmem:[#allocation34_spill] sm:$0xff] %v7483_v18 }
 0x49c   : > { %2105 = vmatmul.bf16.gmra.mxu3 %v7441_v56 }
 0x49d   : > { %2729 = vmatpush.bf16.msra.mxu0 %v5033_v55  ;;  %v5026_v55 = vld [vmem:[%s5810_s5 + $0xb8] sm:$0xf0] }
 0x49f   : > { %v1924_v51 = vpop.f32.mrf.mxu0 }
 0x4a1   : > { %2730 = vmatpush.bf16.msra.mxu0 %v5025_v14  ;;  %v5173_v14 = vld [vmem:[%s5810_s5 + $0xa4] sm:$0xf] }
 0x4a3   : > { %v1935_v13 = vpop.f32.mrf.mxu1 }
 0x4a4   : > { %v1936_v6 = vadd.f32 %v1935_v13, %v1922_v21  ;;  %v7477_v13 = vld [vmem:[%s5810_s5 + $0x8] sm:$0xff] }
 0x4a5   : > { %2731 = vmatpush.bf16.msra.mxu0 %v5017_v31  ;;  %10825 = vst [vmem:[#allocation35_spill] sm:$0xff] %v7477_v13  ;;  %v10434_v63 = vunpack.c.l.bf16 %v7477_v13 }
 0x4a6   : > { %2188 = vmatmul.bf16.gmra.mxu1 %v2006_v59  ;;  %v1965_v52 = vadd.f32 1e-09, %v1936_v6  ;;  %v5061_v59 = vor.u32 %v5183_v36, %v5058_v49 }
 0x4a8   : > { %5428 = vrcp.f32 %v1965_v52  ;;  %2795 = vmatpush.bf16.msra.mxu1 %v5061_v59  ;;  %v1978_v50 = vand.u32 2147483648, %v1965_v52  ;;  %vm1972_vm9 = vweird.f32 %v1965_v52  ;;  %v1976_v3 = vand.u32 2147483647, %v1965_v52 }
 0x4aa   : > { %2144 = vmatmul.bf16.gmra.mxu0 %v2007_v57  ;;  %v5050_v57 = vld [vmem:[%s5810_s5 + $0xe8] sm:$0xf0]  ;;  %v1979_v48 = vor.u32 1.1754944e-38, %v1978_v50  ;;  %vm7471_vm12 = vcmp.eq.f32.partialorder %v1976_v3, 8.507059e+37 }
 0x4ab   : > { %v1937_v46 = vpop.f32.mrf.mxu1  ;;  %v5053_v17 = vor.u32 %v5181_v2, %v5050_v57  ;;  %v5018_v57 = vld [vmem:[%s5810_s5 + $0xa8] sm:$0xf0] }
 0x4ac   : > { %v5021_v3 = vor.u32 %v5173_v14, %v5018_v57 }
 0x4ad   : > { %v2022_v15 = vpop.f32.mrf.mxu2  ;;  %v2071_v45 = vpop.f32.mrf.mxu3  ;;  %2796 = vmatpush.bf16.msra.mxu1 %v5053_v17 }
 0x4ae   : > { %v5429_v23 = vpop.eup %5428  ;;  %v2072_v16 = vadd.f32 %v2071_v45, %v2022_v15  ;;  %v10436_v15 = vunpack.c.l.bf16 %v7483_v18 }
 0x4af   : > { %v1968_v10 = vmul.f32 %v5429_v23, %v1965_v52  ;;  %vm1973_vm10 = vweird.f32 %v5429_v23  ;;  %v5000_v52 = vld [vmem:[%s5810_s5 + $0x80] sm:$0xf] }
 0x4b0   : > { %vm7464_vm11 = vmor %vm1972_vm9, %vm1973_vm10  ;;  %v5001_v46 = vor.u32 %v5170_v28, %v5000_v52 }
 0x4b1   : > { %v1969_v37 = vsub.f32 1.0, %v1968_v10  ;;  %2797 = vmatpush.bf16.msra.mxu1 %v5045_v5 }
 0x4b3   : > { %v1970_v0 = vmul.f32 %v5429_v23, %v1969_v37  ;;  %v5171_v37 = vld [vmem:[%s5810_s5 + $0x94] sm:$0xf] }
 0x4b5   : > { %v1971_v4 = vadd.f32 %v5429_v23, %v1970_v0  ;;  %v2024_v33 = vpop.f32.mrf.mxu2  ;;  %v2073_v6 = vpop.f32.mrf.mxu3  ;;  %2798 = vmatpush.bf16.msra.mxu1 %v5037_v54 }
 0x4b6   : > { %2193 = vmatmul.bf16.gmra.mxu1 %v7414_v27  ;;  %v5008_v27 = vld [vmem:[%s5810_s5 + $0x90] sm:$0xf]  ;;  %v2074_v49 = vadd.f32 %v2073_v6, %v2024_v33 }
 0x4b7   : > { %v1948_v51 = vpop.f32.mrf.mxu0  ;;  %v5009_v8 = vor.u32 %v5172_v58, %v5008_v27  ;;  %v1975_v36 = vsel %vm7464_vm11, %v5429_v23, %v1971_v4  ;;  %v5169_v58 = vld [vmem:[%s5810_s5 + $0x84] sm:$0xf]  ;;  %v7519_v4 = vld [vmem:[%s5810_s5 + $0x18] sm:$0xff] }
 0x4b8   : > { %v1980_v59 = vsel %vm7471_vm12, %v1979_v48, %v1975_v36  ;;  %v7514_v48 = vld [vmem:[%s5810_s5 + $0x10] sm:$0xff]  ;;  %10828 = vst [vmem:[#allocation33_spill] sm:$0xff] %v7519_v4 }
 0x4b9   : > { %2732 = vmatpush.bf16.msra.mxu0 %v5009_v8  ;;  %v7491_v30 = vperm.slane %v1980_v59, 0  ;;  %10827 = vst [vmem:[#allocation16_spill] sm:$0xff] %v7514_v48  ;;  %v10442_v41 = vunpack.c.l.bf16 %v7514_v48 }
 0x4ba   : > { %2149 = vmatmul.bf16.gmra.mxu0 %v7425_v29  ;;  %v5175_v29 = vld [vmem:[%s5810_s5 + $0xb4] sm:$0xf] }
 0x4bb   : > { %v5029_v2 = vor.u32 %v5175_v29, %v5026_v55  ;;  %v2213_v45 = vmul.f32 %v7491_v30, %v2074_v49  ;;  %v2211_v23 = vmul.f32 %v7491_v30, %v2072_v16  ;;  %v5010_v16 = vld [vmem:[%s5810_s5 + $0x98] sm:$0xf0] }
 0x4bc   : > { %v5013_v21 = vor.u32 %v5171_v37, %v5010_v16 }
 0x4bd   : > { %2733 = vmatpush.bf16.msra.mxu0 %v5001_v46  ;;  %v7501_v17 = vsub.f32 %v10434_v63, %v2213_v45  ;;  %v2027_v50 = vpop.f32.mrf.mxu2  ;;  %2799 = vmatpush.bf16.msra.mxu1 %v5029_v2  ;;  %v7505_v62 = vsub.f32 %v10436_v15, %v2211_v23  ;;  %v7538_v23 = vld [vmem:[%s5810_s5 + $0x20] sm:$0xff] }
 0x4be   : > { %10829 = vst [vmem:[#allocation38_spill] sm:$0xff] %v7538_v23 }
 0x4bf   : > { %v1950_v10 = vpop.f32.mrf.mxu0  ;;  %v2076_v39 = vpop.f32.mrf.mxu3 }
 0x4c0   : > { %v2077_v31 = vadd.f32 %v2076_v39, %v2027_v50  ;;  %v7541_v10 = vld [vmem:[%s5810_s5 + $0x28] sm:$0xff] }
 0x4c1   : > { %2800 = vmatpush.bf16.msra.mxu1 %v5021_v3  ;;  %10830 = vst [vmem:[#allocation13_spill] sm:$0xff] %v7541_v10  ;;  %v5628_v3 = vld [vmem:[%s10381_s1] sm:$0xff] }
 0x4c2   : > { %v2215_v5 = vmul.f32 %v7491_v30, %v2077_v31 }
 0x4c3   : > { %v1961_v11 = vpop.f32.mrf.mxu1 }
 0x4c4   : > { %v1962_v0 = vadd.f32 %v1961_v11, %v1948_v51  ;;  %v10430_v51 = vunpack.c.l.bf16 %v7519_v4  ;;  %v7526_v54 = vsub.f32 %v10442_v41, %v2215_v5  ;;  %v10429_v11 = vunpack.c.l.bf16 %v7541_v10 }
 0x4c5   : > { %v2029_v33 = vpop.f32.mrf.mxu2  ;;  %2801 = vmatpush.bf16.msra.mxu1 %v5013_v21 }
 0x4c6   : > { %2198 = vmatmul.bf16.gmra.mxu1 %v7427_v7  ;;  %v1966_v27 = vadd.f32 1e-09, %v1962_v0  ;;  %v5005_v7 = vor.u32 %v5169_v58, %v5002_v53 }
 0x4c7   : > { %v2078_v8 = vpop.f32.mrf.mxu3 }
 0x4c8   : > { %5430 = vrcp.f32 %v1966_v27  ;;  %v2079_v61 = vadd.f32 %v2078_v8, %v2029_v33  ;;  %v1993_v50 = vand.u32 2147483648, %v1966_v27  ;;  %vm1987_vm14 = vweird.f32 %v1966_v27 }
 0x4c9   : > { %2802 = vmatpush.bf16.msra.mxu1 %v5005_v7  ;;  %v1991_v37 = vand.u32 2147483647, %v1966_v27 }
 0x4ca   : > { %2154 = vmatmul.bf16.gmra.mxu0 %v7439_v60  ;;  %v2217_v52 = vmul.f32 %v7491_v30, %v2079_v61  ;;  %v1994_v0 = vor.u32 1.1754944e-38, %v1993_v50 }
 0x4cb   : > { %v1963_v6 = vpop.f32.mrf.mxu1  ;;  %vm1992_vm2 = vcmp.eq.f32.partialorder %v1991_v37, 8.507059e+37 }
 0x4cc   : > { %v7531_v60 = vsub.f32 %v10430_v51, %v2217_v52  ;;  %v5630_v51 = vld [vmem:[%s10381_s1 + $0x10] sm:$0xff] }
 0x4cd   : > { %v2032_v49 = vpop.f32.mrf.mxu2 }
 0x4ce   : > { %v5431_v28 = vpop.eup %5430 }
 0x4cf   : > { %v1983_v36 = vmul.f32 %v5431_v28, %v1966_v27  ;;  %v2081_v59 = vpop.f32.mrf.mxu3  ;;  %vm1988_vm13 = vweird.f32 %v5431_v28 }
 0x4d0   : > { %v2082_v46 = vadd.f32 %v2081_v59, %v2032_v49  ;;  %vm1989_vm15 = vmor %vm1987_vm14, %vm1988_vm13 }
 0x4d1   : > { %v1984_v55 = vsub.f32 1.0, %v1983_v36 }
 0x4d2   : > { %v2219_v45 = vmul.f32 %v7491_v30, %v2082_v46  ;;  %v7564_v46 = vld [vmem:[%s5810_s5 + $0x30] sm:$0xff] }
 0x4d3   : > { %v1985_v2 = vmul.f32 %v5431_v28, %v1984_v55  ;;  %10831 = vst [vmem:[#allocation32_spill] sm:$0xff] %v7564_v46 }
 0x4d5   : > { %v1986_v57 = vadd.f32 %v5431_v28, %v1985_v2  ;;  %v2034_v39 = vpop.f32.mrf.mxu2  ;;  %v7567_v2 = vld [vmem:[%s5810_s5 + $0x38] sm:$0xff] }
 0x4d6   : > { %2203 = vmatmul.bf16.gmra.mxu1 %v7441_v56  ;;  %v10438_v56 = vunpack.c.l.bf16 %v7538_v23  ;;  %10832 = vst [vmem:[#allocation37_spill] sm:$0xff] %v7567_v2  ;;  %v10456_v19 = vunpack.c.h.bf16 %v7567_v2 }
 0x4d7   : > { %v2120_v14 = vpop.f32.mrf.mxu0  ;;  %v2083_v16 = vpop.f32.mrf.mxu3  ;;  %v1990_v5 = vsel %vm1989_vm15, %v5431_v28, %v1986_v57 }
 0x4d8   : > { %v2084_v31 = vadd.f32 %v2083_v16, %v2034_v39  ;;  %v1995_v53 = vsel %vm1992_vm2, %v1994_v0, %v1990_v5  ;;  %v7551_v33 = vsub.f32 %v10438_v56, %v2219_v45  ;;  %v5629_v45 = vld [vmem:[%s10381_s1 + $0x8] sm:$0xff]  ;;  %v10432_v16 = vunpack.c.l.bf16 %v7564_v46 }
 0x4d9   : > { %v7559_v6 = vperm.slane %v1995_v53, 0  ;;  %v10431_v5 = vunpack.c.l.bf16 %v7567_v2 }
 0x4da   : > { %2734 = vmatmul.bf16.vlgmr.msra.gmra.mxu0 %v5628_v3  ;;  %v2221_v21 = vmul.f32 %v7491_v30, %v2084_v31 }
 0x4dc   : > { %v7555_v27 = vsub.f32 %v10429_v11, %v2221_v21  ;;  %v7601_v11 = vld [vmem:[%s5810_s5 + $0x40] sm:$0xff] }
 0x4dd   : > { %v2037_v7 = vpop.f32.mrf.mxu2  ;;  %10833 = vst [vmem:[#allocation20_spill] sm:$0xff] %v7601_v11 }
 0x4df   : > { %v2122_v58 = vpop.f32.mrf.mxu0  ;;  %v2086_v52 = vpop.f32.mrf.mxu3 }
 0x4e0   : > { %v2087_v36 = vadd.f32 %v2086_v52, %v2037_v7 }
 0x4e2   : > { %v2223_v55 = vmul.f32 %v7491_v30, %v2087_v36 }
 0x4e3   : > { %v2169_v8 = vpop.f32.mrf.mxu1 }
 0x4e4   : > { %v2170_v28 = vadd.f32 %v2169_v8, %v2120_v14  ;;  %v10435_v14 = vunpack.c.h.bf16 %v7483_v18  ;;  %v7588_v8 = vsub.f32 %v10432_v16, %v2223_v55 }
 0x4e5   : > { %v2039_v57 = vpop.f32.mrf.mxu2 }
 0x4e6   : > { %v2212_v49 = vmul.f32 %v7559_v6, %v2170_v28  ;;  %2803 = vmatmul.bf16.vlgmr.msra.gmra.mxu1 %v5628_v3  ;;  %v10433_v3 = vunpack.c.h.bf16 %v7477_v13 }
 0x4e7   : > { %v2125_v59 = vpop.f32.mrf.mxu0  ;;  %v2088_v39 = vpop.f32.mrf.mxu3 }
 0x4e8   : > { %v2089_v31 = vadd.f32 %v2088_v39, %v2039_v57  ;;  %v7580_v53 = vsub.f32 %v10435_v14, %v2212_v49 }
 0x4ea   : > { %2739 = vmatmul.bf16.gmra.mxu0 %v5629_v45  ;;  %v2225_v21 = vmul.f32 %v7491_v30, %v2089_v31 }
 0x4eb   : > { %v2171_v50 = vpop.f32.mrf.mxu1 }
 0x4ec   : > { %v2172_v37 = vadd.f32 %v2171_v50, %v2122_v58  ;;  %v7592_v52 = vsub.f32 %v10431_v5, %v2225_v21  ;;  %v7604_v21 = vld [vmem:[%s5810_s5 + $0x48] sm:$0xff] }
 0x4ed   : > { %v2042_v36 = vpop.f32.mrf.mxu2  ;;  %10834 = vst [vmem:[#allocation31_spill] sm:$0xff] %v7604_v21 }
 0x4ee   : > { %v2214_v0 = vmul.f32 %v7559_v6, %v2172_v37 }
 0x4ef   : > { %v2127_v58 = vpop.f32.mrf.mxu0  ;;  %v2091_v50 = vpop.f32.mrf.mxu3 }
 0x4f0   : > { %v7584_v7 = vsub.f32 %v10433_v3, %v2214_v0  ;;  %v2092_v37 = vadd.f32 %v2091_v50, %v2042_v36  ;;  %v10439_v50 = vunpack.c.l.bf16 %v7601_v11 }
 0x4f2   : > { %v2227_v55 = vmul.f32 %v7491_v30, %v2092_v37  ;;  %v10440_v37 = vunpack.c.l.bf16 %v7604_v21 }
 0x4f3   : > { %v2174_v49 = vpop.f32.mrf.mxu1 }
 0x4f4   : > { %v2175_v39 = vadd.f32 %v2174_v49, %v2125_v59  ;;  %v10441_v59 = vunpack.c.h.bf16 %v7514_v48 }
 0x4f5   : > { %v2044_v5 = vpop.f32.mrf.mxu2 }
 0x4f6   : > { %v2216_v31 = vmul.f32 %v7559_v6, %v2175_v39  ;;  %2808 = vmatmul.bf16.gmra.mxu1 %v5629_v45  ;;  %v10437_v45 = vunpack.c.h.bf16 %v7519_v4 }
 0x4f7   : > { %v2130_v0 = vpop.f32.mrf.mxu0  ;;  %v2093_v36 = vpop.f32.mrf.mxu3 }
 0x4f8   : > { %v2094_v39 = vadd.f32 %v2093_v36, %v2044_v5  ;;  %v7617_v14 = vsub.f32 %v10441_v59, %v2216_v31  ;;  %v10443_v59 = vunpack.c.h.bf16 %v7538_v23  ;;  %v10444_v36 = vunpack.c.h.bf16 %v7541_v10 }
 0x4fa   : > { %2744 = vmatmul.bf16.gmra.mxu0 %v5630_v51  ;;  %v2229_v63 = vmul.f32 %v7491_v30, %v2094_v39 }
 0x4fb   : > { %v2176_v16 = vpop.f32.mrf.mxu1 }
 0x4fc   : > { %v2177_v49 = vadd.f32 %v2176_v16, %v2127_v58  ;;  %v7625_v58 = vsub.f32 %v10439_v50, %v2227_v55  ;;  %v7629_v5 = vsub.f32 %v10440_v37, %v2229_v63  ;;  %v5631_v63 = vld [vmem:[%s10381_s1 + $0x18] sm:$0xff] }
 0x4fe   : > { %v2218_v3 = vmul.f32 %v7559_v6, %v2177_v49  ;;  %v7633_v49 = vpop.f32.mrf.mxu2 }
 0x4ff   : > { %v2132_v16 = vpop.f32.mrf.mxu0 }
 0x500   : > { %v7621_v15 = vsub.f32 %v10437_v45, %v2218_v3  ;;  %v7637_v3 = vpop.f32.mrf.mxu3 }
 0x503   : > { %v2179_v31 = vpop.f32.mrf.mxu1 }
 0x504   : > { %v2180_v45 = vadd.f32 %v2179_v31, %v2130_v0 }
 0x506   : > { %v2220_v56 = vmul.f32 %v7559_v6, %v2180_v45  ;;  %2813 = vmatmul.bf16.gmra.mxu1 %v5630_v51  ;;  %v2049_v50 = vpop.f32.mrf.mxu2 }
 0x507   : > { %v2135_v55 = vpop.f32.mrf.mxu0 }
 0x508   : > { %v2098_v41 = vpop.f32.mrf.mxu3  ;;  %v7648_v0 = vsub.f32 %v10443_v59, %v2220_v56  ;;  %v5632_v56 = vld [vmem:[%s10381_s1 + $0x20] sm:$0xff] }
 0x509   : > { %v2099_v47 = vadd.f32 %v2098_v41, %v2049_v50 }
 0x50a   : > { %2749 = vmatmul.bf16.gmra.mxu0 %v5631_v63 }
 0x50b   : > { %v2181_v37 = vpop.f32.mrf.mxu1 }
 0x50c   : > { %v2182_v28 = vadd.f32 %v2181_v37, %v2132_v16 }
 0x50e   : > { %v2222_v34 = vmul.f32 %v7559_v6, %v2182_v28  ;;  %v2052_v29 = vpop.f32.mrf.mxu2 }
 0x50f   : > { %v2137_v45 = vpop.f32.mrf.mxu0 }
 0x510   : > { %v7652_v51 = vsub.f32 %v10444_v36, %v2222_v34  ;;  %v2101_v57 = vpop.f32.mrf.mxu3  ;;  %v10455_v36 = vunpack.c.h.bf16 %v7564_v46 }
 0x513   : > { %v2184_v61 = vpop.f32.mrf.mxu1 }
 0x514   : > { %v2185_v37 = vadd.f32 %v2184_v61, %v2135_v55 }
 0x516   : > { %v2224_v16 = vmul.f32 %v7559_v6, %v2185_v37  ;;  %2818 = vmatmul.bf16.gmra.mxu1 %v5631_v63  ;;  %v2054_v59 = vpop.f32.mrf.mxu2 }
 0x517   : > { %v2140_v28 = vpop.f32.mrf.mxu0 }
 0x518   : > { %v2103_v39 = vpop.f32.mrf.mxu3  ;;  %v7665_v55 = vsub.f32 %v10455_v36, %v2224_v16  ;;  %v7677_v16 = vld [vmem:[%s5810_s5 + $0x70] sm:$0xff] }
 0x519   : > { %10835 = vst [vmem:[#allocation36_spill] sm:$0xff] %v7677_v16 }
 0x51a   : > { %2754 = vmatmul.bf16.gmra.mxu0 %v5632_v56 }
 0x51b   : > { %v2186_v34 = vpop.f32.mrf.mxu1 }
 0x51c   : > { %v2187_v31 = vadd.f32 %v2186_v34, %v2137_v45 }
 0x51e   : > { %v2226_v61 = vmul.f32 %v7559_v6, %v2187_v31  ;;  %v2057_v20 = vpop.f32.mrf.mxu2 }
 0x51f   : > { %v2142_v37 = vpop.f32.mrf.mxu0 }
 0x520   : > { %v7669_v63 = vsub.f32 %v10456_v19, %v2226_v61  ;;  %v2106_v34 = vpop.f32.mrf.mxu3  ;;  %v7680_v61 = vld [vmem:[%s5810_s5 + $0x78] sm:$0xff]  ;;  %v2104_v19 = vadd.f32 %v2103_v39, %v2054_v59  ;;  %v2102_v59 = vadd.f32 %v2101_v57, %v2052_v29  ;;  %v10840_v29 = vunpack.c.h.bf16 %v7601_v11 }
 0x521   : > { %v2107_v36 = vadd.f32 %v2106_v34, %v2057_v20  ;;  %10836 = vst [vmem:[#allocation29_spill] sm:$0xff] %v7680_v61  ;;  %v7692_v34 = vld [vmem:[%s5810_s5 + $0x60] sm:$0xff]  ;;  %v10471_v42 = vunpack.c.l.bf16 %v7680_v61  ;;  %v7720_v20 = vld [vmem:[%s5810_s5 + $0x50] sm:$0xff] }
 0x522   : > { %10838 = vst [vmem:[#allocation40_spill] sm:$0xff] %v7692_v34  ;;  %v2235_v41 = vmul.f32 %v7491_v30, %v2102_v59 }
 0x523   : > { %v2189_v45 = vpop.f32.mrf.mxu1  ;;  %v2239_v39 = vmul.f32 %v7491_v30, %v2107_v36  ;;  %10843 = vst [vmem:[#allocation21_spill] sm:$0xff] %v7720_v20 }
 0x524   : > { %v2190_v26 = vadd.f32 %v2189_v45, %v2140_v28  ;;  %v7686_v28 = vld [vmem:[%s5810_s5 + $0x68] sm:$0xff] }
 0x525   : > { %10837 = vst [vmem:[#allocation15_spill] sm:$0xff] %v7686_v28 }
 0x526   : > { %v2228_v44 = vmul.f32 %v7559_v6, %v2190_v26  ;;  %2823 = vmatmul.bf16.gmra.mxu1 %v5632_v56  ;;  %v2059_v24 = vpop.f32.mrf.mxu2  ;;  %v2237_v26 = vmul.f32 %v7491_v30, %v2104_v19  ;;  %v10479_v56 = vunpack.c.l.bf16 %v7686_v28  ;;  %v2097_v19 = vadd.f32 %v7637_v3, %v7633_v49 }
 0x527   : > { %v7674_v31 = vpop.f32.mrf.mxu0 }
 0x528   : > { %v2108_v45 = vpop.f32.mrf.mxu3  ;;  %v7706_v57 = vsub.f32 %v10840_v29, %v2228_v44  ;;  %v2301_v49 = vsub.f32 %v10479_v56, %v2237_v26 }
 0x529   : > { %v2109_v25 = vadd.f32 %v2108_v45, %v2059_v24  ;;  %v10841_v24 = vunpack.c.h.bf16 %v7604_v21 }
 0x52a   : > { %2759 = vmatmul.bf16.gmra.mxu0 %v5633_v22 }
 0x52b   : > { %v2191_v9 = vpop.f32.mrf.mxu1 }
 0x52c   : > { %v2192_v12 = vadd.f32 %v2191_v9, %v2142_v37  ;;  %v2241_v9 = vmul.f32 %v7491_v30, %v2109_v25  ;;  %v7701_v37 = vld [vmem:[%s5810_s5 + $0x58] sm:$0xff]  ;;  %v10842_v25 = vunpack.c.l.bf16 %v7677_v16 }
 0x52d   : > { %10839 = vst [vmem:[#allocation27_spill] sm:$0xff] %v7701_v37  ;;  %v10476_v29 = vunpack.c.l.bf16 %v7701_v37 }
 0x52e   : > { %v2230_v1 = vmul.f32 %v7559_v6, %v2192_v12  ;;  %v2303_v50 = vsub.f32 %v10842_v25, %v2239_v39  ;;  %v2305_v45 = vsub.f32 %v10471_v42, %v2241_v9  ;;  %v10482_v39 = vunpack.c.l.bf16 %v7720_v20 }
 0x52f   : > { %v2147_v12 = vpop.f32.mrf.mxu0  ;;  %v10844_v9 = vunpack.c.l.bf16 %v7692_v34 }
 0x530   : > { %v7710_v36 = vsub.f32 %v10841_v24, %v2230_v1  ;;  %v2233_v1 = vmul.f32 %v7491_v30, %v2099_v47  ;;  %v2321_v59 = vpack.c.bf16 %v2305_v45, %v2303_v50  ;;  %v2231_v24 = vmul.f32 %v7491_v30, %v2097_v19  ;;  %v5634_v30 = vld [vmem:[%s10381_s1 + $0x30] sm:$0xff] }
 0x531   : > { %v2299_v25 = vsub.f32 %v10844_v9, %v2235_v41  ;;  %v10846_v45 = vpack.c.bf16 %v7592_v52, %v7588_v8  ;;  %v10849_v8 = vpack.c.bf16 %v7501_v17, %v7505_v62  ;;  %v5636_v9 = vld [vmem:[%s10381_s1 + $0x40] sm:$0xff]  ;;  %v10477_v17 = vunpack.c.h.bf16 %v7680_v61 }
 0x532   : > { %2435 = vmatpush.bf16.msra.mxu2 %v2321_v59  ;;  %v2297_v42 = vsub.f32 %v10476_v29, %v2233_v1  ;;  %v2295_v11 = vsub.f32 %v10482_v39, %v2231_v24  ;;  %v10474_v24 = vunpack.c.h.bf16 %v7677_v16 }
 0x533   : > { %v2194_v3 = vpop.f32.mrf.mxu1  ;;  %v2319_v47 = vpack.c.bf16 %v2301_v49, %v2299_v25  ;;  %v10847_v49 = vpack.c.bf16 %v7555_v27, %v7551_v33 }
 0x534   : > { %v2317_v19 = vpack.c.bf16 %v2297_v42, %v2295_v11  ;;  %v5635_v42 = vld [vmem:[%s10381_s1 + $0x38] sm:$0xff] }
 0x536   : > { %2828 = vmatmul.bf16.gmra.mxu1 %v5633_v22  ;;  %2436 = vmatpush.bf16.msra.mxu2 %v2319_v47  ;;  %v10845_v22 = vpack.c.bf16 %v7629_v5, %v7625_v58  ;;  %v10848_v58 = vpack.c.bf16 %v7531_v60, %v7526_v54 }
 0x537   : > { %v2150_v44 = vpop.f32.mrf.mxu0 }
 0x53a   : > { %2764 = vmatmul.bf16.gmra.mxu0 %v5634_v30  ;;  %2437 = vmatpush.bf16.msra.mxu2 %v2317_v19  ;;  %v10478_v19 = vunpack.c.h.bf16 %v7686_v28 }
 0x53b   : > { %v2196_v26 = vpop.f32.mrf.mxu1 }
 0x53c   : > { %v2197_v62 = vadd.f32 %v2196_v26, %v2147_v12  ;;  %v10475_v26 = vunpack.c.h.bf16 %v7701_v37 }
 0x53e   : > { %2438 = vmatpush.bf16.msra.mxu2 %v10845_v22  ;;  %v10480_v22 = vunpack.c.h.bf16 %v7692_v34  ;;  %v2234_v12 = vmul.f32 %v7559_v6, %v2197_v62 }
 0x53f   : > { %v2152_v41 = vpop.f32.mrf.mxu0 }
 0x542   : > { %2439 = vmatpush.bf16.msra.mxu2 %v10846_v45  ;;  %v2195_v45 = vadd.f32 %v2194_v3, %v7674_v31  ;;  %v10481_v3 = vunpack.c.h.bf16 %v7720_v20 }
 0x543   : > { %v2199_v50 = vpop.f32.mrf.mxu1 }
 0x544   : > { %v2200_v54 = vadd.f32 %v2199_v50, %v2150_v44  ;;  %v2232_v31 = vmul.f32 %v7559_v6, %v2195_v45  ;;  %v10851_v45 = vpack.c.bf16 %v7669_v63, %v7665_v55  ;;  %v10853_v63 = vpack.c.bf16 %v7621_v15, %v7617_v14 }
 0x546   : > { %2833 = vmatmul.bf16.gmra.mxu1 %v5634_v30  ;;  %2440 = vmatpush.bf16.msra.mxu2 %v10847_v49 }
 0x547   : > { %v2155_v1 = vpop.f32.mrf.mxu0 }
 0x54a   : > { %2769 = vmatmul.bf16.gmra.mxu0 %v5635_v42  ;;  %2441 = vmatpush.bf16.msra.mxu2 %v10848_v58 }
 0x54b   : > { %v2201_v11 = vpop.f32.mrf.mxu1 }
 0x54c   : > { %v2202_v27 = vadd.f32 %v2201_v11, %v2152_v41 }
 0x54e   : > { %2442 = vmatpush.bf16.msra.mxu2 %v10849_v8  ;;  %v2238_v30 = vmul.f32 %v7559_v6, %v2202_v27  ;;  %v2298_v8 = vsub.f32 %v10475_v26, %v2234_v12 }
 0x54f   : > { %v2157_v5 = vpop.f32.mrf.mxu0 }
 0x553   : > { %v2204_v52 = vpop.f32.mrf.mxu1 }
 0x554   : > { %v2205_v59 = vadd.f32 %v2204_v52, %v2155_v1  ;;  %v2236_v1 = vmul.f32 %v7559_v6, %v2200_v54  ;;  %v5637_v54 = vld [vmem:[%s10381_s1 + $0x48] sm:$0xff] }
 0x556   : > { %2838 = vmatmul.bf16.gmra.mxu1 %v5635_v42  ;;  %v2240_v60 = vmul.f32 %v7559_v6, %v2205_v59  ;;  %v2302_v42 = vsub.f32 %v10478_v19, %v2238_v30  ;;  %v2296_v59 = vsub.f32 %v10481_v3, %v2232_v31  ;;  %v10850_v30 = vpack.c.bf16 %v7710_v36, %v7706_v57  ;;  %v5638_v57 = vld [vmem:[%s10381_s1 + $0x50] sm:$0xff] }
 0x557   : > { %v2735_v33 = vpop.f32.mrf.mxu0 }
 0x558   : > { %v2304_v44 = vsub.f32 %v10474_v24, %v2240_v60 }
 0x55a   : > { %2774 = vmatmul.bf16.gmra.mxu0 %v5636_v9 }
 0x55b   : > { %v2206_v25 = vpop.f32.mrf.mxu1 }
 0x55c   : > { %v2207_v47 = vadd.f32 %v2206_v25, %v2157_v5  ;;  %v2300_v5 = vsub.f32 %v10480_v22, %v2236_v1  ;;  %v2318_v25 = vpack.c.bf16 %v2298_v8, %v2296_v59  ;;  %v5149_v59 = vld [vmem:[%s10382_s2 + $0x20] sm:$0xff] }
 0x55e   : > { %v2242_v41 = vmul.f32 %v7559_v6, %v2207_v47  ;;  %v2320_v52 = vpack.c.bf16 %v2302_v42, %v2300_v5  ;;  %v5145_v6 = vld [vmem:[%s10382_s2] sm:$0xff]  ;;  %v5147_v42 = vld [vmem:[%s10382_s2 + $0x10] sm:$0xff] }
 0x55f   : > { %v2737_v49 = vpop.f32.mrf.mxu0  ;;  %2443 = vmatmul.bf16.vlgmr.msra.gmra.mxu2 %v5145_v6 }
 0x560   : > { %v2306_v50 = vsub.f32 %v10477_v17, %v2242_v41  ;;  %v2864_v47 = vpack.c.bf16 %v2737_v49, %v2735_v33  ;;  %v5146_v33 = vld [vmem:[%s10382_s2 + $0x8] sm:$0xff] }
 0x562   : > { %v2322_v11 = vpack.c.bf16 %v2306_v50, %v2304_v44  ;;  %v10852_v44 = vpack.c.bf16 %v7652_v51, %v7648_v0  ;;  %v10854_v51 = vpack.c.bf16 %v7584_v7, %v7580_v53  ;;  %v5148_v7 = vld [vmem:[%s10382_s2 + $0x18] sm:$0xff] }
 0x563   : > { %v2804_v58 = vpop.f32.mrf.mxu1 }
 0x564   : > { %2484 = vmatpush.bf16.msra.mxu3 %v2322_v11  ;;  %v5639_v11 = vld [vmem:[%s10381_s1 + $0x58] sm:$0xff] }
 0x566   : > { %2843 = vmatmul.bf16.gmra.mxu1 %v5636_v9 }
 0x567   : > { %v2740_v27 = vpop.f32.mrf.mxu0 }
 0x568   : > { %2485 = vmatpush.bf16.msra.mxu3 %v2320_v52 }
 0x56a   : > { %2779 = vmatmul.bf16.gmra.mxu0 %v5637_v54 }
 0x56b   : > { %v2806_v60 = vpop.f32.mrf.mxu1 }
 0x56c   : > { %v2865_v9 = vpack.c.bf16 %v2806_v60, %v2804_v58  ;;  %2486 = vmatpush.bf16.msra.mxu3 %v2318_v25  ;;  %v5152_v25 = vld [vmem:[%s10382_s2 + $0x38] sm:$0xff] }
 0x56e   : > { %2904 = vxpose.binary.xlu2.c.b16.start [1/4] (short) %v2865_v9, %v2864_v47, 128 }
 0x56f   : > { %v2742_v62 = vpop.f32.mrf.mxu0  ;;  %2448 = vmatmul.bf16.gmra.mxu2 %v5146_v33 }
 0x570   : > { %2487 = vmatpush.bf16.msra.mxu3 %v10850_v30  ;;  %v2866_v50 = vpack.c.bf16 %v2742_v62, %v2740_v27  ;;  %v5150_v27 = vld [vmem:[%s10382_s2 + $0x28] sm:$0xff] }
 0x573   : > { %v2809_v41 = vpop.f32.mrf.mxu1 }
 0x574   : > { %2488 = vmatpush.bf16.msra.mxu3 %v10851_v45 }
 0x576   : > { %2848 = vmatmul.bf16.gmra.mxu1 %v5637_v54 }
 0x577   : > { %v2745_v1 = vpop.f32.mrf.mxu0 }
 0x578   : > { %2489 = vmatpush.bf16.msra.mxu3 %v10852_v44 }
 0x57a   : > { %2784 = vmatmul.bf16.gmra.mxu0 %v5638_v57 }
 0x57b   : > { %v2811_v36 = vpop.f32.mrf.mxu1 }
 0x57c   : > { %v2867_v55 = vpack.c.bf16 %v2811_v36, %v2809_v41  ;;  %2490 = vmatpush.bf16.msra.mxu3 %v10853_v63 }
 0x57e   : > { %2905 = vxpose.binary.xlu2.c.b16.end [2/4] (short) %v2867_v55, %v2866_v50, 128 }
 0x57f   : > { %v2747_v0 = vpop.f32.mrf.mxu0  ;;  %2453 = vmatmul.bf16.gmra.mxu2 %v5147_v42 }
 0x580   : > { %2491 = vmatpush.bf16.msra.mxu3 %v10854_v51  ;;  %v2868_v31 = vpack.c.bf16 %v2747_v0, %v2745_v1 }
 0x583   : > { %v2814_v49 = vpop.f32.mrf.mxu1  ;;  %2492 = vmatmul.bf16.vlgmr.msra.gmra.mxu3 %v5145_v6  ;;  %v5151_v6 = vld [vmem:[%s10382_s2 + $0x30] sm:$0xff] }
 0x586   : > { %2853 = vmatmul.bf16.gmra.mxu1 %v5638_v57 }
 0x587   : > { %v2750_v12 = vpop.f32.mrf.mxu0 }
 0x58a   : > { %2789 = vmatmul.bf16.gmra.mxu0 %v5639_v11 }
 0x58b   : > { %v2816_v15 = vpop.f32.mrf.mxu1 }
 0x58c   : > { %v2869_v52 = vpack.c.bf16 %v2816_v15, %v2814_v49 }
 0x58f   : > { %v2752_v14 = vpop.f32.mrf.mxu0  ;;  %2458 = vmatmul.bf16.gmra.mxu2 %v5148_v7 }
 0x590   : > { %v2870_v58 = vpack.c.bf16 %v2752_v14, %v2750_v12 }
 0x592   : > { %2982 = vmatpush.bf16.msrb.mxu2 %v2870_v58 }
 0x593   : > { %v2819_v53 = vpop.f32.mrf.mxu1  ;;  %2497 = vmatmul.bf16.gmra.mxu3 %v5146_v33 }
 0x596   : > { %2858 = vmatmul.bf16.gmra.mxu1 %v5639_v11  ;;  %2983 = vmatpush.bf16.msrb.mxu2 %v2868_v31 }
 0x59b   : > { %v2821_v5 = vpop.f32.mrf.mxu1 }
 0x59c   : > { %v2871_v8 = vpack.c.bf16 %v2821_v5, %v2819_v53 }
 0x59e   : > { %3071 = vmatpush.bf16.msrb.mxu3 %v2871_v8 }
 0x59f   : > { %2463 = vmatmul.bf16.gmra.mxu2 %v5149_v59 }
 0x5a2   : > { %3072 = vmatpush.bf16.msrb.mxu3 %v2869_v52 }
 0x5a3   : > { %2502 = vmatmul.bf16.gmra.mxu3 %v5147_v42 }
 0x5af   : > { %2468 = vmatmul.bf16.gmra.mxu2 %v5150_v27 }
 0x5b3   : > { %2507 = vmatmul.bf16.gmra.mxu3 %v5148_v7 }
 0x5bf   : > { %2473 = vmatmul.bf16.gmra.mxu2 %v5151_v6 }
 0x5c3   : > { %2512 = vmatmul.bf16.gmra.mxu3 %v5149_v59 }
 0x5cf   : > { %2478 = vmatmul.bf16.gmra.mxu2 %v5152_v25 }
 0x5d3   : > { %2517 = vmatmul.bf16.gmra.mxu3 %v5150_v27 }
 0x5e2   : > { %v7833_v54 = vpop.f32.mrf.mxu2 }
 0x5e3   : > { %2522 = vmatmul.bf16.gmra.mxu3 %v5151_v6  ;;  %10855 = vst [vmem:[#allocation39_spill] sm:$0xff] %v7833_v54 }
 0x5ea   : > { %v7835_v60 = vpop.f32.mrf.mxu2 }
 0x5eb   : > { %10856 = vst [vmem:[#allocation22_spill] sm:$0xff] %v7835_v60 }
 0x5f2   : > { %v7839_v9 = vpop.f32.mrf.mxu2 }
 0x5f3   : > { %2527 = vmatmul.bf16.gmra.mxu3 %v5152_v25  ;;  %10858 = vst [vmem:[#allocation41_spill] sm:$0xff] %v7839_v9 }
 0x5fa   : > { %v7845_v41 = vpop.f32.mrf.mxu2 }
 0x5fb   : > { %10860 = vst [vmem:[#allocation43_spill] sm:$0xff] %v7845_v41 }
 0x602   : > { %v7849_v44 = vpop.f32.mrf.mxu2 }
 0x603   : > { %10862 = vst [vmem:[#allocation45_spill] sm:$0xff] %v7849_v44 }
 0x606   : > { %v7837_v47 = vpop.f32.mrf.mxu3 }
 0x607   : > { %10857 = vst [vmem:[#allocation19_spill] sm:$0xff] %v7837_v47 }
 0x60a   : > { %v7857_v50 = vpop.f32.mrf.mxu2 }
 0x60b   : > { %10865 = vst [vmem:[#allocation48_spill] sm:$0xff] %v7857_v50 }
 0x60e   : > { %v7841_v62 = vpop.f32.mrf.mxu3 }
 0x60f   : > { %10859 = vst [vmem:[#allocation42_spill] sm:$0xff] %v7841_v62  ;;  %v2912_v30 = vpop.trf.xlu2 }
 0x610   : > { %5062 = vmatmul.msk.bf16.vlgmr.msrb.gmra.mxu2 %vm710_vm0, %v2912_v30  ;;  %5078 = vmatmul.msk.bf16.vlgmr.msrb.gmra.mxu3 %vm710_vm0, %v2912_v30 }
 0x612   : > { %v7863_v51 = vpop.f32.mrf.mxu2 }
 0x613   : > { %10867 = vst [vmem:[#allocation50_spill] sm:$0xff] %v7863_v51 }
 0x616   : > { %v7847_v45 = vpop.f32.mrf.mxu3 }
 0x617   : > { %10861 = vst [vmem:[#allocation44_spill] sm:$0xff] %v7847_v45  ;;  %v2913_v1 = vpop.trf.xlu2 }
 0x61a   : > { %v7867_v42 = vpop.f32.mrf.mxu2 }
 0x61b   : > { %10869 = vst [vmem:[#allocation52_spill] sm:$0xff] %v7867_v42 }
 0x61e   : > { %v7851_v33 = vpop.f32.mrf.mxu3 }
 0x61f   : > { %10863 = vst [vmem:[#allocation46_spill] sm:$0xff] %v7851_v33  ;;  %v2914_v57 = vpop.trf.xlu2 }
 0x620   : > { %5063 = vmatmul.msk.bf16.gmra.mxu2 %vm710_vm0, %v2914_v57  ;;  %5079 = vmatmul.msk.bf16.gmra.mxu3 %vm710_vm0, %v2914_v57 }
 0x622   : > { %v7873_v14 = vpop.f32.mrf.mxu2 }
 0x623   : > { %10871 = vst [vmem:[#allocation54_spill] sm:$0xff] %v7873_v14 }
 0x626   : > { %v7855_v36 = vpop.f32.mrf.mxu3 }
 0x627   : > { %10864 = vst [vmem:[#allocation47_spill] sm:$0xff] %v7855_v36  ;;  %v2915_v55 = vpop.trf.xlu2 }
 0x62a   : > { %v7877_v53 = vpop.f32.mrf.mxu2 }
 0x62b   : > { %10873 = vst [vmem:[#allocation56_spill] sm:$0xff] %v7877_v53 }
 0x62e   : > { %v7859_v63 = vpop.f32.mrf.mxu3 }
 0x62f   : > { %10866 = vst [vmem:[#allocation49_spill] sm:$0xff] %v7859_v63  ;;  %v2916_v0 = vpop.trf.xlu2 }
 0x630   : > { %5064 = vmatmul.msk.bf16.gmra.mxu2 %vm710_vm0, %v2916_v0  ;;  %5080 = vmatmul.msk.bf16.gmra.mxu3 %vm710_vm0, %v2916_v0 }
 0x632   : > { %v7883_v52 = vpop.f32.mrf.mxu2 }
 0x633   : > { %10875 = vst [vmem:[#allocation58_spill] sm:$0xff] %v7883_v52 }
 0x636   : > { %v7865_v49 = vpop.f32.mrf.mxu3 }
 0x637   : > { %10868 = vst [vmem:[#allocation51_spill] sm:$0xff] %v7865_v49  ;;  %v2917_v12 = vpop.trf.xlu2 }
 0x63a   : > { %v7889_v6 = vpop.f32.mrf.mxu2 }
 0x63b   : > { %10877 = vst [vmem:[#allocation60_spill] sm:$0xff] %v7889_v6 }
 0x63e   : > { %v7869_v11 = vpop.f32.mrf.mxu3 }
 0x63f   : > { %10870 = vst [vmem:[#allocation53_spill] sm:$0xff] %v7869_v11  ;;  %v2918_v15 = vpop.trf.xlu2 }
 0x640   : > { %5065 = vmatmul.msk.bf16.gmra.mxu2 %vm710_vm0, %v2918_v15  ;;  %5081 = vmatmul.msk.bf16.gmra.mxu3 %vm710_vm0, %v2918_v15 }
 0x642   : > { %v7893_v57 = vpop.f32.mrf.mxu2 }
 0x643   : > { %10879 = vst [vmem:[#allocation62_spill] sm:$0xff] %v7893_v57 }
 0x646   : > { %v7875_v58 = vpop.f32.mrf.mxu3 }
 0x647   : > { %10872 = vst [vmem:[#allocation55_spill] sm:$0xff] %v7875_v58  ;;  %v2919_v31 = vpop.trf.xlu2 }
 0x64e   : > { %v7879_v5 = vpop.f32.mrf.mxu3 }
 0x64f   : > { %v2920_v7 = vpop.trf.xlu2  ;;  %10874 = vst [vmem:[#allocation57_spill] sm:$0xff] %v7879_v5 }
 0x650   : > { %5066 = vmatmul.msk.bf16.gmra.mxu2 %vm710_vm0, %v2920_v7  ;;  %5082 = vmatmul.msk.bf16.gmra.mxu3 %vm710_vm0, %v2920_v7  ;;  %v7899_v7 = vpop.f32.mrf.mxu2 }
 0x651   : > { %10881 = vst [vmem:[#allocation64_spill] sm:$0xff] %v7899_v7 }
 0x656   : > { %v7885_v59 = vpop.f32.mrf.mxu3 }
 0x657   : > { %v2921_v8 = vpop.trf.xlu2  ;;  %10876 = vst [vmem:[#allocation59_spill] sm:$0xff] %v7885_v59 }
 0x658   : > { %v7905_v29 = vpop.f32.mrf.mxu2 }
 0x659   : > { %10883 = vst [vmem:[#allocation66_spill] sm:$0xff] %v7905_v29 }
 0x65e   : > { %v7891_v25 = vpop.f32.mrf.mxu3 }
 0x65f   : > { %v2922_v27 = vpop.trf.xlu2  ;;  %10878 = vst [vmem:[#allocation61_spill] sm:$0xff] %v7891_v25 }
 0x660   : > { %5067 = vmatmul.msk.bf16.gmra.mxu2 %vm710_vm0, %v2922_v27  ;;  %5083 = vmatmul.msk.bf16.gmra.mxu3 %vm710_vm0, %v2922_v27  ;;  %v7909_v19 = vpop.f32.mrf.mxu2 }
 0x661   : > { %10885 = vst [vmem:[#allocation68_spill] sm:$0xff] %v7909_v19 }
 0x666   : > { %v7895_v0 = vpop.f32.mrf.mxu3 }
 0x667   : > { %v2923_v30 = vpop.trf.xlu2  ;;  %10880 = vst [vmem:[#allocation63_spill] sm:$0xff] %v7895_v0 }
 0x66e   : > { %v7901_v24 = vpop.f32.mrf.mxu3 }
 0x66f   : > { %v2924_v15 = vpop.trf.xlu2  ;;  %10882 = vst [vmem:[#allocation65_spill] sm:$0xff] %v7901_v24 }
 0x670   : > { %5068 = vmatmul.msk.bf16.gmra.mxu2 %vm710_vm0, %v2924_v15  ;;  %5084 = vmatmul.msk.bf16.gmra.mxu3 %vm710_vm0, %v2924_v15 }
 0x676   : > { %v7907_v17 = vpop.f32.mrf.mxu3 }
 0x677   : > { %v2925_v26 = vpop.trf.xlu2  ;;  %10884 = vst [vmem:[#allocation67_spill] sm:$0xff] %v7907_v17 }
 0x67e   : > { %v7911_v56 = vpop.f32.mrf.mxu3 }
 0x67f   : > { %v2926_v27 = vpop.trf.xlu2  ;;  %10886 = vst [vmem:[#allocation69_spill] sm:$0xff] %v7911_v56 }
 0x680   : > { %5069 = vmatmul.msk.bf16.gmra.mxu2 %vm710_vm0, %v2926_v27  ;;  %5085 = vmatmul.msk.bf16.gmra.mxu3 %vm710_vm0, %v2926_v27 }
 0x687   : > { %v2927_v38 = vpop.trf.xlu2 }
 0x690   : > { %5070 = vmatmul.msk.bf16.gmra.mxu2 %vm710_vm0, %v2913_v1  ;;  %5086 = vmatmul.msk.bf16.gmra.mxu3 %vm710_vm0, %v2913_v1 }
 0x693   : > { %v7915_v15 = vpop.f32.mrf.mxu2  ;;  %v7917_v22 = vpop.f32.mrf.mxu3 }
 0x694   : > { %10887 = vst [vmem:[#allocation70_spill] sm:$0xff] %v7915_v15 }
 0x695   : > { %10888 = vst [vmem:[#allocation71_spill] sm:$0xff] %v7917_v22 }
 0x69b   : > { %v7919_v3 = vpop.f32.mrf.mxu2  ;;  %v7921_v39 = vpop.f32.mrf.mxu3 }
 0x6a0   : > { %5071 = vmatmul.msk.bf16.gmra.mxu2 %vm710_vm0, %v2915_v55  ;;  %5087 = vmatmul.msk.bf16.gmra.mxu3 %vm710_vm0, %v2915_v55 }
 0x6a3   : > { %v7925_v27 = vpop.f32.mrf.mxu2  ;;  %v7927_v16 = vpop.f32.mrf.mxu3 }
 0x6a4   : > { %10889 = vst [vmem:[#allocation72_spill] sm:$0xff] %v7925_v27  ;;  %v3160_v41 = vmax.f32 %v7925_v27, %v7927_v16 }
 0x6a5   : > { %10890 = vst [vmem:[#allocation73_spill] sm:$0xff] %v7927_v16 }
 0x6ab   : > { %v7929_v17 = vpop.f32.mrf.mxu2  ;;  %v7931_v29 = vpop.f32.mrf.mxu3 }
 0x6b0   : > { %5072 = vmatmul.msk.bf16.gmra.mxu2 %vm710_vm0, %v2917_v12  ;;  %5088 = vmatmul.msk.bf16.gmra.mxu3 %vm710_vm0, %v2917_v12 }
 0x6b3   : > { %v7935_v1 = vpop.f32.mrf.mxu2  ;;  %v7937_v37 = vpop.f32.mrf.mxu3 }
 0x6b4   : > { %10891 = vst [vmem:[#allocation74_spill] sm:$0xff] %v7935_v1 }
 0x6b5   : > { %10892 = vst [vmem:[#allocation75_spill] sm:$0xff] %v7937_v37 }
 0x6bb   : > { %v7939_v61 = vpop.f32.mrf.mxu2  ;;  %v7941_v35 = vpop.f32.mrf.mxu3 }
 0x6c0   : > { %5073 = vmatmul.msk.bf16.gmra.mxu2 %vm710_vm0, %v2919_v31  ;;  %5089 = vmatmul.msk.bf16.gmra.mxu3 %vm710_vm0, %v2919_v31 }
 0x6c3   : > { %v7945_v55 = vpop.f32.mrf.mxu2  ;;  %v7947_v28 = vpop.f32.mrf.mxu3 }
 0x6cb   : > { %v7949_v25 = vpop.f32.mrf.mxu2  ;;  %v7951_v6 = vpop.f32.mrf.mxu3 }
 0x6d0   : > { %5074 = vmatmul.msk.bf16.gmra.mxu2 %vm710_vm0, %v2921_v8  ;;  %5090 = vmatmul.msk.bf16.gmra.mxu3 %vm710_vm0, %v2921_v8 }
 0x6d3   : > { %v7955_v12 = vpop.f32.mrf.mxu2  ;;  %v7957_v56 = vpop.f32.mrf.mxu3 }
 0x6db   : > { %v7959_v19 = vpop.f32.mrf.mxu2  ;;  %v7961_v58 = vpop.f32.mrf.mxu3 }
 0x6e0   : > { %5075 = vmatmul.msk.bf16.gmra.mxu2 %vm710_vm0, %v2923_v30  ;;  %5091 = vmatmul.msk.bf16.gmra.mxu3 %vm710_vm0, %v2923_v30 }
 0x6e3   : > { %v7965_v31 = vpop.f32.mrf.mxu2  ;;  %v7967_v34 = vpop.f32.mrf.mxu3 }
 0x6eb   : > { %v7969_v14 = vpop.f32.mrf.mxu2  ;;  %v7971_v24 = vpop.f32.mrf.mxu3 }
 0x6f0   : > { %5076 = vmatmul.msk.bf16.gmra.mxu2 %vm710_vm0, %v2925_v26  ;;  %5092 = vmatmul.msk.bf16.gmra.mxu3 %vm710_vm0, %v2925_v26  ;;  %v3166_v26 = vmax.f32 %v7935_v1, %v7937_v37 }
 0x6f3   : > { %v7975_v8 = vpop.f32.mrf.mxu2  ;;  %v7977_v10 = vpop.f32.mrf.mxu3 }
 0x6fb   : > { %v7979_v7 = vpop.f32.mrf.mxu2  ;;  %v7981_v20 = vpop.f32.mrf.mxu3 }
 0x6fc   : > { %v3193_v30 = vmax.f32 %v7979_v7, %v7981_v20 }
 0x6fe   : > { %3194 = vmax.xlane.f32.xlu0 %v3193_v30 }
 0x700   : > { %5077 = vmatmul.msk.bf16.gmra.mxu2 %vm710_vm0, %v2927_v38  ;;  %5093 = vmatmul.msk.bf16.gmra.mxu3 %vm710_vm0, %v2927_v38 }
 0x703   : > { %v3020_v0 = vpop.f32.mrf.mxu2  ;;  %v3109_v57 = vpop.f32.mrf.mxu3 }
 0x704   : > { %v3196_v21 = vmax.f32 %v3020_v0, %v3109_v57 }
 0x706   : > { %3167 = vmax.xlane.f32.xlu0 %v3166_v26  ;;  %3197 = vmax.xlane.f32.xlu1 %v3196_v21 }
 0x70b   : > { %v7989_v63 = vpop.f32.mrf.mxu2  ;;  %v7991_v50 = vpop.f32.mrf.mxu3 }
 0x70c   : > { %v3199_v4 = vmax.f32 %v7989_v63, %v7991_v50 }
 0x70e   : > { %3200 = vmax.xlane.f32.xlu1 %v3199_v4 }
 0x713   : > { %v7995_v30 = vpop.f32.mrf.mxu2  ;;  %v7997_v59 = vpop.f32.mrf.mxu3 }
 0x714   : > { %10893 = vst [vmem:[#allocation76_spill] sm:$0xff] %v7995_v30 }
 0x715   : > { %10894 = vst [vmem:[#allocation77_spill] sm:$0xff] %v7997_v59 }
 0x71b   : > { %v7999_v38 = vpop.f32.mrf.mxu2  ;;  %v8001_v52 = vpop.f32.mrf.mxu3 }
 0x723   : > { %v8003_v5 = vpop.f32.mrf.mxu2  ;;  %v8005_v26 = vpop.f32.mrf.mxu3 }
 0x724   : > { %10895 = vst [vmem:[#allocation78_spill] sm:$0xff] %v8003_v5  ;;  %v3208_v42 = vmax.f32 %v8003_v5, %v8005_v26 }
 0x725   : > { %10896 = vst [vmem:[#allocation79_spill] sm:$0xff] %v8005_v26 }
 0x72b   : > { %v8007_v21 = vpop.f32.mrf.mxu2  ;;  %v8009_v53 = vpop.f32.mrf.mxu3 }
 0x733   : > { %v8011_v2 = vpop.f32.mrf.mxu2  ;;  %v8013_v43 = vpop.f32.mrf.mxu3 }
 0x734   : > { %v3214_v4 = vmax.f32 %v8011_v2, %v8013_v43 }
 0x736   : > { %3215 = vmax.xlane.f32.xlu0 %v3214_v4  ;;  %v3154_v4 = vmax.f32 %v7915_v15, %v7917_v22 }
 0x73b   : > { %v8017_v46 = vpop.f32.mrf.mxu2  ;;  %v8019_v33 = vpop.f32.mrf.mxu3 }
 0x73c   : > { %10897 = vst [vmem:[#allocation80_spill] sm:$0xff] %v8019_v33 }
 0x73e   : > { %3161 = vmax.xlane.f32.xlu0 %v3160_v41  ;;  %v3202_v41 = vmax.f32 %v7995_v30, %v7997_v59 }
 0x743   : > { %v8023_v13 = vpop.f32.mrf.mxu2  ;;  %v8025_v11 = vpop.f32.mrf.mxu3 }
 0x746   : > { %3209 = vmax.xlane.f32.xlu0 %v3208_v42 }
 0x74b   : > { %v8029_v49 = vpop.f32.mrf.mxu2  ;;  %v8031_v51 = vpop.f32.mrf.mxu3 }
 0x74e   : > { %3155 = vmax.xlane.f32.xlu0 %v3154_v4 }
 0x753   : > { %v8035_v62 = vpop.f32.mrf.mxu2  ;;  %v8037_v60 = vpop.f32.mrf.mxu3 }
 0x756   : > { %3203 = vmax.xlane.f32.xlu0 %v3202_v41 }
 0x75b   : > { %v8041_v18 = vpop.f32.mrf.mxu2  ;;  %v8043_v23 = vpop.f32.mrf.mxu3 }
 0x763   : > { %v8045_v42 = vpop.f32.mrf.mxu2  ;;  %v8047_v47 = vpop.f32.mrf.mxu3 }
 0x76b   : > { %v8049_v54 = vpop.f32.mrf.mxu2  ;;  %v8051_v36 = vpop.f32.mrf.mxu3 }
 0x773   : > { %v8053_v4 = vpop.f32.mrf.mxu2  ;;  %v8055_v44 = vpop.f32.mrf.mxu3 }
 0x779   : > { %v3198_v48 = vpop.xlane.xlu1 %3197 }
 0x77a   : > { %v3278_v45 = vsub.f32 %v3020_v0, %v3198_v48  ;;  %v3279_v9 = vsub.f32 %v3109_v57, %v3198_v48 }
 0x77b   : > { %v8057_v41 = vpop.f32.mrf.mxu2  ;;  %v8059_v40 = vpop.f32.mrf.mxu3 }
 0x77c   : > { %v3370_v32 = vmul.f32 1.442695, %v3278_v45  ;;  %v3372_v59 = vmul.f32 1.442695, %v3279_v9  ;;  %v3241_v57 = vmax.f32 %v8057_v41, %v8059_v40 }
 0x77e   : > { %5432 = vpow2.f32 %v3370_v32 }
 0x77f   : > { %5434 = vpow2.f32 %v3372_v59  ;;  %v3190_v59 = vmax.f32 %v7975_v8, %v7977_v10 }
 0x783   : > { %v8061_v30 = vpop.f32.mrf.mxu2  ;;  %v8063_v26 = vpop.f32.mrf.mxu3 }
 0x784   : > { %v3244_v5 = vmax.f32 %v8061_v30, %v8063_v26  ;;  %v8067_v22 = vpop.eup %5432 }
 0x785   : > { %10898 = vst [vmem:[#allocation81_spill] sm:$0xff] %v8067_v22  ;;  %v8069_v0 = vpop.eup %5434 }
 0x786   : > { %3245 = vmax.xlane.f32.xlu1 %v3244_v5  ;;  %10899 = vst [vmem:[#allocation82_spill] sm:$0xff] %v8069_v0  ;;  %v3484_v48 = vadd.f32 %v8069_v0, %v8067_v22  ;;  %v3238_v5 = vmax.f32 %v8053_v4, %v8055_v44  ;;  %v3187_v0 = vmax.f32 %v7969_v14, %v7971_v24 }
 0x788   : > { %3485 = vadd.xlane.f32.xlu0 %v3484_v48  ;;  %v3184_v48 = vmax.f32 %v7965_v31, %v7967_v34 }
 0x78b   : > { %v8073_v45 = vpop.f32.mrf.mxu2  ;;  %v8075_v32 = vpop.f32.mrf.mxu3 }
 0x78c   : > { %v3247_v9 = vmax.f32 %v8073_v45, %v8075_v32 }
 0x78e   : > { %3191 = vmax.xlane.f32.xlu1 %v3190_v59  ;;  %3248 = vmax.xlane.f32.xlu2 %v3247_v9  ;;  %v3232_v59 = vmax.f32 %v8045_v42, %v8047_v47  ;;  %v3235_v9 = vmax.f32 %v8049_v54, %v8051_v36 }
 0x796   : > { %3239 = vmax.xlane.f32.xlu1 %v3238_v5  ;;  %v3178_v5 = vmax.f32 %v7955_v12, %v7957_v56 }
 0x79e   : > { %3242 = vmax.xlane.f32.xlu1 %v3241_v57  ;;  %v3181_v57 = vmax.f32 %v7959_v19, %v7961_v58 }
 0x7a6   : > { %3185 = vmax.xlane.f32.xlu1 %v3184_v48  ;;  %v3226_v48 = vmax.f32 %v8035_v62, %v8037_v60 }
 0x7ae   : > { %3188 = vmax.xlane.f32.xlu1 %v3187_v0  ;;  %v3229_v0 = vmax.f32 %v8041_v18, %v8043_v23 }
 0x7b6   : > { %3233 = vmax.xlane.f32.xlu1 %v3232_v59  ;;  %v3172_v59 = vmax.f32 %v7945_v55, %v7947_v28 }
 0x7be   : > { %3236 = vmax.xlane.f32.xlu1 %v3235_v9  ;;  %v3175_v9 = vmax.f32 %v7949_v25, %v7951_v6 }
 0x7c6   : > { %3179 = vmax.xlane.f32.xlu1 %v3178_v5  ;;  %v8105_v5 = vpop.xlane.xlu1 %3200 }
 0x7ce   : > { %3182 = vmax.xlane.f32.xlu1 %v3181_v57  ;;  %v3220_v57 = vmax.f32 %v8023_v13, %v8025_v11 }
 0x7d6   : > { %3227 = vmax.xlane.f32.xlu1 %v3226_v48  ;;  %v3223_v48 = vmax.f32 %v8029_v49, %v8031_v51 }
 0x7de   : > { %3230 = vmax.xlane.f32.xlu1 %v3229_v0 }
 0x7e6   : > { %3173 = vmax.xlane.f32.xlu1 %v3172_v59 }
 0x7ee   : > { %3176 = vmax.xlane.f32.xlu1 %v3175_v9  ;;  %v3169_v9 = vmax.f32 %v7939_v61, %v7941_v35 }
 0x7f6   : > { %3221 = vmax.xlane.f32.xlu1 %v3220_v57 }
 0x7f9   : > { %v8109_v22 = vpop.xlane.xlu1 %3245 }
 0x7fe   : > { %3224 = vmax.xlane.f32.xlu1 %v3223_v48  ;;  %v3217_v48 = vmax.f32 %v8017_v46, %v8019_v33 }
 0x801   : > { %v3192_v0 = vpop.xlane.xlu1 %3191 }
 0x802   : > { %v3274_v15 = vsub.f32 %v7975_v8, %v3192_v0  ;;  %v3275_v59 = vsub.f32 %v7977_v10, %v3192_v0 }
 0x804   : > { %v3362_v16 = vmul.f32 1.442695, %v3274_v15  ;;  %v3364_v27 = vmul.f32 1.442695, %v3275_v59  ;;  %v3211_v59 = vmax.f32 %v8007_v21, %v8009_v53 }
 0x806   : > { %5436 = vpow2.f32 %v3362_v16  ;;  %3170 = vmax.xlane.f32.xlu1 %v3169_v9  ;;  %v3163_v16 = vmax.f32 %v7929_v17, %v7931_v29 }
 0x807   : > { %5438 = vpow2.f32 %v3364_v27 }
 0x809   : > { %v8117_v57 = vpop.xlane.xlu1 %3239 }
 0x80c   : > { %v8119_v37 = vpop.eup %5436 }
 0x80d   : > { %10900 = vst [vmem:[#allocation83_spill] sm:$0xff] %v8119_v37  ;;  %v8123_v1 = vpop.eup %5438 }
 0x80e   : > { %10901 = vst [vmem:[#allocation84_spill] sm:$0xff] %v8123_v1  ;;  %3218 = vmax.xlane.f32.xlu1 %v3217_v48  ;;  %v3478_v10 = vadd.f32 %v8123_v1, %v8119_v37  ;;  %v3195_v1 = vpop.xlane.xlu0 %3194 }
 0x80f   : > { %v3276_v37 = vsub.f32 %v7979_v7, %v3195_v1  ;;  %v3277_v33 = vsub.f32 %v7981_v20, %v3195_v1  ;;  %v3205_v1 = vmax.f32 %v7999_v38, %v8001_v52 }
 0x810   : > { %3479 = vadd.xlane.f32.xlu0 %v3478_v10 }
 0x811   : > { %v8127_v8 = vpop.xlane.xlu1 %3242 }
 0x816   : > { %3164 = vmax.xlane.f32.xlu1 %v3163_v16 }
 0x819   : > { %v3186_v15 = vpop.xlane.xlu1 %3185 }
 0x81a   : > { %v3270_v27 = vsub.f32 %v7965_v31, %v3186_v15  ;;  %v3271_v0 = vsub.f32 %v7967_v34, %v3186_v15  ;;  %v3157_v31 = vmax.f32 %v7919_v3, %v7921_v39  ;;  %v3366_v15 = vmul.f32 1.442695, %v3276_v37 }
 0x81c   : > { %v3354_v9 = vmul.f32 1.442695, %v3270_v27  ;;  %v3356_v48 = vmul.f32 1.442695, %v3271_v0  ;;  %v3368_v0 = vmul.f32 1.442695, %v3277_v33 }
 0x81e   : > { %5440 = vpow2.f32 %v3354_v9  ;;  %3212 = vmax.xlane.f32.xlu1 %v3211_v59 }
 0x81f   : > { %5442 = vpow2.f32 %v3356_v48 }
 0x820   : > { %5444 = vpow2.f32 %v3366_v15 }
 0x821   : > { %v3189_v10 = vpop.xlane.xlu1 %3188  ;;  %5446 = vpow2.f32 %v3368_v0 }
 0x822   : > { %v3272_v7 = vsub.f32 %v7969_v14, %v3189_v10  ;;  %v3273_v20 = vsub.f32 %v7971_v24, %v3189_v10 }
 0x824   : > { %v8137_v16 = vpop.eup %5440  ;;  %v3358_v9 = vmul.f32 1.442695, %v3272_v7  ;;  %v3360_v37 = vmul.f32 1.442695, %v3273_v20  ;;  %v3280_v7 = vsub.f32 %v7989_v63, %v8105_v5 }
 0x825   : > { %10902 = vst [vmem:[#allocation85_spill] sm:$0xff] %v8137_v16  ;;  %v8141_v34 = vpop.eup %5442 }
 0x826   : > { %10903 = vst [vmem:[#allocation86_spill] sm:$0xff] %v8141_v34  ;;  %3158 = vmax.xlane.f32.xlu1 %v3157_v31  ;;  %v3472_v27 = vadd.f32 %v8141_v34, %v8137_v16  ;;  %v8151_v48 = vpop.eup %5444  ;;  %5448 = vpow2.f32 %v3358_v9 }
 0x827   : > { %v8153_v31 = vpop.eup %5446  ;;  %5450 = vpow2.f32 %v3360_v37  ;;  %v3281_v37 = vsub.f32 %v7991_v50, %v8105_v5 }
 0x828   : > { %3473 = vadd.xlane.f32.xlu0 %v3472_v27  ;;  %v3481_v14 = vadd.f32 %v8153_v31, %v8151_v48 }
 0x829   : > { %v8145_v59 = vpop.xlane.xlu1 %3233  ;;  %v3376_v34 = vmul.f32 1.442695, %v3281_v37 }
 0x82c   : > { %v8159_v15 = vpop.eup %5448 }
 0x82d   : > { %v8161_v24 = vpop.eup %5450 }
 0x82e   : > { %3206 = vmax.xlane.f32.xlu1 %v3205_v1  ;;  %v3475_v9 = vadd.f32 %v8161_v24, %v8159_v15 }
 0x831   : > { %v8155_v33 = vpop.xlane.xlu1 %3236 }
 0x836   : > { %3482 = vadd.xlane.f32.xlu1 %v3481_v14  ;;  %v3374_v14 = vmul.f32 1.442695, %v3280_v7 }
 0x839   : > { %v3180_v10 = vpop.xlane.xlu1 %3179 }
 0x83a   : > { %v3266_v27 = vsub.f32 %v7955_v12, %v3180_v10  ;;  %v3267_v0 = vsub.f32 %v7957_v56, %v3180_v10 }
 0x83c   : > { %v3346_v20 = vmul.f32 1.442695, %v3266_v27  ;;  %v3348_v1 = vmul.f32 1.442695, %v3267_v0 }
 0x83e   : > { %5452 = vpow2.f32 %v3346_v20  ;;  %3476 = vadd.xlane.f32.xlu1 %v3475_v9 }
 0x83f   : > { %5454 = vpow2.f32 %v3348_v1 }
 0x840   : > { %5456 = vpow2.f32 %v3374_v14 }
 0x841   : > { %v3183_v16 = vpop.xlane.xlu1 %3182  ;;  %5458 = vpow2.f32 %v3376_v34 }
 0x842   : > { %v3268_v12 = vsub.f32 %v7959_v19, %v3183_v16  ;;  %v3269_v56 = vsub.f32 %v7961_v58, %v3183_v16 }
 0x844   : > { %v8173_v10 = vpop.eup %5452  ;;  %v3350_v63 = vmul.f32 1.442695, %v3268_v12  ;;  %v3352_v27 = vmul.f32 1.442695, %v3269_v56 }
 0x845   : > { %10904 = vst [vmem:[#allocation87_spill] sm:$0xff] %v8173_v10  ;;  %v8175_v0 = vpop.eup %5454 }
 0x846   : > { %10905 = vst [vmem:[#allocation88_spill] sm:$0xff] %v8175_v0  ;;  %5460 = vpow2.f32 %v3350_v63  ;;  %v3466_v50 = vadd.f32 %v8175_v0, %v8173_v10  ;;  %v8179_v7 = vpop.eup %5456 }
 0x847   : > { %5462 = vpow2.f32 %v3352_v27  ;;  %v8181_v19 = vpop.eup %5458  ;;  %v8193_v27 = vpop.xlane.xlu0 %3167 }
 0x848   : > { %3467 = vadd.xlane.f32.xlu1 %v3466_v50  ;;  %v3487_v20 = vadd.f32 %v8181_v19, %v8179_v7 }
 0x849   : > { %v3228_v5 = vpop.xlane.xlu1 %3227 }
 0x84c   : > { %v8183_v58 = vpop.eup %5460 }
 0x84d   : > { %v8185_v16 = vpop.eup %5462 }
 0x84e   : > { %10906 = vst [vmem:[#allocation89_spill] sm:$0xff] %v8185_v16  ;;  %v3469_v34 = vadd.f32 %v8185_v16, %v8183_v58 }
 0x850   : > { %3488 = vadd.xlane.f32.xlu1 %v3487_v20  ;;  %3470 = vadd.xlane.f32.xlu2 %v3469_v34  ;;  %v3298_v20 = vsub.f32 %v8035_v62, %v3228_v5  ;;  %v3304_v62 = vsub.f32 %v8049_v54, %v8155_v33 }
 0x851   : > { %v3231_v1 = vpop.xlane.xlu1 %3230 }
 0x852   : > { %v3422_v54 = vmul.f32 1.442695, %v3304_v62 }
 0x859   : > { %v3174_v9 = vpop.xlane.xlu1 %3173 }
 0x85a   : > { %v3262_v37 = vsub.f32 %v7945_v55, %v3174_v9  ;;  %v3263_v14 = vsub.f32 %v7947_v28, %v3174_v9  ;;  %v3299_v28 = vsub.f32 %v8037_v60, %v3228_v5  ;;  %v3305_v60 = vsub.f32 %v8051_v36, %v8155_v33 }
 0x85b   : > { %v3306_v33 = vsub.f32 %v8053_v4, %v8117_v57 }
 0x85c   : > { %v3338_v12 = vmul.f32 1.442695, %v3262_v37  ;;  %v3340_v56 = vmul.f32 1.442695, %v3263_v14  ;;  %v3410_v37 = vmul.f32 1.442695, %v3298_v20  ;;  %v3301_v20 = vsub.f32 %v8043_v23, %v3231_v1 }
 0x85e   : > { %5464 = vpow2.f32 %v3338_v12 }
 0x85f   : > { %5466 = vpow2.f32 %v3340_v56 }
 0x861   : > { %v3177_v63 = vpop.xlane.xlu1 %3176 }
 0x862   : > { %v3264_v50 = vsub.f32 %v7949_v25, %v3177_v63  ;;  %v3265_v0 = vsub.f32 %v7951_v6, %v3177_v63  ;;  %v3412_v25 = vmul.f32 1.442695, %v3299_v28  ;;  %v8205_v6 = vpop.xlane.xlu0 %3215 }
 0x864   : > { %v8197_v10 = vpop.eup %5464  ;;  %v3342_v34 = vmul.f32 1.442695, %v3264_v50  ;;  %v3344_v16 = vmul.f32 1.442695, %v3265_v0 }
 0x865   : > { %v8200_v55 = vpop.eup %5466 }
 0x866   : > { %5468 = vpow2.f32 %v3342_v34  ;;  %v3460_v9 = vadd.f32 %v8200_v55, %v8197_v10  ;;  %v3416_v34 = vmul.f32 1.442695, %v3301_v20 }
 0x867   : > { %5470 = vpow2.f32 %v3344_v16  ;;  %v3300_v16 = vsub.f32 %v8041_v18, %v3231_v1  ;;  %v3307_v18 = vsub.f32 %v8055_v44, %v8117_v57  ;;  %v3309_v44 = vsub.f32 %v8059_v40, %v8127_v8 }
 0x868   : > { %3461 = vadd.xlane.f32.xlu2 %v3460_v9  ;;  %5472 = vpow2.f32 %v3410_v37 }
 0x869   : > { %v3222_v14 = vpop.xlane.xlu1 %3221  ;;  %5474 = vpow2.f32 %v3412_v25  ;;  %v3414_v36 = vmul.f32 1.442695, %v3300_v16  ;;  %v3308_v25 = vsub.f32 %v8057_v41, %v8127_v8  ;;  %v3303_v41 = vsub.f32 %v8047_v47, %v8145_v59 }
 0x86a   : > { %v3294_v0 = vsub.f32 %v8023_v13, %v3222_v14  ;;  %v3295_v12 = vsub.f32 %v8025_v11, %v3222_v14  ;;  %v3424_v11 = vmul.f32 1.442695, %v3305_v60  ;;  %v8235_v4 = vpop.xlane.xlu0 %3161  ;;  %v3310_v47 = vsub.f32 %v8061_v30, %v8109_v22 }
 0x86b   : > { %v3430_v8 = vmul.f32 1.442695, %v3308_v25 }
 0x86c   : > { %v8213_v5 = vpop.eup %5468  ;;  %v3402_v56 = vmul.f32 1.442695, %v3294_v0  ;;  %v3404_v63 = vmul.f32 1.442695, %v3295_v12  ;;  %v3302_v12 = vsub.f32 %v8045_v42, %v8145_v59  ;;  %v3290_v42 = vsub.f32 %v8011_v2, %v8205_v6  ;;  %v3249_v59 = vpop.xlane.xlu2 %3248 }
 0x86d   : > { %v8216_v50 = vpop.eup %5470  ;;  %v3291_v2 = vsub.f32 %v8013_v43, %v8205_v6  ;;  %v3312_v30 = vsub.f32 %v8073_v45, %v3249_v59 }
 0x86e   : > { %5476 = vpow2.f32 %v3402_v56  ;;  %v3463_v13 = vadd.f32 %v8216_v50, %v8213_v5  ;;  %v8225_v9 = vpop.eup %5472  ;;  %v3432_v56 = vmul.f32 1.442695, %v3309_v44  ;;  %v3418_v20 = vmul.f32 1.442695, %v3302_v12  ;;  %v10917_v12 = vld [vmem:[#allocation74_spill] sm:$0xff] }
 0x86f   : > { %5478 = vpow2.f32 %v3404_v63  ;;  %10907 = vst [vmem:[#allocation90_spill] sm:$0xff] %v8225_v9  ;;  %v8229_v37 = vpop.eup %5474 }
 0x870   : > { %3464 = vadd.xlane.f32.xlu0 %v3463_v13  ;;  %5480 = vpow2.f32 %v3422_v54  ;;  %10908 = vst [vmem:[#allocation91_spill] sm:$0xff] %v8229_v37  ;;  %v3514_v60 = vadd.f32 %v8229_v37, %v8225_v9 }
 0x871   : > { %v3225_v28 = vpop.xlane.xlu1 %3224  ;;  %5482 = vpow2.f32 %v3424_v11  ;;  %v3420_v11 = vmul.f32 1.442695, %v3303_v41  ;;  %v3258_v41 = vsub.f32 %v10917_v12, %v8193_v27 }
 0x872   : > { %v3296_v23 = vsub.f32 %v8029_v49, %v3225_v28  ;;  %v3297_v1 = vsub.f32 %v8031_v51, %v3225_v28  ;;  %5484 = vpow2.f32 %v3414_v36  ;;  %v3426_v49 = vmul.f32 1.442695, %v3306_v33  ;;  %v8271_v25 = vpop.xlane.xlu0 %3209 }
 0x873   : > { %v3428_v51 = vmul.f32 1.442695, %v3307_v18  ;;  %5486 = vpow2.f32 %v3416_v34  ;;  %v3311_v33 = vsub.f32 %v8063_v26, %v8109_v22  ;;  %v3394_v28 = vmul.f32 1.442695, %v3290_v42 }
 0x874   : > { %v8233_v14 = vpop.eup %5476  ;;  %v3406_v57 = vmul.f32 1.442695, %v3296_v23  ;;  %v3408_v62 = vmul.f32 1.442695, %v3297_v1  ;;  %v3434_v23 = vmul.f32 1.442695, %v3310_v47  ;;  %v3313_v1 = vsub.f32 %v8075_v32, %v3249_v59 }
 0x875   : > { %10909 = vst [vmem:[#allocation92_spill] sm:$0xff] %v8233_v14  ;;  %v8239_v0 = vpop.eup %5478  ;;  %v3436_v6 = vmul.f32 1.442695, %v3311_v33 }
 0x876   : > { %10910 = vst [vmem:[#allocation93_spill] sm:$0xff] %v8239_v0  ;;  %5488 = vpow2.f32 %v3406_v57  ;;  %v3508_v40 = vadd.f32 %v8239_v0, %v8233_v14  ;;  %v8249_v16 = vpop.eup %5480  ;;  %v3438_v57 = vmul.f32 1.442695, %v3312_v30 }
 0x877   : > { %5490 = vpow2.f32 %v3408_v62  ;;  %10911 = vst [vmem:[#allocation94_spill] sm:$0xff] %v8249_v16  ;;  %v8251_v63 = vpop.eup %5482  ;;  %v3440_v62 = vmul.f32 1.442695, %v3313_v1 }
 0x878   : > { %3515 = vadd.xlane.f32.xlu0 %v3514_v60  ;;  %3509 = vadd.xlane.f32.xlu1 %v3508_v40  ;;  %10912 = vst [vmem:[#allocation95_spill] sm:$0xff] %v8251_v63  ;;  %5492 = vpow2.f32 %v3426_v49  ;;  %v8257_v13 = vpop.eup %5484  ;;  %v3523_v22 = vadd.f32 %v8251_v63, %v8249_v16  ;;  %v3396_v60 = vmul.f32 1.442695, %v3291_v2 }
 0x879   : > { %v3171_v54 = vpop.xlane.xlu1 %3170  ;;  %10913 = vst [vmem:[#allocation96_spill] sm:$0xff] %v8257_v13  ;;  %5494 = vpow2.f32 %v3428_v51  ;;  %v8259_v36 = vpop.eup %5486 }
 0x87a   : > { %10914 = vst [vmem:[#allocation97_spill] sm:$0xff] %v8259_v36  ;;  %5496 = vpow2.f32 %v3430_v8  ;;  %v3517_v26 = vadd.f32 %v8259_v36, %v8257_v13  ;;  %v10919_v8 = vld [vmem:[#allocation75_spill] sm:$0xff]  ;;  %v3260_v47 = vsub.f32 %v7939_v61, %v3171_v54  ;;  %v3261_v59 = vsub.f32 %v7941_v35, %v3171_v54  ;;  %v3156_v61 = vpop.xlane.xlu0 %3155  ;;  %v10922_v54 = vld [vmem:[#allocation72_spill] sm:$0xff] }
 0x87b   : > { %5498 = vpow2.f32 %v3432_v56  ;;  %v3259_v56 = vsub.f32 %v10919_v8, %v8193_v27  ;;  %v3254_v1 = vsub.f32 %v10922_v54, %v8235_v4 }
 0x87c   : > { %v8263_v18 = vpop.eup %5488  ;;  %5500 = vpow2.f32 %v3418_v20  ;;  %v3330_v20 = vmul.f32 1.442695, %v3258_v41 }
 0x87d   : > { %10915 = vst [vmem:[#allocation98_spill] sm:$0xff] %v8263_v18  ;;  %v8268_v34 = vpop.eup %5490  ;;  %5502 = vpow2.f32 %v3420_v11  ;;  %v3332_v27 = vmul.f32 1.442695, %v3259_v56 }
 0x87e   : > { %10916 = vst [vmem:[#allocation99_spill] sm:$0xff] %v8268_v34  ;;  %v3511_v43 = vadd.f32 %v8268_v34, %v8263_v18  ;;  %v8279_v45 = vpop.eup %5492  ;;  %5504 = vpow2.f32 %v3394_v28 }
 0x87f   : > { %v8281_v44 = vpop.eup %5494  ;;  %5506 = vpow2.f32 %v3434_v23  ;;  %v3334_v23 = vmul.f32 1.442695, %v3260_v47 }
 0x880   : > { %3524 = vadd.xlane.f32.xlu0 %v3523_v22  ;;  %3518 = vadd.xlane.f32.xlu1 %v3517_v26  ;;  %v8283_v32 = vpop.eup %5496  ;;  %5508 = vpow2.f32 %v3436_v6  ;;  %v3526_v11 = vadd.f32 %v8281_v44, %v8279_v45  ;;  %v10923_v22 = vld [vmem:[#allocation73_spill] sm:$0xff] }
 0x881   : > { %3512 = vadd.xlane.f32.xlu2 %v3511_v43  ;;  %v3219_v49 = vpop.xlane.xlu1 %3218  ;;  %v8285_v51 = vpop.eup %5498  ;;  %5510 = vpow2.f32 %v3438_v57  ;;  %v3255_v26 = vsub.f32 %v10923_v22, %v8235_v4  ;;  %v3336_v43 = vmul.f32 1.442695, %v3261_v59 }
 0x882   : > { %v8289_v40 = vpop.eup %5500  ;;  %5512 = vpow2.f32 %v3440_v62  ;;  %v3529_v33 = vadd.f32 %v8285_v51, %v8283_v32  ;;  %v3292_v4 = vsub.f32 %v8017_v46, %v3219_v49 }
 0x883   : > { %10918 = vst [vmem:[#allocation74_spill] sm:$0xff] %v8289_v40  ;;  %v8293_v42 = vpop.eup %5502  ;;  %5514 = vpow2.f32 %v3396_v60  ;;  %v10924_v60 = vld [vmem:[#allocation70_spill] sm:$0xff] }
 0x884   : > { %10920 = vst [vmem:[#allocation75_spill] sm:$0xff] %v8293_v42  ;;  %v8301_v2 = vpop.eup %5504  ;;  %v3520_v30 = vadd.f32 %v8293_v42, %v8289_v40  ;;  %5516 = vpow2.f32 %v3330_v20  ;;  %v3250_v8 = vsub.f32 %v10924_v60, %v3156_v61  ;;  %v10926_v20 = vld [vmem:[#allocation80_spill] sm:$0xff] }
 0x885   : > { %10921 = vst [vmem:[#allocation100_spill] sm:$0xff] %v8301_v2  ;;  %v8305_v28 = vpop.eup %5506  ;;  %5518 = vpow2.f32 %v3332_v27 }
 0x886   : > { %v8307_v35 = vpop.eup %5508  ;;  %5520 = vpow2.f32 %v3334_v23  ;;  %v3314_v22 = vmul.f32 1.442695, %v3250_v8  ;;  %v10931_v8 = vld [vmem:[#allocation79_spill] sm:$0xff] }
 0x887   : > { %v8313_v57 = vpop.eup %5510  ;;  %5522 = vpow2.f32 %v3336_v43 }
 0x888   : > { %3527 = vadd.xlane.f32.xlu0 %v3526_v11  ;;  %3530 = vadd.xlane.f32.xlu1 %v3529_v33  ;;  %v8317_v41 = vpop.eup %5512  ;;  %v3322_v11 = vmul.f32 1.442695, %v3254_v1  ;;  %v3324_v33 = vmul.f32 1.442695, %v3255_v26  ;;  %v3398_v1 = vmul.f32 1.442695, %v3292_v4  ;;  %v3287_v4 = vsub.f32 %v10931_v8, %v8271_v25 }
 0x889   : > { %3521 = vadd.xlane.f32.xlu2 %v3520_v30  ;;  %v3165_v6 = vpop.xlane.xlu1 %3164  ;;  %v8320_v56 = vpop.eup %5514  ;;  %v3293_v30 = vsub.f32 %v10926_v20, %v3219_v49  ;;  %v3535_v27 = vadd.f32 %v8317_v41, %v8313_v57 }
 0x88a   : > { %v3256_v62 = vsub.f32 %v7929_v17, %v3165_v6  ;;  %v3257_v12 = vsub.f32 %v7931_v29, %v3165_v6  ;;  %10925 = vst [vmem:[#allocation72_spill] sm:$0xff] %v8320_v56  ;;  %v10927_v17 = vld [vmem:[#allocation71_spill] sm:$0xff]  ;;  %v3532_v29 = vadd.f32 %v8307_v35, %v8305_v28  ;;  %v3502_v46 = vadd.f32 %v8320_v56, %v8301_v2  ;;  %v8331_v23 = vpop.eup %5516  ;;  %v10929_v6 = vld [vmem:[#allocation78_spill] sm:$0xff] }
 0x88b   : > { %v3251_v54 = vsub.f32 %v10927_v17, %v3156_v61  ;;  %v8333_v49 = vpop.eup %5518  ;;  %v3400_v61 = vmul.f32 1.442695, %v3293_v30 }
 0x88c   : > { %v3326_v47 = vmul.f32 1.442695, %v3256_v62  ;;  %v3328_v59 = vmul.f32 1.442695, %v3257_v12  ;;  %10928 = vst [vmem:[#allocation73_spill] sm:$0xff] %v8333_v49  ;;  %v8335_v43 = vpop.eup %5520  ;;  %v3286_v62 = vsub.f32 %v10929_v6, %v8271_v25  ;;  %v3454_v20 = vadd.f32 %v8333_v49, %v8331_v23 }
 0x88d   : > { %v3316_v12 = vmul.f32 1.442695, %v3251_v54  ;;  %v8339_v60 = vpop.eup %5522 }
 0x88e   : > { %5524 = vpow2.f32 %v3326_v47  ;;  %10930 = vst [vmem:[#allocation70_spill] sm:$0xff] %v8339_v60  ;;  %v3386_v30 = vmul.f32 1.442695, %v3286_v62  ;;  %v3457_v25 = vadd.f32 %v8339_v60, %v8335_v43 }
 0x88f   : > { %5526 = vpow2.f32 %v3328_v59 }
 0x890   : > { %3533 = vadd.xlane.f32.xlu0 %v3532_v29  ;;  %3536 = vadd.xlane.f32.xlu1 %v3535_v27  ;;  %5528 = vpow2.f32 %v3322_v11  ;;  %v3388_v29 = vmul.f32 1.442695, %v3287_v4 }
 0x891   : > { %3503 = vadd.xlane.f32.xlu2 %v3502_v46  ;;  %v3213_v26 = vpop.xlane.xlu1 %3212  ;;  %5530 = vpow2.f32 %v3324_v33 }
 0x892   : > { %5532 = vpow2.f32 %v3314_v22  ;;  %v3288_v59 = vsub.f32 %v8007_v21, %v3213_v26  ;;  %v3289_v33 = vsub.f32 %v8009_v53, %v3213_v26  ;;  %v3204_v21 = vpop.xlane.xlu0 %3203  ;;  %v10938_v26 = vld [vmem:[#allocation76_spill] sm:$0xff] }
 0x893   : > { %5534 = vpow2.f32 %v3398_v1  ;;  %v3282_v6 = vsub.f32 %v10938_v26, %v3204_v21 }
 0x894   : > { %v8343_v47 = vpop.eup %5524  ;;  %5536 = vpow2.f32 %v3400_v61  ;;  %v3390_v22 = vmul.f32 1.442695, %v3288_v59  ;;  %v3392_v46 = vmul.f32 1.442695, %v3289_v33 }
 0x895   : > { %10932 = vst [vmem:[#allocation80_spill] sm:$0xff] %v8343_v47  ;;  %v8346_v11 = vpop.eup %5526  ;;  %5538 = vpow2.f32 %v3316_v12  ;;  %v10940_v12 = vld [vmem:[#allocation77_spill] sm:$0xff] }
 0x896   : > { %10933 = vst [vmem:[#allocation71_spill] sm:$0xff] %v8346_v11  ;;  %v3451_v17 = vadd.f32 %v8346_v11, %v8343_v47  ;;  %v8355_v54 = vpop.eup %5528  ;;  %5540 = vpow2.f32 %v3386_v30  ;;  %v3283_v8 = vsub.f32 %v10940_v12, %v3204_v21 }
 0x897   : > { %10934 = vst [vmem:[#allocation78_spill] sm:$0xff] %v8355_v54  ;;  %v8357_v27 = vpop.eup %5530  ;;  %5542 = vpow2.f32 %v3388_v29 }
 0x898   : > { %10935 = vst [vmem:[#allocation79_spill] sm:$0xff] %v8357_v27  ;;  %3455 = vadd.xlane.f32.xlu0 %v3454_v20  ;;  %3458 = vadd.xlane.f32.xlu1 %v3457_v25  ;;  %v8359_v53 = vpop.eup %5532  ;;  %5544 = vpow2.f32 %v3390_v22  ;;  %v3378_v20 = vmul.f32 1.442695, %v3282_v6  ;;  %v3448_v30 = vadd.f32 %v8357_v27, %v8355_v54  ;;  %v3380_v25 = vmul.f32 1.442695, %v3283_v8 }
 0x899   : > { %10936 = vst [vmem:[#allocation101_spill] sm:$0xff] %v8359_v53  ;;  %3452 = vadd.xlane.f32.xlu2 %v3451_v17  ;;  %v3159_v1 = vpop.xlane.xlu1 %3158  ;;  %v8361_v61 = vpop.eup %5534  ;;  %5546 = vpow2.f32 %v3392_v46 }
 0x89a   : > { %10937 = vst [vmem:[#allocation102_spill] sm:$0xff] %v8361_v61  ;;  %v8364_v62 = vpop.eup %5536  ;;  %v3252_v59 = vsub.f32 %v7919_v3, %v3159_v1  ;;  %v3253_v33 = vsub.f32 %v7921_v39, %v3159_v1  ;;  %v8379_v26 = vpop.xlane.xlu0 %3485  ;;  %5548 = vpow2.f32 %v3378_v20 }
 0x89b   : > { %10939 = vst [vmem:[#allocation76_spill] sm:$0xff] %v8364_v62  ;;  %v8367_v4 = vpop.eup %5538  ;;  %v3505_v17 = vadd.f32 %v8364_v62, %v8361_v61  ;;  %5550 = vpow2.f32 %v3380_v25  ;;  %vm3753_vm1 = vweird.f32 %v8379_v26 }
 0x89c   : > { %10941 = vst [vmem:[#allocation77_spill] sm:$0xff] %v8367_v4  ;;  %v3442_v29 = vadd.f32 %v8367_v4, %v8359_v53  ;;  %v8377_v21 = vpop.eup %5540  ;;  %v3318_v22 = vmul.f32 1.442695, %v3252_v59  ;;  %v3320_v39 = vmul.f32 1.442695, %v3253_v33 }
 0x89d   : > { %10942 = vst [vmem:[#allocation103_spill] sm:$0xff] %v8377_v21  ;;  %v8381_v3 = vpop.eup %5542 }
 0x89e   : > { %10943 = vst [vmem:[#allocation104_spill] sm:$0xff] %v8381_v3  ;;  %v8383_v1 = vpop.eup %5544  ;;  %5552 = vpow2.f32 %v3318_v22  ;;  %v3496_v33 = vadd.f32 %v8381_v3, %v8377_v21 }
 0x89f   : > { %10944 = vst [vmem:[#allocation105_spill] sm:$0xff] %v8383_v1  ;;  %v8387_v8 = vpop.eup %5546  ;;  %5554 = vpow2.f32 %v3320_v39 }
 0x8a0   : > { %3506 = vadd.xlane.f32.xlu0 %v3505_v17  ;;  %3449 = vadd.xlane.f32.xlu1 %v3448_v30  ;;  %10945 = vst [vmem:[#allocation106_spill] sm:$0xff] %v8387_v8  ;;  %v3499_v17 = vadd.f32 %v8387_v8, %v8383_v1  ;;  %v8393_v20 = vpop.eup %5548 }
 0x8a1   : > { %3443 = vadd.xlane.f32.xlu2 %v3442_v29  ;;  %v3207_v46 = vpop.xlane.xlu1 %3206  ;;  %10946 = vst [vmem:[#allocation107_spill] sm:$0xff] %v8393_v20 }
 0x8a2   : > { %v3284_v6 = vsub.f32 %v7999_v38, %v3207_v46  ;;  %v3285_v12 = vsub.f32 %v8001_v52, %v3207_v46  ;;  %v8395_v38 = vpop.xlane.xlu0 %3479  ;;  %v8397_v52 = vpop.eup %5550 }
 0x8a3   : > { %10947 = vst [vmem:[#allocation108_spill] sm:$0xff] %v8397_v52  ;;  %v3729_v1 = vand.u32 2147483648, %v8395_v38  ;;  %vm3723_vm5 = vweird.f32 %v8395_v38 }
 0x8a4   : > { %v3382_v4 = vmul.f32 1.442695, %v3284_v6  ;;  %v3384_v59 = vmul.f32 1.442695, %v3285_v12  ;;  %v8401_v25 = vpop.eup %5552  ;;  %v3490_v12 = vadd.f32 %v8397_v52, %v8393_v20 }
 0x8a5   : > { %10948 = vst [vmem:[#allocation109_spill] sm:$0xff] %v8401_v25  ;;  %v8404_v29 = vpop.eup %5554 }
 0x8a6   : > { %5556 = vpow2.f32 %v3382_v4  ;;  %v5730_v4 = vmov 1   ;;  %10949 = vst [vmem:[#allocation110_spill] sm:$0xff] %v8404_v29  ;;  %v3445_v46 = vadd.f32 %v8404_v29, %v8401_v25 }
 0x8a7   : > { %5558 = vpow2.f32 %v3384_v59  ;;  %5233 = vset.pattern.permute.xlu0 %v5730_v4  ;;  %5234 = vset.pattern.permute.xlu1 %v5730_v4 }
 0x8a8   : > { %3497 = vadd.xlane.f32.xlu0 %v3496_v33  ;;  %3500 = vadd.xlane.f32.xlu1 %v3499_v17  ;;  %5560 = vrcp.f32 %v8379_v26 }
 0x8a9   : > { %v8399_v30 = vpop.xlane.xlu1 %3482  ;;  %5562 = vrcp.f32 %v8395_v38  ;;  %5235 = vset.pattern.permute.xlu2 %v5730_v4 }
 0x8aa   : > { %v8421_v8 = vpop.xlane.xlu0 %3473  ;;  %5564 = vrcp.f32 %v8399_v30  ;;  %vm3738_vm11 = vweird.f32 %v8399_v30 }
 0x8ab   : > { %5566 = vrcp.f32 %v8421_v8  ;;  %vm3693_vm10 = vweird.f32 %v8421_v8 }
 0x8ac   : > { %v8407_v22 = vpop.eup %5556 }
 0x8ad   : > { %10950 = vst [vmem:[#allocation111_spill] sm:$0xff] %v8407_v22  ;;  %v8409_v39 = vpop.eup %5558 }
 0x8ae   : > { %10951 = vst [vmem:[#allocation112_spill] sm:$0xff] %v8409_v39  ;;  %v3493_v6 = vadd.f32 %v8409_v39, %v8407_v22  ;;  %v5561_v59 = vpop.eup %5560 }
 0x8af   : > { %v5563_v33 = vpop.eup %5562  ;;  %v3749_v4 = vmul.f32 %v5561_v59, %v8379_v26  ;;  %vm3754_vm0 = vweird.f32 %v5561_v59 }
 0x8b0   : > { %3446 = vadd.xlane.f32.xlu0 %v3445_v46  ;;  %3494 = vadd.xlane.f32.xlu2 %v3493_v6  ;;  %v3719_v53 = vmul.f32 %v5563_v33, %v8395_v38  ;;  %v8425_v22 = vpop.eup %5564  ;;  %vm3724_vm3 = vweird.f32 %v5563_v33  ;;  %vm8442_vm4 = vmor %vm3753_vm1, %vm3754_vm0 }
 0x8b1   : > { %3491 = vadd.xlane.f32.xlu1 %v3490_v12  ;;  %v8417_v17 = vpop.xlane.xlu1 %3476  ;;  %v3750_v29 = vsub.f32 1.0, %v3749_v4  ;;  %v8430_v52 = vpop.eup %5566  ;;  %v3734_v20 = vmul.f32 %v8425_v22, %v8399_v30  ;;  %v3759_v4 = vand.u32 2147483648, %v8379_v26  ;;  %vm8451_vm6 = vmor %vm3723_vm5, %vm3724_vm3  ;;  %vm3739_vm9 = vweird.f32 %v8425_v22 }
 0x8b2   : > { %v3720_v39 = vsub.f32 1.0, %v3719_v53  ;;  %5568 = vrcp.f32 %v8417_v17  ;;  %vm3694_vm12 = vweird.f32 %v8430_v52  ;;  %vm8514_vm13 = vmor %vm3738_vm11, %vm3739_vm9  ;;  %vm3708_vm1 = vweird.f32 %v8417_v17 }
 0x8b3   : > { %v3751_v46 = vmul.f32 %v5561_v59, %v3750_v29  ;;  %v3757_v29 = vand.u32 2147483647, %v8379_v26  ;;  %v3760_v2 = vor.u32 1.1754944e-38, %v3759_v4  ;;  %vm8534_vm0 = vmor %vm3693_vm10, %vm3694_vm12 }
 0x8b4   : > { %v3721_v12 = vmul.f32 %v5563_v33, %v3720_v39  ;;  %v3689_v39 = vmul.f32 %v8430_v52, %v8421_v8 }
 0x8b5   : > { %v3752_v25 = vadd.f32 %v5561_v59, %v3751_v46  ;;  %v3727_v46 = vand.u32 2147483647, %v8395_v38  ;;  %vm3758_vm7 = vcmp.eq.f32.partialorder %v3757_v29, 8.507059e+37  ;;  %v3730_v38 = vor.u32 1.1754944e-38, %v3729_v1 }
 0x8b6   : > { %v3722_v53 = vadd.f32 %v5563_v33, %v3721_v12  ;;  %v3735_v12 = vsub.f32 1.0, %v3734_v20  ;;  %v5640_v20 = vld [vmem:[%s10383_s3] sm:$0xff]  ;;  %v3744_v1 = vand.u32 2147483648, %v8399_v30 }
 0x8b7   : > { %v3756_v62 = vsel %vm8442_vm4, %v5561_v59, %v3752_v25  ;;  %v3690_v25 = vsub.f32 1.0, %v3689_v39  ;;  %vm3728_vm8 = vcmp.eq.f32.partialorder %v3727_v46, 8.507059e+37 }
 0x8b8   : > { %v8435_v3 = vpop.eup %5568  ;;  %v3726_v21 = vsel %vm8451_vm6, %v5563_v33, %v3722_v53  ;;  %v3736_v59 = vmul.f32 %v8425_v22, %v3735_v12  ;;  %v3761_v4 = vsel %vm3758_vm7, %v3760_v2, %v3756_v62  ;;  %v10956_v53 = vld [vmem:[#allocation81_spill] sm:$0xff]  ;;  %v10957_v62 = vld [vmem:[#allocation82_spill] sm:$0xff]  ;;  %v10958_v12 = vld [vmem:[#allocation83_spill] sm:$0xff] }
 0x8b9   : > { %v3704_v34 = vmul.f32 %v8435_v3, %v8417_v17  ;;  %v8469_v0 = vsel %vm3728_vm8, %v3730_v38, %v3726_v21  ;;  %v3691_v33 = vmul.f32 %v8430_v52, %v3690_v25  ;;  %v8479_v29 = vmul.f32 %v10956_v53, %v3761_v4 }
 0x8ba   : > { %v3737_v2 = vadd.f32 %v8425_v22, %v3736_v59  ;;  %v8487_v46 = vmul.f32 %v10957_v62, %v3761_v4  ;;  %v8491_v26 = vmul.f32 %v10958_v12, %v8469_v0  ;;  %v3742_v4 = vand.u32 2147483647, %v8399_v30  ;;  %v5645_v12 = vld [vmem:[%s10383_s3 + $0x18] sm:$0xff] }
 0x8bb   : > { %v8428_v6 = vpop.xlane.xlu1 %3467  ;;  %v3705_v27 = vsub.f32 1.0, %v3704_v34  ;;  %v5642_v34 = vld [vmem:[%s10383_s3 + $0x8] sm:$0xff]  ;;  %v8509_v62 = vadd.f32 %v8430_v52, %v3691_v33  ;;  %v3712_v38 = vand.u32 2147483647, %v8417_v17  ;;  %vm3709_vm2 = vweird.f32 %v8435_v3 }
 0x8bc   : > { %5570 = vrcp.f32 %v8428_v6  ;;  %v3741_v33 = vsel %vm8514_vm13, %v8425_v22, %v3737_v2  ;;  %vm3743_vm15 = vcmp.eq.f32.partialorder %v3742_v4, 8.507059e+37  ;;  %vm8552_vm5 = vmor %vm3708_vm1, %vm3709_vm2  ;;  %vm3663_vm13 = vweird.f32 %v8428_v6 }
 0x8bd   : > { %vm8556_vm6 = vcmp.eq.f32.partialorder %v3712_v38, 8.507059e+37 }
 0x8c2   : > { %v8471_v11 = vpop.eup %5570 }
 0x8c3   : > { %v8455_v56 = vpop.xlane.xlu1 %3488  ;;  %v8457_v61 = vpop.xlane.xlu2 %3470  ;;  %v3659_v25 = vmul.f32 %v8471_v11, %v8428_v6  ;;  %vm3664_vm9 = vweird.f32 %v8471_v11 }
 0x8c4   : > { %5572 = vrcp.f32 %v8455_v56  ;;  %2324 = vperm.xlu0 %5233, %v5640_v20   ;;  %v5641_v20 = vld [vmem:[%s10383_s3 + $0x10] sm:$0xff]  ;;  %v3774_v18 = vand.u32 2147483648, %v8455_v56  ;;  %v3772_v54 = vand.u32 2147483647, %v8455_v56  ;;  %vm3768_vm3 = vweird.f32 %v8455_v56 }
 0x8c5   : > { %5574 = vrcp.f32 %v8457_v61  ;;  %vm3678_vm10 = vweird.f32 %v8457_v61 }
 0x8c6   : > { %vm3773_vm7 = vcmp.eq.f32.partialorder %v3772_v54, 8.507059e+37 }
 0x8c8   : > { %2332 = vperm.xlu2 %5235, %v5641_v20   ;;  %v3706_v20 = vmul.f32 %v8435_v3, %v3705_v27  ;;  %v3745_v27 = vor.u32 1.1754944e-38, %v3744_v1  ;;  %v3714_v1 = vand.u32 2147483648, %v8417_v17 }
 0x8ca   : > { %v5573_v39 = vpop.eup %5572  ;;  %2328 = vperm.xlu1 %5234, %v5642_v34   ;;  %v5643_v34 = vld [vmem:[%s10383_s3 + $0x38] sm:$0xff]  ;;  %v3707_v36 = vadd.f32 %v8435_v3, %v3706_v20  ;;  %v3746_v4 = vsel %vm3743_vm15, %v3745_v27, %v3741_v33  ;;  %v3699_v20 = vand.u32 2147483648, %v8421_v8  ;;  %v3715_v27 = vor.u32 1.1754944e-38, %v3714_v1 }
 0x8cb   : > { %v8493_v21 = vpop.eup %5574  ;;  %v3764_v59 = vmul.f32 %v5573_v39, %v8455_v56  ;;  %vm3769_vm14 = vweird.f32 %v5573_v39  ;;  %v3696_v56 = vsel %vm8534_vm0, %v8430_v52, %v8509_v62  ;;  %v4044_v62 = vmul.f32 %v8151_v48, %v3746_v4 }
 0x8cc   : > { %v3674_v53 = vmul.f32 %v8493_v21, %v8457_v61  ;;  %2352 = vperm.xlu0 %5233, %v5643_v34   ;;  %v3660_v34 = vsub.f32 1.0, %v3659_v25  ;;  %vm3770_vm4 = vmor %vm3768_vm3, %vm3769_vm14  ;;  %v3711_v38 = vsel %vm8552_vm5, %v8435_v3, %v3707_v36  ;;  %vm3679_vm8 = vweird.f32 %v8493_v21 }
 0x8cd   : > { %v3765_v30 = vsub.f32 1.0, %v3764_v59  ;;  %v5644_v59 = vld [vmem:[%s10383_s3 + $0x20] sm:$0xff]  ;;  %v4045_v48 = vmul.f32 %v8153_v31, %v3746_v4  ;;  %v3682_v36 = vand.u32 2147483647, %v8457_v61  ;;  %vm8585_vm11 = vmor %vm3678_vm10, %vm3679_vm8 }
 0x8ce   : > { %v3675_v14 = vsub.f32 1.0, %v3674_v53  ;;  %v3775_v53 = vor.u32 1.1754944e-38, %v3774_v18  ;;  %v3661_v18 = vmul.f32 %v8471_v11, %v3660_v34  ;;  %v3684_v34 = vand.u32 2147483648, %v8457_v61  ;;  %v5647_v61 = vld [vmem:[%s10383_s3 + $0x30] sm:$0xff]  ;;  %vm8607_vm14 = vmor %vm3663_vm13, %vm3664_vm9 }
 0x8cf   : > { %v3766_v47 = vmul.f32 %v5573_v39, %v3765_v30  ;;  %v5646_v30 = vld [vmem:[%s10383_s3 + $0x50] sm:$0xff]  ;;  %vm3683_vm15 = vcmp.eq.f32.partialorder %v3682_v36, 8.507059e+37 }
 0x8d0   : > { %2340 = vperm.xlu2 %5235, %v5644_v59   ;;  %v3676_v25 = vmul.f32 %v8493_v21, %v3675_v14  ;;  %v3662_v1 = vadd.f32 %v8471_v11, %v3661_v18 }
 0x8d1   : > { %v3767_v2 = vadd.f32 %v5573_v39, %v3766_v47 }
 0x8d2   : > { %2336 = vperm.xlu1 %5234, %v5645_v12   ;;  %v3677_v33 = vadd.f32 %v8493_v21, %v3676_v25  ;;  %v3716_v25 = vsel %vm8556_vm6, %v3715_v27, %v3711_v38  ;;  %v3666_v18 = vsel %vm8607_vm14, %v8471_v11, %v3662_v1  ;;  %v10978_v27 = vld [vmem:[#allocation86_spill] sm:$0xff]  ;;  %v10983_v1 = vld [vmem:[#allocation88_spill] sm:$0xff] }
 0x8d3   : > { %v3771_v17 = vsel %vm3770_vm4, %v5573_v39, %v3767_v2  ;;  %v10971_v2 = vld [vmem:[#allocation84_spill] sm:$0xff]  ;;  %v4040_v14 = vmul.f32 %v8159_v15, %v3716_v25  ;;  %v4041_v47 = vmul.f32 %v8161_v24, %v3716_v25  ;;  %v10977_v15 = vld [vmem:[#allocation85_spill] sm:$0xff] }
 0x8d4   : > { %2364 = vperm.xlu0 %5233, %v5646_v30   ;;  %v3776_v52 = vsel %vm3773_vm7, %v3775_v53, %v3771_v17  ;;  %v4043_v31 = vmul.f32 %v10971_v2, %v8469_v0  ;;  %v3681_v0 = vsel %vm8585_vm11, %v8493_v21, %v3677_v33  ;;  %v10981_v33 = vld [vmem:[#allocation89_spill] sm:$0xff] }
 0x8d5   : > { %v4048_v39 = vmul.f32 %v8179_v7, %v3776_v52  ;;  %v4049_v54 = vmul.f32 %v8181_v19, %v3776_v52  ;;  %v3700_v7 = vor.u32 1.1754944e-38, %v3699_v20  ;;  %v3669_v19 = vand.u32 2147483648, %v8428_v6  ;;  %v5648_v20 = vld [vmem:[%s10383_s3 + $0x28] sm:$0xff] }
 0x8d6   : > { %v8617_v53 = vpack.c.bf16 %v4045_v48, %v4043_v31 }
 0x8d7   : > { %v8579_v3 = vpack.c.bf16 %v4048_v39, %v8479_v29  ;;  %v8582_v59 = vpack.c.bf16 %v4049_v54, %v8487_v46  ;;  %v10972_v29 = vand.u32 2147483647, %v8421_v8  ;;  %v3667_v46 = vand.u32 2147483647, %v8428_v6  ;;  %v5650_v54 = vld [vmem:[%s10383_s3 + $0x48] sm:$0xff] }
 0x8d8   : > { %2348 = vperm.xlu2 %5235, %v5647_v61   ;;  %v3685_v8 = vor.u32 1.1754944e-38, %v3684_v34  ;;  %v8615_v6 = vpack.c.bf16 %v4044_v62, %v8491_v26  ;;  %10976 = vst [vmem:[#allocation84_spill] sm:$0xff] %v8617_v53  ;;  %v3670_v17 = vor.u32 1.1754944e-38, %v3669_v19  ;;  %v5649_v26 = vld [vmem:[%s10383_s3 + $0x68] sm:$0xff]  ;;  %v10982_v34 = vld [vmem:[#allocation87_spill] sm:$0xff]  ;;  %v5652_v61 = vld [vmem:[%s10383_s3 + $0x60] sm:$0xff] }
 0x8d9   : > { %10967 = vst [vmem:[#allocation81_spill] sm:$0xff] %v8579_v3  ;;  %vm3698_vm12 = vcmp.eq.f32.partialorder %v10972_v29, 8.507059e+37  ;;  %4114 = vmatpush.bf16.msrb.mxu0 %v8579_v3  ;;  %4312 = vmatpush.bf16.msra.mxu2 %v8582_v59  ;;  %vm3668_vm2 = vcmp.eq.f32.partialorder %v3667_v46, 8.507059e+37  ;;  %v5653_v46 = vld [vmem:[%s10383_s3 + $0x58] sm:$0xff] }
 0x8da   : > { %10968 = vst [vmem:[#allocation82_spill] sm:$0xff] %v8582_v59  ;;  %2344 = vperm.xlu1 %5234, %v5648_v20   ;;  %v3701_v12 = vsel %vm3698_vm12, %v3700_v7, %v3696_v56  ;;  %v3686_v56 = vsel %vm3683_vm15, %v3685_v8, %v3681_v0  ;;  %v3671_v52 = vsel %vm3668_vm2, %v3670_v17, %v3666_v18  ;;  %v5654_v17 = vld [vmem:[%s10383_s3 + $0x78] sm:$0xff] }
 0x8db   : > { %10975 = vst [vmem:[#allocation83_spill] sm:$0xff] %v8615_v6  ;;  %v8619_v21 = vpop.xlane.xlu2 %3461  ;;  %v4038_v24 = vmul.f32 %v10977_v15, %v3701_v12  ;;  %v4039_v30 = vmul.f32 %v10978_v27, %v3701_v12  ;;  %v4036_v38 = vmul.f32 %v8183_v58, %v3686_v56  ;;  %v4037_v39 = vmul.f32 %v10981_v33, %v3686_v56  ;;  %v5651_v58 = vld [vmem:[%s10383_s3 + $0x40] sm:$0xff]  ;;  %v2755_v56 = vpop.f32.mrf.mxu0 }
 0x8dc   : > { %5576 = vrcp.f32 %v8619_v21  ;;  %2376 = vperm.xlu0 %5233, %v5649_v26   ;;  %v4034_v48 = vmul.f32 %v10982_v34, %v3671_v52  ;;  %v4035_v36 = vmul.f32 %v10983_v1, %v3671_v52  ;;  %v3639_v18 = vand.u32 2147483648, %v8619_v21  ;;  %v2824_v15 = vpop.f32.mrf.mxu1 }
 0x8dd   : > { %4115 = vmatpush.bf16.msrb.mxu0 %v8615_v6  ;;  %4313 = vmatpush.bf16.msra.mxu2 %v8617_v53  ;;  %v8634_v11 = vpack.c.bf16 %v4040_v14, %v4038_v24  ;;  %v8636_v62 = vpack.c.bf16 %v4041_v47, %v4039_v30  ;;  %vm3633_vm3 = vweird.f32 %v8619_v21  ;;  %v3637_v26 = vand.u32 2147483647, %v8619_v21  ;;  %v5655_v30 = vld [vmem:[%s10383_s3 + $0x70] sm:$0xff] }
 0x8de   : > { %v8651_v2 = vpack.c.bf16 %v4036_v38, %v4034_v48  ;;  %v8653_v31 = vpack.c.bf16 %v4037_v39, %v4035_v36  ;;  %v3640_v39 = vor.u32 1.1754944e-38, %v3639_v18 }
 0x8df   : > { %10979 = vst [vmem:[#allocation85_spill] sm:$0xff] %v8634_v11  ;;  %vm3638_vm6 = vcmp.eq.f32.partialorder %v3637_v26, 8.507059e+37 }
 0x8e0   : > { %10980 = vst [vmem:[#allocation86_spill] sm:$0xff] %v8636_v62  ;;  %2360 = vperm.xlu2 %5235, %v5650_v54  }
 0x8e1   : > { %4116 = vmatpush.bf16.msrb.mxu0 %v8634_v11  ;;  %4314 = vmatpush.bf16.msra.mxu2 %v8636_v62  ;;  %10984 = vst [vmem:[#allocation89_spill] sm:$0xff] %v8651_v2 }
 0x8e2   : > { %v5577_v7 = vpop.eup %5576  ;;  %2356 = vperm.xlu1 %5234, %v5651_v58   ;;  %10985 = vst [vmem:[#allocation87_spill] sm:$0xff] %v8653_v31 }
 0x8e3   : > { %v3629_v19 = vmul.f32 %v5577_v7, %v8619_v21  ;;  %v3465_v22 = vpop.xlane.xlu0 %3464  ;;  %vm3634_vm0 = vweird.f32 %v5577_v7 }
 0x8e4   : > { %5578 = vrcp.f32 %v3465_v22  ;;  %vm8673_vm1 = vmor %vm3633_vm3, %vm3634_vm0  ;;  %v3654_v52 = vand.u32 2147483648, %v3465_v22  ;;  %vm3648_vm5 = vweird.f32 %v3465_v22  ;;  %v3652_v54 = vand.u32 2147483647, %v3465_v22 }
 0x8e5   : > { %4117 = vmatpush.bf16.msrb.mxu0 %v8651_v2  ;;  %4315 = vmatpush.bf16.msra.mxu2 %v8653_v31  ;;  %v3630_v25 = vsub.f32 1.0, %v3629_v19 }
 0x8e6   : > { %v3655_v36 = vor.u32 1.1754944e-38, %v3654_v52  ;;  %vm3653_vm8 = vcmp.eq.f32.partialorder %v3652_v54, 8.507059e+37 }
 0x8e7   : > { %v3631_v0 = vmul.f32 %v5577_v7, %v3630_v25 }
 0x8e8   : > { %2372 = vperm.xlu2 %5235, %v5652_v61  }
 0x8e9   : > { %v3632_v14 = vadd.f32 %v5577_v7, %v3631_v0 }
 0x8ea   : > { %v5579_v29 = vpop.eup %5578  ;;  %2368 = vperm.xlu1 %5234, %v5653_v46  }
 0x8eb   : > { %v3644_v4 = vmul.f32 %v5579_v29, %v3465_v22  ;;  %v8663_v8 = vpop.xlane.xlu0 %3515  ;;  %v8665_v20 = vpop.xlane.xlu1 %3509  ;;  %vm3649_vm4 = vweird.f32 %v5579_v29  ;;  %v3636_v21 = vsel %vm8673_vm1, %v5577_v7, %v3632_v14 }
 0x8ec   : > { %10986 = vst [vmem:[#allocation88_spill] sm:$0xff] %v8665_v20  ;;  %5580 = vrcp.f32 %v8663_v8  ;;  %vm3650_vm7 = vmor %vm3648_vm5, %vm3649_vm4  ;;  %v3641_v48 = vsel %vm3638_vm6, %v3640_v39, %v3636_v21  ;;  %v3909_v54 = vand.u32 2147483648, %v8663_v8 }
 0x8ed   : > { %v3645_v12 = vsub.f32 1.0, %v3644_v4  ;;  %5582 = vrcp.f32 %v8665_v20  ;;  %v4030_v7 = vmul.f32 %v8197_v10, %v3641_v48  ;;  %v4031_v25 = vmul.f32 %v8200_v55, %v3641_v48  ;;  %v2757_v4 = vpop.f32.mrf.mxu0 }
 0x8ef   : > { %v3646_v47 = vmul.f32 %v5579_v29, %v3645_v12 }
 0x8f0   : > { %2384 = vperm.xlu2 %5235, %v5654_v17  }
 0x8f1   : > { %v3647_v27 = vadd.f32 %v5579_v29, %v3646_v47  ;;  %v2826_v47 = vpop.f32.mrf.mxu1 }
 0x8f2   : > { %2380 = vperm.xlu1 %5234, %v5655_v30   ;;  %v8692_v19 = vpop.eup %5580 }
 0x8f3   : > { %v8680_v38 = vpop.xlane.xlu0 %3524  ;;  %v8682_v33 = vpop.xlane.xlu1 %3518  ;;  %v3651_v1 = vsel %vm3650_vm7, %v5579_v29, %v3647_v27  ;;  %v3899_v55 = vmul.f32 %v8692_v19, %v8663_v8  ;;  %v10994_v27 = vld [vmem:[#allocation24_spill] sm:$0xff] }
 0x8f4   : > { %v8687_v34 = vpop.xlane.xlu2 %3512  ;;  %5584 = vrcp.f32 %v8680_v38  ;;  %v3656_v58 = vsel %vm3653_vm8, %v3655_v36, %v3651_v1  ;;  %v8698_v46 = vpop.eup %5582  ;;  %v2872_v30 = vadd.f32 %v2755_v56, %v10994_v27  ;;  %v2873_v52 = vadd.f32 %v2824_v15, %v10994_v27 }
 0x8f5   : > { %10989 = vst [vmem:[#allocation113_spill] sm:$0xff] %v8687_v34  ;;  %5586 = vrcp.f32 %v8682_v33  ;;  %v4032_v22 = vmul.f32 %v8213_v5, %v3656_v58  ;;  %v4033_v61 = vmul.f32 %v8216_v50, %v3656_v58  ;;  %v3869_v5 = vmul.f32 %v8698_v46, %v8665_v20  ;;  %v10993_v50 = vld [vmem:[#allocation11_spill] sm:$0xff] }
 0x8f6   : > { %10990 = vst [vmem:[#allocation114_spill] sm:$0xff] %v8698_v46  ;;  %5588 = vrcp.f32 %v8687_v34  ;;  %v2874_v17 = vadd.f32 %v2757_v4, %v10993_v50  ;;  %v2875_v24 = vadd.f32 %v2826_v47, %v10993_v50  ;;  %v3900_v39 = vsub.f32 1.0, %v3899_v55 }
 0x8f7   : > { %v8704_v12 = vpack.c.bf16 %v4032_v22, %v4030_v7  ;;  %v8706_v10 = vpack.c.bf16 %v4033_v61, %v4031_v25  ;;  %v3870_v48 = vsub.f32 1.0, %v3869_v5  ;;  %v3879_v1 = vand.u32 2147483648, %v8665_v20 }
 0x8f8   : > { %v8730_v36 = vpack.c.bf16 %v2874_v17, %v2872_v30  ;;  %v8741_v22 = vpack.c.bf16 %v2875_v24, %v2873_v52  ;;  %v3954_v55 = vand.u32 2147483648, %v8680_v38  ;;  %v3924_v5 = vand.u32 2147483648, %v8682_v33 }
 0x8f9   : > { %10991 = vst [vmem:[#allocation115_spill] sm:$0xff] %v8704_v12  ;;  %4118 = vmatpush.bf16.msrb.mxu0 %v8704_v12  ;;  %4316 = vmatpush.bf16.msra.mxu2 %v8706_v10  ;;  %v3901_v17 = vmul.f32 %v8692_v19, %v3900_v39  ;;  %v8754_v24 = vor.u32 1.1754944e-38, %v3909_v54  ;;  %v3871_v27 = vmul.f32 %v8698_v46, %v3870_v48  ;;  %v8757_v30 = vor.u32 1.1754944e-38, %v3879_v1 }
 0x8fa   : > { %10992 = vst [vmem:[#allocation116_spill] sm:$0xff] %v8706_v10  ;;  %v8710_v18 = vpop.eup %5584  ;;  %v3894_v61 = vand.u32 2147483648, %v8687_v34  ;;  %vm3948_vm9 = vweird.f32 %v8680_v38  ;;  %v3952_v25 = vand.u32 2147483647, %v8680_v38  ;;  %v8770_v1 = vor.u32 1.1754944e-38, %v3954_v55 }
 0x8fb   : > { %v8700_v29 = vpop.xlane.xlu0 %3527  ;;  %v8702_v0 = vpop.xlane.xlu1 %3530  ;;  %v3944_v21 = vmul.f32 %v8710_v18, %v8680_v38  ;;  %10995 = vst [vmem:[#allocation11_spill] sm:$0xff] %v8730_v36  ;;  %v8779_v6 = vadd.f32 %v8692_v19, %v3901_v17  ;;  %v8782_v39 = vadd.f32 %v8698_v46, %v3871_v27  ;;  %vm3949_vm10 = vweird.f32 %v8710_v18 }
 0x8fc   : > { %v8708_v14 = vpop.xlane.xlu2 %3521  ;;  %v8720_v26 = vpop.eup %5586  ;;  %5590 = vrcp.f32 %v8700_v29  ;;  %10997 = vst [vmem:[#allocation117_spill] sm:$0xff] %v8741_v22  ;;  %v3969_v54 = vand.u32 2147483648, %v8700_v29  ;;  %v8790_v10 = vor.u32 1.1754944e-38, %v3894_v61  ;;  %v3984_v3 = vand.u32 2147483648, %v8702_v0  ;;  %vm8837_vm12 = vmor %vm3948_vm9, %vm3949_vm10 }
 0x8fd   : > { %v3914_v58 = vmul.f32 %v8720_v26, %v8682_v33  ;;  %5592 = vrcp.f32 %v8702_v0  ;;  %v8739_v15 = vpop.eup %5588  ;;  %v3945_v47 = vsub.f32 1.0, %v3944_v21  ;;  %10999 = vst [vmem:[#allocation119_spill] sm:$0xff] %v8754_v24  ;;  %v3939_v36 = vand.u32 2147483648, %v8708_v14 }
 0x8fe   : > { %10996 = vst [vmem:[#allocation24_spill] sm:$0xff] %v8739_v15  ;;  %5594 = vrcp.f32 %v8708_v14  ;;  %v3884_v21 = vmul.f32 %v8739_v15, %v8687_v34  ;;  %v8797_v62 = vor.u32 1.1754944e-38, %v3969_v54  ;;  %vm8825_vm11 = vcmp.eq.f32.partialorder %v3952_v25, 8.507059e+37 }
 0x8ff   : > { %11000 = vst [vmem:[#allocation120_spill] sm:$0xff] %v8757_v30  ;;  %v3915_v52 = vsub.f32 1.0, %v3914_v58  ;;  %v3946_v48 = vmul.f32 %v8710_v18, %v3945_v47  ;;  %v8772_v58 = vor.u32 1.1754944e-38, %v3924_v5  ;;  %v8829_v37 = vor.u32 1.1754944e-38, %v3984_v3 }
 0x900   : > { %11002 = vst [vmem:[#allocation122_spill] sm:$0xff] %v8779_v6  ;;  %v3885_v5 = vsub.f32 1.0, %v3884_v21  ;;  %vm3963_vm7 = vweird.f32 %v8700_v29  ;;  %vm3978_vm8 = vweird.f32 %v8702_v0  ;;  %v11032_v40 = vand.u32 2147483647, %v8708_v14 }
 0x901   : > { %11001 = vst [vmem:[#allocation121_spill] sm:$0xff] %v8772_v58  ;;  %v3916_v55 = vmul.f32 %v8720_v26, %v3915_v52  ;;  %v8805_v52 = vadd.f32 %v8710_v18, %v3946_v48 }
 0x902   : > { %v8751_v50 = vpop.eup %5590  ;;  %11003 = vst [vmem:[#allocation123_spill] sm:$0xff] %v8782_v39 }
 0x903   : > { %v8735_v7 = vpop.xlane.xlu0 %3533  ;;  %v8737_v56 = vpop.xlane.xlu1 %3536  ;;  %v3959_v2 = vmul.f32 %v8751_v50, %v8700_v29  ;;  %11004 = vst [vmem:[#allocation124_spill] sm:$0xff] %v8790_v10  ;;  %v8818_v48 = vadd.f32 %v8720_v26, %v3916_v55  ;;  %v3951_v38 = vsel %vm8837_vm12, %v8710_v18, %v8805_v52  ;;  %vm3964_vm1 = vweird.f32 %v8751_v50 }
 0x904   : > { %v8746_v4 = vpop.xlane.xlu2 %3503  ;;  %5596 = vrcp.f32 %v8735_v7  ;;  %v8767_v12 = vpop.eup %5592  ;;  %v3999_v13 = vand.u32 2147483648, %v8735_v7  ;;  %v3997_v30 = vand.u32 2147483647, %v8735_v7  ;;  %v4012_v3 = vand.u32 2147483647, %v8737_v56 }
 0x905   : > { %10998 = vst [vmem:[#allocation118_spill] sm:$0xff] %v8746_v4  ;;  %5598 = vrcp.f32 %v8737_v56  ;;  %v8776_v11 = vpop.eup %5594  ;;  %v3960_v61 = vsub.f32 1.0, %v3959_v2  ;;  %v3974_v21 = vmul.f32 %v8767_v12, %v8702_v0  ;;  %v3886_v2 = vmul.f32 %v8739_v15, %v3885_v5 }
 0x906   : > { %5600 = vrcp.f32 %v8746_v4  ;;  %v3929_v54 = vmul.f32 %v8776_v11, %v8708_v14  ;;  %11005 = vst [vmem:[#allocation125_spill] sm:$0xff] %v8818_v48  ;;  %v8853_v48 = vor.u32 1.1754944e-38, %v3939_v36  ;;  %vm3993_vm13 = vweird.f32 %v8735_v7 }
 0x907   : > { %v3961_v25 = vmul.f32 %v8751_v50, %v3960_v61  ;;  %v3975_v5 = vsub.f32 1.0, %v3974_v21  ;;  %v8851_v24 = vadd.f32 %v8739_v15, %v3886_v2  ;;  %v4000_v6 = vor.u32 1.1754944e-38, %v3999_v13 }
 0x908   : > { %v3930_v58 = vsub.f32 1.0, %v3929_v54  ;;  %vm4008_vm14 = vweird.f32 %v8737_v56  ;;  %v4014_v18 = vand.u32 2147483648, %v8737_v56  ;;  %vm8869_vm15 = vcmp.eq.f32.partialorder %v3997_v30, 8.507059e+37 }
 0x909   : > { %11011 = vst [vmem:[#allocation127_spill] sm:$0xff] %v8851_v24  ;;  %v8866_v52 = vadd.f32 %v8751_v50, %v3961_v25  ;;  %v3976_v36 = vmul.f32 %v8767_v12, %v3975_v5  ;;  %vm8873_vm2 = vcmp.eq.f32.partialorder %v4012_v3, 8.507059e+37  ;;  %v3849_v30 = vand.u32 2147483648, %v8746_v4 }
 0x90a   : > { %v8786_v47 = vpop.eup %5596  ;;  %v3931_v24 = vmul.f32 %v8776_v11, %v3930_v58  ;;  %v4015_v15 = vor.u32 1.1754944e-38, %v4014_v18  ;;  %v8912_v60 = vsel %vm8825_vm11, %v8770_v1, %v3951_v38  ;;  %vm3979_vm5 = vweird.f32 %v8767_v12 }
 0x90b   : > { %v8792_v31 = vpop.xlane.xlu0 %3455  ;;  %v8794_v17 = vpop.xlane.xlu1 %3458  ;;  %v3989_v22 = vmul.f32 %v8786_v47, %v8735_v7  ;;  %vm3994_vm0 = vweird.f32 %v8786_v47  ;;  %11018 = vst [vmem:[#allocation128_spill] sm:$0xff] %v8912_v60  ;;  %v8915_v49 = vadd.f32 %v8767_v12, %v3976_v36  ;;  %v8932_v1 = vor.u32 1.1754944e-38, %v3849_v30 }
 0x90c   : > { %v8802_v53 = vpop.eup %5598  ;;  %5602 = vrcp.f32 %v8792_v31  ;;  %v8815_v10 = vpop.xlane.xlu2 %3452  ;;  %v3609_v63 = vand.u32 2147483648, %v8792_v31  ;;  %v3624_v58 = vand.u32 2147483648, %v8794_v17  ;;  %vm8900_vm4 = vmor %vm3993_vm13, %vm3994_vm0  ;;  %v8919_v7 = vadd.f32 %v8776_v11, %v3931_v24 }
 0x90d   : > { %v3990_v27 = vsub.f32 1.0, %v3989_v22  ;;  %v4004_v59 = vmul.f32 %v8802_v53, %v8737_v56  ;;  %v8823_v39 = vpop.eup %5600  ;;  %5604 = vrcp.f32 %v8794_v17  ;;  %vm4009_vm3 = vweird.f32 %v8802_v53  ;;  %11021 = vst [vmem:[#allocation129_spill] sm:$0xff] %v8932_v1 }
 0x90e   : > { %11006 = vst [vmem:[#allocation126_spill] sm:$0xff] %v8823_v39  ;;  %5606 = vrcp.f32 %v8815_v10  ;;  %v3839_v21 = vmul.f32 %v8823_v39, %v8746_v4  ;;  %vm8928_vm6 = vmor %vm4008_vm14, %vm4009_vm3  ;;  %v8946_v30 = vor.u32 1.1754944e-38, %v3609_v63  ;;  %v8949_v1 = vor.u32 1.1754944e-38, %v3624_v58 }
 0x90f   : > { %v4005_v9 = vsub.f32 1.0, %v4004_v59  ;;  %v3991_v59 = vmul.f32 %v8786_v47, %v3990_v27  ;;  %vm3934_vm9 = vweird.f32 %v8776_v11  ;;  %vm3603_vm10 = vweird.f32 %v8792_v31 }
 0x910   : > { %v3840_v3 = vsub.f32 1.0, %v3839_v21  ;;  %v11022_v4 = vand.u32 2147483647, %v8700_v29  ;;  %vm3933_vm14 = vweird.f32 %v8708_v14  ;;  %vm9008_vm3 = vcmp.eq.f32.partialorder %v11032_v40, 8.507059e+37 }
 0x911   : > { %v4006_v61 = vmul.f32 %v8802_v53, %v4005_v9  ;;  %v3992_v25 = vadd.f32 %v8786_v47, %v3991_v59 }
 0x912   : > { %v8860_v27 = vpop.eup %5602  ;;  %vm8966_vm12 = vcmp.eq.f32.partialorder %v11022_v4, 8.507059e+37  ;;  %v3594_v4 = vand.u32 2147483648, %v8815_v10 }
 0x913   : > { %v8858_v54 = vpop.xlane.xlu0 %3506  ;;  %v8878_v13 = vpop.xlane.xlu1 %3449  ;;  %v4007_v5 = vadd.f32 %v8802_v53, %v4006_v61  ;;  %v3599_v34 = vmul.f32 %v8860_v27, %v8792_v31  ;;  %v3996_v21 = vsel %vm8900_vm4, %v8786_v47, %v3992_v25  ;;  %v3841_v47 = vmul.f32 %v8823_v39, %v3840_v3 }
 0x914   : > { %5608 = vrcp.f32 %v8858_v54  ;;  %v8880_v55 = vpop.eup %5604  ;;  %v8895_v59 = vpop.xlane.xlu2 %3443  ;;  %v3607_v25 = vand.u32 2147483647, %v8792_v31  ;;  %v3622_v61 = vand.u32 2147483647, %v8794_v17  ;;  %vm3604_vm11 = vweird.f32 %v8860_v27 }
 0x915   : > { %v8890_v20 = vpop.eup %5606  ;;  %5610 = vrcp.f32 %v8878_v13  ;;  %v3614_v18 = vmul.f32 %v8880_v55, %v8794_v17  ;;  %v4011_v24 = vsel %vm8928_vm6, %v8802_v53, %v4007_v5  ;;  %v3600_v36 = vsub.f32 1.0, %v3599_v34  ;;  %vm9030_vm6 = vmor %vm3963_vm7, %vm3964_vm1 }
 0x916   : > { %v3584_v42 = vmul.f32 %v8890_v20, %v8815_v10  ;;  %5612 = vrcp.f32 %v8895_v59  ;;  %v4001_v22 = vsel %vm8869_vm15, %v4000_v6, %v3996_v21  ;;  %v4016_v58 = vsel %vm8873_vm2, %v4015_v15, %v4011_v24  ;;  %vm9043_vm2 = vmor %vm3978_vm8, %vm3979_vm5 }
 0x917   : > { %v3615_v53 = vsub.f32 1.0, %v3614_v18  ;;  %v8978_v6 = vadd.f32 %v8823_v39, %v3841_v47  ;;  %v3601_v15 = vmul.f32 %v8860_v27, %v3600_v36  ;;  %vm3619_vm15 = vweird.f32 %v8880_v55  ;;  %vm9057_vm1 = vmor %vm3603_vm10, %vm3604_vm11 }
 0x918   : > { %v3585_v34 = vsub.f32 1.0, %v3584_v42  ;;  %v11025_v42 = vand.u32 2147483647, %v8702_v0  ;;  %v3864_v9 = vand.u32 2147483648, %v8858_v54  ;;  %v4078_v21 = vmul.f32 %v8305_v28, %v4001_v22  ;;  %vm9084_vm8 = vmor %vm3933_vm14, %vm3934_vm9 }
 0x919   : > { %11028 = vst [vmem:[#allocation130_spill] sm:$0xff] %v8978_v6  ;;  %v4080_v24 = vmul.f32 %v8313_v57, %v4016_v58  ;;  %vm8991_vm0 = vcmp.eq.f32.partialorder %v3607_v25, 8.507059e+37  ;;  %v3616_v36 = vmul.f32 %v8880_v55, %v3615_v53  ;;  %v3579_v6 = vand.u32 2147483648, %v8878_v13  ;;  %v11060_v53 = vld [vmem:[#allocation70_spill] sm:$0xff] }
 0x91a   : > { %v8934_v38 = vpop.eup %5608  ;;  %vm8972_vm13 = vcmp.eq.f32.partialorder %v11025_v42, 8.507059e+37  ;;  %v4079_v39 = vmul.f32 %v8307_v35, %v4001_v22  ;;  %v4081_v46 = vmul.f32 %v8317_v41, %v4016_v58  ;;  %v3586_v28 = vmul.f32 %v8890_v20, %v3585_v34  ;;  %v11057_v41 = vld [vmem:[#allocation94_spill] sm:$0xff] }
 0x91b   : > { %v8942_v56 = vpop.xlane.xlu0 %3497  ;;  %v8955_v3 = vpop.eup %5610  ;;  %v3854_v63 = vmul.f32 %v8934_v38, %v8858_v54  ;;  %v9004_v25 = vpack.c.bf16 %v4080_v24, %v4078_v21  ;;  %v3602_v35 = vadd.f32 %v8860_v27, %v3601_v15  ;;  %vm9013_vm4 = vcmp.eq.f32.partialorder %v3622_v61, 8.507059e+37 }
 0x91c   : > { %5614 = vrcp.f32 %v8942_v56  ;;  %v3569_v2 = vmul.f32 %v8955_v3, %v8878_v13  ;;  %v8989_v42 = vpop.eup %5612  ;;  %v8999_v16 = vpop.xlane.xlu1 %3500  ;;  %v9017_v22 = vor.u32 1.1754944e-38, %v3594_v4  ;;  %v9034_v61 = vor.u32 1.1754944e-38, %v3864_v9 }
 0x91d   : > { %v3855_v60 = vsub.f32 1.0, %v3854_v63  ;;  %v3539_v57 = vmul.f32 %v8989_v42, %v8895_v59  ;;  %11031 = vst [vmem:[#allocation131_spill] sm:$0xff] %v9004_v25  ;;  %v9020_v63 = vpack.c.bf16 %v4081_v46, %v4079_v39  ;;  %v3577_v4 = vand.u32 2147483647, %v8878_v13  ;;  %4127 = vmatpush.bf16.msrb.mxu1 %v9004_v25 }
 0x91e   : > { %v3570_v15 = vsub.f32 1.0, %v3569_v2  ;;  %5616 = vrcp.f32 %v8999_v16  ;;  %v3617_v29 = vadd.f32 %v8880_v55, %v3616_v36  ;;  %v9048_v39 = vor.u32 1.1754944e-38, %v3579_v6 }
 0x91f   : > { %v3540_v9 = vsub.f32 1.0, %v3539_v57  ;;  %4361 = vmatpush.bf16.msra.mxu3 %v9020_v63  ;;  %v9062_v24 = vadd.f32 %v8890_v20, %v3586_v28  ;;  %v3856_v6 = vmul.f32 %v8934_v38, %v3855_v60  ;;  %v3549_v57 = vand.u32 2147483648, %v8895_v59 }
 0x920   : > { %vm3904_vm5 = vweird.f32 %v8692_v19  ;;  %v3966_v31 = vsel %vm9030_vm6, %v8751_v50, %v8866_v52  ;;  %v3981_v28 = vsel %vm9043_vm2, %v8767_v12, %v8915_v49  ;;  %v3606_v60 = vsel %vm9057_vm1, %v8860_v27, %v3602_v35 }
 0x921   : > { %vm3919_vm7 = vweird.f32 %v8720_v26  ;;  %v9089_v50 = vmul.f32 %v8955_v3, %v3570_v15  ;;  %v3819_v52 = vand.u32 2147483648, %v8942_v56  ;;  %v3971_v49 = vsel %vm8966_vm12, %v8797_v62, %v3966_v31 }
 0x922   : > { %v9024_v21 = vpop.eup %5614  ;;  %v3986_v12 = vsel %vm8972_vm13, %v8829_v37, %v3981_v28  ;;  %vm3903_vm10 = vweird.f32 %v8663_v8  ;;  %vm11045_vm9 = vweird.f32 %v8794_v17  ;;  %v3541_v27 = vmul.f32 %v8989_v42, %v3540_v9 }
 0x923   : > { %v9022_v58 = vpop.xlane.xlu2 %3494  ;;  %v3809_v2 = vmul.f32 %v9024_v21, %v8942_v56  ;;  %vm9103_vm11 = vmor %vm11045_vm9, %vm3619_vm15  ;;  %v4074_v35 = vmul.f32 %v8279_v45, %v3971_v49  ;;  %v4076_v62 = vmul.f32 %v8283_v32, %v3986_v12  ;;  %v4075_v18 = vmul.f32 %v8281_v44, %v3971_v49  ;;  %v9157_v0 = vpop.xlane.xlu0 %3446  ;;  %v11056_v49 = vld [vmem:[#allocation128_spill] sm:$0xff] }
 0x924   : > { %v9111_v5 = vpop.eup %5616  ;;  %vm3918_vm12 = vweird.f32 %v8682_v33  ;;  %vm3589_vm13 = vweird.f32 %v8890_v20  ;;  %v4077_v37 = vmul.f32 %v8285_v51, %v3986_v12  ;;  %v3611_v17 = vsel %vm8991_vm0, %v8946_v30, %v3606_v60  ;;  %v11055_v60 = vld [vmem:[#allocation74_spill] sm:$0xff]  ;;  %vm9214_vm9 = vmor %vm3903_vm10, %vm3904_vm5 }
 0x925   : > { %v3810_v34 = vsub.f32 1.0, %v3809_v2  ;;  %v3621_v45 = vsel %vm9103_vm11, %v8880_v55, %v3617_v29  ;;  %v3936_v44 = vsel %vm9084_vm8, %v8776_v11, %v8919_v7  ;;  %vm3574_vm14 = vweird.f32 %v8955_v3  ;;  %v11058_v12 = vld [vmem:[#allocation114_spill] sm:$0xff]  ;;  %vm9240_vm10 = vmor %vm3918_vm12, %vm3919_vm7 }
 0x926   : > { %v3824_v51 = vmul.f32 %v9111_v5, %v8999_v16  ;;  %v3834_v40 = vand.u32 2147483648, %v8999_v16  ;;  %v9131_v47 = vpack.c.bf16 %v4076_v62, %v4074_v35  ;;  %v11049_v55 = vand.u32 2147483647, %v8663_v8  ;;  %v11061_v35 = vld [vmem:[#allocation75_spill] sm:$0xff] }
 0x927   : > { %v3811_v32 = vmul.f32 %v9024_v21, %v3810_v34  ;;  %v11052_v11 = vand.u32 2147483647, %v8682_v33  ;;  %vm3588_vm0 = vweird.f32 %v8815_v10  ;;  %v9148_v34 = vpack.c.bf16 %v4077_v37, %v4075_v18  ;;  %v11062_v18 = vld [vmem:[#allocation95_spill] sm:$0xff]  ;;  %v11086_v33 = vld [vmem:[#allocation118_spill] sm:$0xff] }
 0x928   : > { %11048 = vst [vmem:[#allocation132_spill] sm:$0xff] %v9131_v47  ;;  %vm9137_vm15 = vcmp.eq.f32.partialorder %v11049_v55, 8.507059e+37  ;;  %v3626_v46 = vsel %vm9013_vm4, %v8949_v1, %v3621_v45  ;;  %v4026_v29 = vmul.f32 %v8331_v23, %v3611_v17  ;;  %v3941_v9 = vsel %vm9008_vm3, %v8853_v48, %v3936_v44  ;;  %4128 = vmatpush.bf16.msrb.mxu1 %v9131_v47  ;;  %v11059_v23 = vld [vmem:[#allocation73_spill] sm:$0xff]  ;;  %v9172_v45 = vpop.xlane.xlu1 %3491  ;;  %vm9280_vm7 = vmor %vm3588_vm0, %vm3589_vm13 }
 0x929   : > { %vm9143_vm2 = vcmp.eq.f32.partialorder %v11052_v11, 8.507059e+37  ;;  %vm3573_vm6 = vweird.f32 %v8878_v13  ;;  %v3825_v31 = vsub.f32 1.0, %v3824_v51  ;;  %v4028_v28 = vmul.f32 %v8335_v43, %v3626_v46  ;;  %4362 = vmatpush.bf16.msra.mxu3 %v9148_v34  ;;  %v11063_v43 = vld [vmem:[#allocation24_spill] sm:$0xff]  ;;  %v11095_v13 = vld [vmem:[#allocation91_spill] sm:$0xff] }
 0x92a   : > { %v4070_v2 = vmul.f32 %v11055_v60, %v3941_v9  ;;  %v4072_v1 = vmul.f32 %v11057_v41, %v11056_v49  ;;  %vm3874_vm4 = vweird.f32 %v11058_v12  ;;  %v4027_v48 = vmul.f32 %v11059_v23, %v3611_v17  ;;  %v11066_v17 = vld [vmem:[#allocation88_spill] sm:$0xff]  ;;  %vm9298_vm13 = vmor %vm3573_vm6, %vm3574_vm14 }
 0x92b   : > { %v9133_v30 = vpop.permute.xlu2 %2332  ;;  %v4029_v14 = vmul.f32 %v11060_v53, %v3626_v46  ;;  %v4071_v62 = vmul.f32 %v11061_v35, %v3941_v9  ;;  %v4073_v37 = vmul.f32 %v11062_v18, %v11056_v49  ;;  %v3826_v44 = vmul.f32 %v9111_v5, %v3825_v31  ;;  %v11083_v53 = vld [vmem:[#allocation126_spill] sm:$0xff]  ;;  %v11089_v49 = vld [vmem:[#allocation119_spill] sm:$0xff] }
 0x92c   : > { %v9176_v51 = vpack.c.bf16 %v4028_v28, %v4026_v29  ;;  %v9178_v55 = vpack.c.bf16 %v4072_v1, %v4070_v2  ;;  %5618 = vrcp.f32 %v9157_v0  ;;  %v9183_v11 = vadd.f32 %v8934_v38, %v3856_v6  ;;  %v11069_v28 = vld [vmem:[#allocation113_spill] sm:$0xff] }
 0x92d   : > { %vm9187_vm8 = vcmp.eq.f32.partialorder %v3577_v4, 8.507059e+37  ;;  %v9191_v9 = vor.u32 1.1754944e-38, %v3549_v57  ;;  %v9193_v31 = vpack.c.bf16 %v4029_v14, %v4027_v48  ;;  %v9195_v29 = vpack.c.bf16 %v4073_v37, %v4071_v62  ;;  %v11096_v4 = vld [vmem:[#allocation97_spill] sm:$0xff]  ;;  %v9341_v37 = vpop.f32.mrf.mxu0 }
 0x92e   : > { %11064 = vst [vmem:[#allocation74_spill] sm:$0xff] %v9176_v51  ;;  %v11070_v60 = vand.u32 2147483647, %v8815_v10  ;;  %4119 = vmatpush.bf16.msrb.mxu0 %v9176_v51  ;;  %4129 = vmatpush.bf16.msrb.mxu1 %v9178_v55  ;;  %v3564_v57 = vand.u32 2147483648, %v9157_v0  ;;  %5620 = vrcp.f32 %v9172_v45  ;;  %v3572_v41 = vadd.f32 %v8955_v3, %v9089_v50  ;;  %v11090_v50 = vld [vmem:[#allocation121_spill] sm:$0xff] }
 0x92f   : > { %11065 = vst [vmem:[#allocation128_spill] sm:$0xff] %v9178_v55  ;;  %v9221_v1 = vadd.f32 %v8989_v42, %v3541_v27  ;;  %v9225_v23 = vor.u32 1.1754944e-38, %v3819_v52  ;;  %4317 = vmatpush.bf16.msra.mxu2 %v9193_v31  ;;  %4363 = vmatpush.bf16.msra.mxu3 %v9195_v29  ;;  %5622 = vrcp.f32 %v9022_v58  ;;  %v11075_v8 = vand.u32 2147483647, %v11066_v17 }
 0x930   : > { %vm9200_vm11 = vcmp.eq.f32.partialorder %v11070_v60, 8.507059e+37  ;;  %v11080_v52 = vand.u32 2147483647, %v11069_v28  ;;  %vm3844_vm1 = vweird.f32 %v11083_v53  ;;  %v9252_v14 = vadd.f32 %v9024_v21, %v3811_v32 }
 0x931   : > { %vm9232_vm5 = vcmp.eq.f32.partialorder %v11075_v8, 8.507059e+37  ;;  %v9255_v35 = vadd.f32 %v9111_v5, %v3826_v44  ;;  %v9257_v62 = vor.u32 1.1754944e-38, %v3834_v40  ;;  %v3789_v60 = vand.u32 2147483648, %v9172_v45  ;;  %v11084_v8 = vld [vmem:[#allocation122_spill] sm:$0xff] }
 0x932   : > { %vm9246_vm3 = vcmp.eq.f32.partialorder %v11080_v52, 8.507059e+37  ;;  %v3906_v32 = vsel %vm9214_vm9, %v8692_v19, %v11084_v8  ;;  %v11085_v52 = vld [vmem:[#allocation125_spill] sm:$0xff]  ;;  %v9273_v44 = vpop.eup %5618  ;;  %vm3843_vm12 = vweird.f32 %v11086_v33  ;;  %v9284_v36 = vor.u32 1.1754944e-38, %v3564_v57 }
 0x933   : > { %v9260_v18 = vpop.permute.xlu2 %2340  ;;  %v3921_v40 = vsel %vm9240_vm10, %v8720_v26, %v11085_v52  ;;  %v3804_v19 = vand.u32 2147483648, %v9022_v58  ;;  %v3911_v26 = vsel %vm9137_vm15, %v11089_v49, %v3906_v32  ;;  %vm3858_vm9 = vweird.f32 %v8858_v54  ;;  %v11093_v32 = vld [vmem:[#allocation90_spill] sm:$0xff]  ;;  %v11094_v52 = vld [vmem:[#allocation96_spill] sm:$0xff] }
 0x934   : > { %v3926_v8 = vsel %vm9143_vm2, %v11090_v50, %v3921_v40  ;;  %vm3814_vm0 = vweird.f32 %v9024_v21  ;;  %v3554_v15 = vmul.f32 %v9273_v44, %v9157_v0  ;;  %v4066_v7 = vmul.f32 %v11093_v32, %v3911_v26  ;;  %v9308_v49 = vpop.eup %5620 }
 0x935   : > { %v4068_v40 = vmul.f32 %v11094_v52, %v3926_v8  ;;  %vm3829_vm15 = vweird.f32 %v9111_v5  ;;  %v4067_v50 = vmul.f32 %v11095_v13, %v3911_v26  ;;  %v4069_v6 = vmul.f32 %v11096_v4, %v3926_v8  ;;  %v9320_v32 = vpop.eup %5622 }
 0x936   : > { %v3576_v51 = vsel %vm9298_vm13, %v8955_v3, %v3572_v41  ;;  %v3591_v57 = vsel %vm9280_vm7, %v8890_v20, %v9062_v24  ;;  %v11097_v52 = vand.u32 2147483647, %v11086_v33  ;;  %v11100_v26 = vand.u32 2147483647, %v8858_v54  ;;  %v11136_v54 = vld [vmem:[#allocation99_spill] sm:$0xff] }
 0x937   : > { %vm3813_vm6 = vweird.f32 %v8942_v56  ;;  %v3555_v3 = vsub.f32 1.0, %v3554_v15  ;;  %v3779_v20 = vmul.f32 %v9308_v49, %v9172_v45  ;;  %v9337_v24 = vor.u32 1.1754944e-38, %v3789_v60  ;;  %v11163_v33 = vld [vmem:[#allocation103_spill] sm:$0xff] }
 0x938   : > { %vm9324_vm14 = vcmp.eq.f32.partialorder %v11097_v52, 8.507059e+37  ;;  %vm9330_vm2 = vcmp.eq.f32.partialorder %v11100_v26, 8.507059e+37  ;;  %v9339_v41 = vpack.c.bf16 %v4068_v40, %v4066_v7  ;;  %vm11104_vm10 = vweird.f32 %v11066_v17  ;;  %v9361_v40 = vpop.permute.xlu0 %2324  ;;  %v9363_v17 = vpop.f32.mrf.mxu1 }
 0x939   : > { %vm9347_vm7 = vmor %vm11104_vm10, %vm3874_vm4  ;;  %v3794_v10 = vmul.f32 %v9320_v32, %v9022_v58  ;;  %v9354_v15 = vor.u32 1.1754944e-38, %v3804_v19  ;;  %v9356_v60 = vpack.c.bf16 %v4069_v6, %v4067_v50  ;;  %v3581_v7 = vsel %vm9187_vm8, %v9048_v39, %v3576_v51  ;;  %v11111_v51 = vld [vmem:[#allocation78_spill] sm:$0xff] }
 0x93a   : > { %11103 = vst [vmem:[#allocation94_spill] sm:$0xff] %v9339_v41  ;;  %vm11107_vm4 = vweird.f32 %v11063_v43  ;;  %vm11108_vm10 = vweird.f32 %v11069_v28  ;;  %v3556_v19 = vmul.f32 %v9273_v44, %v3555_v3  ;;  %v3780_v6 = vsub.f32 1.0, %v3779_v20  ;;  %4130 = vmatpush.bf16.msrb.mxu1 %v9339_v41 }
 0x93b   : > { %vm9369_vm13 = vmor %vm11108_vm10, %vm11107_vm4  ;;  %v3596_v39 = vsel %vm9200_vm11, %v9017_v22, %v3591_v57  ;;  %v4022_v46 = vmul.f32 %v11111_v51, %v3581_v7  ;;  %vm3544_vm8 = vweird.f32 %v8989_v42  ;;  %v11112_v28 = vand.u32 2147483647, %v8942_v56  ;;  %4364 = vmatpush.bf16.msra.mxu3 %v9356_v60  ;;  %v11118_v22 = vld [vmem:[#allocation80_spill] sm:$0xff]  ;;  %v11119_v57 = vld [vmem:[#allocation123_spill] sm:$0xff]  ;;  %v9415_v8 = vpop.permute.xlu2 %2348 }
 0x93c   : > { %v11115_v52 = vand.u32 2147483647, %v8999_v16  ;;  %v3795_v3 = vsub.f32 1.0, %v3794_v10  ;;  %v4024_v2 = vmul.f32 %v11118_v22, %v3596_v39  ;;  %v3876_v20 = vsel %vm9347_vm7, %v11058_v12, %v11119_v57  ;;  %v11120_v51 = vld [vmem:[#allocation127_spill] sm:$0xff]  ;;  %v11121_v10 = vld [vmem:[#allocation120_spill] sm:$0xff]  ;;  %v9413_v12 = vpop.permute.xlu1 %2328 }
 0x93d   : > { %vm9382_vm4 = vcmp.eq.f32.partialorder %v11112_v28, 8.507059e+37  ;;  %v3891_v28 = vsel %vm9369_vm13, %v11063_v43, %v11120_v51  ;;  %v3781_v41 = vmul.f32 %v9308_v49, %v3780_v6  ;;  %v3881_v47 = vsel %vm9232_vm5, %v11121_v10, %v3876_v20  ;;  %v11122_v22 = vld [vmem:[#allocation124_spill] sm:$0xff]  ;;  %v11124_v6 = vld [vmem:[#allocation98_spill] sm:$0xff] }
 0x93e   : > { %vm9388_vm10 = vcmp.eq.f32.partialorder %v11115_v52, 8.507059e+37  ;;  %v9403_v52 = vadd.f32 %v9273_v44, %v3556_v19  ;;  %v3896_v25 = vsel %vm9246_vm3, %v11122_v22, %v3891_v28  ;;  %vm3543_vm11 = vweird.f32 %v8895_v59  ;;  %v11123_v19 = vld [vmem:[#allocation92_spill] sm:$0xff]  ;;  %vm9428_vm3 = vmor %vm3843_vm12, %vm3844_vm1  ;;  %v11129_v28 = vld [vmem:[#allocation93_spill] sm:$0xff] }
 0x93f   : > { %v3796_v43 = vmul.f32 %v9320_v32, %v3795_v3  ;;  %v9420_v13 = vpack.c.bf16 %v4024_v2, %v4022_v46  ;;  %v4062_v48 = vmul.f32 %v11123_v19, %v3881_v47  ;;  %v4064_v57 = vmul.f32 %v11124_v6, %v3896_v25  ;;  %v11127_v46 = vld [vmem:[#allocation79_spill] sm:$0xff]  ;;  %v11137_v19 = vld [vmem:[#allocation41_spill] sm:$0xff] }
 0x940   : > { %v9433_v20 = vadd.f32 %v9308_v49, %v3781_v41  ;;  %vm3784_vm5 = vweird.f32 %v9308_v49  ;;  %v4023_v3 = vmul.f32 %v11127_v46, %v3581_v7  ;;  %v11128_v2 = vld [vmem:[#allocation71_spill] sm:$0xff]  ;;  %v4063_v10 = vmul.f32 %v11129_v28, %v3881_v47  ;;  %v11139_v28 = vld [vmem:[#allocation130_spill] sm:$0xff] }
 0x941   : > { %v4025_v51 = vmul.f32 %v11128_v2, %v3596_v39  ;;  %vm11130_vm13 = vweird.f32 %v8934_v38  ;;  %v11133_v22 = vand.u32 2147483647, %v8895_v59  ;;  %vm3558_vm12 = vweird.f32 %v9157_v0  ;;  %4120 = vmatpush.bf16.msrb.mxu0 %v9420_v13  ;;  %v11138_v2 = vld [vmem:[#allocation44_spill] sm:$0xff]  ;;  %v11179_v41 = vld [vmem:[#allocation38_spill] sm:$0xff] }
 0x942   : > { %vm9443_vm7 = vmor %vm3858_vm9, %vm11130_vm13  ;;  %v9455_v7 = vadd.f32 %v9320_v32, %v3796_v43  ;;  %v9458_v47 = vpack.c.bf16 %v4064_v57, %v4062_v48  ;;  %v4065_v39 = vmul.f32 %v11136_v54, %v3896_v25  ;;  %v2450_v6 = vadd.f32 %v11137_v19, %v9133_v30  ;;  %v11153_v54 = vld [vmem:[#allocation102_spill] sm:$0xff] }
 0x943   : > { %vm9449_vm1 = vcmp.eq.f32.partialorder %v11133_v22, 8.507059e+37  ;;  %v9468_v46 = vpack.c.bf16 %v4025_v51, %v4023_v3  ;;  %v2499_v43 = vadd.f32 %v11138_v2, %v9133_v30  ;;  %v3846_v48 = vsel %vm9428_vm3, %v11083_v53, %v11139_v28  ;;  %vm9484_vm13 = vmor %vm3813_vm6, %vm3814_vm0  ;;  %v11155_v2 = vld [vmem:[#allocation16_spill] sm:$0xff] }
 0x944   : > { %v3861_v25 = vsel %vm9443_vm7, %v8934_v38, %v9183_v11  ;;  %v11142_v3 = vand.u32 2147483647, %v9157_v0  ;;  %4131 = vmatpush.bf16.msrb.mxu1 %v9458_v47  ;;  %v9495_v53 = vpack.c.bf16 %v4065_v39, %v4063_v10  ;;  %v2537_v27 = vmax.f32 %v2450_v6, 0.0  ;;  %v11145_v38 = vld [vmem:[#allocation129_spill] sm:$0xff]  ;;  %v9522_v6 = vpop.f32.mrf.mxu0 }
 0x945   : > { %v3851_v11 = vsel %vm9324_vm14, %v11145_v38, %v3846_v48  ;;  %v3866_v56 = vsel %vm9330_vm2, %v9034_v61, %v3861_v25  ;;  %vm11146_vm0 = vweird.f32 %v8999_v16  ;;  %v11149_v10 = vand.u32 2147483647, %v9172_v45  ;;  %4318 = vmatpush.bf16.msra.mxu2 %v9468_v46  ;;  %v11152_v61 = vld [vmem:[#allocation100_spill] sm:$0xff]  ;;  %vm9571_vm2 = vmor %vm3543_vm11, %vm3544_vm8 }
 0x946   : > { %vm9490_vm9 = vcmp.eq.f32.partialorder %v11142_v3, 8.507059e+37  ;;  %vm9507_vm6 = vmor %vm11146_vm0, %vm3829_vm15  ;;  %vm3798_vm14 = vweird.f32 %v9022_v58  ;;  %v2538_v55 = vmax.f32 %v2499_v43, 0.0  ;;  %v4058_v4 = vmul.f32 %v11152_v61, %v3851_v11  ;;  %v11154_v16 = vld [vmem:[#allocation72_spill] sm:$0xff]  ;;  %4365 = vmatpush.bf16.msra.mxu3 %v9495_v53 }
 0x947   : > { %vm9513_vm7 = vcmp.eq.f32.partialorder %v11149_v10, 8.507059e+37  ;;  %v4060_v39 = vmul.f32 %v11153_v54, %v3866_v56  ;;  %v4059_v19 = vmul.f32 %v11154_v16, %v3851_v11  ;;  %v11156_v28 = vunpack.c.l.bf16 %v11155_v2  ;;  %v11157_v25 = vld [vmem:[#allocation76_spill] sm:$0xff]  ;;  %v9536_v11 = vpop.permute.xlu0 %2352  ;;  %v9538_v10 = vpop.f32.mrf.mxu1 }
 0x948   : > { %v4061_v3 = vmul.f32 %v11157_v25, %v3866_v56  ;;  %v3816_v43 = vsel %vm9484_vm13, %v9024_v21, %v9252_v14  ;;  %v3831_v38 = vsel %vm9507_vm6, %v9111_v5, %v9255_v35  ;;  %11158 = vst [vmem:[#allocation114_spill] sm:$0xff] %v9536_v11  ;;  %v11159_v61 = vand.u32 2147483647, %v9022_v58  ;;  %v9556_v14 = vpop.permute.xlu1 %2336  ;;  %v11165_v16 = vld [vmem:[#allocation104_spill] sm:$0xff]  ;;  %v9583_v25 = vpop.permute.xlu2 %2360 }
 0x949   : > { %v2569_v48 = vadd.f32 %v2537_v27, %v11156_v28  ;;  %v11162_v56 = vunpack.c.h.bf16 %v11155_v2  ;;  %v9548_v57 = vpack.c.bf16 %v4060_v39, %v4058_v4  ;;  %v3821_v21 = vsel %vm9382_vm4, %v9225_v23, %v3816_v43  ;;  %v11164_v4 = vld [vmem:[#allocation105_spill] sm:$0xff]  ;;  %v11170_v28 = vld [vmem:[#allocation47_spill] sm:$0xff]  ;;  %11171 = vst [vmem:[#allocation73_spill] sm:$0xff] %v9583_v25 }
 0x94a   : > { %vm9542_vm15 = vcmp.eq.f32.partialorder %v11159_v61, 8.507059e+37  ;;  %v3836_v5 = vsel %vm9388_vm10, %v9257_v62, %v3831_v38  ;;  %v9562_v35 = vpack.c.bf16 %v4061_v3, %v4059_v19  ;;  %v4055_v50 = vmul.f32 %v11165_v16, %v3821_v21  ;;  %v11168_v62 = vld [vmem:[#allocation106_spill] sm:$0xff]  ;;  %v11169_v19 = vld [vmem:[#allocation45_spill] sm:$0xff]  ;;  %v11172_v3 = vld [vmem:[#allocation39_spill] sm:$0xff] }
 0x94b   : > { %v2570_v54 = vadd.f32 %v2538_v55, %v11162_v56  ;;  %2601 = vst [vmem:[%s9559_s8 + $0x20] sm:$0xff] %v2569_v48  ;;  %v4054_v55 = vmul.f32 %v11163_v33, %v3821_v21  ;;  %v4056_v39 = vmul.f32 %v11164_v4, %v3836_v5  ;;  %vm3799_vm4 = vweird.f32 %v9320_v32  ;;  %4132 = vmatpush.bf16.msrb.mxu1 %v9548_v57  ;;  %v11173_v38 = vld [vmem:[#allocation19_spill] sm:$0xff]  ;;  %v11178_v4 = vld [vmem:[#allocation101_spill] sm:$0xff] }
 0x94c   : > { %v4057_v26 = vmul.f32 %v11168_v62, %v3836_v5  ;;  %v2455_v2 = vadd.f32 %v11169_v19, %v9260_v18  ;;  %v2504_v48 = vadd.f32 %v11170_v28, %v9260_v18  ;;  %4366 = vmatpush.bf16.msra.mxu3 %v9562_v35  ;;  %v2445_v43 = vadd.f32 %v11172_v3, %v9361_v40  ;;  %v11184_v62 = vld [vmem:[#allocation34_spill] sm:$0xff]  ;;  %v11189_v3 = vld [vmem:[#allocation77_spill] sm:$0xff] }
 0x94d   : > { %2602 = vst [vmem:[%s9559_s8 + $0x28] sm:$0xff] %v2570_v54  ;;  %v9586_v59 = vpack.c.bf16 %v4056_v39, %v4054_v55  ;;  %v2494_v61 = vadd.f32 %v11173_v38, %v9361_v40  ;;  %v3546_v56 = vsel %vm9571_vm2, %v8989_v42, %v9221_v1  ;;  %vm11174_vm8 = vweird.f32 %v9273_v44  ;;  %v11190_v38 = vld [vmem:[#allocation110_spill] sm:$0xff] }
 0x94e   : > { %vm3560_vm10 = vmor %vm3558_vm12, %vm11174_vm8  ;;  %v9600_v54 = vpack.c.bf16 %v4057_v26, %v4055_v50  ;;  %v2541_v21 = vmax.f32 %v2455_v2, 0.0  ;;  %v2542_v5 = vmax.f32 %v2504_v48, 0.0  ;;  %v3551_v33 = vsel %vm9449_vm1, %v9191_v9, %v3546_v56  ;;  %v11187_v2 = vld [vmem:[#allocation109_spill] sm:$0xff] }
 0x94f   : > { %vm11175_vm11 = vweird.f32 %v9172_v45  ;;  %v2533_v42 = vmax.f32 %v2445_v43, 0.0  ;;  %v2534_v0 = vmax.f32 %v2494_v61, 0.0  ;;  %v3561_v1 = vsel %vm3560_vm10, %v9273_v44, %v9403_v52  ;;  %4133 = vmatpush.bf16.msrb.mxu1 %v9586_v59 }
 0x950   : > { %vm9609_vm3 = vmor %vm11175_vm11, %vm3784_vm5  ;;  %v4018_v39 = vmul.f32 %v11178_v4, %v3551_v33  ;;  %v11180_v9 = vunpack.c.l.bf16 %v11179_v41  ;;  %v11181_v50 = vunpack.c.h.bf16 %v11179_v41  ;;  %v3566_v23 = vsel %vm9490_vm9, %v9284_v36, %v3561_v1  ;;  %4367 = vmatpush.bf16.msra.mxu3 %v9600_v54  ;;  %v9653_v56 = vpop.permute.xlu1 %2344 }
 0x951   : > { %v3786_v44 = vsel %vm9609_vm3, %v9308_v49, %v9433_v20  ;;  %vm9632_vm5 = vmor %vm3798_vm14, %vm3799_vm4  ;;  %v11185_v26 = vunpack.c.l.bf16 %v11184_v62  ;;  %v11186_v36 = vunpack.c.h.bf16 %v11184_v62  ;;  %v4020_v28 = vmul.f32 %v11187_v2, %v3566_v23  ;;  %v11188_v20 = vld [vmem:[#allocation107_spill] sm:$0xff] }
 0x952   : > { %v2573_v16 = vadd.f32 %v2541_v21, %v11180_v9  ;;  %v2574_v45 = vadd.f32 %v2542_v5, %v11181_v50  ;;  %v3791_v49 = vsel %vm9513_vm7, %v9337_v24, %v3786_v44  ;;  %v3801_v58 = vsel %vm9632_vm5, %v9320_v32, %v9455_v7  ;;  %v9655_v21 = vpop.f32.mrf.mxu0  ;;  %v11191_v5 = vld [vmem:[#allocation108_spill] sm:$0xff]  ;;  %v11192_v7 = vld [vmem:[#allocation22_spill] sm:$0xff] }
 0x953   : > { %v2565_v51 = vadd.f32 %v2533_v42, %v11185_v26  ;;  %v2566_v19 = vadd.f32 %v2534_v0, %v11186_v36  ;;  %v4050_v48 = vmul.f32 %v11188_v20, %v3791_v49  ;;  %v4019_v43 = vmul.f32 %v11189_v3, %v3551_v33  ;;  %v9666_v33 = vpop.permute.xlu0 %2364  ;;  %v9668_v42 = vpop.f32.mrf.mxu1  ;;  %v11194_v0 = vld [vmem:[#allocation111_spill] sm:$0xff]  ;;  %v11196_v9 = vld [vmem:[#allocation42_spill] sm:$0xff]  ;;  %v11199_v44 = vld [vmem:[#allocation52_spill] sm:$0xff] }
 0x954   : > { %2605 = vst [vmem:[%s9559_s8 + $0x40] sm:$0xff] %v2573_v16  ;;  %v4021_v61 = vmul.f32 %v11190_v38, %v3566_v23  ;;  %v9658_v22 = vpack.c.bf16 %v4020_v28, %v4018_v39  ;;  %v3806_v24 = vsel %vm9542_vm15, %v9354_v15, %v3801_v58  ;;  %v4051_v32 = vmul.f32 %v11191_v5, %v3791_v49  ;;  %v11195_v39 = vld [vmem:[#allocation112_spill] sm:$0xff]  ;;  %v11197_v16 = vld [vmem:[#allocation50_spill] sm:$0xff]  ;;  %v9693_v28 = vpop.permute.xlu2 %2372  ;;  %v11203_v49 = vld [vmem:[#allocation35_spill] sm:$0xff] }
 0x955   : > { %2606 = vst [vmem:[%s9559_s8 + $0x48] sm:$0xff] %v2574_v45  ;;  %v2447_v55 = vadd.f32 %v11192_v7, %v9413_v12  ;;  %v4052_v1 = vmul.f32 %v11194_v0, %v3806_v24  ;;  %v4053_v41 = vmul.f32 %v11195_v39, %v3806_v24  ;;  %v2496_v27 = vadd.f32 %v11196_v9, %v9413_v12  ;;  %v11198_v45 = vld [vmem:[#allocation51_spill] sm:$0xff]  ;;  %v11207_v7 = vld [vmem:[#allocation46_spill] sm:$0xff]  ;;  %v11208_v0 = vld [vmem:[#allocation32_spill] sm:$0xff] }
 0x956   : > { %11193 = vst [vmem:[#allocation70_spill] sm:$0xff] %v9666_v33  ;;  %v9672_v4 = vpack.c.bf16 %v4021_v61, %v4019_v43  ;;  %4121 = vmatpush.bf16.msrb.mxu0 %v9658_v22  ;;  %v2460_v50 = vadd.f32 %v11197_v16, %v9415_v8  ;;  %v2509_v23 = vadd.f32 %v11198_v45, %v9415_v8  ;;  %v11204_v58 = vunpack.c.l.bf16 %v11203_v49  ;;  %v11206_v5 = vld [vmem:[#allocation43_spill] sm:$0xff] }
 0x957   : > { %2597 = vst [vmem:[%s9559_s8] sm:$0xff] %v2565_v51  ;;  %v2535_v15 = vmax.f32 %v2447_v55, 0.0  ;;  %v2462_v52 = vadd.f32 %v11199_v44, %v9536_v11  ;;  %v9685_v62 = vpack.c.bf16 %v4052_v1, %v4050_v48  ;;  %v9688_v26 = vpack.c.bf16 %v4053_v41, %v4051_v32  ;;  %v11200_v51 = vld [vmem:[#allocation82_spill] sm:$0xff]  ;;  %v11214_v45 = vld [vmem:[#allocation11_spill] sm:$0xff] }
 0x958   : > { %2598 = vst [vmem:[%s9559_s8 + $0x8] sm:$0xff] %v2566_v19  ;;  %4319 = vmatpush.bf16.msra.mxu2 %v9672_v4  ;;  %v2536_v36 = vmax.f32 %v2496_v27, 0.0  ;;  %v11201_v19 = vld [vmem:[#allocation53_spill] sm:$0xff]  ;;  %v2545_v3 = vmax.f32 %v2460_v50, 0.0  ;;  %v2546_v48 = vmax.f32 %v2509_v23, 0.0  ;;  %v11205_v38 = vunpack.c.h.bf16 %v11203_v49  ;;  %v11211_v27 = vld [vmem:[#allocation12_spill] sm:$0xff] }
 0x959   : > { %v2511_v2 = vadd.f32 %v11201_v19, %v9536_v11  ;;  %11202 = vst [vmem:[#allocation75_spill] sm:$0xff] %v9693_v28  ;;  %v2567_v20 = vadd.f32 %v2535_v15, %v11204_v58  ;;  %v2547_v43 = vmax.f32 %v2462_v52, 0.0  ;;  %4134 = vmatpush.bf16.msrb.mxu1 %v9685_v62  ;;  %4368 = vmatpush.bf16.msra.mxu3 %v9688_v26  ;;  %v11209_v1 = vunpack.c.l.bf16 %v11208_v0  ;;  %v11212_v15 = vld [vmem:[#allocation37_spill] sm:$0xff] }
 0x95a   : > { %4140 = vmatpush.bf16.msra.mxu0 %v11200_v51  ;;  %v2568_v61 = vadd.f32 %v2536_v36, %v11205_v38  ;;  %v2452_v32 = vadd.f32 %v11206_v5, %v9556_v14  ;;  %v2501_v55 = vadd.f32 %v11207_v7, %v9556_v14  ;;  %v11210_v41 = vunpack.c.h.bf16 %v11208_v0  ;;  %v11217_v36 = vld [vmem:[#allocation56_spill] sm:$0xff]  ;;  %v11219_v49 = vld [vmem:[#allocation117_spill] sm:$0xff] }
 0x95b   : > { %v2548_v24 = vmax.f32 %v2511_v2, 0.0  ;;  %2599 = vst [vmem:[%s9559_s8 + $0x10] sm:$0xff] %v2567_v20  ;;  %v2577_v39 = vadd.f32 %v2545_v3, %v11209_v1  ;;  %4122 = vmatmul.bf16.vlgmr.msrb.gmra.mxu0 %v11211_v27  ;;  %v11213_v16 = vunpack.c.l.bf16 %v11212_v15  ;;  %4320 = vmatmul.bf16.vlgmr.msra.gmra.mxu2 %v11214_v45  ;;  %v11215_v23 = vunpack.c.h.bf16 %v11212_v15  ;;  %v9721_v2 = vpop.permute.xlu1 %2356  ;;  %v11220_v58 = vld [vmem:[#allocation57_spill] sm:$0xff]  ;;  %v11221_v3 = vld [vmem:[#allocation58_spill] sm:$0xff]  ;;  %v11226_v0 = vld [vmem:[#allocation48_spill] sm:$0xff] }
 0x95c   : > { %v2578_v9 = vadd.f32 %v2546_v48, %v11210_v41  ;;  %2600 = vst [vmem:[%s9559_s8 + $0x18] sm:$0xff] %v2568_v61  ;;  %v2539_v52 = vmax.f32 %v2452_v32, 0.0  ;;  %v2540_v51 = vmax.f32 %v2501_v55, 0.0  ;;  %v2467_v19 = vadd.f32 %v11217_v36, %v9583_v25  ;;  %4135 = vmatmul.bf16.vlgmr.msrb.gmra.mxu1 %v11211_v27  ;;  %4369 = vmatmul.bf16.vlgmr.msra.gmra.mxu3 %v11219_v49  ;;  %v11223_v61 = vld [vmem:[#allocation33_spill] sm:$0xff]  ;;  %v11230_v36 = vld [vmem:[#allocation31_spill] sm:$0xff] }
 0x95d   : > { %4153 = vmatpush.bf16.msra.mxu1 %v9020_v63  ;;  %v2579_v50 = vadd.f32 %v2547_v43, %v11213_v16  ;;  %v2580_v44 = vadd.f32 %v2548_v24, %v11215_v23  ;;  %v11216_v63 = vld [vmem:[#allocation84_spill] sm:$0xff]  ;;  %11218 = vst [vmem:[#allocation95_spill] sm:$0xff] %v9721_v2  ;;  %v2516_v20 = vadd.f32 %v11220_v58, %v9583_v25  ;;  %v11222_v43 = vld [vmem:[#allocation59_spill] sm:$0xff]  ;;  %v11224_v24 = vunpack.c.l.bf16 %v11223_v61  ;;  %v11227_v16 = vld [vmem:[#allocation49_spill] sm:$0xff] }
 0x95e   : > { %4141 = vmatpush.bf16.msra.mxu0 %v11216_v63  ;;  %2609 = vst [vmem:[%s9559_s8 + $0x60] sm:$0xff] %v2577_v39  ;;  %v2470_v48 = vadd.f32 %v11221_v3, %v9666_v33  ;;  %v2519_v38 = vadd.f32 %v11222_v43, %v9666_v33  ;;  %v11225_v32 = vunpack.c.h.bf16 %v11223_v61  ;;  %v2551_v55 = vmax.f32 %v2467_v19, 0.0  ;;  %v9739_v39 = vpop.f32.mrf.mxu0  ;;  %v9745_v63 = vpop.permute.xlu0 %2376  ;;  %v11233_v3 = vld [vmem:[#allocation63_spill] sm:$0xff]  ;;  %v11234_v43 = vld [vmem:[#allocation25_spill] sm:$0xff] }
 0x95f   : > { %2610 = vst [vmem:[%s9559_s8 + $0x68] sm:$0xff] %v2578_v9  ;;  %v2571_v5 = vadd.f32 %v2539_v52, %v11224_v24  ;;  %v2457_v1 = vadd.f32 %v11226_v0, %v9653_v56  ;;  %v2552_v41 = vmax.f32 %v2516_v20, 0.0  ;;  %v2506_v23 = vadd.f32 %v11227_v16, %v9653_v56  ;;  %v9747_v52 = vpop.f32.mrf.mxu1  ;;  %v11236_v24 = vld [vmem:[#allocation21_spill] sm:$0xff] }
 0x960   : > { %v2572_v7 = vadd.f32 %v2540_v51, %v11225_v32  ;;  %2611 = vst [vmem:[%s9559_s8 + $0x70] sm:$0xff] %v2579_v50  ;;  %v2553_v15 = vmax.f32 %v2470_v48, 0.0  ;;  %v2554_v9 = vmax.f32 %v2519_v38, 0.0  ;;  %v11229_v51 = vld [vmem:[#allocation86_spill] sm:$0xff]  ;;  %v11231_v19 = vunpack.c.l.bf16 %v11230_v36 }
 0x961   : > { %4154 = vmatpush.bf16.msra.mxu1 %v9148_v34  ;;  %11228 = vst [vmem:[#allocation24_spill] sm:$0xff] %v9745_v63  ;;  %v2543_v50 = vmax.f32 %v2457_v1, 0.0  ;;  %v11232_v34 = vld [vmem:[#allocation62_spill] sm:$0xff]  ;;  %v2524_v48 = vadd.f32 %v11233_v3, %v9693_v28  ;;  %v2878_v38 = vadd.f32 %v9522_v6, %v11234_v43  ;;  %v11237_v32 = vunpack.c.l.bf16 %v11236_v24  ;;  %v9769_v6 = vpop.permute.xlu2 %2384 }
 0x962   : > { %2612 = vst [vmem:[%s9559_s8 + $0x78] sm:$0xff] %v2580_v44  ;;  %4142 = vmatpush.bf16.msra.mxu0 %v11229_v51  ;;  %v2583_v58 = vadd.f32 %v2551_v55, %v11231_v19  ;;  %v2475_v20 = vadd.f32 %v11232_v34, %v9693_v28  ;;  %v11235_v44 = vunpack.c.h.bf16 %v11230_v36  ;;  %v2544_v55 = vmax.f32 %v2506_v23, 0.0  ;;  %v11239_v34 = vld [vmem:[#allocation64_spill] sm:$0xff] }
 0x963   : > { %2603 = vst [vmem:[%s9559_s8 + $0x30] sm:$0xff] %v2571_v5  ;;  %v2585_v0 = vadd.f32 %v2553_v15, %v11237_v32  ;;  %v11238_v1 = vunpack.c.h.bf16 %v11236_v24  ;;  %v2558_v19 = vmax.f32 %v2524_v48, 0.0  ;;  %v2477_v3 = vadd.f32 %v11239_v34, %v9745_v63  ;;  %v11241_v5 = vld [vmem:[#allocation13_spill] sm:$0xff]  ;;  %v11247_v24 = vld [vmem:[#allocation40_spill] sm:$0xff]  ;;  %v9787_v34 = vpop.permute.xlu1 %2368 }
 0x964   : > { %v2584_v61 = vadd.f32 %v2552_v41, %v11235_v44  ;;  %2604 = vst [vmem:[%s9559_s8 + $0x38] sm:$0xff] %v2572_v7  ;;  %v2557_v51 = vmax.f32 %v2475_v20, 0.0  ;;  %v11242_v41 = vunpack.c.l.bf16 %v11241_v5  ;;  %v11243_v7 = vld [vmem:[#allocation65_spill] sm:$0xff]  ;;  %v11245_v20 = vld [vmem:[#allocation87_spill] sm:$0xff]  ;;  %v11246_v48 = vunpack.c.h.bf16 %v11241_v5  ;;  %v10085_v28 = vld [vmem:[%s5810_s5 + $0xf8] sm:$0xff] }
 0x965   : > { %v2586_v16 = vadd.f32 %v2554_v9, %v11238_v1  ;;  %11240 = vst [vmem:[#allocation88_spill] sm:$0xff] %v9769_v6  ;;  %4155 = vmatpush.bf16.msra.mxu1 %v9195_v29  ;;  %v2526_v23 = vadd.f32 %v11243_v7, %v9745_v63  ;;  %v11244_v9 = vld [vmem:[#allocation54_spill] sm:$0xff]  ;;  %v11248_v32 = vunpack.c.l.bf16 %v11247_v24  ;;  %v11249_v1 = vld [vmem:[#allocation55_spill] sm:$0xff]  ;;  %v11252_v5 = vld [vmem:[#allocation69_spill] sm:$0xff] }
 0x966   : > { %2615 = vst [vmem:[%s9559_s8 + $0x90] sm:$0xff] %v2583_v58  ;;  %v2575_v15 = vadd.f32 %v2543_v50, %v11242_v41  ;;  %v2465_v36 = vadd.f32 %v11244_v9, %v9721_v2  ;;  %4143 = vmatpush.bf16.msra.mxu0 %v11245_v20  ;;  %v2576_v44 = vadd.f32 %v2544_v55, %v11246_v48  ;;  %v2559_v58 = vmax.f32 %v2477_v3, 0.0  ;;  %v11254_v48 = vld [vmem:[#allocation60_spill] sm:$0xff] }
 0x967   : > { %2616 = vst [vmem:[%s9559_s8 + $0x98] sm:$0xff] %v2584_v61  ;;  %v2589_v29 = vadd.f32 %v2557_v51, %v11248_v32  ;;  %v2514_v50 = vadd.f32 %v11249_v1, %v9721_v2  ;;  %v2560_v41 = vmax.f32 %v2526_v23, 0.0  ;;  %v11251_v61 = vld [vmem:[#allocation68_spill] sm:$0xff]  ;;  %v2531_v55 = vadd.f32 %v11252_v5, %v9769_v6  ;;  %v11256_v1 = vld [vmem:[#allocation15_spill] sm:$0xff] }
 0x968   : > { %11250 = vst [vmem:[#allocation113_spill] sm:$0xff] %v9787_v34  ;;  %v2549_v7 = vmax.f32 %v2465_v36, 0.0  ;;  %v2482_v9 = vadd.f32 %v11251_v61, %v9769_v6  ;;  %v11253_v51 = vunpack.c.h.bf16 %v11247_v24  ;;  %v2472_v32 = vadd.f32 %v11254_v48, %v9787_v34  ;;  %v11259_v5 = vld [vmem:[#allocation116_spill] sm:$0xff] }
 0x969   : > { %2617 = vst [vmem:[%s9559_s8 + $0xa0] sm:$0xff] %v2585_v0  ;;  %v2550_v3 = vmax.f32 %v2514_v50, 0.0  ;;  %v11255_v0 = vld [vmem:[#allocation61_spill] sm:$0xff]  ;;  %v2879_v36 = vadd.f32 %v9538_v10, %v11234_v43  ;;  %4156 = vmatpush.bf16.msra.mxu1 %v9356_v60  ;;  %v9815_v10 = vpop.f32.mrf.mxu0  ;;  %v11261_v43 = vld [vmem:[#allocation20_spill] sm:$0xff] }
 0x96a   : > { %2618 = vst [vmem:[%s9559_s8 + $0xa8] sm:$0xff] %v2586_v16  ;;  %v2590_v20 = vadd.f32 %v2558_v19, %v11253_v51  ;;  %v2521_v23 = vadd.f32 %v11255_v0, %v9787_v34  ;;  %v11257_v16 = vunpack.c.l.bf16 %v11256_v1  ;;  %v2563_v24 = vmax.f32 %v2482_v9, 0.0  ;;  %v11258_v19 = vld [vmem:[#allocation18_spill] sm:$0xff]  ;;  %4144 = vmatpush.bf16.msra.mxu0 %v11259_v5 }
 0x96b   : > { %2607 = vst [vmem:[%s9559_s8 + $0x50] sm:$0xff] %v2575_v15  ;;  %v2876_v50 = vadd.f32 %v9341_v37, %v11258_v19  ;;  %v11260_v51 = vunpack.c.h.bf16 %v11256_v1  ;;  %v2564_v0 = vmax.f32 %v2531_v55, 0.0  ;;  %v2877_v60 = vadd.f32 %v9363_v17, %v11258_v19  ;;  %v11264_v17 = vld [vmem:[#allocation29_spill] sm:$0xff] }
 0x96c   : > { %v2591_v61 = vadd.f32 %v2559_v58, %v11257_v16  ;;  %2608 = vst [vmem:[%s9559_s8 + $0x58] sm:$0xff] %v2576_v44  ;;  %v11262_v15 = vunpack.c.l.bf16 %v11261_v43  ;;  %v2555_v9 = vmax.f32 %v2472_v32, 0.0  ;;  %v9822_v16 = vpop.f32.mrf.mxu1  ;;  %v11263_v44 = vunpack.c.h.bf16 %v11261_v43 }
 0x96d   : > { %v2592_v48 = vadd.f32 %v2560_v41, %v11260_v51  ;;  %2621 = vst [vmem:[%s9559_s8 + $0xc0] sm:$0xff] %v2589_v29  ;;  %v9820_v37 = vpack.c.bf16 %v2878_v38, %v2876_v50  ;;  %v2556_v55 = vmax.f32 %v2521_v23, 0.0  ;;  %v9827_v1 = vpack.c.bf16 %v2879_v36, %v2877_v60  ;;  %4157 = vmatpush.bf16.msra.mxu1 %v9495_v53  ;;  %v11268_v53 = vld [vmem:[#allocation27_spill] sm:$0xff]  ;;  %v11270_v36 = vld [vmem:[#allocation66_spill] sm:$0xff] }
 0x96e   : > { %v2581_v58 = vadd.f32 %v2549_v7, %v11262_v15  ;;  %2622 = vst [vmem:[%s9559_s8 + $0xc8] sm:$0xff] %v2590_v20  ;;  %v2582_v41 = vadd.f32 %v2550_v3, %v11263_v44  ;;  %v11265_v29 = vunpack.c.l.bf16 %v11264_v17  ;;  %4145 = vmatpush.bf16.msra.mxu0 %v9193_v31  ;;  %v11266_v38 = vunpack.c.h.bf16 %v11264_v17  ;;  %v9838_v3 = vpop.permute.xlu1 %2380  ;;  %v11279_v17 = vld [vmem:[#allocation131_spill] sm:$0xff] }
 0x96f   : > { %2623 = vst [vmem:[%s9559_s8 + $0xd0] sm:$0xff] %v2591_v61  ;;  %4325 = vmatmul.bf16.gmra.mxu2 %v9820_v37  ;;  %4374 = vmatmul.bf16.gmra.mxu3 %v9827_v1  ;;  %v11269_v32 = vunpack.c.l.bf16 %v11268_v53  ;;  %v2480_v61 = vadd.f32 %v11270_v36, %v9838_v3  ;;  %v11272_v19 = vunpack.c.h.bf16 %v11268_v53  ;;  %v11284_v53 = vld [vmem:[#allocation89_spill] sm:$0xff] }
 0x970   : > { %v2595_v7 = vadd.f32 %v2563_v24, %v11265_v29  ;;  %2624 = vst [vmem:[%s9559_s8 + $0xd8] sm:$0xff] %v2592_v48  ;;  %v2596_v20 = vadd.f32 %v2564_v0, %v11266_v38  ;;  %v11271_v24 = vld [vmem:[#allocation67_spill] sm:$0xff]  ;;  %v11273_v48 = vld [vmem:[#allocation36_spill] sm:$0xff] }
 0x971   : > { %11267 = vst [vmem:[#allocation126_spill] sm:$0xff] %v9838_v3  ;;  %v2587_v23 = vadd.f32 %v2555_v9, %v11269_v32  ;;  %v2529_v31 = vadd.f32 %v11271_v24, %v9838_v3  ;;  %v2588_v50 = vadd.f32 %v2556_v55, %v11272_v19  ;;  %4158 = vmatpush.bf16.msra.mxu1 %v9562_v35  ;;  %v2561_v5 = vmax.f32 %v2480_v61, 0.0  ;;  %v11276_v35 = vld [vmem:[#allocation81_spill] sm:$0xff]  ;;  %v11280_v29 = vld [vmem:[#allocation83_spill] sm:$0xff]  ;;  %v11281_v38 = vld [vmem:[#allocation132_spill] sm:$0xff] }
 0x972   : > { %2613 = vst [vmem:[%s9559_s8 + $0x80] sm:$0xff] %v2581_v58  ;;  %4146 = vmatpush.bf16.msra.mxu0 %v9468_v46  ;;  %v11274_v0 = vunpack.c.l.bf16 %v11273_v48  ;;  %v11275_v43 = vunpack.c.h.bf16 %v11273_v48  ;;  %v2772_v58 = vpop.f32.mrf.mxu0  ;;  %v11277_v46 = vld [vmem:[#allocation6_spill] sm:$0xff]  ;;  %v11278_v55 = vld [vmem:[#allocation5_spill] sm:$0xff] }
 0x973   : > { %2614 = vst [vmem:[%s9559_s8 + $0x88] sm:$0xff] %v2582_v41  ;;  %v2562_v51 = vmax.f32 %v2529_v31, 0.0  ;;  %v2882_v44 = vadd.f32 %v9739_v39, %v11277_v46  ;;  %v2883_v41 = vadd.f32 %v9747_v52, %v11277_v46  ;;  %v11282_v52 = vld [vmem:[#allocation85_spill] sm:$0xff]  ;;  %v11285_v32 = vld [vmem:[#allocation94_spill] sm:$0xff] }
 0x974   : > { %2627 = vst [vmem:[%s9559_s8 + $0xf0] sm:$0xff] %v2595_v7  ;;  %v2593_v60 = vadd.f32 %v2561_v5, %v11274_v0  ;;  %v2841_v9 = vpop.f32.mrf.mxu1  ;;  %v11288_v24 = vld [vmem:[#allocation10_spill] sm:$0xff] }
 0x975   : > { %2628 = vst [vmem:[%s9559_s8 + $0xf8] sm:$0xff] %v2596_v20  ;;  %v2594_v15 = vadd.f32 %v2562_v51, %v11275_v43  ;;  %4159 = vmatpush.bf16.msra.mxu1 %v9600_v54  ;;  %v2880_v54 = vadd.f32 %v9655_v21, %v11278_v55  ;;  %v11283_v21 = vld [vmem:[#allocation128_spill] sm:$0xff]  ;;  %v2884_v31 = vadd.f32 %v9815_v10, %v11288_v24  ;;  %v11289_v5 = vld [vmem:[#allocation74_spill] sm:$0xff] }
 0x976   : > { %2619 = vst [vmem:[%s9559_s8 + $0xb0] sm:$0xff] %v2587_v23  ;;  %4147 = vmatpush.bf16.msra.mxu0 %v9672_v4  ;;  %v2881_v4 = vadd.f32 %v9668_v42, %v11278_v55  ;;  %v11286_v42 = vld [vmem:[#allocation115_spill] sm:$0xff]  ;;  %v11287_v23 = vld [vmem:[#allocation9_spill] sm:$0xff] }
 0x977   : > { %2620 = vst [vmem:[%s9559_s8 + $0xb8] sm:$0xff] %v2588_v50  ;;  %v4202_v7 = vpack.c.bf16 %v2882_v44, %v2880_v54  ;;  %v2886_v36 = vadd.f32 %v2772_v58, %v11287_v23  ;;  %v2885_v50 = vadd.f32 %v9822_v16, %v11288_v24 }
 0x978   : > { %2625 = vst [vmem:[%s9559_s8 + $0xe0] sm:$0xff] %v2593_v60  ;;  %v4203_v39 = vpack.c.bf16 %v2883_v41, %v2881_v4 }
 0x979   : > { %2626 = vst [vmem:[%s9559_s8 + $0xe8] sm:$0xff] %v2594_v15  ;;  %4160 = vmatpush.bf16.msra.mxu1 %v9688_v26  ;;  %4148 = vmatmul.bf16.vlgmr.msra.gmra.mxu0 %v11211_v27  ;;  %v4204_v51 = vpack.c.bf16 %v2886_v36, %v2884_v31  ;;  %v11296_v36 = vld [vmem:[#allocation14_spill] sm:$0xff] }
 0x97a   : > { %4214 = vmatpush.bf16.msrb.mxu0 %v11276_v35  ;;  %v2775_v26 = vpop.f32.mrf.mxu0 }
 0x97c   : > { %4161 = vmatmul.bf16.vlgmr.msra.gmra.mxu1 %v11211_v27  ;;  %v2844_v20 = vpop.f32.mrf.mxu1  ;;  %v2887_v27 = vadd.f32 %v2841_v9, %v11287_v23 }
 0x97d   : > { %4263 = vmatpush.bf16.msrb.mxu1 %v11279_v17 }
 0x97e   : > { %4215 = vmatpush.bf16.msrb.mxu0 %v11280_v29  ;;  %v4205_v48 = vpack.c.bf16 %v2887_v27, %v2885_v50 }
 0x97f   : > { %4330 = vmatmul.bf16.gmra.mxu2 %v4202_v7  ;;  %4379 = vmatmul.bf16.gmra.mxu3 %v4203_v39 }
 0x981   : > { %4264 = vmatpush.bf16.msrb.mxu1 %v11281_v38 }
 0x982   : > { %4216 = vmatpush.bf16.msrb.mxu0 %v11282_v52  ;;  %v2777_v61 = vpop.f32.mrf.mxu0 }
 0x984   : > { %v2846_v19 = vpop.f32.mrf.mxu1 }
 0x985   : > { %4265 = vmatpush.bf16.msrb.mxu1 %v11283_v21 }
 0x986   : > { %4217 = vmatpush.bf16.msrb.mxu0 %v11284_v53 }
 0x989   : > { %4266 = vmatpush.bf16.msrb.mxu1 %v11285_v32 }
 0x98a   : > { %4218 = vmatpush.bf16.msrb.mxu0 %v11286_v42  ;;  %v2780_v0 = vpop.f32.mrf.mxu0 }
 0x98c   : > { %v2849_v10 = vpop.f32.mrf.mxu1 }
 0x98d   : > { %4267 = vmatpush.bf16.msrb.mxu1 %v9458_v47  ;;  %v11290_v47 = vld [vmem:[#allocation7_spill] sm:$0xff] }
 0x98e   : > { %4219 = vmatpush.bf16.msrb.mxu0 %v11289_v5  ;;  %v2890_v16 = vadd.f32 %v2777_v61, %v11290_v47  ;;  %v2891_v60 = vadd.f32 %v2846_v19, %v11290_v47  ;;  %v11297_v61 = vld [vmem:[#allocation26_spill] sm:$0xff] }
 0x98f   : > { %4335 = vmatmul.bf16.gmra.mxu2 %v4204_v51  ;;  %4384 = vmatmul.bf16.gmra.mxu3 %v4205_v48 }
 0x991   : > { %4268 = vmatpush.bf16.msrb.mxu1 %v9548_v57  ;;  %v11291_v57 = vld [vmem:[#allocation8_spill] sm:$0xff] }
 0x992   : > { %4220 = vmatpush.bf16.msrb.mxu0 %v9420_v13  ;;  %v2888_v43 = vadd.f32 %v2775_v26, %v11291_v57  ;;  %v2889_v13 = vadd.f32 %v2844_v20, %v11291_v57  ;;  %v2782_v58 = vpop.f32.mrf.mxu0  ;;  %v11295_v26 = vld [vmem:[#allocation28_spill] sm:$0xff] }
 0x994   : > { %v4206_v15 = vpack.c.bf16 %v2890_v16, %v2888_v43  ;;  %v2851_v9 = vpop.f32.mrf.mxu1 }
 0x995   : > { %4269 = vmatpush.bf16.msrb.mxu1 %v9586_v59  ;;  %v4207_v59 = vpack.c.bf16 %v2891_v60, %v2889_v13 }
 0x996   : > { %4221 = vmatpush.bf16.msrb.mxu0 %v9658_v22 }
 0x999   : > { %4270 = vmatpush.bf16.msrb.mxu1 %v9685_v62  ;;  %4222 = vmatmul.bf16.vlgmr.msrb.gmra.mxu0 %v11214_v45  ;;  %v11292_v62 = vld [vmem:[#allocation17_spill] sm:$0xff] }
 0x99a   : > { %v2785_v22 = vpop.f32.mrf.mxu0  ;;  %v2894_v45 = vadd.f32 %v2782_v58, %v11292_v62  ;;  %v2895_v46 = vadd.f32 %v2851_v9, %v11292_v62 }
 0x99b   : > { %v2896_v52 = vadd.f32 %v2785_v22, %v11295_v26 }
 0x99c   : > { %4271 = vmatmul.bf16.vlgmr.msrb.gmra.mxu1 %v11219_v49  ;;  %v2854_v35 = vpop.f32.mrf.mxu1  ;;  %v11293_v49 = vld [vmem:[#allocation23_spill] sm:$0xff] }
 0x99d   : > { %v2892_v44 = vadd.f32 %v2780_v0, %v11293_v49  ;;  %v2893_v41 = vadd.f32 %v2849_v10, %v11293_v49 }
 0x99f   : > { %4340 = vmatmul.bf16.gmra.mxu2 %v4206_v15  ;;  %4389 = vmatmul.bf16.gmra.mxu3 %v4207_v59  ;;  %v4208_v55 = vpack.c.bf16 %v2894_v45, %v2892_v44  ;;  %v4209_v54 = vpack.c.bf16 %v2895_v46, %v2893_v41 }
 0x9a2   : > { %v2787_v17 = vpop.f32.mrf.mxu0 }
 0x9a4   : > { %v2856_v4 = vpop.f32.mrf.mxu1 }
 0x9a9   : > { %4227 = vmatmul.bf16.gmra.mxu0 %v9820_v37  ;;  %v11294_v37 = vld [vmem:[#allocation30_spill] sm:$0xff] }
 0x9aa   : > { %v2898_v29 = vadd.f32 %v2787_v17, %v11294_v37  ;;  %v2899_v38 = vadd.f32 %v2856_v4, %v11294_v37  ;;  %v2790_v20 = vpop.f32.mrf.mxu0 }
 0x9ac   : > { %4276 = vmatmul.bf16.gmra.mxu1 %v9827_v1  ;;  %v2897_v1 = vadd.f32 %v2854_v35, %v11295_v26  ;;  %v4210_v21 = vpack.c.bf16 %v2898_v29, %v2896_v52  ;;  %v2859_v53 = vpop.f32.mrf.mxu1 }
 0x9ad   : > { %v2901_v24 = vadd.f32 %v2859_v53, %v11297_v61 }
 0x9ae   : > { %v4211_v32 = vpack.c.bf16 %v2899_v38, %v2897_v1 }
 0x9af   : > { %4345 = vmatmul.bf16.gmra.mxu2 %v4208_v55  ;;  %4394 = vmatmul.bf16.gmra.mxu3 %v4209_v54 }
 0x9b2   : > { %v2792_v42 = vpop.f32.mrf.mxu0 }
 0x9b4   : > { %v2861_v23 = vpop.f32.mrf.mxu1 }
 0x9b5   : > { %v2903_v27 = vadd.f32 %v2861_v23, %v11296_v36 }
 0x9b7   : > { %v4213_v19 = vpack.c.bf16 %v2903_v27, %v2901_v24 }
 0x9b9   : > { %4232 = vmatmul.bf16.gmra.mxu0 %v4202_v7  ;;  %v2902_v7 = vadd.f32 %v2792_v42, %v11296_v36 }
 0x9bc   : > { %4281 = vmatmul.bf16.gmra.mxu1 %v4203_v39  ;;  %v2900_v39 = vadd.f32 %v2790_v20, %v11297_v61 }
 0x9be   : > { %v4212_v31 = vpack.c.bf16 %v2902_v7, %v2900_v39 }
 0x9bf   : > { %4350 = vmatmul.bf16.gmra.mxu2 %v4210_v21  ;;  %4399 = vmatmul.bf16.gmra.mxu3 %v4211_v32 }
 0x9c9   : > { %4237 = vmatmul.bf16.gmra.mxu0 %v4204_v51 }
 0x9cc   : > { %4286 = vmatmul.bf16.gmra.mxu1 %v4205_v48 }
 0x9cf   : > { %4355 = vmatmul.bf16.gmra.mxu2 %v4212_v31  ;;  %4404 = vmatmul.bf16.gmra.mxu3 %v4213_v19 }
 0x9d8   : > { %v4123_v50 = vpop.f32.mrf.mxu0 }
 0x9d9   : > { %4242 = vmatmul.bf16.gmra.mxu0 %v4206_v15  ;;  %v4136_v5 = vpop.f32.mrf.mxu1 }
 0x9da   : > { %v4137_v0 = vadd.f32 %v4136_v5, %v4123_v50  ;;  %v9927_v5 = vld [vmem:[%s5810_s5 + $0x98] sm:$0xff] }
 0x9dc   : > { %4291 = vmatmul.bf16.gmra.mxu1 %v4207_v59  ;;  %v4166_v15 = vadd.f32 1e-09, %v4137_v0 }
 0x9de   : > { %v4321_v10 = vpop.f32.mrf.mxu2  ;;  %5624 = vrcp.f32 %v4166_v15  ;;  %v4179_v39 = vand.u32 2147483648, %v4166_v15  ;;  %vm4173_vm6 = vweird.f32 %v4166_v15 }
 0x9df   : > { %v4370_v51 = vpop.f32.mrf.mxu3 }
 0x9e0   : > { %v4125_v47 = vpop.f32.mrf.mxu0  ;;  %v9918_v16 = vadd.f32 %v4370_v51, %v4321_v10  ;;  %v9931_v10 = vld [vmem:[%s5810_s5 + $0xa0] sm:$0xff] }
 0x9e1   : > { %v4138_v60 = vpop.f32.mrf.mxu1 }
 0x9e4   : > { %v5625_v44 = vpop.eup %5624 }
 0x9e5   : > { %vm4174_vm13 = vweird.f32 %v5625_v44 }
 0x9e6   : > { %v4323_v48 = vpop.f32.mrf.mxu2  ;;  %vm4175_vm7 = vmor %vm4173_vm6, %vm4174_vm13 }
 0x9e7   : > { %v4372_v57 = vpop.f32.mrf.mxu3 }
 0x9e8   : > { %v9920_v43 = vadd.f32 %v4372_v57, %v4323_v48  ;;  %v4180_v48 = vor.u32 1.1754944e-38, %v4179_v39  ;;  %v9936_v57 = vld [vmem:[%s5810_s5 + $0xa8] sm:$0xff] }
 0x9e9   : > { %4247 = vmatmul.bf16.gmra.mxu0 %v4208_v55  ;;  %v4169_v55 = vmul.f32 %v5625_v44, %v4166_v15 }
 0x9eb   : > { %v4170_v38 = vsub.f32 1.0, %v4169_v55 }
 0x9ec   : > { %4296 = vmatmul.bf16.gmra.mxu1 %v4209_v54 }
 0x9ed   : > { %v4171_v20 = vmul.f32 %v5625_v44, %v4170_v38 }
 0x9ef   : > { %v4172_v27 = vadd.f32 %v5625_v44, %v4171_v20 }
 0x9f2   : > { %v4326_v13 = vpop.f32.mrf.mxu2  ;;  %v4375_v58 = vpop.f32.mrf.mxu3 }
 0x9f3   : > { %v9922_v9 = vadd.f32 %v4375_v58, %v4326_v13 }
 0x9f6   : > { %v4149_v59 = vpop.f32.mrf.mxu0 }
 0x9f9   : > { %4252 = vmatmul.bf16.gmra.mxu0 %v4210_v21  ;;  %v4162_v22 = vpop.f32.mrf.mxu1 }
 0x9fa   : > { %v4328_v62 = vpop.f32.mrf.mxu2  ;;  %v4163_v45 = vadd.f32 %v4162_v22, %v4149_v59  ;;  %v4377_v35 = vpop.f32.mrf.mxu3  ;;  %v10613_v22 = vunpack.c.h.bf16 %v9927_v5 }
 0x9fb   : > { %v4378_v46 = vadd.f32 %v4377_v35, %v4328_v62  ;;  %v10611_v62 = vunpack.c.h.bf16 %v9931_v10 }
 0x9fc   : > { %4301 = vmatmul.bf16.gmra.mxu1 %v4211_v32  ;;  %v4167_v49 = vadd.f32 1e-09, %v4163_v45  ;;  %v10609_v45 = vunpack.c.h.bf16 %v9936_v57 }
 0x9fe   : > { %5626 = vrcp.f32 %v4167_v49  ;;  %v4151_v41 = vpop.f32.mrf.mxu0  ;;  %v4194_v1 = vand.u32 2147483648, %v4167_v49  ;;  %v4192_v53 = vand.u32 2147483647, %v4167_v49  ;;  %vm4188_vm12 = vweird.f32 %v4167_v49 }
 0x9ff   : > { %v9948_v41 = vld [vmem:[%s5810_s5 + $0x80] sm:$0xff] }
 0xa00   : > { %v4195_v7 = vor.u32 1.1754944e-38, %v4194_v1  ;;  %vm4193_vm0 = vcmp.eq.f32.partialorder %v4192_v53, 8.507059e+37  ;;  %v10619_v53 = vunpack.c.h.bf16 %v9948_v41 }
 0xa01   : > { %v4164_v54 = vpop.f32.mrf.mxu1 }
 0xa02   : > { %v4331_v17 = vpop.f32.mrf.mxu2  ;;  %v4380_v4 = vpop.f32.mrf.mxu3  ;;  %v9951_v54 = vld [vmem:[%s5810_s5 + $0x88] sm:$0xff] }
 0xa03   : > { %v4381_v37 = vadd.f32 %v4380_v4, %v4331_v17 }
 0xa04   : > { %v5627_v29 = vpop.eup %5626 }
 0xa05   : > { %v4184_v26 = vmul.f32 %v5627_v29, %v4167_v49  ;;  %vm4189_vm1 = vweird.f32 %v5627_v29  ;;  %v9943_v49 = vld [vmem:[%s5810_s5 + $0x90] sm:$0xff] }
 0xa06   : > { %vm4190_vm9 = vmor %vm4188_vm12, %vm4189_vm1 }
 0xa07   : > { %v4185_v52 = vsub.f32 1.0, %v4184_v26 }
 0xa09   : > { %4257 = vmatmul.bf16.gmra.mxu0 %v4212_v31  ;;  %v4186_v21 = vmul.f32 %v5627_v29, %v4185_v52  ;;  %v4177_v31 = vand.u32 2147483647, %v4166_v15  ;;  %v10615_v52 = vunpack.c.h.bf16 %v9943_v49 }
 0xa0a   : > { %v4333_v32 = vpop.f32.mrf.mxu2  ;;  %v4382_v42 = vpop.f32.mrf.mxu3 }
 0xa0b   : > { %v4187_v23 = vadd.f32 %v5627_v29, %v4186_v21  ;;  %v4383_v36 = vadd.f32 %v4382_v42, %v4333_v32  ;;  %vm4178_vm14 = vcmp.eq.f32.partialorder %v4177_v31, 8.507059e+37  ;;  %v10617_v32 = vunpack.c.h.bf16 %v9951_v54  ;;  %v9998_v31 = vld [vmem:[%s5810_s5 + $0xb0] sm:$0xff] }
 0xa0c   : > { %4306 = vmatmul.bf16.gmra.mxu1 %v4213_v19  ;;  %v4176_v19 = vsel %vm4175_vm7, %v5625_v44, %v4172_v27  ;;  %11299 = vst [vmem:[#allocation125_spill] sm:$0xff] %v9998_v31 }
 0xa0d   : > { %v4191_v61 = vsel %vm4190_vm9, %v5627_v29, %v4187_v23  ;;  %v4181_v59 = vsel %vm4178_vm14, %v4180_v48, %v4176_v19 }
 0xa0e   : > { %v4196_v24 = vsel %vm4193_vm0, %v4195_v7, %v4191_v61  ;;  %v9945_v44 = vperm.slane %v4181_v59, 0  ;;  %v9993_v61 = vld [vmem:[%s5810_s5 + $0xb8] sm:$0xff]  ;;  %v10610_v59 = vunpack.c.l.bf16 %v9951_v54  ;;  %v10088_v7 = vld [vmem:[%s5810_s5 + $0xe8] sm:$0xff] }
 0xa0f   : > { %v9924_v50 = vperm.slane %v4196_v24, 0  ;;  %11298 = vst [vmem:[#allocation122_spill] sm:$0xff] %v9993_v61  ;;  %v10607_v19 = vunpack.c.h.bf16 %v9993_v61  ;;  %v10626_v24 = vunpack.c.l.bf16 %v9931_v10 }
 0xa11   : > { %v4419_v0 = vmul.f32 %v9924_v50, %v4378_v46  ;;  %v4421_v51 = vmul.f32 %v9924_v50, %v4381_v37  ;;  %v4423_v47 = vmul.f32 %v9924_v50, %v4383_v36  ;;  %v4417_v26 = vmul.f32 %v9924_v50, %v9922_v9 }
 0xa12   : > { %v4336_v60 = vpop.f32.mrf.mxu2  ;;  %v4385_v13 = vpop.f32.mrf.mxu3  ;;  %v4413_v20 = vmul.f32 %v9924_v50, %v9918_v16  ;;  %v4415_v21 = vmul.f32 %v9924_v50, %v9920_v43 }
 0xa13   : > { %v4386_v58 = vadd.f32 %v4385_v13, %v4336_v60  ;;  %v9955_v17 = vsub.f32 %v10613_v22, %v4419_v0  ;;  %v9959_v4 = vsub.f32 %v10611_v62, %v4421_v51  ;;  %v9963_v37 = vsub.f32 %v10609_v45, %v4423_v47 }
 0xa14   : > { %v9977_v36 = vsub.f32 %v10615_v52, %v4417_v26  ;;  %v9981_v9 = vsub.f32 %v10619_v53, %v4413_v20  ;;  %v9985_v16 = vsub.f32 %v10617_v32, %v4415_v21  ;;  %v10608_v60 = vunpack.c.h.bf16 %v9998_v31 }
 0xa15   : > { %v4425_v35 = vmul.f32 %v9924_v50, %v4386_v58  ;;  %v10612_v26 = vunpack.c.l.bf16 %v9948_v41  ;;  %v10621_v53 = vunpack.c.l.bf16 %v9936_v57 }
 0xa16   : > { %v4223_v15 = vpop.f32.mrf.mxu0 }
 0xa19   : > { %v4272_v46 = vpop.f32.mrf.mxu1 }
 0xa1a   : > { %v4273_v55 = vadd.f32 %v4272_v46, %v4223_v15  ;;  %v4338_v38 = vpop.f32.mrf.mxu2  ;;  %v4387_v1 = vpop.f32.mrf.mxu3 }
 0xa1b   : > { %v4388_v42 = vadd.f32 %v4387_v1, %v4338_v38  ;;  %v10011_v38 = vsub.f32 %v10608_v60, %v4425_v35 }
 0xa1c   : > { %v4412_v29 = vmul.f32 %v9945_v44, %v4273_v55 }
 0xa1d   : > { %v4427_v43 = vmul.f32 %v9924_v50, %v4388_v42 }
 0xa1e   : > { %v4225_v23 = vpop.f32.mrf.mxu0 }
 0xa1f   : > { %v10004_v58 = vsub.f32 %v10607_v19, %v4427_v43 }
 0xa21   : > { %v4274_v39 = vpop.f32.mrf.mxu1 }
 0xa22   : > { %v4275_v0 = vadd.f32 %v4274_v39, %v4225_v23  ;;  %v4341_v51 = vpop.f32.mrf.mxu2  ;;  %v4390_v47 = vpop.f32.mrf.mxu3  ;;  %v10023_v39 = vsub.f32 %v10612_v26, %v4412_v29 }
 0xa23   : > { %v4391_v48 = vadd.f32 %v4390_v47, %v4341_v51  ;;  %v10028_v47 = vld [vmem:[%s5810_s5 + $0xc8] sm:$0xff] }
 0xa24   : > { %v4414_v15 = vmul.f32 %v9945_v44, %v4275_v0 }
 0xa25   : > { %v4429_v46 = vmul.f32 %v9924_v50, %v4391_v48 }
 0xa26   : > { %v4228_v13 = vpop.f32.mrf.mxu0  ;;  %v10016_v20 = vsub.f32 %v10610_v59, %v4414_v15  ;;  %v10618_v59 = vunpack.c.l.bf16 %v9927_v5 }
 0xa29   : > { %v4277_v55 = vpop.f32.mrf.mxu1 }
 0xa2a   : > { %v4278_v1 = vadd.f32 %v4277_v55, %v4228_v13  ;;  %v4343_v42 = vpop.f32.mrf.mxu2  ;;  %v4392_v43 = vpop.f32.mrf.mxu3  ;;  %v10031_v13 = vld [vmem:[%s5810_s5 + $0xc0] sm:$0xff]  ;;  %v10614_v55 = vunpack.c.h.bf16 %v10028_v47 }
 0xa2b   : > { %v4393_v0 = vadd.f32 %v4392_v43, %v4343_v42  ;;  %v10616_v29 = vunpack.c.h.bf16 %v10031_v13 }
 0xa2c   : > { %v4416_v21 = vmul.f32 %v9945_v44, %v4278_v1 }
 0xa2d   : > { %v4431_v15 = vmul.f32 %v9924_v50, %v4393_v0  ;;  %v10048_v0 = vsub.f32 %v10616_v29, %v4429_v46 }
 0xa2e   : > { %v4230_v35 = vpop.f32.mrf.mxu0 }
 0xa2f   : > { %v10042_v43 = vsub.f32 %v10614_v55, %v4431_v15 }
 0xa31   : > { %v4279_v48 = vpop.f32.mrf.mxu1 }
 0xa32   : > { %v4280_v1 = vadd.f32 %v4279_v48, %v4230_v35  ;;  %v10035_v19 = vpop.f32.mrf.mxu2  ;;  %v10037_v60 = vpop.f32.mrf.mxu3  ;;  %v10620_v35 = vunpack.c.l.bf16 %v9943_v49 }
 0xa34   : > { %v4418_v45 = vmul.f32 %v9945_v44, %v4280_v1  ;;  %v10060_v52 = vsub.f32 %v10620_v35, %v4416_v21 }
 0xa36   : > { %v4233_v42 = vpop.f32.mrf.mxu0  ;;  %v10053_v26 = vsub.f32 %v10618_v59, %v4418_v45 }
 0xa39   : > { %v4282_v62 = vpop.f32.mrf.mxu1 }
 0xa3a   : > { %v4283_v48 = vadd.f32 %v4282_v62, %v4233_v42  ;;  %v4348_v15 = vpop.f32.mrf.mxu2  ;;  %v4397_v55 = vpop.f32.mrf.mxu3 }
 0xa3b   : > { %v4398_v33 = vadd.f32 %v4397_v55, %v4348_v15  ;;  %v11302_v55 = vunpack.c.h.bf16 %v10085_v28 }
 0xa3c   : > { %v4420_v22 = vmul.f32 %v9945_v44, %v4283_v48 }
 0xa3e   : > { %v4235_v46 = vpop.f32.mrf.mxu0 }
 0xa41   : > { %v4284_v62 = vpop.f32.mrf.mxu1 }
 0xa42   : > { %v4285_v42 = vadd.f32 %v4284_v62, %v4235_v46  ;;  %v4351_v32 = vpop.f32.mrf.mxu2  ;;  %v4400_v45 = vpop.f32.mrf.mxu3  ;;  %v10074_v62 = vsub.f32 %v10626_v24, %v4420_v22  ;;  %v10082_v22 = vld [vmem:[%s5810_s5 + $0xf0] sm:$0xff] }
 0xa44   : > { %v4422_v48 = vmul.f32 %v9945_v44, %v4285_v42 }
 0xa46   : > { %v4238_v59 = vpop.f32.mrf.mxu0  ;;  %v10069_v21 = vsub.f32 %v10621_v53, %v4422_v48 }
 0xa49   : > { %v4287_v51 = vpop.f32.mrf.mxu1 }
 0xa4a   : > { %v4288_v27 = vadd.f32 %v4287_v51, %v4238_v59  ;;  %v4353_v29 = vpop.f32.mrf.mxu2  ;;  %v4402_v46 = vpop.f32.mrf.mxu3 }
 0xa4c   : > { %v4424_v35 = vmul.f32 %v9945_v44, %v4288_v27  ;;  %v10637_v27 = vunpack.c.l.bf16 %v9993_v61 }
 0xa4e   : > { %v4240_v42 = vpop.f32.mrf.mxu0 }
 0xa51   : > { %v4289_v59 = vpop.f32.mrf.mxu1 }
 0xa52   : > { %v4290_v51 = vadd.f32 %v4289_v59, %v4240_v42  ;;  %v4356_v23 = vpop.f32.mrf.mxu2  ;;  %v4405_v48 = vpop.f32.mrf.mxu3  ;;  %v4403_v42 = vadd.f32 %v4402_v46, %v4353_v29 }
 0xa53   : > { %v4406_v24 = vadd.f32 %v4405_v48, %v4356_v23  ;;  %v10098_v23 = vld [vmem:[%s5810_s5 + $0xe0] sm:$0xff] }
 0xa54   : > { %v4426_v1 = vmul.f32 %v9945_v44, %v4290_v51  ;;  %v4439_v2 = vmul.f32 %v9924_v50, %v4403_v42  ;;  %v10122_v42 = vld [vmem:[%s5810_s5 + $0xd0] sm:$0xff] }
 0xa55   : > { %v4441_v29 = vmul.f32 %v9924_v50, %v4406_v24  ;;  %v4396_v24 = vadd.f32 %v10037_v60, %v10035_v19  ;;  %v4465_v60 = vunpack.c.h.bf16 %v10122_v42 }
 0xa56   : > { %v4243_v53 = vpop.f32.mrf.mxu0  ;;  %v10092_v59 = vsub.f32 %v10637_v27, %v4426_v1  ;;  %v10107_v27 = vld [vmem:[%s5810_s5 + $0xd8] sm:$0xff] }
 0xa57   : > { %v4433_v19 = vmul.f32 %v9924_v50, %v4396_v24 }
 0xa59   : > { %v4292_v6 = vpop.f32.mrf.mxu1 }
 0xa5a   : > { %v4293_v63 = vadd.f32 %v4292_v6, %v4243_v53  ;;  %v4358_v34 = vpop.f32.mrf.mxu2  ;;  %v4407_v3 = vpop.f32.mrf.mxu3  ;;  %v4401_v6 = vadd.f32 %v4400_v45, %v4351_v32  ;;  %v11300_v53 = vunpack.c.l.bf16 %v9998_v31  ;;  %v4435_v32 = vmul.f32 %v9924_v50, %v4398_v33 }
 0xa5b   : > { %v4408_v1 = vadd.f32 %v4407_v3, %v4358_v34  ;;  %v11301_v3 = vunpack.c.h.bf16 %v10082_v22  ;;  %v4462_v33 = vunpack.c.l.bf16 %v10028_v47 }
 0xa5c   : > { %v4428_v51 = vmul.f32 %v9945_v44, %v4293_v63  ;;  %v10102_v48 = vsub.f32 %v11300_v53, %v4424_v35  ;;  %v4471_v63 = vunpack.c.h.bf16 %v10088_v7  ;;  %v4437_v34 = vmul.f32 %v9924_v50, %v4401_v6 }
 0xa5d   : > { %v4443_v25 = vmul.f32 %v9924_v50, %v4408_v1  ;;  %v4505_v53 = vsub.f32 %v11301_v3, %v4441_v29  ;;  %v4467_v1 = vunpack.c.h.bf16 %v10107_v27  ;;  %v11303_v6 = vunpack.c.h.bf16 %v10098_v23 }
 0xa5e   : > { %v4245_v46 = vpop.f32.mrf.mxu0  ;;  %v4503_v35 = vsub.f32 %v4471_v63, %v4439_v2  ;;  %v4460_v50 = vunpack.c.l.bf16 %v10031_v13 }
 0xa5f   : > { %v4507_v15 = vsub.f32 %v11302_v55, %v4443_v25  ;;  %v4501_v29 = vsub.f32 %v11303_v6, %v4437_v34  ;;  %v4499_v3 = vsub.f32 %v4467_v1, %v4435_v32 }
 0xa60   : > { %v4492_v24 = vsub.f32 %v4460_v50, %v4428_v51  ;;  %v11307_v51 = vpack.c.bf16 %v9955_v17, %v9977_v36 }
 0xa61   : > { %v4294_v45 = vpop.f32.mrf.mxu1  ;;  %v4523_v61 = vpack.c.bf16 %v4507_v15, %v4505_v53  ;;  %v4521_v31 = vpack.c.bf16 %v4503_v35, %v4501_v29  ;;  %v11304_v35 = vpack.c.bf16 %v10042_v43, %v10048_v0  ;;  %v11305_v53 = vpack.c.bf16 %v10004_v58, %v10011_v38  ;;  %v5656_v58 = vld [vmem:[%s10382_s2] sm:$0xff] }
 0xa62   : > { %v4295_v11 = vadd.f32 %v4294_v45, %v4245_v46  ;;  %v4497_v46 = vsub.f32 %v4465_v60, %v4433_v19  ;;  %v11306_v19 = vpack.c.bf16 %v9963_v37, %v9959_v4  ;;  %v11308_v43 = vpack.c.bf16 %v9985_v16, %v9981_v9 }
 0xa63   : > { %4573 = vmatpush.bf16.msra.mxu1 %v4523_v61  ;;  %v4474_v9 = vunpack.c.l.bf16 %v10085_v28 }
 0xa64   : > { %v4430_v55 = vmul.f32 %v9945_v44, %v4295_v11  ;;  %v4519_v61 = vpack.c.bf16 %v4499_v3, %v4497_v46 }
 0xa66   : > { %v4248_v25 = vpop.f32.mrf.mxu0  ;;  %v4494_v45 = vsub.f32 %v4462_v33, %v4430_v55  ;;  %v4472_v55 = vunpack.c.l.bf16 %v10082_v22 }
 0xa67   : > { %4574 = vmatpush.bf16.msra.mxu1 %v4521_v31 }
 0xa68   : > { %v4516_v11 = vpack.c.bf16 %v4494_v45, %v4492_v24  ;;  %v4470_v24 = vunpack.c.l.bf16 %v10088_v7 }
 0xa69   : > { %v4297_v2 = vpop.f32.mrf.mxu1 }
 0xa6b   : > { %4575 = vmatpush.bf16.msra.mxu1 %v4519_v61 }
 0xa6e   : > { %v4250_v32 = vpop.f32.mrf.mxu0 }
 0xa6f   : > { %4576 = vmatpush.bf16.msra.mxu1 %v11304_v35 }
 0xa71   : > { %v4299_v34 = vpop.f32.mrf.mxu1 }
 0xa72   : > { %v4300_v16 = vadd.f32 %v4299_v34, %v4250_v32 }
 0xa73   : > { %4577 = vmatpush.bf16.msra.mxu1 %v11305_v53  ;;  %v4468_v53 = vunpack.c.l.bf16 %v10098_v23 }
 0xa74   : > { %v4434_v34 = vmul.f32 %v9945_v44, %v4300_v16 }
 0xa76   : > { %v4253_v31 = vpop.f32.mrf.mxu0 }
 0xa77   : > { %4578 = vmatpush.bf16.msra.mxu1 %v11306_v19  ;;  %v5657_v19 = vld [vmem:[%s10382_s2 + $0x8] sm:$0xff] }
 0xa79   : > { %v4302_v15 = vpop.f32.mrf.mxu1 }
 0xa7a   : > { %v4303_v36 = vadd.f32 %v4302_v15, %v4253_v31  ;;  %v4298_v31 = vadd.f32 %v4297_v2, %v4248_v25  ;;  %v4464_v25 = vunpack.c.l.bf16 %v10122_v42 }
 0xa7b   : > { %4579 = vmatpush.bf16.msra.mxu1 %v11307_v51 }
 0xa7c   : > { %v4436_v15 = vmul.f32 %v9945_v44, %v4303_v36  ;;  %v11310_v36 = vpack.c.bf16 %v10069_v21, %v10074_v62 }
 0xa7e   : > { %v4255_v6 = vpop.f32.mrf.mxu0  ;;  %v4500_v2 = vsub.f32 %v4468_v53, %v4436_v15 }
 0xa7f   : > { %4580 = vmatpush.bf16.msra.mxu1 %v11308_v43 }
 0xa81   : > { %v4304_v29 = vpop.f32.mrf.mxu1 }
 0xa82   : > { %4581 = vmatmul.bf16.vlgmr.msra.gmra.mxu1 %v5656_v58  ;;  %v4305_v37 = vadd.f32 %v4304_v29, %v4255_v6  ;;  %v4466_v6 = vunpack.c.l.bf16 %v10107_v27 }
 0xa84   : > { %v4438_v61 = vmul.f32 %v9945_v44, %v4305_v37 }
 0xa86   : > { %v4258_v38 = vpop.f32.mrf.mxu0  ;;  %v4502_v29 = vsub.f32 %v4470_v24, %v4438_v61 }
 0xa89   : > { %v4307_v0 = vpop.f32.mrf.mxu1 }
 0xa8a   : > { %v4308_v3 = vadd.f32 %v4307_v0, %v4258_v38  ;;  %v4432_v38 = vmul.f32 %v9945_v44, %v4298_v31  ;;  %v4498_v0 = vsub.f32 %v4466_v6, %v4434_v34  ;;  %v11314_v31 = vunpack.c.h.bf16 %v9951_v54 }
 0xa8c   : > { %v4440_v46 = vmul.f32 %v9945_v44, %v4308_v3  ;;  %v4520_v3 = vpack.c.bf16 %v4502_v29, %v4500_v2  ;;  %v11315_v29 = vunpack.c.h.bf16 %v9943_v49 }
 0xa8e   : > { %v4260_v4 = vpop.f32.mrf.mxu0  ;;  %v4504_v51 = vsub.f32 %v4472_v55, %v4440_v46  ;;  %v11311_v46 = vpack.c.bf16 %v10053_v26, %v10060_v52  ;;  %v5661_v52 = vld [vmem:[%s10382_s2 + $0x28] sm:$0xff]  ;;  %v5662_v26 = vld [vmem:[%s10382_s2 + $0x30] sm:$0xff] }
 0xa91   : > { %v4309_v17 = vpop.f32.mrf.mxu1 }
 0xa92   : > { %v4310_v45 = vadd.f32 %v4309_v17, %v4260_v4  ;;  %4586 = vmatmul.bf16.gmra.mxu1 %v5657_v19  ;;  %v4496_v4 = vsub.f32 %v4464_v25, %v4432_v38  ;;  %v11309_v17 = vpack.c.bf16 %v10092_v59, %v10102_v48  ;;  %v5660_v59 = vld [vmem:[%s10382_s2 + $0x20] sm:$0xff] }
 0xa94   : > { %v4442_v35 = vmul.f32 %v9945_v44, %v4310_v45  ;;  %v4518_v37 = vpack.c.bf16 %v4498_v0, %v4496_v4  ;;  %v5658_v44 = vld [vmem:[%s10382_s2 + $0x10] sm:$0xff]  ;;  %v5659_v45 = vld [vmem:[%s10382_s2 + $0x18] sm:$0xff] }
 0xa96   : > { %v4506_v32 = vsub.f32 %v4474_v9, %v4442_v35 }
 0xa98   : > { %v4522_v43 = vpack.c.bf16 %v4506_v32, %v4504_v51 }
 0xa9a   : > { %4524 = vmatpush.bf16.msra.mxu0 %v4522_v43 }
 0xa9e   : > { %4525 = vmatpush.bf16.msra.mxu0 %v4520_v3 }
 0xaa2   : > { %4526 = vmatpush.bf16.msra.mxu0 %v4518_v37  ;;  %4591 = vmatmul.bf16.gmra.mxu1 %v5658_v44 }
 0xaa6   : > { %4527 = vmatpush.bf16.msra.mxu0 %v4516_v11  ;;  %v11312_v11 = vpack.c.bf16 %v10016_v20, %v10023_v39  ;;  %v5663_v20 = vld [vmem:[%s10382_s2 + $0x38] sm:$0xff] }
 0xaaa   : > { %4528 = vmatpush.bf16.msra.mxu0 %v11309_v17 }
 0xaae   : > { %4529 = vmatpush.bf16.msra.mxu0 %v11310_v36  ;;  %v11317_v36 = vunpack.c.l.bf16 %v9948_v41 }
 0xab2   : > { %4530 = vmatpush.bf16.msra.mxu0 %v11311_v46  ;;  %4596 = vmatmul.bf16.gmra.mxu1 %v5659_v45 }
 0xab6   : > { %4531 = vmatpush.bf16.msra.mxu0 %v11312_v11 }
 0xab9   : > { %4532 = vmatmul.bf16.vlgmr.msra.gmra.mxu0 %v5656_v58  ;;  %v11313_v58 = vunpack.c.h.bf16 %v9948_v41 }
 0xac2   : > { %4601 = vmatmul.bf16.gmra.mxu1 %v5660_v59 }
 0xac9   : > { %4537 = vmatmul.bf16.gmra.mxu0 %v5657_v19 }
 0xad2   : > { %4606 = vmatmul.bf16.gmra.mxu1 %v5661_v52 }
 0xad9   : > { %4542 = vmatmul.bf16.gmra.mxu0 %v5658_v44  ;;  %v11316_v44 = vunpack.c.h.bf16 %v9927_v5 }
 0xae2   : > { %4611 = vmatmul.bf16.gmra.mxu1 %v5662_v26 }
 0xae9   : > { %4547 = vmatmul.bf16.gmra.mxu0 %v5659_v45 }
 0xaf2   : > { %4616 = vmatmul.bf16.gmra.mxu1 %v5663_v20 }
 0xaf9   : > { %4552 = vmatmul.bf16.gmra.mxu0 %v5660_v59 }
 0xaff   : > { %v4582_v39 = vpop.f32.mrf.mxu1 }
 0xb00   : > { %v4583_v21 = vadd.f32 %v4582_v39, %v9361_v40 }
 0xb02   : > { %v4623_v48 = vmax.f32 %v4583_v21, 0.0  ;;  %v11319_v21 = vunpack.c.l.bf16 %v9951_v54 }
 0xb04   : > { %v4655_v16 = vadd.f32 %v4623_v48, %v11313_v58 }
 0xb06   : > { %5095 = vst [vmem:[%s9559_s8 + $0x108] sm:$0xff] %v4655_v16 }
 0xb07   : > { %v4584_v62 = vpop.f32.mrf.mxu1 }
 0xb08   : > { %v4585_v61 = vadd.f32 %v4584_v62, %v9413_v12 }
 0xb09   : > { %4557 = vmatmul.bf16.gmra.mxu0 %v5661_v52 }
 0xb0a   : > { %v4625_v19 = vmax.f32 %v4585_v61, 0.0 }
 0xb0c   : > { %v4657_v15 = vadd.f32 %v4625_v19, %v11314_v31  ;;  %v11321_v31 = vunpack.c.l.bf16 %v9943_v49  ;;  %v11325_v49 = vld [vmem:[#allocation114_spill] sm:$0xff] }
 0xb0e   : > { %5097 = vst [vmem:[%s9559_s8 + $0x118] sm:$0xff] %v4657_v15 }
 0xb0f   : > { %v4587_v35 = vpop.f32.mrf.mxu1 }
 0xb10   : > { %v4588_v51 = vadd.f32 %v4587_v35, %v9133_v30  ;;  %v11320_v35 = vunpack.c.h.bf16 %v9936_v57 }
 0xb12   : > { %v4627_v34 = vmax.f32 %v4588_v51, 0.0 }
 0xb14   : > { %v4659_v43 = vadd.f32 %v4627_v34, %v11315_v29 }
 0xb16   : > { %5099 = vst [vmem:[%s9559_s8 + $0x128] sm:$0xff] %v4659_v43  ;;  %v11322_v43 = vld [vmem:[#allocation125_spill] sm:$0xff] }
 0xb17   : > { %v4589_v32 = vpop.f32.mrf.mxu1 }
 0xb18   : > { %v4590_v38 = vadd.f32 %v4589_v32, %v9556_v14 }
 0xb19   : > { %4562 = vmatmul.bf16.gmra.mxu0 %v5662_v26 }
 0xb1a   : > { %v4629_v4 = vmax.f32 %v4590_v38, 0.0  ;;  %v11323_v38 = vunpack.c.h.bf16 %v11322_v43 }
 0xb1c   : > { %v4661_v17 = vadd.f32 %v4629_v4, %v11316_v44 }
 0xb1e   : > { %5101 = vst [vmem:[%s9559_s8 + $0x138] sm:$0xff] %v4661_v17 }
 0xb1f   : > { %v4592_v0 = vpop.f32.mrf.mxu1 }
 0xb20   : > { %v4593_v45 = vadd.f32 %v4592_v0, %v9260_v18  ;;  %v11324_v0 = vunpack.c.l.bf16 %v9927_v5  ;;  %v11329_v5 = vld [vmem:[#allocation95_spill] sm:$0xff] }
 0xb27   : > { %v4594_v59 = vpop.f32.mrf.mxu1 }
 0xb28   : > { %v4595_v41 = vadd.f32 %v4594_v59, %v9653_v56  ;;  %v11328_v59 = vunpack.c.l.bf16 %v9931_v10 }
 0xb29   : > { %4567 = vmatmul.bf16.gmra.mxu0 %v5663_v20  ;;  %v11318_v20 = vunpack.c.h.bf16 %v9931_v10  ;;  %v11332_v10 = vld [vmem:[#allocation73_spill] sm:$0xff] }
 0xb2f   : > { %v4597_v58 = vpop.f32.mrf.mxu1 }
 0xb30   : > { %v4598_v54 = vadd.f32 %v4597_v58, %v9415_v8 }
 0xb36   : > { %v4533_v2 = vpop.f32.mrf.mxu0 }
 0xb37   : > { %v4534_v3 = vadd.f32 %v4533_v2, %v9361_v40  ;;  %v4631_v40 = vmax.f32 %v4593_v45, 0.0  ;;  %v4599_v32 = vpop.f32.mrf.mxu1 }
 0xb38   : > { %v4600_v4 = vadd.f32 %v4599_v32, %v11325_v49 }
 0xb39   : > { %v4622_v37 = vmax.f32 %v4534_v3, 0.0  ;;  %v4663_v39 = vadd.f32 %v4631_v40, %v11318_v20 }
 0xb3b   : > { %v4654_v46 = vadd.f32 %v4622_v37, %v11317_v36  ;;  %5103 = vst [vmem:[%s9559_s8 + $0x148] sm:$0xff] %v4663_v39 }
 0xb3d   : > { %5094 = vst [vmem:[%s9559_s8 + $0x100] sm:$0xff] %v4654_v46  ;;  %v11326_v46 = vld [vmem:[#allocation122_spill] sm:$0xff] }
 0xb3e   : > { %v4535_v11 = vpop.f32.mrf.mxu0  ;;  %v11327_v45 = vunpack.c.h.bf16 %v11326_v46 }
 0xb3f   : > { %v4536_v52 = vadd.f32 %v4535_v11, %v9413_v12  ;;  %v4633_v12 = vmax.f32 %v4595_v41, 0.0  ;;  %v4602_v44 = vpop.f32.mrf.mxu1 }
 0xb40   : > { %v4603_v40 = vadd.f32 %v4602_v44, %v11329_v5 }
 0xb41   : > { %v4624_v26 = vmax.f32 %v4536_v52, 0.0  ;;  %v4665_v19 = vadd.f32 %v4633_v12, %v11320_v35 }
 0xb43   : > { %v4656_v62 = vadd.f32 %v4624_v26, %v11319_v21  ;;  %5105 = vst [vmem:[%s9559_s8 + $0x158] sm:$0xff] %v4665_v19 }
 0xb45   : > { %5096 = vst [vmem:[%s9559_s8 + $0x110] sm:$0xff] %v4656_v62  ;;  %v11330_v62 = vunpack.c.h.bf16 %v10031_v13  ;;  %v11340_v13 = vld [vmem:[#allocation24_spill] sm:$0xff] }
 0xb46   : > { %v4538_v48 = vpop.f32.mrf.mxu0 }
 0xb47   : > { %v4539_v16 = vadd.f32 %v4538_v48, %v9133_v30  ;;  %v4635_v30 = vmax.f32 %v4598_v54, 0.0  ;;  %v4604_v20 = vpop.f32.mrf.mxu1  ;;  %v11331_v48 = vunpack.c.l.bf16 %v9936_v57  ;;  %v11334_v54 = vunpack.c.l.bf16 %v11322_v43  ;;  %v11335_v57 = vld [vmem:[#allocation70_spill] sm:$0xff]  ;;  %v11337_v43 = vld [vmem:[#allocation113_spill] sm:$0xff] }
 0xb49   : > { %v4626_v61 = vmax.f32 %v4539_v16, 0.0  ;;  %v4667_v2 = vadd.f32 %v4635_v30, %v11323_v38  ;;  %v4605_v16 = vadd.f32 %v4604_v20, %v11332_v10 }
 0xb4b   : > { %v4658_v15 = vadd.f32 %v4626_v61, %v11321_v31  ;;  %5107 = vst [vmem:[%s9559_s8 + $0x168] sm:$0xff] %v4667_v2  ;;  %v11333_v31 = vunpack.c.h.bf16 %v10028_v47  ;;  %v11341_v47 = vld [vmem:[#allocation126_spill] sm:$0xff] }
 0xb4d   : > { %5098 = vst [vmem:[%s9559_s8 + $0x120] sm:$0xff] %v4658_v15 }
 0xb4e   : > { %v4540_v51 = vpop.f32.mrf.mxu0 }
 0xb4f   : > { %v4541_v34 = vadd.f32 %v4540_v51, %v9556_v14  ;;  %v4637_v14 = vmax.f32 %v4600_v4, 0.0  ;;  %v4607_v61 = vpop.f32.mrf.mxu1 }
 0xb50   : > { %v4608_v32 = vadd.f32 %v4607_v61, %v11335_v57 }
 0xb51   : > { %v4628_v29 = vmax.f32 %v4541_v34, 0.0  ;;  %v4669_v11 = vadd.f32 %v4637_v14, %v11327_v45 }
 0xb53   : > { %v4660_v3 = vadd.f32 %v4628_v29, %v11324_v0  ;;  %5109 = vst [vmem:[%s9559_s8 + $0x178] sm:$0xff] %v4669_v11  ;;  %v11336_v0 = vunpack.c.l.bf16 %v11326_v46  ;;  %v11338_v46 = vld [vmem:[#allocation75_spill] sm:$0xff] }
 0xb55   : > { %5100 = vst [vmem:[%s9559_s8 + $0x130] sm:$0xff] %v4660_v3 }
 0xb56   : > { %v4543_v37 = vpop.f32.mrf.mxu0 }
 0xb57   : > { %v4544_v17 = vadd.f32 %v4543_v37, %v9260_v18  ;;  %v4639_v18 = vmax.f32 %v4603_v40, 0.0  ;;  %v4609_v30 = vpop.f32.mrf.mxu1 }
 0xb58   : > { %v4610_v4 = vadd.f32 %v4609_v30, %v11337_v43 }
 0xb59   : > { %v4630_v36 = vmax.f32 %v4544_v17, 0.0  ;;  %v4671_v41 = vadd.f32 %v4639_v18, %v11330_v62 }
 0xb5b   : > { %v4662_v52 = vadd.f32 %v4630_v36, %v11328_v59  ;;  %5111 = vst [vmem:[%s9559_s8 + $0x188] sm:$0xff] %v4671_v41 }
 0xb5d   : > { %5102 = vst [vmem:[%s9559_s8 + $0x140] sm:$0xff] %v4662_v52 }
 0xb5e   : > { %v4545_v26 = vpop.f32.mrf.mxu0 }
 0xb5f   : > { %v4546_v39 = vadd.f32 %v4545_v26, %v9653_v56  ;;  %v4641_v56 = vmax.f32 %v4605_v16, 0.0  ;;  %v4612_v44 = vpop.f32.mrf.mxu1  ;;  %v11339_v26 = vunpack.c.h.bf16 %v10098_v23 }
 0xb60   : > { %v4613_v45 = vadd.f32 %v4612_v44, %v11338_v46 }
 0xb61   : > { %v4632_v21 = vmax.f32 %v4546_v39, 0.0  ;;  %v4673_v15 = vadd.f32 %v4641_v56, %v11333_v31 }
 0xb63   : > { %v4664_v58 = vadd.f32 %v4632_v21, %v11331_v48  ;;  %5113 = vst [vmem:[%s9559_s8 + $0x198] sm:$0xff] %v4673_v15  ;;  %v11344_v15 = vunpack.c.h.bf16 %v10085_v28 }
 0xb65   : > { %5104 = vst [vmem:[%s9559_s8 + $0x150] sm:$0xff] %v4664_v58 }
 0xb66   : > { %v4548_v12 = vpop.f32.mrf.mxu0 }
 0xb67   : > { %v4549_v35 = vadd.f32 %v4548_v12, %v9415_v8  ;;  %v4643_v8 = vmax.f32 %v4608_v32, 0.0  ;;  %v4614_v59 = vpop.f32.mrf.mxu1 }
 0xb69   : > { %v4634_v19 = vmax.f32 %v4549_v35, 0.0  ;;  %v4675_v2 = vadd.f32 %v4643_v8, %v4465_v60  ;;  %v11342_v35 = vld [vmem:[#allocation88_spill] sm:$0xff] }
 0xb6b   : > { %v4666_v51 = vadd.f32 %v4634_v19, %v11334_v54  ;;  %5115 = vst [vmem:[%s9559_s8 + $0x1a8] sm:$0xff] %v4675_v2 }
 0xb6d   : > { %5106 = vst [vmem:[%s9559_s8 + $0x160] sm:$0xff] %v4666_v51 }
 0xb6e   : > { %v4550_v34 = vpop.f32.mrf.mxu0 }
 0xb6f   : > { %v4551_v29 = vadd.f32 %v4550_v34, %v11325_v49  ;;  %v4645_v49 = vmax.f32 %v4610_v4, 0.0  ;;  %v4617_v18 = vpop.f32.mrf.mxu1 }
 0xb71   : > { %v4636_v38 = vmax.f32 %v4551_v29, 0.0  ;;  %v4677_v36 = vadd.f32 %v4645_v49, %v4467_v1 }
 0xb73   : > { %v4668_v3 = vadd.f32 %v4636_v38, %v11336_v0  ;;  %5117 = vst [vmem:[%s9559_s8 + $0x1b8] sm:$0xff] %v4677_v36 }
 0xb75   : > { %5108 = vst [vmem:[%s9559_s8 + $0x170] sm:$0xff] %v4668_v3 }
 0xb76   : > { %v4553_v37 = vpop.f32.mrf.mxu0 }
 0xb77   : > { %v4554_v17 = vadd.f32 %v4553_v37, %v11329_v5  ;;  %v4647_v5 = vmax.f32 %v4613_v45, 0.0  ;;  %v4619_v16 = vpop.f32.mrf.mxu1 }
 0xb78   : > { %v4620_v56 = vadd.f32 %v4619_v16, %v11342_v35 }
 0xb79   : > { %v4638_v14 = vmax.f32 %v4554_v17, 0.0  ;;  %v4679_v20 = vadd.f32 %v4647_v5, %v11339_v26 }
 0xb7a   : > { %v4653_v42 = vmax.f32 %v4620_v56, 0.0 }
 0xb7b   : > { %v4670_v60 = vadd.f32 %v4638_v14, %v4460_v50  ;;  %5119 = vst [vmem:[%s9559_s8 + $0x1c8] sm:$0xff] %v4679_v20  ;;  %v4615_v50 = vadd.f32 %v4614_v59, %v11340_v13 }
 0xb7c   : > { %v4685_v54 = vadd.f32 %v4653_v42, %v11344_v15 }
 0xb7d   : > { %5110 = vst [vmem:[%s9559_s8 + $0x180] sm:$0xff] %v4670_v60  ;;  %v4649_v62 = vmax.f32 %v4615_v50, 0.0 }
 0xb7e   : > { %v4555_v11 = vpop.f32.mrf.mxu0  ;;  %5125 = vst [vmem:[%s9559_s8 + $0x1f8] sm:$0xff] %v4685_v54 }
 0xb7f   : > { %v4556_v52 = vadd.f32 %v4555_v11, %v11332_v10  ;;  %v4681_v48 = vadd.f32 %v4649_v62, %v4471_v63  ;;  %v11343_v63 = vunpack.c.h.bf16 %v10082_v22 }
 0xb81   : > { %v4640_v40 = vmax.f32 %v4556_v52, 0.0  ;;  %5121 = vst [vmem:[%s9559_s8 + $0x1d8] sm:$0xff] %v4681_v48 }
 0xb83   : > { %v4672_v1 = vadd.f32 %v4640_v40, %v4462_v33  ;;  %v4618_v33 = vadd.f32 %v4617_v18, %v11341_v47 }
 0xb85   : > { %5112 = vst [vmem:[%s9559_s8 + $0x190] sm:$0xff] %v4672_v1  ;;  %v4651_v61 = vmax.f32 %v4618_v33, 0.0 }
 0xb86   : > { %v4558_v39 = vpop.f32.mrf.mxu0 }
 0xb87   : > { %v4559_v21 = vadd.f32 %v4558_v39, %v11335_v57  ;;  %v4683_v31 = vadd.f32 %v4651_v61, %v11343_v63 }
 0xb89   : > { %v4642_v41 = vmax.f32 %v4559_v21, 0.0  ;;  %5123 = vst [vmem:[%s9559_s8 + $0x1e8] sm:$0xff] %v4683_v31 }
 0xb8b   : > { %v4674_v58 = vadd.f32 %v4642_v41, %v4464_v25 }
 0xb8d   : > { %5114 = vst [vmem:[%s9559_s8 + $0x1a0] sm:$0xff] %v4674_v58 }
 0xb8e   : > { %v4560_v10 = vpop.f32.mrf.mxu0 }
 0xb8f   : > { %v4561_v12 = vadd.f32 %v4560_v10, %v11337_v43 }
 0xb91   : > { %v4644_v19 = vmax.f32 %v4561_v12, 0.0 }
 0xb93   : > { %v4676_v25 = vadd.f32 %v4644_v19, %v4466_v6 }
 0xb95   : > { %5116 = vst [vmem:[%s9559_s8 + $0x1b0] sm:$0xff] %v4676_v25 }
 0xb96   : > { %v4563_v51 = vpop.f32.mrf.mxu0 }
 0xb97   : > { %v4564_v57 = vadd.f32 %v4563_v51, %v11338_v46 }
 0xb99   : > { %v4646_v32 = vmax.f32 %v4564_v57, 0.0 }
 0xb9b   : > { %v4678_v34 = vadd.f32 %v4646_v32, %v4468_v53 }
 0xb9d   : > { %5118 = vst [vmem:[%s9559_s8 + $0x1c0] sm:$0xff] %v4678_v34 }
 0xb9e   : > { %v4565_v30 = vpop.f32.mrf.mxu0 }
 0xb9f   : > { %v4566_v27 = vadd.f32 %v4565_v30, %v11340_v13 }
 0xba1   : > { %v4648_v6 = vmax.f32 %v4566_v27, 0.0 }
 0xba3   : > { %v4680_v29 = vadd.f32 %v4648_v6, %v4470_v24 }
 0xba5   : > { %5120 = vst [vmem:[%s9559_s8 + $0x1d0] sm:$0xff] %v4680_v29 }
 0xba6   : > { %v4568_v8 = vpop.f32.mrf.mxu0 }
 0xba7   : > { %v4569_v38 = vadd.f32 %v4568_v8, %v11341_v47 }
 0xba9   : > { %v4650_v2 = vmax.f32 %v4569_v38, 0.0 }
 0xbab   : > { %v4682_v23 = vadd.f32 %v4650_v2, %v4472_v55 }
 0xbad   : > { %5122 = vst [vmem:[%s9559_s8 + $0x1e0] sm:$0xff] %v4682_v23 }
 0xbae   : > { %v4570_v53 = vpop.f32.mrf.mxu0 }
 0xbaf   : > { %v4571_v7 = vadd.f32 %v4570_v53, %v11342_v35 }
 0xbb1   : > { %v4652_v24 = vmax.f32 %v4571_v7, 0.0 }
 0xbb3   : > { %v4684_v0 = vadd.f32 %v4652_v24, %v4474_v9 }
 0xbb5   : > { %5124 = vst [vmem:[%s9559_s8 + $0x1f0] sm:$0xff] %v4684_v0 }
 0xbb6   : > { %5691 = shalt.err (!%p5688_p3)
}
 0xbb7   : > { %s5731_s6 = smov 256   ;;  %s5732_s8 = smov 16  }
 0xbb8   : > { %5187 = dma.vmem_to_hbm [thread:$0]  (%p5796_p5), %s4734_s13, 8192, %s4736_s14, %s4720_s19, %s5731_s6, %s5731_s6, %s5732_s8  }
 0xbb9 PF: > { %p5193_p4 = scmp.ge.s32.totalorder %s5726_s18, 2  ;;  %s4750_s7 = sand.u32 1, %s5714_s15  }
 0xbba   : > { %s4751_s5 = scalar_lea.sflag [#allocation3], %s4750_s7 }
 0xbbb   : > { %p5190_p7 = pnand %p5193_p4, %p5800_p6 }
 0xbbd   : > { %p5191_p8 = pneg %p5190_p7 }
 0xbbf   : > { %5709 = dma.done.wait (%p5191_p8), %s4751_s5, 8192  }
 0xbc0   : > { %5711 = vsyncadd (%p5191_p8), %s4751_s5, 4294959104  ;;  %p14_p9 = scmp.ge.s32.totalorder %s5783_s21, 4   ;;  %s11345_s15 = smov %s5718_s16 }
 0xbc1   : > { %s11346_s16 = smov %s5722_s17  ;;  %s11347_s17 = smov %s5794_s24 }
 0xbc2   : > { %s11348_s18 = smov %s5783_s21  ;;  %16 = sbr.rel (!%p14_p9) target bundleno = 3 (0x3), region = 73 }
 0xbc7   :  { %4757 = vsyncpa [#allocation3], 1 }
 0xbc8   :  { %4759 = vsyncpa [#allocation3 + $0x1], 1 }

</bundles_post_ra>
